<compile_context>
chip_gen: v7x
topology: tpu7x:2x2x1
jax: 0.10.0
libtpu: 0.0.40
codegen_flags: <defaults>
</compile_context>

<pallas_src>
import functools

import jax
import jax.numpy as jnp
from jax.experimental import pallas as pl
from jax.experimental.pallas import tpu as pltpu


_VMEM_LIMIT_BYTES = 32 * 1024 * 1024  # safe headroom on v5e / v6e / v7x


def _compiler_params():
    return pltpu.CompilerParams(
        dimension_semantics=("parallel",),
        vmem_limit_bytes=_VMEM_LIMIT_BYTES,
    )


def _round_up(v, m):
    return ((v + m - 1) // m) * m


def _pick_row_tile(n, target=256):
    """Largest row tile <= target that is a multiple of 8 and divides n (else n itself)."""
    if n <= target:
        return n
    t = (target // 8) * 8
    while t >= 8:
        if n % t == 0:
            return t
        t -= 8
    return n


# ---------------------------------------------------------------------------
# Pallas kernels
# ---------------------------------------------------------------------------

def _knn_kernel(xr_ref, xf_ref, sqc_ref, idx_ref, *, k, n):
    """Fused kNN for one row tile.

    Computes a [TM, N] squared-distance stripe (f32, norms/subtract in f32 to avoid
    cancellation issues), masks self-loops with an iota comparison, and selects the
    k nearest columns by iterative min + masking.  The full [N, N] distance matrix
    never goes to HBM; only [TM, k] int32 indices are written.
    """
    tm = xr_ref.shape[0]
    row0 = pl.program_id(0) * tm

    xr = xr_ref[...].astype(jnp.float32)                      # [TM, C]
    xf = xf_ref[...].astype(jnp.float32)                      # [N, C] (VMEM-resident)
    sq_r = jnp.sum(xr * xr, axis=1, keepdims=True)            # [TM, 1]
    gram = jax.lax.dot_general(                               # [TM, N]
        xr, xf, (((1,), (1,)), ((), ())), preferred_element_type=jnp.float32)
    d = sq_r + sqc_ref[...] - 2.0 * gram                      # [TM, N]

    big = jnp.float32(1e30)
    row_ids = row0 + jax.lax.broadcasted_iota(jnp.int32, (tm, n), 0)
    col_ids = jax.lax.broadcasted_iota(jnp.int32, (tm, n), 1)
    col_f = col_ids.astype(jnp.float32)
    d = jnp.where(row_ids == col_ids, big, d)                 # fused self-loop mask

    picks = []
    for _ in range(k):                                        # k is small and static
        mn = jnp.min(d, axis=1, keepdims=True)                # [TM, 1]
        sel = jnp.min(jnp.where(d <= mn, col_f, jnp.float32(n)),
                      axis=1, keepdims=True)                  # lowest index among ties
        picks.append(sel)
        d = jnp.where(col_f == sel, big, d)

    lane = jax.lax.broadcasted_iota(jnp.int32, (tm, k), 1)
    out = jnp.zeros((tm, k), jnp.float32)
    for s in range(k):
        out = jnp.where(lane == s, picks[s], out)
    idx_ref[...] = out.astype(jnp.int32)


def _edge_project_kernel(x_ref, ws_ref, wq_ref, b_ref, s_ref, q_ref):
    """Split-weight edge-conv projections (K x fewer MXU FLOPs than [N*K,2C]@[2C,F]):

        [x_i || x_j - x_i] @ W + b == (x_i @ (W_i - W_j) + b) + x_j @ W_j

    s = x @ (W_i - W_j) + b   ("self" term),  q = x @ W_j   (neighbor term).
    bf16 MXU matmuls, f32 accumulation / bias add.
    """
    x = x_ref[...].astype(jnp.bfloat16)
    s_ref[...] = jnp.dot(x, ws_ref[...], preferred_element_type=jnp.float32) + b_ref[...]
    q_ref[...] = jnp.dot(x, wq_ref[...], preferred_element_type=jnp.float32)


def _edge_combine_kernel(s_ref, qn_ref, o_ref):
    """out_i = max_k relu(s_i + q_{nbr(i,k)})  :  [TM,F], [TM,K,F] -> [TM,F]."""
    s = s_ref[...]                                            # [TM, F] f32
    qn = qn_ref[...]                                          # [TM, K, F] f32
    e = jnp.maximum(s[:, None, :] + qn, 0.0)
    o_ref[...] = jnp.max(e, axis=1)


def _head_kernel(x_ref, w1_ref, b1_ref, w2_ref, b2_ref, w3_ref, b3_ref,
                 w4_ref, b4_ref, o_ref):
    """lin1 -> mlp(1024 -> 256 -> 128 -> padded classes) -> log_softmax.

    Dropout = identity (eval); BatchNorm = identity (fresh eval stats).
    bf16 MXU matmuls with f32 accumulation; elementwise / softmax math in f32.
    Class lanes are padded to 128 (lane-dense store); padded lanes carry a -1e30
    bias so exp() underflows to 0 and the log_softmax over real classes is exact.
    """
    bf16 = jnp.bfloat16
    x = x_ref[...].astype(bf16)
    h = jnp.maximum(
        jnp.dot(x, w1_ref[...], preferred_element_type=jnp.float32) + b1_ref[...], 0.0)
    h = jnp.maximum(
        jnp.dot(h.astype(bf16), w2_ref[...], preferred_element_type=jnp.float32) + b2_ref[...], 0.0)
    h = jnp.maximum(
        jnp.dot(h.astype(bf16), w3_ref[...], preferred_element_type=jnp.float32) + b3_ref[...], 0.0)
    logits = jnp.dot(h.astype(bf16), w4_ref[...],
                     preferred_element_type=jnp.float32) + b4_ref[...]
    m = jnp.max(logits, axis=-1, keepdims=True)
    z = logits - m
    lse = jnp.log(jnp.sum(jnp.exp(z), axis=-1, keepdims=True))
    o_ref[...] = z - lse


# ---------------------------------------------------------------------------
# pallas_call wrappers (row-tiled grids; weights stay VMEM-resident)
# ---------------------------------------------------------------------------

def pallas_knn(x, k, row_tile=256):
    n, c = x.shape
    tm = _pick_row_tile(n, row_tile)
    sq_cols = jnp.sum(x.astype(jnp.float32) ** 2, axis=1, keepdims=True).T  # [1, N]
    kernel = functools.partial(_knn_kernel, k=k, n=n)
    return pl.pallas_call(
        kernel,
        out_shape=jax.ShapeDtypeStruct((n, k), jnp.int32),
        grid=(n // tm,),
        in_specs=[
            pl.BlockSpec((tm, c), lambda i: (i, 0)),    # query row tile
            pl.BlockSpec((n, c), lambda i: (0, 0)),     # all points (resident)
            pl.BlockSpec((1, n), lambda i: (0, 0)),     # |x_j|^2 row vector (resident)
        ],
        out_specs=pl.BlockSpec((tm, k), lambda i: (i, 0)),
        compiler_params=_compiler_params(),
    )(x, x, sq_cols)


def pallas_edge_project(x, w_self, w_nbr, b, row_tile=256):
    n, c = x.shape
    f = w_self.shape[1]
    tm = _pick_row_tile(n, row_tile)
    return pl.pallas_call(
        _edge_project_kernel,
        out_shape=(jax.ShapeDtypeStruct((n, f), jnp.float32),
                   jax.ShapeDtypeStruct((n, f), jnp.float32)),
        grid=(n // tm,),
        in_specs=[
            pl.BlockSpec((tm, c), lambda i: (i, 0)),
            pl.BlockSpec((c, f), lambda i: (0, 0)),     # weights resident across grid
            pl.BlockSpec((c, f), lambda i: (0, 0)),
            pl.BlockSpec((1, f), lambda i: (0, 0)),
        ],
        out_specs=(pl.BlockSpec((tm, f), lambda i: (i, 0)),
                   pl.BlockSpec((tm, f), lambda i: (i, 0))),
        compiler_params=_compiler_params(),
    )(x, w_self, w_nbr, b)


def pallas_edge_combine(s, q_nbr, row_tile=256):
    n, f = s.shape
    k = q_nbr.shape[1]
    tm = _pick_row_tile(n, row_tile)
    return pl.pallas_call(
        _edge_combine_kernel,
        out_shape=jax.ShapeDtypeStruct((n, f), jnp.float32),
        grid=(n // tm,),
        in_specs=[
            pl.BlockSpec((tm, f), lambda i: (i, 0)),
            pl.BlockSpec((tm, k, f), lambda i: (i, 0, 0)),
        ],
        out_specs=pl.BlockSpec((tm, f), lambda i: (i, 0)),
        compiler_params=_compiler_params(),
    )(s, q_nbr)


def pallas_head(x, params, row_tile=256):
    w1, b1 = params["lin1"]
    w2, b2 = params["mlp1"]
    w3, b3 = params["mlp2"]
    w4, b4 = params["mlp3"]
    n, cin = x.shape
    num_classes = w4.shape[1]
    ncp = max(128, _round_up(num_classes, 128))       # lane-dense logits
    tm = _pick_row_tile(n, row_tile)

    bf16 = jnp.bfloat16
    w4p = jnp.zeros((w4.shape[0], ncp), jnp.float32).at[:, :num_classes].set(w4)
    b4p = jnp.full((1, ncp), -1e30, jnp.float32).at[:, :num_classes].set(b4)

    def _res(shape):                                  # resident (constant index_map)
        return pl.BlockSpec(shape, lambda i: (0,) * len(shape))

    out = pl.pallas_call(
        _head_kernel,
        out_shape=jax.ShapeDtypeStruct((n, ncp), jnp.float32),
        grid=(n // tm,),
        in_specs=[
            pl.BlockSpec((tm, cin), lambda i: (i, 0)),
            _res(w1.shape), _res(b1.shape),
            _res(w2.shape), _res(b2.shape),
            _res(w3.shape), _res(b3.shape),
            _res((w4.shape[0], ncp)), _res((1, ncp)),
        ],
        out_specs=pl.BlockSpec((tm, ncp), lambda i: (i, 0)),
        compiler_params=_compiler_params(),
    )(x,
      w1.astype(bf16), b1, w2.astype(bf16), b2,
      w3.astype(bf16), b3, w4p.astype(bf16), b4p)
    return out[:, :num_classes]


# ---------------------------------------------------------------------------
# HybridDGNN forward
# ---------------------------------------------------------------------------

def _split_edge_weights(w):
    c = w.shape[0] // 2
    w_i, w_j = w[:c], w[c:]
    return (w_i - w_j).astype(jnp.bfloat16), w_j.astype(jnp.bfloat16)


def delirium_layer(x, k, w, b):
    # TODO(synk): exact Delirium definition not in the prompt; approximated as a
    # DGCNN-style dynamic edge conv (kNN + max_k relu([x_i || x_j - x_i] @ W + b)).
    w_self, w_nbr = _split_edge_weights(w)
    idx = pallas_knn(x, k)                                    # [N, k] int32
    s, q = pallas_edge_project(x, w_self, w_nbr, b)           # [N, F] each
    # TODO(synk): neighbor gather stays in XLA; an in-kernel (DMA / scalar-prefetch)
    # gather of q would avoid materializing the [N, k, F] tensor in HBM.
    q_nbr = jnp.take(q, idx, axis=0)                          # [N, k, F]
    return pallas_edge_combine(s, q_nbr)                      # [N, F]


def hybrid_dgnn_forward(x, params, k):
    # batch=None (single graph). TODO(synk): per-graph `batch` segmentation not implemented.
    x1 = delirium_layer(x, k, *params["conv1"])
    x2 = delirium_layer(x1, k, *params["conv2"])
    x3 = delirium_layer(x2, k, *params["conv3"])
    xc = jnp.concatenate([x1, x2, x3], axis=1)                # [N, 3*out]
    return pallas_head(xc, params)                            # [N, num_classes]


# ---------------------------------------------------------------------------
# Deterministic parameter init (PyTorch nn.Linear-style uniform)
# ---------------------------------------------------------------------------

def _init_linear(key, fan_in, fan_out):
    kw, kb = jax.random.split(key)
    bound = 1.0 / (fan_in ** 0.5)
    w = jax.random.uniform(kw, (fan_in, fan_out), jnp.float32, -bound, bound)
    b = jax.random.uniform(kb, (1, fan_out), jnp.float32, -bound, bound)
    return w, b


def init_params(key, in_channels, out_channels, num_classes):
    ks = jax.random.split(key, 7)
    return {
        "conv1": _init_linear(ks[0], 2 * in_channels, out_channels),
        "conv2": _init_linear(ks[1], 2 * out_channels, out_channels),
        "conv3": _init_linear(ks[2], 2 * out_channels, out_channels),
        "lin1":  _init_linear(ks[3], 3 * out_channels, 1024),
        "mlp1":  _init_linear(ks[4], 1024, 256),
        "mlp2":  _init_linear(ks[5], 256, 128),
        "mlp3":  _init_linear(ks[6], 128, num_classes),
    }


# ---------------------------------------------------------------------------

if __name__ == "__main__":
    N, K, C_IN, C_OUT, NUM_CLASSES = 64, 8, 3, 64, 5

    key = jax.random.PRNGKey(0)
    kx, kp = jax.random.split(key)
    x = jax.random.normal(kx, (N, C_IN), jnp.float32)         # [N, in_channels]
    params = init_params(kp, C_IN, C_OUT, NUM_CLASSES)

    fwd = jax.jit(hybrid_dgnn_forward, static_argnames=("k",))
    out = jax.block_until_ready(fwd(x, params, k=K))

    assert out.shape == (N, NUM_CLASSES), out.shape
    assert bool(jnp.all(jnp.isfinite(out)))
    # rows of log_softmax must (approximately) exp-sum to 1
    assert bool(jnp.allclose(jnp.sum(jnp.exp(out), axis=-1), 1.0, atol=1e-4))
    print("KERNEL_OK")
</pallas_src>

<mosaic_0001>
module attributes {stable_mosaic.version = 11 : i64} {
  func.func @_edge_project_kernel(%arg0: i32, %arg1: memref<64x3xf32, #tpu.memory_space<vmem>>, %arg2: memref<3x64xbf16, #tpu.memory_space<vmem>>, %arg3: memref<3x64xbf16, #tpu.memory_space<vmem>>, %arg4: memref<1x64xf32, #tpu.memory_space<vmem>>, %arg5: memref<64x64xf32, #tpu.memory_space<vmem>>, %arg6: memref<64x64xf32, #tpu.memory_space<vmem>>) attributes {dimension_semantics = [#tpu.dimension_semantics<parallel>], iteration_bounds = array<i64: 1>, scalar_prefetch = 0 : i64, scratch_operands = 0 : i64, tpu.core_type = #tpu.core_type<tc>, window_params = [{transform_indices = @transform_0, window_bounds = array<i64: 64, 3>}, {pipeline_mode = #tpu.pipeline_mode<synchronous>, transform_indices = @transform_1, window_bounds = array<i64: 3, 64>}, {pipeline_mode = #tpu.pipeline_mode<synchronous>, transform_indices = @transform_2, window_bounds = array<i64: 3, 64>}, {pipeline_mode = #tpu.pipeline_mode<synchronous>, transform_indices = @transform_3, window_bounds = array<i64: 1, 64>}, {transform_indices = @transform_4, window_bounds = array<i64: 64, 64>}, {transform_indices = @transform_5, window_bounds = array<i64: 64, 64>}]} {
    %c0 = arith.constant 0 : index
    %c0_0 = arith.constant 0 : index
    %0 = vector.load %arg1[%c0, %c0_0] : memref<64x3xf32, #tpu.memory_space<vmem>>, vector<64x3xf32>
    %1 = arith.truncf %0 : vector<64x3xf32> to vector<64x3xbf16>
    %c0_1 = arith.constant 0 : index
    %c0_2 = arith.constant 0 : index
    %2 = vector.load %arg2[%c0_1, %c0_2] : memref<3x64xbf16, #tpu.memory_space<vmem>>, vector<3x64xbf16>
    %cst = arith.constant dense<0.000000e+00> : vector<64x64xf32>
    %3 = tpu.matmul %1, %2, %cst {dimension_numbers = #tpu.dot_dimension_numbers<[1], [0], [0], [1], [0, 0, 1, 1], [], []>} : vector<64x3xbf16>, vector<3x64xbf16>, vector<64x64xf32> -> vector<64x64xf32>
    %c0_3 = arith.constant 0 : index
    %c0_4 = arith.constant 0 : index
    %4 = vector.load %arg4[%c0_3, %c0_4] : memref<1x64xf32, #tpu.memory_space<vmem>>, vector<1x64xf32>
    %5 = vector.broadcast %4 : vector<1x64xf32> to vector<64x64xf32>
    %6 = arith.addf %3, %5 : vector<64x64xf32>
    %c0_5 = arith.constant 0 : index
    %c0_6 = arith.constant 0 : index
    %7 = vector.load %arg5[%c0_5, %c0_6] : memref<64x64xf32, #tpu.memory_space<vmem>>, vector<64x64xf32>
    tpu.vector_store %arg5[%c0_5, %c0_6], %6 {strides = array<i32>} : memref<64x64xf32, #tpu.memory_space<vmem>>, vector<64x64xf32>,
    %c0_7 = arith.constant 0 : index
    %c0_8 = arith.constant 0 : index
    %8 = vector.load %arg3[%c0_7, %c0_8] : memref<3x64xbf16, #tpu.memory_space<vmem>>, vector<3x64xbf16>
    %cst_9 = arith.constant dense<0.000000e+00> : vector<64x64xf32>
    %9 = tpu.matmul %1, %8, %cst_9 {dimension_numbers = #tpu.dot_dimension_numbers<[1], [0], [0], [1], [0, 0, 1, 1], [], []>} : vector<64x3xbf16>, vector<3x64xbf16>, vector<64x64xf32> -> vector<64x64xf32>
    %c0_10 = arith.constant 0 : index
    %c0_11 = arith.constant 0 : index
    %10 = vector.load %arg6[%c0_10, %c0_11] : memref<64x64xf32, #tpu.memory_space<vmem>>, vector<64x64xf32>
    tpu.vector_store %arg6[%c0_10, %c0_11], %9 {strides = array<i32>} : memref<64x64xf32, #tpu.memory_space<vmem>>, vector<64x64xf32>,
    return
  }
  func.func @transform_0(%arg0: i32) -> (i32, i32) {
    %c0_i32 = arith.constant 0 : i32
    %c0_i32_0 = arith.constant 0 : i32
    return %arg0, %c0_i32 : i32, i32
  }
  func.func @transform_1(%arg0: i32) -> (i32, i32) {
    %c0_i32 = arith.constant 0 : i32
    %c0_i32_0 = arith.constant 0 : i32
    %c0_i32_1 = arith.constant 0 : i32
    return %c0_i32, %c0_i32_0 : i32, i32
  }
  func.func @transform_2(%arg0: i32) -> (i32, i32) {
    %c0_i32 = arith.constant 0 : i32
    %c0_i32_0 = arith.constant 0 : i32
    %c0_i32_1 = arith.constant 0 : i32
    return %c0_i32, %c0_i32_0 : i32, i32
  }
  func.func @transform_3(%arg0: i32) -> (i32, i32) {
    %c0_i32 = arith.constant 0 : i32
    %c0_i32_0 = arith.constant 0 : i32
    %c0_i32_1 = arith.constant 0 : i32
    return %c0_i32, %c0_i32_0 : i32, i32
  }
  func.func @transform_4(%arg0: i32) -> (i32, i32) {
    %c0_i32 = arith.constant 0 : i32
    %c0_i32_0 = arith.constant 0 : i32
    return %arg0, %c0_i32 : i32, i32
  }
  func.func @transform_5(%arg0: i32) -> (i32, i32) {
    %c0_i32 = arith.constant 0 : i32
    %c0_i32_0 = arith.constant 0 : i32
    return %arg0, %c0_i32 : i32, i32
  }
}

module attributes {stable_mosaic.version = 11 : i64} {
  func.func @_knn_kernel(%arg0: i32, %arg1: memref<64x3xf32, #tpu.memory_space<vmem>>, %arg2: memref<64x3xf32, #tpu.memory_space<vmem>>, %arg3: memref<1x64xf32, #tpu.memory_space<vmem>>, %arg4: memref<64x8xi32, #tpu.memory_space<vmem>>) attributes {dimension_semantics = [#tpu.dimension_semantics<parallel>], iteration_bounds = array<i64: 1>, scalar_prefetch = 0 : i64, scratch_operands = 0 : i64, tpu.core_type = #tpu.core_type<tc>, window_params = [{transform_indices = @transform_0, window_bounds = array<i64: 64, 3>}, {pipeline_mode = #tpu.pipeline_mode<synchronous>, transform_indices = @transform_1, window_bounds = array<i64: 64, 3>}, {pipeline_mode = #tpu.pipeline_mode<synchronous>, transform_indices = @transform_2, window_bounds = array<i64: 1, 64>}, {transform_indices = @transform_3, window_bounds = array<i64: 64, 8>}]} {
    %c64_i32 = arith.constant 64 : i32
    %0 = arith.muli %arg0, %c64_i32 : i32
    %c0 = arith.constant 0 : index
    %c0_0 = arith.constant 0 : index
    %1 = vector.load %arg1[%c0, %c0_0] : memref<64x3xf32, #tpu.memory_space<vmem>>, vector<64x3xf32>
    %c0_1 = arith.constant 0 : index
    %c0_2 = arith.constant 0 : index
    %2 = vector.load %arg2[%c0_1, %c0_2] : memref<64x3xf32, #tpu.memory_space<vmem>>, vector<64x3xf32>
    %3 = arith.mulf %1, %1 : vector<64x3xf32>
    %cst = arith.constant dense<0.000000e+00> : vector<64xf32>
    %4 = vector.multi_reduction <add>, %3, %cst [1] : vector<64x3xf32> to vector<64xf32>
    %5 = vector.shape_cast %4 : vector<64xf32> to vector<64x1xf32>
    %cst_3 = arith.constant dense<0.000000e+00> : vector<64x64xf32>
    %6 = tpu.matmul %1, %2, %cst_3 {dimension_numbers = #tpu.dot_dimension_numbers<[1], [1], [0], [0], [0, 0, 1, 0], [], []>} : vector<64x3xf32>, vector<64x3xf32>, vector<64x64xf32> -> vector<64x64xf32>
    %c0_4 = arith.constant 0 : index
    %c0_5 = arith.constant 0 : index
    %7 = vector.load %arg3[%c0_4, %c0_5] : memref<1x64xf32, #tpu.memory_space<vmem>>, vector<1x64xf32>
    %8 = vector.broadcast %5 : vector<64x1xf32> to vector<64x64xf32>
    %9 = vector.broadcast %7 : vector<1x64xf32> to vector<64x64xf32>
    %10 = arith.addf %8, %9 : vector<64x64xf32>
    %cst_6 = arith.constant 2.000000e+00 : f32
    %11 = vector.broadcast %cst_6 : f32 to vector<64x64xf32>
    %12 = arith.mulf %11, %6 : vector<64x64xf32>
    %13 = arith.subf %10, %12 : vector<64x64xf32>
    %14 = tpu.iota {dimensions = array<i32: 0>} : vector<64x64xi32>
    %15 = vector.broadcast %0 : i32 to vector<64x64xi32>
    %16 = arith.addi %15, %14 : vector<64x64xi32>
    %17 = tpu.iota {dimensions = array<i32: 1>} : vector<64x64xi32>
    %18 = arith.sitofp %17 : vector<64x64xi32> to vector<64x64xf32>
    %19 = arith.cmpi eq, %16, %17 : vector<64x64xi32>
    %cst_7 = arith.constant 1.000000e+30 : f32
    %20 = vector.broadcast %cst_7 : f32 to vector<64x64xf32>
    %21 = arith.select %19, %20, %13 : vector<64x64xi1>, vector<64x64xf32>
    %cst_8 = arith.constant dense<0x7F800000> : vector<64xf32>
    %22 = vector.multi_reduction <minimumf>, %21, %cst_8 [1] : vector<64x64xf32> to vector<64xf32>
    %23 = vector.shape_cast %22 : vector<64xf32> to vector<64x1xf32>
    %24 = vector.broadcast %23 : vector<64x1xf32> to vector<64x64xf32>
    %25 = arith.cmpf ole, %21, %24 : vector<64x64xf32>
    %cst_9 = arith.constant 6.400000e+01 : f32
    %26 = vector.broadcast %cst_9 : f32 to vector<64x64xf32>
    %27 = arith.select %25, %18, %26 : vector<64x64xi1>, vector<64x64xf32>
    %cst_10 = arith.constant dense<0x7F800000> : vector<64xf32>
    %28 = vector.multi_reduction <minimumf>, %27, %cst_10 [1] : vector<64x64xf32> to vector<64xf32>
    %29 = vector.shape_cast %28 : vector<64xf32> to vector<64x1xf32>
    %30 = vector.broadcast %29 : vector<64x1xf32> to vector<64x64xf32>
    %31 = arith.cmpf oeq, %18, %30 : vector<64x64xf32>
    %cst_11 = arith.constant 1.000000e+30 : f32
    %32 = vector.broadcast %cst_11 : f32 to vector<64x64xf32>
    %33 = arith.select %31, %32, %21 : vector<64x64xi1>, vector<64x64xf32>
    %cst_12 = arith.constant dense<0x7F800000> : vector<64xf32>
    %34 = vector.multi_reduction <minimumf>, %33, %cst_12 [1] : vector<64x64xf32> to vector<64xf32>
    %35 = vector.shape_cast %34 : vector<64xf32> to vector<64x1xf32>
    %36 = vector.broadcast %35 : vector<64x1xf32> to vector<64x64xf32>
    %37 = arith.cmpf ole, %33, %36 : vector<64x64xf32>
    %cst_13 = arith.constant 6.400000e+01 : f32
    %38 = vector.broadcast %cst_13 : f32 to vector<64x64xf32>
    %39 = arith.select %37, %18, %38 : vector<64x64xi1>, vector<64x64xf32>
    %cst_14 = arith.constant dense<0x7F800000> : vector<64xf32>
    %40 = vector.multi_reduction <minimumf>, %39, %cst_14 [1] : vector<64x64xf32> to vector<64xf32>
    %41 = vector.shape_cast %40 : vector<64xf32> to vector<64x1xf32>
    %42 = vector.broadcast %41 : vector<64x1xf32> to vector<64x64xf32>
    %43 = arith.cmpf oeq, %18, %42 : vector<64x64xf32>
    %cst_15 = arith.constant 1.000000e+30 : f32
    %44 = vector.broadcast %cst_15 : f32 to vector<64x64xf32>
    %45 = arith.select %43, %44, %33 : vector<64x64xi1>, vector<64x64xf32>
    %cst_16 = arith.constant dense<0x7F800000> : vector<64xf32>
    %46 = vector.multi_reduction <minimumf>, %45, %cst_16 [1] : vector<64x64xf32> to vector<64xf32>
    %47 = vector.shape_cast %46 : vector<64xf32> to vector<64x1xf32>
    %48 = vector.broadcast %47 : vector<64x1xf32> to vector<64x64xf32>
    %49 = arith.cmpf ole, %45, %48 : vector<64x64xf32>
    %cst_17 = arith.constant 6.400000e+01 : f32
    %50 = vector.broadcast %cst_17 : f32 to vector<64x64xf32>
    %51 = arith.select %49, %18, %50 : vector<64x64xi1>, vector<64x64xf32>
    %cst_18 = arith.constant dense<0x7F800000> : vector<64xf32>
    %52 = vector.multi_reduction <minimumf>, %51, %cst_18 [1] : vector<64x64xf32> to vector<64xf32>
    %53 = vector.shape_cast %52 : vector<64xf32> to vector<64x1xf32>
    %54 = vector.broadcast %53 : vector<64x1xf32> to vector<64x64xf32>
    %55 = arith.cmpf oeq, %18, %54 : vector<64x64xf32>
    %cst_19 = arith.constant 1.000000e+30 : f32
    %56 = vector.broadcast %cst_19 : f32 to vector<64x64xf32>
    %57 = arith.select %55, %56, %45 : vector<64x64xi1>, vector<64x64xf32>
    %cst_20 = arith.constant dense<0x7F800000> : vector<64xf32>
    %58 = vector.multi_reduction <minimumf>, %57, %cst_20 [1] : vector<64x64xf32> to vector<64xf32>
    %59 = vector.shape_cast %58 : vector<64xf32> to vector<64x1xf32>
    %60 = vector.broadcast %59 : vector<64x1xf32> to vector<64x64xf32>
    %61 = arith.cmpf ole, %57, %60 : vector<64x64xf32>
    %cst_21 = arith.constant 6.400000e+01 : f32
    %62 = vector.broadcast %cst_21 : f32 to vector<64x64xf32>
    %63 = arith.select %61, %18, %62 : vector<64x64xi1>, vector<64x64xf32>
    %cst_22 = arith.constant dense<0x7F800000> : vector<64xf32>
    %64 = vector.multi_reduction <minimumf>, %63, %cst_22 [1] : vector<64x64xf32> to vector<64xf32>
    %65 = vector.shape_cast %64 : vector<64xf32> to vector<64x1xf32>
    %66 = vector.broadcast %65 : vector<64x1xf32> to vector<64x64xf32>
    %67 = arith.cmpf oeq, %18, %66 : vector<64x64xf32>
    %cst_23 = arith.constant 1.000000e+30 : f32
    %68 = vector.broadcast %cst_23 : f32 to vector<64x64xf32>
    %69 = arith.select %67, %68, %57 : vector<64x64xi1>, vector<64x64xf32>
    %cst_24 = arith.constant dense<0x7F800000> : vector<64xf32>
    %70 = vector.multi_reduction <minimumf>, %69, %cst_24 [1] : vector<64x64xf32> to vector<64xf32>
    %71 = vector.shape_cast %70 : vector<64xf32> to vector<64x1xf32>
    %72 = vector.broadcast %71 : vector<64x1xf32> to vector<64x64xf32>
    %73 = arith.cmpf ole, %69, %72 : vector<64x64xf32>
    %cst_25 = arith.constant 6.400000e+01 : f32
    %74 = vector.broadcast %cst_25 : f32 to vector<64x64xf32>
    %75 = arith.select %73, %18, %74 : vector<64x64xi1>, vector<64x64xf32>
    %cst_26 = arith.constant dense<0x7F800000> : vector<64xf32>
    %76 = vector.multi_reduction <minimumf>, %75, %cst_26 [1] : vector<64x64xf32> to vector<64xf32>
    %77 = vector.shape_cast %76 : vector<64xf32> to vector<64x1xf32>
    %78 = vector.broadcast %77 : vector<64x1xf32> to vector<64x64xf32>
    %79 = arith.cmpf oeq, %18, %78 : vector<64x64xf32>
    %cst_27 = arith.constant 1.000000e+30 : f32
    %80 = vector.broadcast %cst_27 : f32 to vector<64x64xf32>
    %81 = arith.select %79, %80, %69 : vector<64x64xi1>, vector<64x64xf32>
    %cst_28 = arith.constant dense<0x7F800000> : vector<64xf32>
    %82 = vector.multi_reduction <minimumf>, %81, %cst_28 [1] : vector<64x64xf32> to vector<64xf32>
    %83 = vector.shape_cast %82 : vector<64xf32> to vector<64x1xf32>
    %84 = vector.broadcast %83 : vector<64x1xf32> to vector<64x64xf32>
    %85 = arith.cmpf ole, %81, %84 : vector<64x64xf32>
    %cst_29 = arith.constant 6.400000e+01 : f32
    %86 = vector.broadcast %cst_29 : f32 to vector<64x64xf32>
    %87 = arith.select %85, %18, %86 : vector<64x64xi1>, vector<64x64xf32>
    %cst_30 = arith.constant dense<0x7F800000> : vector<64xf32>
    %88 = vector.multi_reduction <minimumf>, %87, %cst_30 [1] : vector<64x64xf32> to vector<64xf32>
    %89 = vector.shape_cast %88 : vector<64xf32> to vector<64x1xf32>
    %90 = vector.broadcast %89 : vector<64x1xf32> to vector<64x64xf32>
    %91 = arith.cmpf oeq, %18, %90 : vector<64x64xf32>
    %cst_31 = arith.constant 1.000000e+30 : f32
    %92 = vector.broadcast %cst_31 : f32 to vector<64x64xf32>
    %93 = arith.select %91, %92, %81 : vector<64x64xi1>, vector<64x64xf32>
    %cst_32 = arith.constant dense<0x7F800000> : vector<64xf32>
    %94 = vector.multi_reduction <minimumf>, %93, %cst_32 [1] : vector<64x64xf32> to vector<64xf32>
    %95 = vector.shape_cast %94 : vector<64xf32> to vector<64x1xf32>
    %96 = vector.broadcast %95 : vector<64x1xf32> to vector<64x64xf32>
    %97 = arith.cmpf ole, %93, %96 : vector<64x64xf32>
    %cst_33 = arith.constant 6.400000e+01 : f32
    %98 = vector.broadcast %cst_33 : f32 to vector<64x64xf32>
    %99 = arith.select %97, %18, %98 : vector<64x64xi1>, vector<64x64xf32>
    %cst_34 = arith.constant dense<0x7F800000> : vector<64xf32>
    %100 = vector.multi_reduction <minimumf>, %99, %cst_34 [1] : vector<64x64xf32> to vector<64xf32>
    %101 = vector.shape_cast %100 : vector<64xf32> to vector<64x1xf32>
    %102 = vector.broadcast %101 : vector<64x1xf32> to vector<64x64xf32>
    %103 = arith.cmpf oeq, %18, %102 : vector<64x64xf32>
    %cst_35 = arith.constant 1.000000e+30 : f32
    %104 = vector.broadcast %cst_35 : f32 to vector<64x64xf32>
    %105 = arith.select %103, %104, %93 : vector<64x64xi1>, vector<64x64xf32>
    %cst_36 = arith.constant dense<0x7F800000> : vector<64xf32>
    %106 = vector.multi_reduction <minimumf>, %105, %cst_36 [1] : vector<64x64xf32> to vector<64xf32>
    %107 = vector.shape_cast %106 : vector<64xf32> to vector<64x1xf32>
    %108 = vector.broadcast %107 : vector<64x1xf32> to vector<64x64xf32>
    %109 = arith.cmpf ole, %105, %108 : vector<64x64xf32>
    %cst_37 = arith.constant 6.400000e+01 : f32
    %110 = vector.broadcast %cst_37 : f32 to vector<64x64xf32>
    %111 = arith.select %109, %18, %110 : vector<64x64xi1>, vector<64x64xf32>
    %cst_38 = arith.constant dense<0x7F800000> : vector<64xf32>
    %112 = vector.multi_reduction <minimumf>, %111, %cst_38 [1] : vector<64x64xf32> to vector<64xf32>
    %113 = vector.shape_cast %112 : vector<64xf32> to vector<64x1xf32>
    %114 = tpu.iota {dimensions = array<i32: 1>} : vector<64x8xi32>
    %cst_39 = arith.constant 0.000000e+00 : f32
    %115 = vector.broadcast %cst_39 : f32 to vector<64x8xf32>
    %c0_i32 = arith.constant 0 : i32
    %116 = vector.broadcast %c0_i32 : i32 to vector<64x8xi32>
    %117 = arith.cmpi eq, %114, %116 : vector<64x8xi32>
    %118 = vector.shape_cast %29 : vector<64x1xf32> to vector<64x1xf32>
    %119 = vector.broadcast %118 : vector<64x1xf32> to vector<64x8xf32>
    %120 = arith.select %117, %119, %115 : vector<64x8xi1>, vector<64x8xf32>
    %c1_i32 = arith.constant 1 : i32
    %121 = vector.broadcast %c1_i32 : i32 to vector<64x8xi32>
    %122 = arith.cmpi eq, %114, %121 : vector<64x8xi32>
    %123 = vector.shape_cast %41 : vector<64x1xf32> to vector<64x1xf32>
    %124 = vector.broadcast %123 : vector<64x1xf32> to vector<64x8xf32>
    %125 = arith.select %122, %124, %120 : vector<64x8xi1>, vector<64x8xf32>
    %c2_i32 = arith.constant 2 : i32
    %126 = vector.broadcast %c2_i32 : i32 to vector<64x8xi32>
    %127 = arith.cmpi eq, %114, %126 : vector<64x8xi32>
    %128 = vector.shape_cast %53 : vector<64x1xf32> to vector<64x1xf32>
    %129 = vector.broadcast %128 : vector<64x1xf32> to vector<64x8xf32>
    %130 = arith.select %127, %129, %125 : vector<64x8xi1>, vector<64x8xf32>
    %c3_i32 = arith.constant 3 : i32
    %131 = vector.broadcast %c3_i32 : i32 to vector<64x8xi32>
    %132 = arith.cmpi eq, %114, %131 : vector<64x8xi32>
    %133 = vector.shape_cast %65 : vector<64x1xf32> to vector<64x1xf32>
    %134 = vector.broadcast %133 : vector<64x1xf32> to vector<64x8xf32>
    %135 = arith.select %132, %134, %130 : vector<64x8xi1>, vector<64x8xf32>
    %c4_i32 = arith.constant 4 : i32
    %136 = vector.broadcast %c4_i32 : i32 to vector<64x8xi32>
    %137 = arith.cmpi eq, %114, %136 : vector<64x8xi32>
    %138 = vector.shape_cast %77 : vector<64x1xf32> to vector<64x1xf32>
    %139 = vector.broadcast %138 : vector<64x1xf32> to vector<64x8xf32>
    %140 = arith.select %137, %139, %135 : vector<64x8xi1>, vector<64x8xf32>
    %c5_i32 = arith.constant 5 : i32
    %141 = vector.broadcast %c5_i32 : i32 to vector<64x8xi32>
    %142 = arith.cmpi eq, %114, %141 : vector<64x8xi32>
    %143 = vector.shape_cast %89 : vector<64x1xf32> to vector<64x1xf32>
    %144 = vector.broadcast %143 : vector<64x1xf32> to vector<64x8xf32>
    %145 = arith.select %142, %144, %140 : vector<64x8xi1>, vector<64x8xf32>
    %c6_i32 = arith.constant 6 : i32
    %146 = vector.broadcast %c6_i32 : i32 to vector<64x8xi32>
    %147 = arith.cmpi eq, %114, %146 : vector<64x8xi32>
    %148 = vector.shape_cast %101 : vector<64x1xf32> to vector<64x1xf32>
    %149 = vector.broadcast %148 : vector<64x1xf32> to vector<64x8xf32>
    %150 = arith.select %147, %149, %145 : vector<64x8xi1>, vector<64x8xf32>
    %c7_i32 = arith.constant 7 : i32
    %151 = vector.broadcast %c7_i32 : i32 to vector<64x8xi32>
    %152 = arith.cmpi eq, %114, %151 : vector<64x8xi32>
    %153 = vector.shape_cast %113 : vector<64x1xf32> to vector<64x1xf32>
    %154 = vector.broadcast %153 : vector<64x1xf32> to vector<64x8xf32>
    %155 = arith.select %152, %154, %150 : vector<64x8xi1>, vector<64x8xf32>
    %156 = arith.fptosi %155 : vector<64x8xf32> to vector<64x8xi32>
    %c0_40 = arith.constant 0 : index
    %c0_41 = arith.constant 0 : index
    %157 = vector.load %arg4[%c0_40, %c0_41] : memref<64x8xi32, #tpu.memory_space<vmem>>, vector<64x8xi32>
    tpu.vector_store %arg4[%c0_40, %c0_41], %156 {strides = array<i32>} : memref<64x8xi32, #tpu.memory_space<vmem>>, vector<64x8xi32>,
    return
  }
  func.func @transform_0(%arg0: i32) -> (i32, i32) {
    %c0_i32 = arith.constant 0 : i32
    %c0_i32_0 = arith.constant 0 : i32
    return %arg0, %c0_i32 : i32, i32
  }
  func.func @transform_1(%arg0: i32) -> (i32, i32) {
    %c0_i32 = arith.constant 0 : i32
    %c0_i32_0 = arith.constant 0 : i32
    %c0_i32_1 = arith.constant 0 : i32
    return %c0_i32, %c0_i32_0 : i32, i32
  }
  func.func @transform_2(%arg0: i32) -> (i32, i32) {
    %c0_i32 = arith.constant 0 : i32
    %c0_i32_0 = arith.constant 0 : i32
    %c0_i32_1 = arith.constant 0 : i32
    return %c0_i32, %c0_i32_0 : i32, i32
  }
  func.func @transform_3(%arg0: i32) -> (i32, i32) {
    %c0_i32 = arith.constant 0 : i32
    %c0_i32_0 = arith.constant 0 : i32
    return %arg0, %c0_i32 : i32, i32
  }
}

module attributes {stable_mosaic.version = 11 : i64} {
  func.func @_edge_combine_kernel(%arg0: i32, %arg1: memref<64x64xf32, #tpu.memory_space<vmem>>, %arg2: memref<64x8x64xf32, #tpu.memory_space<vmem>>, %arg3: memref<64x64xf32, #tpu.memory_space<vmem>>) attributes {dimension_semantics = [#tpu.dimension_semantics<parallel>], iteration_bounds = array<i64: 1>, scalar_prefetch = 0 : i64, scratch_operands = 0 : i64, tpu.core_type = #tpu.core_type<tc>, window_params = [{transform_indices = @transform_0, window_bounds = array<i64: 64, 64>}, {transform_indices = @transform_1, window_bounds = array<i64: 64, 8, 64>}, {transform_indices = @transform_2, window_bounds = array<i64: 64, 64>}]} {
    %c0 = arith.constant 0 : index
    %c0_0 = arith.constant 0 : index
    %0 = vector.load %arg1[%c0, %c0_0] : memref<64x64xf32, #tpu.memory_space<vmem>>, vector<64x64xf32>
    %c0_1 = arith.constant 0 : index
    %c0_2 = arith.constant 0 : index
    %c0_3 = arith.constant 0 : index
    %1 = vector.load %arg2[%c0_1, %c0_2, %c0_3] : memref<64x8x64xf32, #tpu.memory_space<vmem>>, vector<64x8x64xf32>
    %2 = vector.shape_cast %0 : vector<64x64xf32> to vector<64x1x64xf32>
    %3 = vector.broadcast %2 : vector<64x1x64xf32> to vector<64x8x64xf32>
    %4 = arith.addf %3, %1 : vector<64x8x64xf32>
    %cst = arith.constant 0.000000e+00 : f32
    %5 = vector.broadcast %cst : f32 to vector<64x8x64xf32>
    %6 = arith.maximumf %4, %5 : vector<64x8x64xf32>
    %cst_4 = arith.constant dense<0xFF800000> : vector<64x64xf32>
    %7 = vector.multi_reduction <maximumf>, %6, %cst_4 [1] : vector<64x8x64xf32> to vector<64x64xf32>
    %c0_5 = arith.constant 0 : index
    %c0_6 = arith.constant 0 : index
    %8 = vector.load %arg3[%c0_5, %c0_6] : memref<64x64xf32, #tpu.memory_space<vmem>>, vector<64x64xf32>
    tpu.vector_store %arg3[%c0_5, %c0_6], %7 {strides = array<i32>} : memref<64x64xf32, #tpu.memory_space<vmem>>, vector<64x64xf32>,
    return
  }
  func.func @transform_0(%arg0: i32) -> (i32, i32) {
    %c0_i32 = arith.constant 0 : i32
    %c0_i32_0 = arith.constant 0 : i32
    return %arg0, %c0_i32 : i32, i32
  }
  func.func @transform_1(%arg0: i32) -> (i32, i32, i32) {
    %c0_i32 = arith.constant 0 : i32
    %c0_i32_0 = arith.constant 0 : i32
    %c0_i32_1 = arith.constant 0 : i32
    return %arg0, %c0_i32, %c0_i32_0 : i32, i32, i32
  }
  func.func @transform_2(%arg0: i32) -> (i32, i32) {
    %c0_i32 = arith.constant 0 : i32
    %c0_i32_0 = arith.constant 0 : i32
    return %arg0, %c0_i32 : i32, i32
  }
}

module attributes {stable_mosaic.version = 11 : i64} {
  func.func @_knn_kernel(%arg0: i32, %arg1: memref<64x64xf32, #tpu.memory_space<vmem>>, %arg2: memref<64x64xf32, #tpu.memory_space<vmem>>, %arg3: memref<1x64xf32, #tpu.memory_space<vmem>>, %arg4: memref<64x8xi32, #tpu.memory_space<vmem>>) attributes {dimension_semantics = [#tpu.dimension_semantics<parallel>], iteration_bounds = array<i64: 1>, scalar_prefetch = 0 : i64, scratch_operands = 0 : i64, tpu.core_type = #tpu.core_type<tc>, window_params = [{transform_indices = @transform_0, window_bounds = array<i64: 64, 64>}, {pipeline_mode = #tpu.pipeline_mode<synchronous>, transform_indices = @transform_1, window_bounds = array<i64: 64, 64>}, {pipeline_mode = #tpu.pipeline_mode<synchronous>, transform_indices = @transform_2, window_bounds = array<i64: 1, 64>}, {transform_indices = @transform_3, window_bounds = array<i64: 64, 8>}]} {
    %c64_i32 = arith.constant 64 : i32
    %0 = arith.muli %arg0, %c64_i32 : i32
    %c0 = arith.constant 0 : index
    %c0_0 = arith.constant 0 : index
    %1 = vector.load %arg1[%c0, %c0_0] : memref<64x64xf32, #tpu.memory_space<vmem>>, vector<64x64xf32>
    %c0_1 = arith.constant 0 : index
    %c0_2 = arith.constant 0 : index
    %2 = vector.load %arg2[%c0_1, %c0_2] : memref<64x64xf32, #tpu.memory_space<vmem>>, vector<64x64xf32>
    %3 = arith.mulf %1, %1 : vector<64x64xf32>
    %cst = arith.constant dense<0.000000e+00> : vector<64xf32>
    %4 = vector.multi_reduction <add>, %3, %cst [1] : vector<64x64xf32> to vector<64xf32>
    %5 = vector.shape_cast %4 : vector<64xf32> to vector<64x1xf32>
    %cst_3 = arith.constant dense<0.000000e+00> : vector<64x64xf32>
    %6 = tpu.matmul %1, %2, %cst_3 {dimension_numbers = #tpu.dot_dimension_numbers<[1], [1], [0], [0], [0, 0, 1, 0], [], []>} : vector<64x64xf32>, vector<64x64xf32>, vector<64x64xf32> -> vector<64x64xf32>
    %c0_4 = arith.constant 0 : index
    %c0_5 = arith.constant 0 : index
    %7 = vector.load %arg3[%c0_4, %c0_5] : memref<1x64xf32, #tpu.memory_space<vmem>>, vector<1x64xf32>
    %8 = vector.broadcast %5 : vector<64x1xf32> to vector<64x64xf32>
    %9 = vector.broadcast %7 : vector<1x64xf32> to vector<64x64xf32>
    %10 = arith.addf %8, %9 : vector<64x64xf32>
    %cst_6 = arith.constant 2.000000e+00 : f32
    %11 = vector.broadcast %cst_6 : f32 to vector<64x64xf32>
    %12 = arith.mulf %11, %6 : vector<64x64xf32>
    %13 = arith.subf %10, %12 : vector<64x64xf32>
    %14 = tpu.iota {dimensions = array<i32: 0>} : vector<64x64xi32>
    %15 = vector.broadcast %0 : i32 to vector<64x64xi32>
    %16 = arith.addi %15, %14 : vector<64x64xi32>
    %17 = tpu.iota {dimensions = array<i32: 1>} : vector<64x64xi32>
    %18 = arith.sitofp %17 : vector<64x64xi32> to vector<64x64xf32>
    %19 = arith.cmpi eq, %16, %17 : vector<64x64xi32>
    %cst_7 = arith.constant 1.000000e+30 : f32
    %20 = vector.broadcast %cst_7 : f32 to vector<64x64xf32>
    %21 = arith.select %19, %20, %13 : vector<64x64xi1>, vector<64x64xf32>
    %cst_8 = arith.constant dense<0x7F800000> : vector<64xf32>
    %22 = vector.multi_reduction <minimumf>, %21, %cst_8 [1] : vector<64x64xf32> to vector<64xf32>
    %23 = vector.shape_cast %22 : vector<64xf32> to vector<64x1xf32>
    %24 = vector.broadcast %23 : vector<64x1xf32> to vector<64x64xf32>
    %25 = arith.cmpf ole, %21, %24 : vector<64x64xf32>
    %cst_9 = arith.constant 6.400000e+01 : f32
    %26 = vector.broadcast %cst_9 : f32 to vector<64x64xf32>
    %27 = arith.select %25, %18, %26 : vector<64x64xi1>, vector<64x64xf32>
    %cst_10 = arith.constant dense<0x7F800000> : vector<64xf32>
    %28 = vector.multi_reduction <minimumf>, %27, %cst_10 [1] : vector<64x64xf32> to vector<64xf32>
    %29 = vector.shape_cast %28 : vector<64xf32> to vector<64x1xf32>
    %30 = vector.broadcast %29 : vector<64x1xf32> to vector<64x64xf32>
    %31 = arith.cmpf oeq, %18, %30 : vector<64x64xf32>
    %cst_11 = arith.constant 1.000000e+30 : f32
    %32 = vector.broadcast %cst_11 : f32 to vector<64x64xf32>
    %33 = arith.select %31, %32, %21 : vector<64x64xi1>, vector<64x64xf32>
    %cst_12 = arith.constant dense<0x7F800000> : vector<64xf32>
    %34 = vector.multi_reduction <minimumf>, %33, %cst_12 [1] : vector<64x64xf32> to vector<64xf32>
    %35 = vector.shape_cast %34 : vector<64xf32> to vector<64x1xf32>
    %36 = vector.broadcast %35 : vector<64x1xf32> to vector<64x64xf32>
    %37 = arith.cmpf ole, %33, %36 : vector<64x64xf32>
    %cst_13 = arith.constant 6.400000e+01 : f32
    %38 = vector.broadcast %cst_13 : f32 to vector<64x64xf32>
    %39 = arith.select %37, %18, %38 : vector<64x64xi1>, vector<64x64xf32>
    %cst_14 = arith.constant dense<0x7F800000> : vector<64xf32>
    %40 = vector.multi_reduction <minimumf>, %39, %cst_14 [1] : vector<64x64xf32> to vector<64xf32>
    %41 = vector.shape_cast %40 : vector<64xf32> to vector<64x1xf32>
    %42 = vector.broadcast %41 : vector<64x1xf32> to vector<64x64xf32>
    %43 = arith.cmpf oeq, %18, %42 : vector<64x64xf32>
    %cst_15 = arith.constant 1.000000e+30 : f32
    %44 = vector.broadcast %cst_15 : f32 to vector<64x64xf32>
    %45 = arith.select %43, %44, %33 : vector<64x64xi1>, vector<64x64xf32>
    %cst_16 = arith.constant dense<0x7F800000> : vector<64xf32>
    %46 = vector.multi_reduction <minimumf>, %45, %cst_16 [1] : vector<64x64xf32> to vector<64xf32>
    %47 = vector.shape_cast %46 : vector<64xf32> to vector<64x1xf32>
    %48 = vector.broadcast %47 : vector<64x1xf32> to vector<64x64xf32>
    %49 = arith.cmpf ole, %45, %48 : vector<64x64xf32>
    %cst_17 = arith.constant 6.400000e+01 : f32
    %50 = vector.broadcast %cst_17 : f32 to vector<64x64xf32>
    %51 = arith.select %49, %18, %50 : vector<64x64xi1>, vector<64x64xf32>
    %cst_18 = arith.constant dense<0x7F800000> : vector<64xf32>
    %52 = vector.multi_reduction <minimumf>, %51, %cst_18 [1] : vector<64x64xf32> to vector<64xf32>
    %53 = vector.shape_cast %52 : vector<64xf32> to vector<64x1xf32>
    %54 = vector.broadcast %53 : vector<64x1xf32> to vector<64x64xf32>
    %55 = arith.cmpf oeq, %18, %54 : vector<64x64xf32>
    %cst_19 = arith.constant 1.000000e+30 : f32
    %56 = vector.broadcast %cst_19 : f32 to vector<64x64xf32>
    %57 = arith.select %55, %56, %45 : vector<64x64xi1>, vector<64x64xf32>
    %cst_20 = arith.constant dense<0x7F800000> : vector<64xf32>
    %58 = vector.multi_reduction <minimumf>, %57, %cst_20 [1] : vector<64x64xf32> to vector<64xf32>
    %59 = vector.shape_cast %58 : vector<64xf32> to vector<64x1xf32>
    %60 = vector.broadcast %59 : vector<64x1xf32> to vector<64x64xf32>
    %61 = arith.cmpf ole, %57, %60 : vector<64x64xf32>
    %cst_21 = arith.constant 6.400000e+01 : f32
    %62 = vector.broadcast %cst_21 : f32 to vector<64x64xf32>
    %63 = arith.select %61, %18, %62 : vector<64x64xi1>, vector<64x64xf32>
    %cst_22 = arith.constant dense<0x7F800000> : vector<64xf32>
    %64 = vector.multi_reduction <minimumf>, %63, %cst_22 [1] : vector<64x64xf32> to vector<64xf32>
    %65 = vector.shape_cast %64 : vector<64xf32> to vector<64x1xf32>
    %66 = vector.broadcast %65 : vector<64x1xf32> to vector<64x64xf32>
    %67 = arith.cmpf oeq, %18, %66 : vector<64x64xf32>
    %cst_23 = arith.constant 1.000000e+30 : f32
    %68 = vector.broadcast %cst_23 : f32 to vector<64x64xf32>
    %69 = arith.select %67, %68, %57 : vector<64x64xi1>, vector<64x64xf32>
    %cst_24 = arith.constant dense<0x7F800000> : vector<64xf32>
    %70 = vector.multi_reduction <minimumf>, %69, %cst_24 [1] : vector<64x64xf32> to vector<64xf32>
    %71 = vector.shape_cast %70 : vector<64xf32> to vector<64x1xf32>
    %72 = vector.broadcast %71 : vector<64x1xf32> to vector<64x64xf32>
    %73 = arith.cmpf ole, %69, %72 : vector<64x64xf32>
    %cst_25 = arith.constant 6.400000e+01 : f32
    %74 = vector.broadcast %cst_25 : f32 to vector<64x64xf32>
    %75 = arith.select %73, %18, %74 : vector<64x64xi1>, vector<64x64xf32>
    %cst_26 = arith.constant dense<0x7F800000> : vector<64xf32>
    %76 = vector.multi_reduction <minimumf>, %75, %cst_26 [1] : vector<64x64xf32> to vector<64xf32>
    %77 = vector.shape_cast %76 : vector<64xf32> to vector<64x1xf32>
    %78 = vector.broadcast %77 : vector<64x1xf32> to vector<64x64xf32>
    %79 = arith.cmpf oeq, %18, %78 : vector<64x64xf32>
    %cst_27 = arith.constant 1.000000e+30 : f32
    %80 = vector.broadcast %cst_27 : f32 to vector<64x64xf32>
    %81 = arith.select %79, %80, %69 : vector<64x64xi1>, vector<64x64xf32>
    %cst_28 = arith.constant dense<0x7F800000> : vector<64xf32>
    %82 = vector.multi_reduction <minimumf>, %81, %cst_28 [1] : vector<64x64xf32> to vector<64xf32>
    %83 = vector.shape_cast %82 : vector<64xf32> to vector<64x1xf32>
    %84 = vector.broadcast %83 : vector<64x1xf32> to vector<64x64xf32>
    %85 = arith.cmpf ole, %81, %84 : vector<64x64xf32>
    %cst_29 = arith.constant 6.400000e+01 : f32
    %86 = vector.broadcast %cst_29 : f32 to vector<64x64xf32>
    %87 = arith.select %85, %18, %86 : vector<64x64xi1>, vector<64x64xf32>
    %cst_30 = arith.constant dense<0x7F800000> : vector<64xf32>
    %88 = vector.multi_reduction <minimumf>, %87, %cst_30 [1] : vector<64x64xf32> to vector<64xf32>
    %89 = vector.shape_cast %88 : vector<64xf32> to vector<64x1xf32>
    %90 = vector.broadcast %89 : vector<64x1xf32> to vector<64x64xf32>
    %91 = arith.cmpf oeq, %18, %90 : vector<64x64xf32>
    %cst_31 = arith.constant 1.000000e+30 : f32
    %92 = vector.broadcast %cst_31 : f32 to vector<64x64xf32>
    %93 = arith.select %91, %92, %81 : vector<64x64xi1>, vector<64x64xf32>
    %cst_32 = arith.constant dense<0x7F800000> : vector<64xf32>
    %94 = vector.multi_reduction <minimumf>, %93, %cst_32 [1] : vector<64x64xf32> to vector<64xf32>
    %95 = vector.shape_cast %94 : vector<64xf32> to vector<64x1xf32>
    %96 = vector.broadcast %95 : vector<64x1xf32> to vector<64x64xf32>
    %97 = arith.cmpf ole, %93, %96 : vector<64x64xf32>
    %cst_33 = arith.constant 6.400000e+01 : f32
    %98 = vector.broadcast %cst_33 : f32 to vector<64x64xf32>
    %99 = arith.select %97, %18, %98 : vector<64x64xi1>, vector<64x64xf32>
    %cst_34 = arith.constant dense<0x7F800000> : vector<64xf32>
    %100 = vector.multi_reduction <minimumf>, %99, %cst_34 [1] : vector<64x64xf32> to vector<64xf32>
    %101 = vector.shape_cast %100 : vector<64xf32> to vector<64x1xf32>
    %102 = vector.broadcast %101 : vector<64x1xf32> to vector<64x64xf32>
    %103 = arith.cmpf oeq, %18, %102 : vector<64x64xf32>
    %cst_35 = arith.constant 1.000000e+30 : f32
    %104 = vector.broadcast %cst_35 : f32 to vector<64x64xf32>
    %105 = arith.select %103, %104, %93 : vector<64x64xi1>, vector<64x64xf32>
    %cst_36 = arith.constant dense<0x7F800000> : vector<64xf32>
    %106 = vector.multi_reduction <minimumf>, %105, %cst_36 [1] : vector<64x64xf32> to vector<64xf32>
    %107 = vector.shape_cast %106 : vector<64xf32> to vector<64x1xf32>
    %108 = vector.broadcast %107 : vector<64x1xf32> to vector<64x64xf32>
    %109 = arith.cmpf ole, %105, %108 : vector<64x64xf32>
    %cst_37 = arith.constant 6.400000e+01 : f32
    %110 = vector.broadcast %cst_37 : f32 to vector<64x64xf32>
    %111 = arith.select %109, %18, %110 : vector<64x64xi1>, vector<64x64xf32>
    %cst_38 = arith.constant dense<0x7F800000> : vector<64xf32>
    %112 = vector.multi_reduction <minimumf>, %111, %cst_38 [1] : vector<64x64xf32> to vector<64xf32>
    %113 = vector.shape_cast %112 : vector<64xf32> to vector<64x1xf32>
    %114 = tpu.iota {dimensions = array<i32: 1>} : vector<64x8xi32>
    %cst_39 = arith.constant 0.000000e+00 : f32
    %115 = vector.broadcast %cst_39 : f32 to vector<64x8xf32>
    %c0_i32 = arith.constant 0 : i32
    %116 = vector.broadcast %c0_i32 : i32 to vector<64x8xi32>
    %117 = arith.cmpi eq, %114, %116 : vector<64x8xi32>
    %118 = vector.shape_cast %29 : vector<64x1xf32> to vector<64x1xf32>
    %119 = vector.broadcast %118 : vector<64x1xf32> to vector<64x8xf32>
    %120 = arith.select %117, %119, %115 : vector<64x8xi1>, vector<64x8xf32>
    %c1_i32 = arith.constant 1 : i32
    %121 = vector.broadcast %c1_i32 : i32 to vector<64x8xi32>
    %122 = arith.cmpi eq, %114, %121 : vector<64x8xi32>
    %123 = vector.shape_cast %41 : vector<64x1xf32> to vector<64x1xf32>
    %124 = vector.broadcast %123 : vector<64x1xf32> to vector<64x8xf32>
    %125 = arith.select %122, %124, %120 : vector<64x8xi1>, vector<64x8xf32>
    %c2_i32 = arith.constant 2 : i32
    %126 = vector.broadcast %c2_i32 : i32 to vector<64x8xi32>
    %127 = arith.cmpi eq, %114, %126 : vector<64x8xi32>
    %128 = vector.shape_cast %53 : vector<64x1xf32> to vector<64x1xf32>
    %129 = vector.broadcast %128 : vector<64x1xf32> to vector<64x8xf32>
    %130 = arith.select %127, %129, %125 : vector<64x8xi1>, vector<64x8xf32>
    %c3_i32 = arith.constant 3 : i32
    %131 = vector.broadcast %c3_i32 : i32 to vector<64x8xi32>
    %132 = arith.cmpi eq, %114, %131 : vector<64x8xi32>
    %133 = vector.shape_cast %65 : vector<64x1xf32> to vector<64x1xf32>
    %134 = vector.broadcast %133 : vector<64x1xf32> to vector<64x8xf32>
    %135 = arith.select %132, %134, %130 : vector<64x8xi1>, vector<64x8xf32>
    %c4_i32 = arith.constant 4 : i32
    %136 = vector.broadcast %c4_i32 : i32 to vector<64x8xi32>
    %137 = arith.cmpi eq, %114, %136 : vector<64x8xi32>
    %138 = vector.shape_cast %77 : vector<64x1xf32> to vector<64x1xf32>
    %139 = vector.broadcast %138 : vector<64x1xf32> to vector<64x8xf32>
    %140 = arith.select %137, %139, %135 : vector<64x8xi1>, vector<64x8xf32>
    %c5_i32 = arith.constant 5 : i32
    %141 = vector.broadcast %c5_i32 : i32 to vector<64x8xi32>
    %142 = arith.cmpi eq, %114, %141 : vector<64x8xi32>
    %143 = vector.shape_cast %89 : vector<64x1xf32> to vector<64x1xf32>
    %144 = vector.broadcast %143 : vector<64x1xf32> to vector<64x8xf32>
    %145 = arith.select %142, %144, %140 : vector<64x8xi1>, vector<64x8xf32>
    %c6_i32 = arith.constant 6 : i32
    %146 = vector.broadcast %c6_i32 : i32 to vector<64x8xi32>
    %147 = arith.cmpi eq, %114, %146 : vector<64x8xi32>
    %148 = vector.shape_cast %101 : vector<64x1xf32> to vector<64x1xf32>
    %149 = vector.broadcast %148 : vector<64x1xf32> to vector<64x8xf32>
    %150 = arith.select %147, %149, %145 : vector<64x8xi1>, vector<64x8xf32>
    %c7_i32 = arith.constant 7 : i32
    %151 = vector.broadcast %c7_i32 : i32 to vector<64x8xi32>
    %152 = arith.cmpi eq, %114, %151 : vector<64x8xi32>
    %153 = vector.shape_cast %113 : vector<64x1xf32> to vector<64x1xf32>
    %154 = vector.broadcast %153 : vector<64x1xf32> to vector<64x8xf32>
    %155 = arith.select %152, %154, %150 : vector<64x8xi1>, vector<64x8xf32>
    %156 = arith.fptosi %155 : vector<64x8xf32> to vector<64x8xi32>
    %c0_40 = arith.constant 0 : index
    %c0_41 = arith.constant 0 : index
    %157 = vector.load %arg4[%c0_40, %c0_41] : memref<64x8xi32, #tpu.memory_space<vmem>>, vector<64x8xi32>
    tpu.vector_store %arg4[%c0_40, %c0_41], %156 {strides = array<i32>} : memref<64x8xi32, #tpu.memory_space<vmem>>, vector<64x8xi32>,
    return
  }
  func.func @transform_0(%arg0: i32) -> (i32, i32) {
    %c0_i32 = arith.constant 0 : i32
    %c0_i32_0 = arith.constant 0 : i32
    return %arg0, %c0_i32 : i32, i32
  }
  func.func @transform_1(%arg0: i32) -> (i32, i32) {
    %c0_i32 = arith.constant 0 : i32
    %c0_i32_0 = arith.constant 0 : i32
    %c0_i32_1 = arith.constant 0 : i32
    return %c0_i32, %c0_i32_0 : i32, i32
  }
  func.func @transform_2(%arg0: i32) -> (i32, i32) {
    %c0_i32 = arith.constant 0 : i32
    %c0_i32_0 = arith.constant 0 : i32
    %c0_i32_1 = arith.constant 0 : i32
    return %c0_i32, %c0_i32_0 : i32, i32
  }
  func.func @transform_3(%arg0: i32) -> (i32, i32) {
    %c0_i32 = arith.constant 0 : i32
    %c0_i32_0 = arith.constant 0 : i32
    return %arg0, %c0_i32 : i32, i32
  }
}

module attributes {stable_mosaic.version = 11 : i64} {
  func.func @_edge_project_kernel(%arg0: i32, %arg1: memref<64x64xf32, #tpu.memory_space<vmem>>, %arg2: memref<64x64xbf16, #tpu.memory_space<vmem>>, %arg3: memref<64x64xbf16, #tpu.memory_space<vmem>>, %arg4: memref<1x64xf32, #tpu.memory_space<vmem>>, %arg5: memref<64x64xf32, #tpu.memory_space<vmem>>, %arg6: memref<64x64xf32, #tpu.memory_space<vmem>>) attributes {dimension_semantics = [#tpu.dimension_semantics<parallel>], iteration_bounds = array<i64: 1>, scalar_prefetch = 0 : i64, scratch_operands = 0 : i64, tpu.core_type = #tpu.core_type<tc>, window_params = [{transform_indices = @transform_0, window_bounds = array<i64: 64, 64>}, {pipeline_mode = #tpu.pipeline_mode<synchronous>, transform_indices = @transform_1, window_bounds = array<i64: 64, 64>}, {pipeline_mode = #tpu.pipeline_mode<synchronous>, transform_indices = @transform_2, window_bounds = array<i64: 64, 64>}, {pipeline_mode = #tpu.pipeline_mode<synchronous>, transform_indices = @transform_3, window_bounds = array<i64: 1, 64>}, {transform_indices = @transform_4, window_bounds = array<i64: 64, 64>}, {transform_indices = @transform_5, window_bounds = array<i64: 64, 64>}]} {
    %c0 = arith.constant 0 : index
    %c0_0 = arith.constant 0 : index
    %0 = vector.load %arg1[%c0, %c0_0] : memref<64x64xf32, #tpu.memory_space<vmem>>, vector<64x64xf32>
    %1 = arith.truncf %0 : vector<64x64xf32> to vector<64x64xbf16>
    %c0_1 = arith.constant 0 : index
    %c0_2 = arith.constant 0 : index
    %2 = vector.load %arg2[%c0_1, %c0_2] : memref<64x64xbf16, #tpu.memory_space<vmem>>, vector<64x64xbf16>
    %cst = arith.constant dense<0.000000e+00> : vector<64x64xf32>
    %3 = tpu.matmul %1, %2, %cst {dimension_numbers = #tpu.dot_dimension_numbers<[1], [0], [0], [1], [0, 0, 1, 1], [], []>} : vector<64x64xbf16>, vector<64x64xbf16>, vector<64x64xf32> -> vector<64x64xf32>
    %c0_3 = arith.constant 0 : index
    %c0_4 = arith.constant 0 : index
    %4 = vector.load %arg4[%c0_3, %c0_4] : memref<1x64xf32, #tpu.memory_space<vmem>>, vector<1x64xf32>
    %5 = vector.broadcast %4 : vector<1x64xf32> to vector<64x64xf32>
    %6 = arith.addf %3, %5 : vector<64x64xf32>
    %c0_5 = arith.constant 0 : index
    %c0_6 = arith.constant 0 : index
    %7 = vector.load %arg5[%c0_5, %c0_6] : memref<64x64xf32, #tpu.memory_space<vmem>>, vector<64x64xf32>
    tpu.vector_store %arg5[%c0_5, %c0_6], %6 {strides = array<i32>} : memref<64x64xf32, #tpu.memory_space<vmem>>, vector<64x64xf32>,
    %c0_7 = arith.constant 0 : index
    %c0_8 = arith.constant 0 : index
    %8 = vector.load %arg3[%c0_7, %c0_8] : memref<64x64xbf16, #tpu.memory_space<vmem>>, vector<64x64xbf16>
    %cst_9 = arith.constant dense<0.000000e+00> : vector<64x64xf32>
    %9 = tpu.matmul %1, %8, %cst_9 {dimension_numbers = #tpu.dot_dimension_numbers<[1], [0], [0], [1], [0, 0, 1, 1], [], []>} : vector<64x64xbf16>, vector<64x64xbf16>, vector<64x64xf32> -> vector<64x64xf32>
    %c0_10 = arith.constant 0 : index
    %c0_11 = arith.constant 0 : index
    %10 = vector.load %arg6[%c0_10, %c0_11] : memref<64x64xf32, #tpu.memory_space<vmem>>, vector<64x64xf32>
    tpu.vector_store %arg6[%c0_10, %c0_11], %9 {strides = array<i32>} : memref<64x64xf32, #tpu.memory_space<vmem>>, vector<64x64xf32>,
    return
  }
  func.func @transform_0(%arg0: i32) -> (i32, i32) {
    %c0_i32 = arith.constant 0 : i32
    %c0_i32_0 = arith.constant 0 : i32
    return %arg0, %c0_i32 : i32, i32
  }
  func.func @transform_1(%arg0: i32) -> (i32, i32) {
    %c0_i32 = arith.constant 0 : i32
    %c0_i32_0 = arith.constant 0 : i32
    %c0_i32_1 = arith.constant 0 : i32
    return %c0_i32, %c0_i32_0 : i32, i32
  }
  func.func @transform_2(%arg0: i32) -> (i32, i32) {
    %c0_i32 = arith.constant 0 : i32
    %c0_i32_0 = arith.constant 0 : i32
    %c0_i32_1 = arith.constant 0 : i32
    return %c0_i32, %c0_i32_0 : i32, i32
  }
  func.func @transform_3(%arg0: i32) -> (i32, i32) {
    %c0_i32 = arith.constant 0 : i32
    %c0_i32_0 = arith.constant 0 : i32
    %c0_i32_1 = arith.constant 0 : i32
    return %c0_i32, %c0_i32_0 : i32, i32
  }
  func.func @transform_4(%arg0: i32) -> (i32, i32) {
    %c0_i32 = arith.constant 0 : i32
    %c0_i32_0 = arith.constant 0 : i32
    return %arg0, %c0_i32 : i32, i32
  }
  func.func @transform_5(%arg0: i32) -> (i32, i32) {
    %c0_i32 = arith.constant 0 : i32
    %c0_i32_0 = arith.constant 0 : i32
    return %arg0, %c0_i32 : i32, i32
  }
}

module attributes {stable_mosaic.version = 11 : i64} {
  func.func @_head_kernel(%arg0: i32, %arg1: memref<64x192xf32, #tpu.memory_space<vmem>>, %arg2: memref<192x1024xbf16, #tpu.memory_space<vmem>>, %arg3: memref<1x1024xf32, #tpu.memory_space<vmem>>, %arg4: memref<1024x256xbf16, #tpu.memory_space<vmem>>, %arg5: memref<1x256xf32, #tpu.memory_space<vmem>>, %arg6: memref<256x128xbf16, #tpu.memory_space<vmem>>, %arg7: memref<1x128xf32, #tpu.memory_space<vmem>>, %arg8: memref<128x128xbf16, #tpu.memory_space<vmem>>, %arg9: memref<1x128xf32, #tpu.memory_space<vmem>>, %arg10: memref<64x128xf32, #tpu.memory_space<vmem>>) attributes {dimension_semantics = [#tpu.dimension_semantics<parallel>], iteration_bounds = array<i64: 1>, scalar_prefetch = 0 : i64, scratch_operands = 0 : i64, tpu.core_type = #tpu.core_type<tc>, window_params = [{transform_indices = @transform_0, window_bounds = array<i64: 64, 192>}, {pipeline_mode = #tpu.pipeline_mode<synchronous>, transform_indices = @transform_1, window_bounds = array<i64: 192, 1024>}, {pipeline_mode = #tpu.pipeline_mode<synchronous>, transform_indices = @transform_2, window_bounds = array<i64: 1, 1024>}, {pipeline_mode = #tpu.pipeline_mode<synchronous>, transform_indices = @transform_3, window_bounds = array<i64: 1024, 256>}, {pipeline_mode = #tpu.pipeline_mode<synchronous>, transform_indices = @transform_4, window_bounds = array<i64: 1, 256>}, {pipeline_mode = #tpu.pipeline_mode<synchronous>, transform_indices = @transform_5, window_bounds = array<i64: 256, 128>}, {pipeline_mode = #tpu.pipeline_mode<synchronous>, transform_indices = @transform_6, window_bounds = array<i64: 1, 128>}, {pipeline_mode = #tpu.pipeline_mode<synchronous>, transform_indices = @transform_7, window_bounds = array<i64: 128, 128>}, {pipeline_mode = #tpu.pipeline_mode<synchronous>, transform_indices = @transform_8, window_bounds = array<i64: 1, 128>}, {transform_indices = @transform_9, window_bounds = array<i64: 64, 128>}]} {
    %c0 = arith.constant 0 : index
    %c0_0 = arith.constant 0 : index
    %0 = vector.load %arg1[%c0, %c0_0] : memref<64x192xf32, #tpu.memory_space<vmem>>, vector<64x192xf32>
    %1 = arith.truncf %0 : vector<64x192xf32> to vector<64x192xbf16>
    %c0_1 = arith.constant 0 : index
    %c0_2 = arith.constant 0 : index
    %2 = vector.load %arg2[%c0_1, %c0_2] : memref<192x1024xbf16, #tpu.memory_space<vmem>>, vector<192x1024xbf16>
    %cst = arith.constant dense<0.000000e+00> : vector<64x1024xf32>
    %3 = tpu.matmul %1, %2, %cst {dimension_numbers = #tpu.dot_dimension_numbers<[1], [0], [0], [1], [0, 0, 1, 1], [], []>} : vector<64x192xbf16>, vector<192x1024xbf16>, vector<64x1024xf32> -> vector<64x1024xf32>
    %c0_3 = arith.constant 0 : index
    %c0_4 = arith.constant 0 : index
    %4 = vector.load %arg3[%c0_3, %c0_4] : memref<1x1024xf32, #tpu.memory_space<vmem>>, vector<1x1024xf32>
    %5 = vector.broadcast %4 : vector<1x1024xf32> to vector<64x1024xf32>
    %6 = arith.addf %3, %5 : vector<64x1024xf32>
    %cst_5 = arith.constant 0.000000e+00 : f32
    %7 = vector.broadcast %cst_5 : f32 to vector<64x1024xf32>
    %8 = arith.maximumf %6, %7 : vector<64x1024xf32>
    %9 = arith.truncf %8 : vector<64x1024xf32> to vector<64x1024xbf16>
    %c0_6 = arith.constant 0 : index
    %c0_7 = arith.constant 0 : index
    %10 = vector.load %arg4[%c0_6, %c0_7] : memref<1024x256xbf16, #tpu.memory_space<vmem>>, vector<1024x256xbf16>
    %cst_8 = arith.constant dense<0.000000e+00> : vector<64x256xf32>
    %11 = tpu.matmul %9, %10, %cst_8 {dimension_numbers = #tpu.dot_dimension_numbers<[1], [0], [0], [1], [0, 0, 1, 1], [], []>} : vector<64x1024xbf16>, vector<1024x256xbf16>, vector<64x256xf32> -> vector<64x256xf32>
    %c0_9 = arith.constant 0 : index
    %c0_10 = arith.constant 0 : index
    %12 = vector.load %arg5[%c0_9, %c0_10] : memref<1x256xf32, #tpu.memory_space<vmem>>, vector<1x256xf32>
    %13 = vector.broadcast %12 : vector<1x256xf32> to vector<64x256xf32>
    %14 = arith.addf %11, %13 : vector<64x256xf32>
    %cst_11 = arith.constant 0.000000e+00 : f32
    %15 = vector.broadcast %cst_11 : f32 to vector<64x256xf32>
    %16 = arith.maximumf %14, %15 : vector<64x256xf32>
    %17 = arith.truncf %16 : vector<64x256xf32> to vector<64x256xbf16>
    %c0_12 = arith.constant 0 : index
    %c0_13 = arith.constant 0 : index
    %18 = vector.load %arg6[%c0_12, %c0_13] : memref<256x128xbf16, #tpu.memory_space<vmem>>, vector<256x128xbf16>
    %cst_14 = arith.constant dense<0.000000e+00> : vector<64x128xf32>
    %19 = tpu.matmul %17, %18, %cst_14 {dimension_numbers = #tpu.dot_dimension_numbers<[1], [0], [0], [1], [0, 0, 1, 1], [], []>} : vector<64x256xbf16>, vector<256x128xbf16>, vector<64x128xf32> -> vector<64x128xf32>
    %c0_15 = arith.constant 0 : index
    %c0_16 = arith.constant 0 : index
    %20 = vector.load %arg7[%c0_15, %c0_16] : memref<1x128xf32, #tpu.memory_space<vmem>>, vector<1x128xf32>
    %21 = vector.broadcast %20 : vector<1x128xf32> to vector<64x128xf32>
    %22 = arith.addf %19, %21 : vector<64x128xf32>
    %cst_17 = arith.constant 0.000000e+00 : f32
    %23 = vector.broadcast %cst_17 : f32 to vector<64x128xf32>
    %24 = arith.maximumf %22, %23 : vector<64x128xf32>
    %25 = arith.truncf %24 : vector<64x128xf32> to vector<64x128xbf16>
    %c0_18 = arith.constant 0 : index
    %c0_19 = arith.constant 0 : index
    %26 = vector.load %arg8[%c0_18, %c0_19] : memref<128x128xbf16, #tpu.memory_space<vmem>>, vector<128x128xbf16>
    %cst_20 = arith.constant dense<0.000000e+00> : vector<64x128xf32>
    %27 = tpu.matmul %25, %26, %cst_20 {dimension_numbers = #tpu.dot_dimension_numbers<[1], [0], [0], [1], [0, 0, 1, 1], [], []>} : vector<64x128xbf16>, vector<128x128xbf16>, vector<64x128xf32> -> vector<64x128xf32>
    %c0_21 = arith.constant 0 : index
    %c0_22 = arith.constant 0 : index
    %28 = vector.load %arg9[%c0_21, %c0_22] : memref<1x128xf32, #tpu.memory_space<vmem>>, vector<1x128xf32>
    %29 = vector.broadcast %28 : vector<1x128xf32> to vector<64x128xf32>
    %30 = arith.addf %27, %29 : vector<64x128xf32>
    %cst_23 = arith.constant dense<0xFF800000> : vector<64xf32>
    %31 = vector.multi_reduction <maximumf>, %30, %cst_23 [1] : vector<64x128xf32> to vector<64xf32>
    %32 = vector.shape_cast %31 : vector<64xf32> to vector<64x1xf32>
    %33 = vector.broadcast %32 : vector<64x1xf32> to vector<64x128xf32>
    %34 = arith.subf %30, %33 : vector<64x128xf32>
    %35 = math.exp %34 : vector<64x128xf32>
    %cst_24 = arith.constant dense<0.000000e+00> : vector<64xf32>
    %36 = vector.multi_reduction <add>, %35, %cst_24 [1] : vector<64x128xf32> to vector<64xf32>
    %37 = vector.shape_cast %36 : vector<64xf32> to vector<64x1xf32>
    %38 = math.log %37 : vector<64x1xf32>
    %39 = vector.broadcast %38 : vector<64x1xf32> to vector<64x128xf32>
    %40 = arith.subf %34, %39 : vector<64x128xf32>
    %c0_25 = arith.constant 0 : index
    %c0_26 = arith.constant 0 : index
    %41 = vector.load %arg10[%c0_25, %c0_26] : memref<64x128xf32, #tpu.memory_space<vmem>>, vector<64x128xf32>
    tpu.vector_store %arg10[%c0_25, %c0_26], %40 {strides = array<i32>} : memref<64x128xf32, #tpu.memory_space<vmem>>, vector<64x128xf32>,
    return
  }
  func.func @transform_0(%arg0: i32) -> (i32, i32) {
    %c0_i32 = arith.constant 0 : i32
    %c0_i32_0 = arith.constant 0 : i32
    return %arg0, %c0_i32 : i32, i32
  }
  func.func @transform_1(%arg0: i32) -> (i32, i32) {
    %c0_i32 = arith.constant 0 : i32
    %c0_i32_0 = arith.constant 0 : i32
    %c0_i32_1 = arith.constant 0 : i32
    return %c0_i32, %c0_i32_0 : i32, i32
  }
  func.func @transform_2(%arg0: i32) -> (i32, i32) {
    %c0_i32 = arith.constant 0 : i32
    %c0_i32_0 = arith.constant 0 : i32
    %c0_i32_1 = arith.constant 0 : i32
    return %c0_i32, %c0_i32_0 : i32, i32
  }
  func.func @transform_3(%arg0: i32) -> (i32, i32) {
    %c0_i32 = arith.constant 0 : i32
    %c0_i32_0 = arith.constant 0 : i32
    %c0_i32_1 = arith.constant 0 : i32
    return %c0_i32, %c0_i32_0 : i32, i32
  }
  func.func @transform_4(%arg0: i32) -> (i32, i32) {
    %c0_i32 = arith.constant 0 : i32
    %c0_i32_0 = arith.constant 0 : i32
    %c0_i32_1 = arith.constant 0 : i32
    return %c0_i32, %c0_i32_0 : i32, i32
  }
  func.func @transform_5(%arg0: i32) -> (i32, i32) {
    %c0_i32 = arith.constant 0 : i32
    %c0_i32_0 = arith.constant 0 : i32
    %c0_i32_1 = arith.constant 0 : i32
    return %c0_i32, %c0_i32_0 : i32, i32
  }
  func.func @transform_6(%arg0: i32) -> (i32, i32) {
    %c0_i32 = arith.constant 0 : i32
    %c0_i32_0 = arith.constant 0 : i32
    %c0_i32_1 = arith.constant 0 : i32
    return %c0_i32, %c0_i32_0 : i32, i32
  }
  func.func @transform_7(%arg0: i32) -> (i32, i32) {
    %c0_i32 = arith.constant 0 : i32
    %c0_i32_0 = arith.constant 0 : i32
    %c0_i32_1 = arith.constant 0 : i32
    return %c0_i32, %c0_i32_0 : i32, i32
  }
  func.func @transform_8(%arg0: i32) -> (i32, i32) {
    %c0_i32 = arith.constant 0 : i32
    %c0_i32_0 = arith.constant 0 : i32
    %c0_i32_1 = arith.constant 0 : i32
    return %c0_i32, %c0_i32_0 : i32, i32
  }
  func.func @transform_9(%arg0: i32) -> (i32, i32) {
    %c0_i32 = arith.constant 0 : i32
    %c0_i32_0 = arith.constant 0 : i32
    return %arg0, %c0_i32 : i32, i32
  }
}

</mosaic_0001>

<bundles_post_ra>
// kernel: hybrid_dgnn_forward.11
= control target key start
LH: loop header
LB: loop body
LE: loop exit
PB: predicated region body
PF: predicated region fallthrough
CT: control target
= control target key end

     0   :  { %vm53_vm0 = vcmask 1040384   ;;  %vm54_vm1 = vcmask 1041408   ;;  %v259_v1 = vmov 65535   ;;  %vm40_vm2 = vcmask 23552   ;;  %s395_s1 = inlined_call_operand.vmem [shape: bf16[3,64], index: 1, kind: input, shape index: {}]   ;;  %s396_s2 = inlined_call_operand.vmem [shape: bf16[3,64], index: 2, kind: input, shape index: {}]   ;;  %s397_s0 = inlined_call_operand.vmem [shape: f32[64,3], index: 0, kind: input, shape index: {}]   ;;  %s398_s3 = inlined_call_operand.vmem [shape: f32[1,64], index: 3, kind: input, shape index: {}]   ;;  %s399_s5 = inlined_call_operand.vmem [shape: f32[64,64], index: 5, kind: output, shape index: {1}]   ;;  %s400_s4 = inlined_call_operand.vmem [shape: f32[64,64], index: 4, kind: output, shape index: {0}]  }
   0x1   :  { %v32_v0 = vld [vmem:[%s395_s1] sm:$0x3]  ;;  %v55_v2 = vsel %vm53_vm0, 4294967295, %v259_v1  ;;  %v21_v6 = vld [vmem:[%s397_s0 + $0x8] sm:$0xff]  ;;  %v22_v7 = vld [vmem:[%s397_s0 + $0x10] sm:$0xff]  ;;  %vm125_vm3 = vcmask 523264  }
   0x2   :  { %v134_v3 = vld [vmem:[%s396_s2] sm:$0x3]  ;;  %v56_v5 = vsel %vm54_vm1, %v55_v2, 0  ;;  %v23_v8 = vld [vmem:[%s397_s0 + $0x18] sm:$0xff]  ;;  %v25_v13 = vld [vmem:[%s397_s0 + $0x28] sm:$0xff] }
   0x3   :  { %v20_v4 = vld [vmem:[%s397_s0] sm:$0xff]  ;;  %v58_v9 = vand.u32 %v56_v5, %v32_v0  ;;  %v136_v10 = vand.u32 %v134_v3, %v56_v5  ;;  %v29_v14 = vpack.c.bf16 %v23_v8, %v22_v7  ;;  %v26_v16 = vld [vmem:[%s397_s0 + $0x30] sm:$0xff]  ;;  %v27_v17 = vld [vmem:[%s397_s0 + $0x38] sm:$0xff] }
   0x4   :  { %v28_v11 = vpack.c.bf16 %v21_v6, %v20_v4  ;;  %v24_v12 = vld [vmem:[%s397_s0 + $0x20] sm:$0xff]  ;;  %v31_v18 = vpack.c.bf16 %v27_v17, %v26_v16 }
   0x5   :  { %238 = vmatprep.subr.bf16.mxu0 %v58_v9  ;;  %248 = vmatprep.subr.bf16.mxu1 %v136_v10  ;;  %v30_v15 = vpack.c.bf16 %v25_v13, %v24_v12  ;;  %v219_v19 = vld [vmem:[%s398_s3] ss:$0 sm:$0xff] }
   0x6   :  { %239 = vmatpush3.bf16.msra.mxu0 %v58_v9  ;;  %249 = vmatpush3.bf16.msra.mxu1 %v136_v10 }
   0x7   :  { %240 = vmatprep.mubr.msk.bf16.mxu0 %vm40_vm2, %v28_v11  ;;  %250 = vmatprep.mubr.msk.bf16.mxu1 %vm40_vm2, %v28_v11 }
   0x9   :  { %241 = vmatmul.mubr.msk.bf16.vlgmr.msra.gmra.mrb[0].mxu0 %vm40_vm2, %v29_v14  ;;  %251 = vmatmul.mubr.msk.bf16.vlgmr.msra.gmra.mrb[0].mxu1 %vm40_vm2, %v29_v14 }
   0xa   :  { %244 = vmatprep.mubr.msk.bf16.mxu0 %vm40_vm2, %v30_v15  ;;  %254 = vmatprep.mubr.msk.bf16.mxu1 %vm40_vm2, %v30_v15 }
  0x11   :  { %245 = vmatmul.mubr.msk.bf16.gmra.mrb[4].mxu0 %vm40_vm2, %v31_v18  ;;  %255 = vmatmul.mubr.msk.bf16.gmra.mrb[4].mxu1 %vm40_vm2, %v31_v18 }
  0xdc   :  { %v242_v20 = vpop.f32.mrb[0].mxu0  ;;  %v252_v21 = vpop.f32.mrb[0].mxu1 }
  0xdd   :  { %v103_v22 = vadd.f32 %v242_v20, %v219_v19  ;;  %205 = vst.msk [vmem:[%s399_s5 + $0x10] sm:$0xff] %vm125_vm3, %v252_v21  ;;  %v94_v23 = vpop.f32.mrb[1].mxu0  ;;  %v172_v24 = vpop.f32.mrb[1].mxu1 }
  0xde   :  { %v95_v25 = vadd.f32 %v219_v19, %v94_v23  ;;  %203 = vst.msk [vmem:[%s399_s5] sm:$0xff] %vm125_vm3, %v172_v24  ;;  %v243_v26 = vpop.f32.mrb[2].mxu0  ;;  %v253_v27 = vpop.f32.mrb[2].mxu1 }
  0xdf   :  { %128 = vst.msk [vmem:[%s400_s4 + $0x10] sm:$0xff] %vm125_vm3, %v103_v22  ;;  %v106_v28 = vadd.f32 %v243_v26, %v219_v19  ;;  %206 = vst.msk [vmem:[%s399_s5 + $0x18] sm:$0xff] %vm125_vm3, %v253_v27  ;;  %v97_v29 = vpop.f32.mrb[3].mxu0  ;;  %v175_v30 = vpop.f32.mrb[3].mxu1 }
  0xe0   :  { %126 = vst.msk [vmem:[%s400_s4] sm:$0xff] %vm125_vm3, %v95_v25  ;;  %v98_v31 = vadd.f32 %v219_v19, %v97_v29  ;;  %204 = vst.msk [vmem:[%s399_s5 + $0x8] sm:$0xff] %vm125_vm3, %v175_v30 }
  0xe1   :  { %129 = vst.msk [vmem:[%s400_s4 + $0x18] sm:$0xff] %vm125_vm3, %v106_v28 }
  0xe2   :  { %127 = vst.msk [vmem:[%s400_s4 + $0x8] sm:$0xff] %vm125_vm3, %v98_v31 }
  0xe4   :  { %v246_v32 = vpop.f32.mrb[4].mxu0  ;;  %v256_v33 = vpop.f32.mrb[4].mxu1 }
  0xe5   :  { %v119_v34 = vadd.f32 %v246_v32, %v219_v19  ;;  %209 = vst.msk [vmem:[%s399_s5 + $0x30] sm:$0xff] %vm125_vm3, %v256_v33  ;;  %v110_v35 = vpop.f32.mrb[5].mxu0  ;;  %v188_v36 = vpop.f32.mrb[5].mxu1 }
  0xe6   :  { %v111_v37 = vadd.f32 %v219_v19, %v110_v35  ;;  %207 = vst.msk [vmem:[%s399_s5 + $0x20] sm:$0xff] %vm125_vm3, %v188_v36  ;;  %v247_v38 = vpop.f32.mrb[6].mxu0  ;;  %v257_v39 = vpop.f32.mrb[6].mxu1 }
  0xe7   :  { %132 = vst.msk [vmem:[%s400_s4 + $0x30] sm:$0xff] %vm125_vm3, %v119_v34  ;;  %v122_v40 = vadd.f32 %v247_v38, %v219_v19  ;;  %210 = vst.msk [vmem:[%s399_s5 + $0x38] sm:$0xff] %vm125_vm3, %v257_v39  ;;  %v113_v41 = vpop.f32.mrb[7].mxu0  ;;  %v191_v42 = vpop.f32.mrb[7].mxu1 }
  0xe8   :  { %130 = vst.msk [vmem:[%s400_s4 + $0x20] sm:$0xff] %vm125_vm3, %v111_v37  ;;  %v114_v43 = vadd.f32 %v219_v19, %v113_v41  ;;  %208 = vst.msk [vmem:[%s399_s5 + $0x28] sm:$0xff] %vm125_vm3, %v191_v42 }
  0xe9   :  { %133 = vst.msk [vmem:[%s400_s4 + $0x38] sm:$0xff] %vm125_vm3, %v122_v40 }
  0xea   :  { %131 = vst.msk [vmem:[%s400_s4 + $0x28] sm:$0xff] %vm125_vm3, %v114_v43 }

// kernel: hybrid_dgnn_forward.10
= control target key start
LH: loop header
LB: loop body
LE: loop exit
PB: predicated region body
PF: predicated region fallthrough
CT: control target
= control target key end

     0   :  { %vm39_vm0 = vcmask 23552   ;;  %v248_v39 = vlaneseq  ;;  %vm285_vm3 = vcmask 523264   ;;  %s2154_s1 = inlined_call_operand.vmem [shape: f32[64,3], index: 1, kind: input, shape index: {}, may-alias: {0,1}]   ;;  %s2155_s0 = inlined_call_operand.vmem [shape: f32[64,3], index: 0, kind: input, shape index: {}, may-alias: {0,1}]   ;;  %s2156_s2 = inlined_call_operand.vmem [shape: f32[1,64], index: 2, kind: input, shape index: {}]   ;;  %s2157_s3 = inlined_call_operand.vmem [shape: s32[64,8], index: 3, kind: output, shape index: {}]  }
   0x1   :  { %v23_v0 = vld [vmem:[%s2154_s1] sm:$0xff]  ;;  %v24_v1 = vld [vmem:[%s2154_s1 + $0x8] sm:$0xff]  ;;  %vm1140_vm1 = vmpackc.low %vm39_vm0, %vm39_vm0 }
   0x2   :  { %v1064_v3 = vpack.c.bf16 %v24_v1, %v23_v0  ;;  %v25_v4 = vld [vmem:[%s2154_s1 + $0x10] sm:$0xff]  ;;  %v26_v5 = vld [vmem:[%s2154_s1 + $0x18] sm:$0xff]  ;;  %v15_v7 = vld [vmem:[%s2155_s0] sm:$0xff]  ;;  %v249_v42 = vshrl.u32 %v248_v39, 7  ;;  %v1234_v45 = vand.u32 127, %v248_v39 }
   0x3   :  { %v1070_v6 = vpack.c.bf16 %v26_v5, %v25_v4  ;;  %v16_v8 = vld [vmem:[%s2155_s0 + $0x8] sm:$0xff]  ;;  %v19_v9 = vld [vmem:[%s2155_s0 + $0x20] sm:$0xff]  ;;  %v31_v10 = vmul.f32 %v15_v7, %v15_v7  ;;  %v17_v11 = vld [vmem:[%s2155_s0 + $0x10] sm:$0xff]  ;;  %1052 = vmatprep.mubr.msk.f32.mxu0 %vm39_vm0, %v15_v7 }
   0x4   :  { %1066 = vmatprep.subr.msk.bf16.mxu0 %vm1140_vm1, %v1064_v3  ;;  %1088 = vmatprep.subr.msk.bf16.mxu1 %vm1140_vm1, %v1064_v3  ;;  %v32_v12 = vmul.f32 %v16_v8, %v16_v8  ;;  %v33_v13 = vmul.f32 %v17_v11, %v17_v11  ;;  %v27_v14 = vld [vmem:[%s2154_s1 + $0x20] sm:$0xff]  ;;  %v28_v15 = vld [vmem:[%s2154_s1 + $0x28] sm:$0xff]  ;;  %v18_v16 = vld [vmem:[%s2155_s0 + $0x18] sm:$0xff]  ;;  %v35_v20 = vmul.f32 %v19_v9, %v19_v9  ;;  %v250_v44 = vadd.s32 8, %v249_v42 }
   0x5   :  { %1069 = vmatpush3.bf16.xpose.msk.msra.mxu0 %vm1140_vm1, %v1064_v3  ;;  %1092 = vmatpush3.bf16.xpose.msk.msra.mxu1 %vm1140_vm1, %v1064_v3  ;;  %v40_v17 = vsel %vm39_vm0, %v31_v10, 0.0  ;;  %v34_v19 = vmul.f32 %v18_v16, %v18_v16  ;;  %v1076_v22 = vpack.c.bf16 %v28_v15, %v27_v14  ;;  %v20_v23 = vld [vmem:[%s2155_s0 + $0x28] sm:$0xff]  ;;  %v21_v24 = vld [vmem:[%s2155_s0 + $0x30] sm:$0xff]  ;;  %v30_v30 = vld [vmem:[%s2154_s1 + $0x38] sm:$0xff]  ;;  %v254_v47 = vadd.s32 40, %v249_v42 }
   0x6   :  { %1072 = vmatprep.subr.msk.bf16.mxu0 %vm1140_vm1, %v1070_v6  ;;  %1089 = vmatprep.subr.msk.bf16.mxu1 %vm1140_vm1, %v1070_v6  ;;  %v46_v18 = vsel %vm39_vm0, %v33_v13, 0.0  ;;  %v43_v21 = vsel %vm39_vm0, %v32_v12, 0.0  ;;  %v36_v26 = vmul.f32 %v20_v23, %v20_v23  ;;  %v52_v27 = vsel %vm39_vm0, %v35_v20, 0.0  ;;  %v29_v29 = vld [vmem:[%s2154_s1 + $0x30] sm:$0xff]  ;;  %v22_v31 = vld [vmem:[%s2155_s0 + $0x38] sm:$0xff] }
   0x7   :  { %1058 = vmatprep.mubr.msk.f32.mxu1 %vm39_vm0, %v19_v9  ;;  %41 = vadd.xlane.f32.xlu0 %v40_v17  ;;  %v49_v25 = vsel %vm39_vm0, %v34_v19, 0.0  ;;  %v37_v28 = vmul.f32 %v21_v24, %v21_v24  ;;  %v38_v33 = vmul.f32 %v22_v31, %v22_v31  ;;  %v1082_v35 = vpack.c.bf16 %v30_v30, %v29_v29  ;;  %v1019_v48 = vld [vmem:[%s2156_s2] ss:$0 sm:$0xff] }
   0x8   :  { %47 = vadd.xlane.f32.xlu1 %v46_v18  ;;  %v55_v32 = vsel %vm39_vm0, %v36_v26, 0.0  ;;  %v253_v49 = vadd.s32 32, %v249_v42  ;;  %vm270_vm2 = vcmp.eq.s32.totalorder %v250_v44, %v1234_v45  ;;  %vm269_vm4 = vcmp.eq.s32.totalorder %v249_v42, %v1234_v45 }
   0x9   :  { %v58_v34 = vsel %vm39_vm0, %v37_v28, 0.0  ;;  %v61_v36 = vsel %vm39_vm0, %v38_v33, 0.0  ;;  %v252_v56 = vadd.s32 24, %v249_v42  ;;  %vm274_vm5 = vcmp.eq.s32.totalorder %v254_v47, %v1234_v45 }
   0xa   :  { %v251_v61 = vadd.s32 16, %v249_v42  ;;  %vm273_vm6 = vcmp.eq.s32.totalorder %v253_v49, %v1234_v45  ;;  %v256_v5 = vadd.s32 56, %v249_v42 }
   0xb   :  { %44 = vadd.xlane.f32.xlu0 %v43_v21  ;;  %vm272_vm7 = vcmp.eq.s32.totalorder %v252_v56, %v1234_v45 }
   0xc   :  { %50 = vadd.xlane.f32.xlu1 %v49_v25  ;;  %v255_v25 = vadd.s32 48, %v249_v42  ;;  %vm271_vm8 = vcmp.eq.s32.totalorder %v251_v61, %v1234_v45  ;;  %vm276_vm9 = vcmp.eq.s32.totalorder %v256_v5, %v1234_v45 }
   0xd   :  { %1075 = vmatpush3.bf16.xpose.msk.msra.mxu0 %vm1140_vm1, %v1070_v6  ;;  %1093 = vmatpush3.bf16.xpose.msk.msra.mxu1 %vm1140_vm1, %v1070_v6 }
   0xe   :  { %1078 = vmatprep.subr.msk.bf16.mxu0 %vm1140_vm1, %v1076_v22  ;;  %1090 = vmatprep.subr.msk.bf16.mxu1 %vm1140_vm1, %v1076_v22  ;;  %vm275_vm10 = vcmp.eq.s32.totalorder %v255_v25, %v1234_v45 }
   0xf   :  { %53 = vadd.xlane.f32.xlu0 %v52_v27 }
  0x10   :  { %56 = vadd.xlane.f32.xlu1 %v55_v32 }
  0x13   :  { %59 = vadd.xlane.f32.xlu0 %v58_v34 }
  0x14   :  { %62 = vadd.xlane.f32.xlu1 %v61_v36 }
  0x15   :  { %1081 = vmatpush3.bf16.xpose.msk.msra.mxu0 %vm1140_vm1, %v1076_v22  ;;  %1094 = vmatpush3.bf16.xpose.msk.msra.mxu1 %vm1140_vm1, %v1076_v22 }
  0x16   :  { %1084 = vmatprep.subr.msk.bf16.mxu0 %vm1140_vm1, %v1082_v35  ;;  %1091 = vmatprep.subr.msk.bf16.mxu1 %vm1140_vm1, %v1082_v35 }
  0x1d   :  { %1087 = vmatpush3.bf16.xpose.msk.msra.mxu0 %vm1140_vm1, %v1082_v35  ;;  %1095 = vmatpush3.bf16.xpose.msk.msra.mxu1 %vm1140_vm1, %v1082_v35 }
  0x24   :  { %1053 = vmatmul.mubr.msk.f32.vlgmr.msra.gmra.mrb[0].mxu0 %vm39_vm0, %v16_v8  ;;  %1059 = vmatmul.mubr.msk.f32.vlgmr.msra.gmra.mrb[0].mxu1 %vm39_vm0, %v20_v23 }
  0x25   :  { %1055 = vmatprep.mubr.msk.f32.mxu0 %vm39_vm0, %v17_v11  ;;  %1061 = vmatprep.mubr.msk.f32.mxu1 %vm39_vm0, %v21_v24 }
  0x28   :  { %1056 = vmatmul.mubr.msk.f32.gmra.mrb[2].mxu0 %vm39_vm0, %v18_v16  ;;  %1062 = vmatmul.mubr.msk.f32.gmra.mrb[2].mxu1 %vm39_vm0, %v22_v31 }
  0x94   :  { %v42_v37 = vpop.xlane.xlu0 %41 }
  0x95   :  { %v48_v38 = vpop.xlane.xlu1 %47  ;;  %v224_v62 = vadd.f32 %v1019_v48, %v42_v37 }
  0x96   :  { %v226_v2 = vadd.f32 %v1019_v48, %v48_v38 }
  0x98   :  { %v45_v40 = vpop.xlane.xlu0 %44 }
  0x99   :  { %v51_v41 = vpop.xlane.xlu1 %50  ;;  %v225_v50 = vadd.f32 %v1019_v48, %v45_v40  ;;  %v1288_v40 = vcvt.s32.f32 %v1234_v45 }
  0x9a   :  { %v227_v6 = vadd.f32 %v1019_v48, %v51_v41 }
  0x9c   :  { %v54_v43 = vpop.xlane.xlu0 %53 }
  0x9d   :  { %v57_v46 = vpop.xlane.xlu1 %56  ;;  %v228_v55 = vadd.f32 %v1019_v48, %v54_v43 }
  0x9e   :  { %v229_v51 = vadd.f32 %v1019_v48, %v57_v46 }
  0xa0   :  { %v60_v52 = vpop.xlane.xlu0 %59 }
  0xa1   :  { %v63_v1 = vpop.xlane.xlu1 %62  ;;  %v230_v11 = vadd.f32 %v1019_v48, %v60_v52 }
  0xa2   :  { %v231_v17 = vadd.f32 %v1019_v48, %v63_v1 }
  0xf7   :  { %v1054_v53 = vpop.f32.mrb[0].mxu0  ;;  %v1060_v54 = vpop.f32.mrb[0].mxu1 }
  0xf8   :  { %v233_v57 = vmul.f32 2.0, %v1054_v53  ;;  %v178_v58 = vpop.f32.mrb[1].mxu0  ;;  %v237_v59 = vmul.f32 2.0, %v1060_v54  ;;  %v198_v60 = vpop.f32.mrb[1].mxu1 }
  0xf9   :  { %v232_v63 = vmul.f32 2.0, %v178_v58  ;;  %v236_v0 = vmul.f32 2.0, %v198_v60 }
  0xfa   :  { %v241_v3 = vsub.f32 %v225_v50, %v233_v57  ;;  %v245_v4 = vsub.f32 %v229_v51, %v237_v59 }
  0xfb   :  { %v240_v7 = vsub.f32 %v224_v62, %v232_v63  ;;  %v1057_v8 = vpop.f32.mrb[2].mxu0  ;;  %v244_v9 = vsub.f32 %v228_v55, %v236_v0  ;;  %v1063_v10 = vpop.f32.mrb[2].mxu1 }
  0xfc   :  { %v235_v12 = vmul.f32 2.0, %v1057_v8  ;;  %v188_v13 = vpop.f32.mrb[3].mxu0  ;;  %v1245_v14 = vsel %vm270_vm2, 1e+30, %v241_v3  ;;  %v239_v15 = vmul.f32 2.0, %v1063_v10  ;;  %v208_v16 = vpop.f32.mrb[3].mxu1 }
  0xfd   :  { %v234_v18 = vmul.f32 2.0, %v188_v13  ;;  %v289_v19 = vsel %vm285_vm3, %v1245_v14, inf  ;;  %v1251_v20 = vsel %vm269_vm4, 1e+30, %v240_v7  ;;  %v1255_v21 = vsel %vm274_vm5, 1e+30, %v245_v4 }
  0xfe   :  { %v243_v22 = vsub.f32 %v227_v6, %v235_v12  ;;  %290 = vmin.xlane.f32.xlu1 %v289_v19  ;;  %v286_v23 = vsel %vm285_vm3, %v1251_v20, inf  ;;  %v238_v24 = vmul.f32 2.0, %v208_v16  ;;  %v301_v27 = vsel %vm285_vm3, %v1255_v21, inf }
  0xff   :  { %v242_v26 = vsub.f32 %v226_v2, %v234_v18  ;;  %287 = vmin.xlane.f32.xlu0 %v286_v23  ;;  %v1263_v28 = vsel %vm273_vm6, 1e+30, %v244_v9  ;;  %v247_v29 = vsub.f32 %v231_v17, %v239_v15 }
 0x100   :  { %v298_v30 = vsel %vm285_vm3, %v1263_v28, inf  ;;  %v246_v31 = vsub.f32 %v230_v11, %v238_v24  ;;  %v1270_v32 = vsel %vm272_vm7, 1e+30, %v243_v22 }
 0x101   :  { %v1273_v33 = vsel %vm271_vm8, 1e+30, %v242_v26  ;;  %v1275_v34 = vsel %vm276_vm9, 1e+30, %v247_v29  ;;  %v295_v35 = vsel %vm285_vm3, %v1270_v32, inf }
 0x102   :  { %302 = vmin.xlane.f32.xlu1 %v301_v27  ;;  %v1279_v36 = vsel %vm275_vm10, 1e+30, %v246_v31  ;;  %v292_v37 = vsel %vm285_vm3, %v1273_v33, inf  ;;  %v307_v38 = vsel %vm285_vm3, %v1275_v34, inf }
 0x103   :  { %299 = vmin.xlane.f32.xlu0 %v298_v30  ;;  %v304_v39 = vsel %vm285_vm3, %v1279_v36, inf }
 0x106   :  { %296 = vmin.xlane.f32.xlu1 %v295_v35 }
 0x107   :  { %293 = vmin.xlane.f32.xlu0 %v292_v37 }
 0x10a   :  { %308 = vmin.xlane.f32.xlu1 %v307_v38 }
 0x10b   :  { %305 = vmin.xlane.f32.xlu0 %v304_v39 }
 0x18b   :  { %v291_v41 = vpop.xlane.xlu1 %290 }
 0x18c   :  { %vm311_vm11 = vcmp.le.f32.partialorder %v1245_v14, %v291_v41  ;;  %v288_v42 = vpop.xlane.xlu0 %287 }
 0x18d   :  { %vm310_vm12 = vcmp.le.f32.partialorder %v1251_v20, %v288_v42  ;;  %v319_v43 = vsel %vm311_vm11, %v1288_v40, 64.0 }
 0x18e   :  { %v329_v44 = vsel %vm285_vm3, %v319_v43, inf  ;;  %v318_v46 = vsel %vm310_vm12, %v1288_v40, 64.0 }
 0x18f   :  { %330 = vmin.xlane.f32.xlu1 %v329_v44  ;;  %v303_v47 = vpop.xlane.xlu1 %302  ;;  %v326_v48 = vsel %vm285_vm3, %v318_v46, inf }
 0x190   :  { %vm315_vm13 = vcmp.le.f32.partialorder %v1255_v21, %v303_v47  ;;  %327 = vmin.xlane.f32.xlu0 %v326_v48  ;;  %v300_v49 = vpop.xlane.xlu0 %299 }
 0x191   :  { %vm314_vm14 = vcmp.le.f32.partialorder %v1263_v28, %v300_v49  ;;  %v323_v50 = vsel %vm315_vm13, %v1288_v40, 64.0 }
 0x192   :  { %v341_v51 = vsel %vm285_vm3, %v323_v50, inf  ;;  %v322_v52 = vsel %vm314_vm14, %v1288_v40, 64.0 }
 0x193   :  { %342 = vmin.xlane.f32.xlu1 %v341_v51  ;;  %v297_v53 = vpop.xlane.xlu1 %296  ;;  %v338_v54 = vsel %vm285_vm3, %v322_v52, inf }
 0x194   :  { %vm313_vm15 = vcmp.le.f32.partialorder %v1270_v32, %v297_v53  ;;  %339 = vmin.xlane.f32.xlu0 %v338_v54  ;;  %v294_v55 = vpop.xlane.xlu0 %293 }
 0x195   :  { %vm312_vm0 = vcmp.le.f32.partialorder %v1273_v33, %v294_v55  ;;  %v321_v56 = vsel %vm313_vm15, %v1288_v40, 64.0 }
 0x196   :  { %v335_v57 = vsel %vm285_vm3, %v321_v56, inf  ;;  %v320_v58 = vsel %vm312_vm0, %v1288_v40, 64.0 }
 0x197   :  { %336 = vmin.xlane.f32.xlu1 %v335_v57  ;;  %v309_v59 = vpop.xlane.xlu1 %308  ;;  %v332_v60 = vsel %vm285_vm3, %v320_v58, inf }
 0x198   :  { %vm317_vm1 = vcmp.le.f32.partialorder %v1275_v34, %v309_v59  ;;  %333 = vmin.xlane.f32.xlu0 %v332_v60  ;;  %v306_v61 = vpop.xlane.xlu0 %305 }
 0x199   :  { %vm316_vm2 = vcmp.le.f32.partialorder %v1279_v36, %v306_v61  ;;  %v325_v62 = vsel %vm317_vm1, %v1288_v40, 64.0 }
 0x19a   :  { %v347_v63 = vsel %vm285_vm3, %v325_v62, inf  ;;  %v324_v0 = vsel %vm316_vm2, %v1288_v40, 64.0 }
 0x19b   :  { %348 = vmin.xlane.f32.xlu1 %v347_v63  ;;  %v344_v1 = vsel %vm285_vm3, %v324_v0, inf }
 0x19c   :  { %345 = vmin.xlane.f32.xlu0 %v344_v1 }
 0x21c   :  { %v1314_v2 = vpop.xlane.xlu1 %330 }
 0x21d   :  { %vm351_vm4 = vcmp.eq.f32.partialorder %v1288_v40, %v1314_v2  ;;  %v1318_v3 = vpop.xlane.xlu0 %327 }
 0x21e   :  { %vm350_vm5 = vcmp.eq.f32.partialorder %v1288_v40, %v1318_v3  ;;  %v1323_v4 = vsel %vm351_vm4, 1e+30, %v1245_v14 }
 0x21f   :  { %v369_v5 = vsel %vm285_vm3, %v1323_v4, inf  ;;  %v1328_v6 = vsel %vm350_vm5, 1e+30, %v1251_v20 }
 0x220   :  { %370 = vmin.xlane.f32.xlu1 %v369_v5  ;;  %v1330_v7 = vpop.xlane.xlu1 %342  ;;  %v366_v8 = vsel %vm285_vm3, %v1328_v6, inf }
 0x221   :  { %vm355_vm6 = vcmp.eq.f32.partialorder %v1288_v40, %v1330_v7  ;;  %367 = vmin.xlane.f32.xlu0 %v366_v8  ;;  %v1336_v9 = vpop.xlane.xlu0 %339 }
 0x222   :  { %vm354_vm7 = vcmp.eq.f32.partialorder %v1288_v40, %v1336_v9  ;;  %v1341_v10 = vsel %vm355_vm6, 1e+30, %v1255_v21 }
 0x223   :  { %v381_v11 = vsel %vm285_vm3, %v1341_v10, inf  ;;  %v1346_v12 = vsel %vm354_vm7, 1e+30, %v1263_v28 }
 0x224   :  { %382 = vmin.xlane.f32.xlu1 %v381_v11  ;;  %v1348_v13 = vpop.xlane.xlu1 %336  ;;  %v378_v14 = vsel %vm285_vm3, %v1346_v12, inf }
 0x225   :  { %vm353_vm8 = vcmp.eq.f32.partialorder %v1288_v40, %v1348_v13  ;;  %379 = vmin.xlane.f32.xlu0 %v378_v14  ;;  %v1354_v15 = vpop.xlane.xlu0 %333 }
 0x226   :  { %vm352_vm9 = vcmp.eq.f32.partialorder %v1288_v40, %v1354_v15  ;;  %v1359_v16 = vsel %vm353_vm8, 1e+30, %v1270_v32 }
 0x227   :  { %v375_v17 = vsel %vm285_vm3, %v1359_v16, inf  ;;  %v1364_v18 = vsel %vm352_vm9, 1e+30, %v1273_v33 }
 0x228   :  { %376 = vmin.xlane.f32.xlu1 %v375_v17  ;;  %v1366_v19 = vpop.xlane.xlu1 %348  ;;  %v372_v20 = vsel %vm285_vm3, %v1364_v18, inf }
 0x229   :  { %vm357_vm10 = vcmp.eq.f32.partialorder %v1288_v40, %v1366_v19  ;;  %373 = vmin.xlane.f32.xlu0 %v372_v20  ;;  %v1372_v21 = vpop.xlane.xlu0 %345 }
 0x22a   :  { %vm356_vm11 = vcmp.eq.f32.partialorder %v1288_v40, %v1372_v21  ;;  %v1377_v22 = vsel %vm357_vm10, 1e+30, %v1275_v34 }
 0x22b   :  { %v387_v23 = vsel %vm285_vm3, %v1377_v22, inf  ;;  %v1382_v24 = vsel %vm356_vm11, 1e+30, %v1279_v36 }
 0x22c   :  { %388 = vmin.xlane.f32.xlu1 %v387_v23  ;;  %v384_v25 = vsel %vm285_vm3, %v1382_v24, inf }
 0x22d   :  { %385 = vmin.xlane.f32.xlu0 %v384_v25 }
 0x2ad   :  { %v371_v26 = vpop.xlane.xlu1 %370 }
 0x2ae   :  { %vm391_vm12 = vcmp.le.f32.partialorder %v1323_v4, %v371_v26  ;;  %v368_v27 = vpop.xlane.xlu0 %367 }
 0x2af   :  { %vm390_vm13 = vcmp.le.f32.partialorder %v1328_v6, %v368_v27  ;;  %v399_v28 = vsel %vm391_vm12, %v1288_v40, 64.0 }
 0x2b0   :  { %v409_v29 = vsel %vm285_vm3, %v399_v28, inf  ;;  %v398_v30 = vsel %vm390_vm13, %v1288_v40, 64.0 }
 0x2b1   :  { %410 = vmin.xlane.f32.xlu1 %v409_v29  ;;  %v383_v31 = vpop.xlane.xlu1 %382  ;;  %v406_v32 = vsel %vm285_vm3, %v398_v30, inf }
 0x2b2   :  { %vm395_vm14 = vcmp.le.f32.partialorder %v1341_v10, %v383_v31  ;;  %407 = vmin.xlane.f32.xlu0 %v406_v32  ;;  %v380_v33 = vpop.xlane.xlu0 %379 }
 0x2b3   :  { %vm394_vm15 = vcmp.le.f32.partialorder %v1346_v12, %v380_v33  ;;  %v403_v34 = vsel %vm395_vm14, %v1288_v40, 64.0 }
 0x2b4   :  { %v421_v35 = vsel %vm285_vm3, %v403_v34, inf  ;;  %v402_v36 = vsel %vm394_vm15, %v1288_v40, 64.0 }
 0x2b5   :  { %422 = vmin.xlane.f32.xlu1 %v421_v35  ;;  %v377_v37 = vpop.xlane.xlu1 %376  ;;  %v418_v38 = vsel %vm285_vm3, %v402_v36, inf }
 0x2b6   :  { %vm393_vm0 = vcmp.le.f32.partialorder %v1359_v16, %v377_v37  ;;  %419 = vmin.xlane.f32.xlu0 %v418_v38  ;;  %v374_v39 = vpop.xlane.xlu0 %373 }
 0x2b7   :  { %vm392_vm1 = vcmp.le.f32.partialorder %v1364_v18, %v374_v39  ;;  %v401_v41 = vsel %vm393_vm0, %v1288_v40, 64.0 }
 0x2b8   :  { %v415_v42 = vsel %vm285_vm3, %v401_v41, inf  ;;  %v400_v43 = vsel %vm392_vm1, %v1288_v40, 64.0 }
 0x2b9   :  { %416 = vmin.xlane.f32.xlu1 %v415_v42  ;;  %v389_v44 = vpop.xlane.xlu1 %388  ;;  %v412_v46 = vsel %vm285_vm3, %v400_v43, inf }
 0x2ba   :  { %vm397_vm2 = vcmp.le.f32.partialorder %v1377_v22, %v389_v44  ;;  %413 = vmin.xlane.f32.xlu0 %v412_v46  ;;  %v386_v47 = vpop.xlane.xlu0 %385 }
 0x2bb   :  { %vm396_vm4 = vcmp.le.f32.partialorder %v1382_v24, %v386_v47  ;;  %v405_v48 = vsel %vm397_vm2, %v1288_v40, 64.0 }
 0x2bc   :  { %v427_v49 = vsel %vm285_vm3, %v405_v48, inf  ;;  %v404_v50 = vsel %vm396_vm4, %v1288_v40, 64.0 }
 0x2bd   :  { %428 = vmin.xlane.f32.xlu1 %v427_v49  ;;  %v424_v51 = vsel %vm285_vm3, %v404_v50, inf }
 0x2be   :  { %425 = vmin.xlane.f32.xlu0 %v424_v51 }
 0x33e   :  { %v1410_v52 = vpop.xlane.xlu1 %410 }
 0x33f   :  { %vm431_vm5 = vcmp.eq.f32.partialorder %v1288_v40, %v1410_v52  ;;  %v1414_v53 = vpop.xlane.xlu0 %407 }
 0x340   :  { %vm430_vm6 = vcmp.eq.f32.partialorder %v1288_v40, %v1414_v53  ;;  %v1419_v54 = vsel %vm431_vm5, 1e+30, %v1323_v4 }
 0x341   :  { %v449_v55 = vsel %vm285_vm3, %v1419_v54, inf  ;;  %v1424_v56 = vsel %vm430_vm6, 1e+30, %v1328_v6 }
 0x342   :  { %450 = vmin.xlane.f32.xlu1 %v449_v55  ;;  %v1426_v57 = vpop.xlane.xlu1 %422  ;;  %v446_v58 = vsel %vm285_vm3, %v1424_v56, inf }
 0x343   :  { %vm435_vm7 = vcmp.eq.f32.partialorder %v1288_v40, %v1426_v57  ;;  %447 = vmin.xlane.f32.xlu0 %v446_v58  ;;  %v1432_v59 = vpop.xlane.xlu0 %419 }
 0x344   :  { %vm434_vm8 = vcmp.eq.f32.partialorder %v1288_v40, %v1432_v59  ;;  %v1437_v60 = vsel %vm435_vm7, 1e+30, %v1341_v10 }
 0x345   :  { %v461_v61 = vsel %vm285_vm3, %v1437_v60, inf  ;;  %v1442_v62 = vsel %vm434_vm8, 1e+30, %v1346_v12 }
 0x346   :  { %462 = vmin.xlane.f32.xlu1 %v461_v61  ;;  %v1444_v63 = vpop.xlane.xlu1 %416  ;;  %v458_v0 = vsel %vm285_vm3, %v1442_v62, inf }
 0x347   :  { %vm433_vm9 = vcmp.eq.f32.partialorder %v1288_v40, %v1444_v63  ;;  %459 = vmin.xlane.f32.xlu0 %v458_v0  ;;  %v1450_v1 = vpop.xlane.xlu0 %413 }
 0x348   :  { %vm432_vm10 = vcmp.eq.f32.partialorder %v1288_v40, %v1450_v1  ;;  %v1455_v4 = vsel %vm433_vm9, 1e+30, %v1359_v16 }
 0x349   :  { %v455_v5 = vsel %vm285_vm3, %v1455_v4, inf  ;;  %v1460_v6 = vsel %vm432_vm10, 1e+30, %v1364_v18 }
 0x34a   :  { %456 = vmin.xlane.f32.xlu1 %v455_v5  ;;  %v1462_v8 = vpop.xlane.xlu1 %428  ;;  %v452_v10 = vsel %vm285_vm3, %v1460_v6, inf }
 0x34b   :  { %vm437_vm11 = vcmp.eq.f32.partialorder %v1288_v40, %v1462_v8  ;;  %453 = vmin.xlane.f32.xlu0 %v452_v10  ;;  %v1468_v11 = vpop.xlane.xlu0 %425 }
 0x34c   :  { %vm436_vm12 = vcmp.eq.f32.partialorder %v1288_v40, %v1468_v11  ;;  %v1473_v12 = vsel %vm437_vm11, 1e+30, %v1377_v22 }
 0x34d   :  { %v467_v14 = vsel %vm285_vm3, %v1473_v12, inf  ;;  %v1478_v16 = vsel %vm436_vm12, 1e+30, %v1382_v24 }
 0x34e   :  { %468 = vmin.xlane.f32.xlu1 %v467_v14  ;;  %v464_v17 = vsel %vm285_vm3, %v1478_v16, inf }
 0x34f   :  { %465 = vmin.xlane.f32.xlu0 %v464_v17 }
 0x3cf   :  { %v451_v18 = vpop.xlane.xlu1 %450 }
 0x3d0   :  { %vm471_vm13 = vcmp.le.f32.partialorder %v1419_v54, %v451_v18  ;;  %v448_v20 = vpop.xlane.xlu0 %447 }
 0x3d1   :  { %vm470_vm14 = vcmp.le.f32.partialorder %v1424_v56, %v448_v20  ;;  %v479_v22 = vsel %vm471_vm13, %v1288_v40, 64.0 }
 0x3d2   :  { %v489_v23 = vsel %vm285_vm3, %v479_v22, inf  ;;  %v478_v25 = vsel %vm470_vm14, %v1288_v40, 64.0 }
 0x3d3   :  { %490 = vmin.xlane.f32.xlu1 %v489_v23  ;;  %v463_v24 = vpop.xlane.xlu1 %462  ;;  %v486_v26 = vsel %vm285_vm3, %v478_v25, inf }
 0x3d4   :  { %vm475_vm15 = vcmp.le.f32.partialorder %v1437_v60, %v463_v24  ;;  %487 = vmin.xlane.f32.xlu0 %v486_v26  ;;  %v460_v27 = vpop.xlane.xlu0 %459 }
 0x3d5   :  { %vm474_vm0 = vcmp.le.f32.partialorder %v1442_v62, %v460_v27  ;;  %v483_v28 = vsel %vm475_vm15, %v1288_v40, 64.0 }
 0x3d6   :  { %v501_v29 = vsel %vm285_vm3, %v483_v28, inf  ;;  %v482_v30 = vsel %vm474_vm0, %v1288_v40, 64.0 }
 0x3d7   :  { %502 = vmin.xlane.f32.xlu1 %v501_v29  ;;  %v457_v31 = vpop.xlane.xlu1 %456  ;;  %v498_v32 = vsel %vm285_vm3, %v482_v30, inf }
 0x3d8   :  { %vm473_vm1 = vcmp.le.f32.partialorder %v1455_v4, %v457_v31  ;;  %499 = vmin.xlane.f32.xlu0 %v498_v32  ;;  %v454_v33 = vpop.xlane.xlu0 %453 }
 0x3d9   :  { %vm472_vm2 = vcmp.le.f32.partialorder %v1460_v6, %v454_v33  ;;  %v481_v34 = vsel %vm473_vm1, %v1288_v40, 64.0 }
 0x3da   :  { %v495_v35 = vsel %vm285_vm3, %v481_v34, inf  ;;  %v480_v36 = vsel %vm472_vm2, %v1288_v40, 64.0 }
 0x3db   :  { %496 = vmin.xlane.f32.xlu1 %v495_v35  ;;  %v469_v37 = vpop.xlane.xlu1 %468  ;;  %v492_v38 = vsel %vm285_vm3, %v480_v36, inf }
 0x3dc   :  { %vm477_vm4 = vcmp.le.f32.partialorder %v1473_v12, %v469_v37  ;;  %493 = vmin.xlane.f32.xlu0 %v492_v38  ;;  %v466_v39 = vpop.xlane.xlu0 %465 }
 0x3dd   :  { %vm476_vm5 = vcmp.le.f32.partialorder %v1478_v16, %v466_v39  ;;  %v485_v41 = vsel %vm477_vm4, %v1288_v40, 64.0 }
 0x3de   :  { %v507_v42 = vsel %vm285_vm3, %v485_v41, inf  ;;  %v484_v43 = vsel %vm476_vm5, %v1288_v40, 64.0 }
 0x3df   :  { %508 = vmin.xlane.f32.xlu1 %v507_v42  ;;  %v504_v44 = vsel %vm285_vm3, %v484_v43, inf }
 0x3e0   :  { %505 = vmin.xlane.f32.xlu0 %v504_v44 }
 0x460   :  { %v1506_v46 = vpop.xlane.xlu1 %490 }
 0x461   :  { %vm511_vm6 = vcmp.eq.f32.partialorder %v1288_v40, %v1506_v46  ;;  %v1510_v47 = vpop.xlane.xlu0 %487 }
 0x462   :  { %vm510_vm7 = vcmp.eq.f32.partialorder %v1288_v40, %v1510_v47  ;;  %v1515_v48 = vsel %vm511_vm6, 1e+30, %v1419_v54 }
 0x463   :  { %v529_v49 = vsel %vm285_vm3, %v1515_v48, inf  ;;  %v1520_v50 = vsel %vm510_vm7, 1e+30, %v1424_v56  ;;  %vm910_vm7 = vcmp.eq.s32.totalorder %v1234_v45, 0 }
 0x464   :  { %530 = vmin.xlane.f32.xlu1 %v529_v49  ;;  %v1522_v51 = vpop.xlane.xlu1 %502  ;;  %v526_v55 = vsel %vm285_vm3, %v1520_v50, inf }
 0x465   :  { %vm515_vm8 = vcmp.eq.f32.partialorder %v1288_v40, %v1522_v51  ;;  %527 = vmin.xlane.f32.xlu0 %v526_v55  ;;  %v1528_v58 = vpop.xlane.xlu0 %499 }
 0x466   :  { %vm514_vm9 = vcmp.eq.f32.partialorder %v1288_v40, %v1528_v58  ;;  %v1533_v54 = vsel %vm515_vm8, 1e+30, %v1437_v60  ;;  %vm919_vm8 = vcmp.eq.s32.totalorder %v1234_v45, 1 }
 0x467   :  { %v541_v56 = vsel %vm285_vm3, %v1533_v54, inf  ;;  %v1538_v61 = vsel %vm514_vm9, 1e+30, %v1442_v62  ;;  %vm928_vm9 = vcmp.eq.s32.totalorder %v1234_v45, 2 }
 0x468   :  { %542 = vmin.xlane.f32.xlu1 %v541_v56  ;;  %v1540_v0 = vpop.xlane.xlu1 %496  ;;  %v538_v5 = vsel %vm285_vm3, %v1538_v61, inf  ;;  %v912_v56 = vsel %vm910_vm7, %v1314_v2, 0.0 }
 0x469   :  { %vm513_vm10 = vcmp.eq.f32.partialorder %v1288_v40, %v1540_v0  ;;  %539 = vmin.xlane.f32.xlu0 %v538_v5  ;;  %v1546_v10 = vpop.xlane.xlu0 %493  ;;  %v911_v5 = vsel %vm910_vm7, %v1318_v3, 0.0 }
 0x46a   :  { %vm512_vm11 = vcmp.eq.f32.partialorder %v1288_v40, %v1546_v10  ;;  %v1551_v60 = vsel %vm513_vm10, 1e+30, %v1455_v4  ;;  %vm937_vm10 = vcmp.eq.s32.totalorder %v1234_v45, 3 }
 0x46b   :  { %v535_v62 = vsel %vm285_vm3, %v1551_v60, inf  ;;  %v1556_v14 = vsel %vm512_vm11, 1e+30, %v1460_v6 }
 0x46c   :  { %536 = vmin.xlane.f32.xlu1 %v535_v62  ;;  %v1558_v17 = vpop.xlane.xlu1 %508  ;;  %v532_v18 = vsel %vm285_vm3, %v1556_v14, inf  ;;  %v921_v62 = vsel %vm919_vm8, %v1410_v52, %v912_v56 }
 0x46d   :  { %vm517_vm12 = vcmp.eq.f32.partialorder %v1288_v40, %v1558_v17  ;;  %533 = vmin.xlane.f32.xlu0 %v532_v18  ;;  %v1564_v20 = vpop.xlane.xlu0 %505  ;;  %v920_v18 = vsel %vm919_vm8, %v1414_v53, %v911_v5  ;;  %v916_v53 = vsel %vm910_vm7, %v1330_v7, 0.0 }
 0x46e   :  { %vm516_vm13 = vcmp.eq.f32.partialorder %v1288_v40, %v1564_v20  ;;  %v1569_v4 = vsel %vm517_vm12, 1e+30, %v1473_v12  ;;  %v929_v2 = vsel %vm928_vm9, %v1510_v47, %v920_v18  ;;  %v915_v47 = vsel %vm910_vm7, %v1336_v9, 0.0 }
 0x46f   :  { %v547_v6 = vsel %vm285_vm3, %v1569_v4, inf  ;;  %v1574_v22 = vsel %vm516_vm13, 1e+30, %v1478_v16 }
 0x470   :  { %548 = vmin.xlane.f32.xlu1 %v547_v6  ;;  %v544_v23 = vsel %vm285_vm3, %v1574_v22, inf  ;;  %v930_v6 = vsel %vm928_vm9, %v1506_v46, %v921_v62 }
 0x471   :  { %545 = vmin.xlane.f32.xlu0 %v544_v23 }
 0x4f1   :  { %v531_v25 = vpop.xlane.xlu1 %530 }
 0x4f2   :  { %vm551_vm14 = vcmp.le.f32.partialorder %v1515_v48, %v531_v25  ;;  %v528_v24 = vpop.xlane.xlu0 %527 }
 0x4f3   :  { %vm550_vm15 = vcmp.le.f32.partialorder %v1520_v50, %v528_v24  ;;  %v559_v12 = vsel %vm551_vm14, %v1288_v40, 64.0  ;;  %v925_v24 = vsel %vm919_vm8, %v1426_v57, %v916_v53 }
 0x4f4   :  { %v569_v26 = vsel %vm285_vm3, %v559_v12, inf  ;;  %v558_v27 = vsel %vm550_vm15, %v1288_v40, 64.0 }
 0x4f5   :  { %570 = vmin.xlane.f32.xlu1 %v569_v26  ;;  %v543_v16 = vpop.xlane.xlu1 %542  ;;  %v566_v28 = vsel %vm285_vm3, %v558_v27, inf  ;;  %v924_v26 = vsel %vm919_vm8, %v1432_v59, %v915_v47 }
 0x4f6   :  { %vm555_vm0 = vcmp.le.f32.partialorder %v1533_v54, %v543_v16  ;;  %567 = vmin.xlane.f32.xlu0 %v566_v28  ;;  %v540_v29 = vpop.xlane.xlu0 %539  ;;  %v933_v57 = vsel %vm928_vm9, %v1528_v58, %v924_v26  ;;  %v913_v28 = vsel %vm910_vm7, %v1354_v15, 0.0 }
 0x4f7   :  { %vm554_vm1 = vcmp.le.f32.partialorder %v1538_v61, %v540_v29  ;;  %v563_v30 = vsel %vm555_vm0, %v1288_v40, 64.0 }
 0x4f8   :  { %v581_v31 = vsel %vm285_vm3, %v563_v30, inf  ;;  %v562_v32 = vsel %vm554_vm1, %v1288_v40, 64.0 }
 0x4f9   :  { %582 = vmin.xlane.f32.xlu1 %v581_v31  ;;  %v537_v33 = vpop.xlane.xlu1 %536  ;;  %v578_v34 = vsel %vm285_vm3, %v562_v32, inf  ;;  %v922_v31 = vsel %vm919_vm8, %v1450_v1, %v913_v28 }
 0x4fa   :  { %vm553_vm2 = vcmp.le.f32.partialorder %v1551_v60, %v537_v33  ;;  %579 = vmin.xlane.f32.xlu0 %v578_v34  ;;  %v534_v35 = vpop.xlane.xlu0 %533 }
 0x4fb   :  { %vm552_vm4 = vcmp.le.f32.partialorder %v1556_v14, %v534_v35  ;;  %v561_v36 = vsel %vm553_vm2, %v1288_v40, 64.0 }
 0x4fc   :  { %v575_v37 = vsel %vm285_vm3, %v561_v36, inf  ;;  %v560_v38 = vsel %vm552_vm4, %v1288_v40, 64.0 }
 0x4fd   :  { %576 = vmin.xlane.f32.xlu1 %v575_v37  ;;  %v549_v39 = vpop.xlane.xlu1 %548  ;;  %v572_v41 = vsel %vm285_vm3, %v560_v38, inf }
 0x4fe   :  { %vm557_vm5 = vcmp.le.f32.partialorder %v1569_v4, %v549_v39  ;;  %573 = vmin.xlane.f32.xlu0 %v572_v41  ;;  %v546_v42 = vpop.xlane.xlu0 %545 }
 0x4ff   :  { %vm556_vm6 = vcmp.le.f32.partialorder %v1574_v22, %v546_v42  ;;  %v565_v43 = vsel %vm557_vm5, %v1288_v40, 64.0 }
 0x500   :  { %v587_v44 = vsel %vm285_vm3, %v565_v43, inf  ;;  %v564_v49 = vsel %vm556_vm6, %v1288_v40, 64.0 }
 0x501   :  { %588 = vmin.xlane.f32.xlu1 %v587_v44  ;;  %v584_v55 = vsel %vm285_vm3, %v564_v49, inf }
 0x502   :  { %585 = vmin.xlane.f32.xlu0 %v584_v55 }
 0x582   :  { %v571_v23 = vpop.xlane.xlu1 %570 }
 0x583   :  { %vm591_vm11 = vcmp.eq.f32.partialorder %v1288_v40, %v571_v23  ;;  %v1627_v3 = vsel %vm937_vm10, %v571_v23, %v930_v6  ;;  %v568_v52 = vpop.xlane.xlu0 %567 }
 0x584   :  { %vm590_vm12 = vcmp.eq.f32.partialorder %v1288_v40, %v568_v52  ;;  %v1635_v46 = vsel %vm937_vm10, %v568_v52, %v929_v2  ;;  %v1638_v25 = vsel %vm591_vm11, 1e+30, %v1515_v48  ;;  %v934_v48 = vsel %vm928_vm9, %v1522_v51, %v925_v24 }
 0x585   :  { %v609_v7 = vsel %vm285_vm3, %v1638_v25, inf  ;;  %v1649_v12 = vsel %vm590_vm12, 1e+30, %v1520_v50  ;;  %v914_v51 = vsel %vm910_vm7, %v1348_v13, 0.0 }
 0x586   :  { %610 = vmin.xlane.f32.xlu1 %v609_v7  ;;  %v583_v9 = vpop.xlane.xlu1 %582  ;;  %v606_v27 = vsel %vm285_vm3, %v1649_v12, inf  ;;  %v923_v29 = vsel %vm919_vm8, %v1444_v63, %v914_v51  ;;  %v931_v63 = vsel %vm928_vm9, %v1546_v10, %v922_v31 }
 0x587   :  { %vm595_vm13 = vcmp.eq.f32.partialorder %v1288_v40, %v583_v9  ;;  %v1665_v50 = vsel %vm937_vm10, %v583_v9, %v934_v48  ;;  %607 = vmin.xlane.f32.xlu0 %v606_v27  ;;  %v580_v59 = vpop.xlane.xlu0 %579 }
 0x588   :  { %vm594_vm14 = vcmp.eq.f32.partialorder %v1288_v40, %v580_v59  ;;  %v1673_v16 = vsel %vm937_vm10, %v580_v59, %v933_v57  ;;  %v1676_v58 = vsel %vm595_vm13, 1e+30, %v1533_v54  ;;  %v932_v54 = vsel %vm928_vm9, %v1540_v0, %v923_v29 }
 0x589   :  { %v621_v13 = vsel %vm285_vm3, %v1676_v58, inf  ;;  %v1687_v30 = vsel %vm594_vm14, 1e+30, %v1538_v61 }
 0x58a   :  { %622 = vmin.xlane.f32.xlu1 %v621_v13  ;;  %v577_v15 = vpop.xlane.xlu1 %576  ;;  %v618_v32 = vsel %vm285_vm3, %v1687_v30, inf }
 0x58b   :  { %vm593_vm15 = vcmp.eq.f32.partialorder %v1288_v40, %v577_v15  ;;  %v1703_v61 = vsel %vm937_vm10, %v577_v15, %v932_v54  ;;  %619 = vmin.xlane.f32.xlu0 %v618_v32  ;;  %v574_v1 = vpop.xlane.xlu0 %573 }
 0x58c   :  { %vm592_vm0 = vcmp.eq.f32.partialorder %v1288_v40, %v574_v1  ;;  %v1708_v0 = vsel %vm937_vm10, %v574_v1, %v931_v63  ;;  %v1711_v33 = vsel %vm593_vm15, 1e+30, %v1551_v60 }
 0x58d   :  { %v615_v10 = vsel %vm285_vm3, %v1711_v33, inf  ;;  %v1716_v34 = vsel %vm592_vm0, 1e+30, %v1556_v14  ;;  %vm946_vm0 = vcmp.eq.s32.totalorder %v1234_v45, 4 }
 0x58e   :  { %616 = vmin.xlane.f32.xlu1 %v615_v10  ;;  %v1718_v35 = vpop.xlane.xlu1 %588  ;;  %v612_v36 = vsel %vm285_vm3, %v1716_v34, inf }
 0x58f   :  { %vm597_vm1 = vcmp.eq.f32.partialorder %v1288_v40, %v1718_v35  ;;  %613 = vmin.xlane.f32.xlu0 %v612_v36  ;;  %v1724_v37 = vpop.xlane.xlu0 %585 }
 0x590   :  { %vm596_vm2 = vcmp.eq.f32.partialorder %v1288_v40, %v1724_v37  ;;  %v1729_v60 = vsel %vm597_vm1, 1e+30, %v1569_v4 }
 0x591   :  { %v627_v14 = vsel %vm285_vm3, %v1729_v60, inf  ;;  %v1734_v38 = vsel %vm596_vm2, 1e+30, %v1574_v22 }
 0x592   :  { %628 = vmin.xlane.f32.xlu1 %v627_v14  ;;  %v624_v39 = vsel %vm285_vm3, %v1734_v38, inf }
 0x593   :  { %625 = vmin.xlane.f32.xlu0 %v624_v39 }
 0x613   :  { %v611_v41 = vpop.xlane.xlu1 %610 }
 0x614   :  { %vm631_vm4 = vcmp.le.f32.partialorder %v1638_v25, %v611_v41  ;;  %v608_v42 = vpop.xlane.xlu0 %607 }
 0x615   :  { %vm630_vm5 = vcmp.le.f32.partialorder %v1649_v12, %v608_v42  ;;  %v639_v4 = vsel %vm631_vm4, %v1288_v40, 64.0 }
 0x616   :  { %v649_v43 = vsel %vm285_vm3, %v639_v4, inf  ;;  %v638_v44 = vsel %vm630_vm5, %v1288_v40, 64.0 }
 0x617   :  { %650 = vmin.xlane.f32.xlu1 %v649_v43  ;;  %v623_v22 = vpop.xlane.xlu1 %622  ;;  %v646_v49 = vsel %vm285_vm3, %v638_v44, inf }
 0x618   :  { %vm635_vm6 = vcmp.le.f32.partialorder %v1676_v58, %v623_v22  ;;  %647 = vmin.xlane.f32.xlu0 %v646_v49  ;;  %v620_v55 = vpop.xlane.xlu0 %619 }
 0x619   :  { %vm634_vm11 = vcmp.le.f32.partialorder %v1687_v30, %v620_v55  ;;  %v643_v56 = vsel %vm635_vm6, %v1288_v40, 64.0 }
 0x61a   :  { %v661_v5 = vsel %vm285_vm3, %v643_v56, inf  ;;  %v642_v62 = vsel %vm634_vm11, %v1288_v40, 64.0 }
 0x61b   :  { %662 = vmin.xlane.f32.xlu1 %v661_v5  ;;  %v617_v18 = vpop.xlane.xlu1 %616  ;;  %v658_v6 = vsel %vm285_vm3, %v642_v62, inf }
 0x61c   :  { %vm633_vm12 = vcmp.le.f32.partialorder %v1711_v33, %v617_v18  ;;  %659 = vmin.xlane.f32.xlu0 %v658_v6  ;;  %v614_v23 = vpop.xlane.xlu0 %613 }
 0x61d   :  { %vm632_vm13 = vcmp.le.f32.partialorder %v1716_v34, %v614_v23  ;;  %v641_v2 = vsel %vm633_vm12, %v1288_v40, 64.0 }
 0x61e   :  { %v655_v52 = vsel %vm285_vm3, %v641_v2, inf  ;;  %v640_v53 = vsel %vm632_vm13, %v1288_v40, 64.0 }
 0x61f   :  { %656 = vmin.xlane.f32.xlu1 %v655_v52  ;;  %v629_v47 = vpop.xlane.xlu1 %628  ;;  %v652_v24 = vsel %vm285_vm3, %v640_v53, inf }
 0x620   :  { %vm637_vm14 = vcmp.le.f32.partialorder %v1729_v60, %v629_v47  ;;  %653 = vmin.xlane.f32.xlu0 %v652_v24  ;;  %v626_v7 = vpop.xlane.xlu0 %625 }
 0x621   :  { %vm636_vm15 = vcmp.le.f32.partialorder %v1734_v38, %v626_v7  ;;  %v645_v26 = vsel %vm637_vm14, %v1288_v40, 64.0 }
 0x622   :  { %v667_v48 = vsel %vm285_vm3, %v645_v26, inf  ;;  %v644_v9 = vsel %vm636_vm15, %v1288_v40, 64.0 }
 0x623   :  { %668 = vmin.xlane.f32.xlu1 %v667_v48  ;;  %v664_v27 = vsel %vm285_vm3, %v644_v9, inf }
 0x624   :  { %665 = vmin.xlane.f32.xlu0 %v664_v27 }
 0x6a4   :  { %v651_v57 = vpop.xlane.xlu1 %650 }
 0x6a5   :  { %vm671_vm1 = vcmp.eq.f32.partialorder %v1288_v40, %v651_v57  ;;  %v1767_v59 = vsel %vm946_vm0, %v651_v57, %v1627_v3  ;;  %v648_v51 = vpop.xlane.xlu0 %647 }
 0x6a6   :  { %vm670_vm2 = vcmp.eq.f32.partialorder %v1288_v40, %v648_v51  ;;  %v1773_v28 = vsel %vm946_vm0, %v648_v51, %v1635_v46  ;;  %v1776_v29 = vsel %vm671_vm1, 1e+30, %v1638_v25 }
 0x6a7   :  { %v689_v13 = vsel %vm285_vm3, %v1776_v29, inf  ;;  %v1781_v31 = vsel %vm670_vm2, 1e+30, %v1649_v12 }
 0x6a8   :  { %690 = vmin.xlane.f32.xlu1 %v689_v13  ;;  %v663_v3 = vpop.xlane.xlu1 %662  ;;  %v686_v54 = vsel %vm285_vm3, %v1781_v31, inf }
 0x6a9   :  { %vm675_vm4 = vcmp.eq.f32.partialorder %v1288_v40, %v663_v3  ;;  %v1789_v46 = vsel %vm946_vm0, %v663_v3, %v1665_v50  ;;  %687 = vmin.xlane.f32.xlu0 %v686_v54  ;;  %v660_v25 = vpop.xlane.xlu0 %659 }
 0x6aa   :  { %vm674_vm5 = vcmp.eq.f32.partialorder %v1288_v40, %v660_v25  ;;  %v1795_v12 = vsel %vm946_vm0, %v660_v25, %v1673_v16  ;;  %v1798_v15 = vsel %vm675_vm4, 1e+30, %v1676_v58 }
 0x6ab   :  { %v701_v32 = vsel %vm285_vm3, %v1798_v15, inf  ;;  %v1803_v63 = vsel %vm674_vm5, 1e+30, %v1687_v30 }
 0x6ac   :  { %702 = vmin.xlane.f32.xlu1 %v701_v32  ;;  %v657_v50 = vpop.xlane.xlu1 %656  ;;  %v698_v1 = vsel %vm285_vm3, %v1803_v63, inf }
 0x6ad   :  { %vm673_vm6 = vcmp.eq.f32.partialorder %v1288_v40, %v657_v50  ;;  %v1811_v16 = vsel %vm946_vm0, %v657_v50, %v1703_v61  ;;  %699 = vmin.xlane.f32.xlu0 %v698_v1  ;;  %v654_v58 = vpop.xlane.xlu0 %653 }
 0x6ae   :  { %vm672_vm11 = vcmp.eq.f32.partialorder %v1288_v40, %v654_v58  ;;  %v1817_v30 = vsel %vm946_vm0, %v654_v58, %v1708_v0  ;;  %v1820_v10 = vsel %vm673_vm6, 1e+30, %v1711_v33 }
 0x6af   :  { %v695_v36 = vsel %vm285_vm3, %v1820_v10, inf  ;;  %v1825_v14 = vsel %vm672_vm11, 1e+30, %v1716_v34 }
 0x6b0   :  { %696 = vmin.xlane.f32.xlu1 %v695_v36  ;;  %v1827_v61 = vpop.xlane.xlu1 %668  ;;  %v692_v39 = vsel %vm285_vm3, %v1825_v14, inf }
 0x6b1   :  { %vm677_vm12 = vcmp.eq.f32.partialorder %v1288_v40, %v1827_v61  ;;  %693 = vmin.xlane.f32.xlu0 %v692_v39  ;;  %v1833_v0 = vpop.xlane.xlu0 %665 }
 0x6b2   :  { %vm676_vm13 = vcmp.eq.f32.partialorder %v1288_v40, %v1833_v0  ;;  %v1838_v33 = vsel %vm677_vm12, 1e+30, %v1729_v60  ;;  %vm955_vm12 = vcmp.eq.s32.totalorder %v1234_v45, 5 }
 0x6b3   :  { %v707_v34 = vsel %vm285_vm3, %v1838_v33, inf  ;;  %v1843_v41 = vsel %vm676_vm13, 1e+30, %v1734_v38 }
 0x6b4   :  { %708 = vmin.xlane.f32.xlu1 %v707_v34  ;;  %v704_v42 = vsel %vm285_vm3, %v1843_v41, inf }
 0x6b5   :  { %705 = vmin.xlane.f32.xlu0 %v704_v42 }
 0x735   :  { %v691_v4 = vpop.xlane.xlu1 %690 }
 0x736   :  { %vm711_vm14 = vcmp.le.f32.partialorder %v1776_v29, %v691_v4  ;;  %v688_v43 = vpop.xlane.xlu0 %687 }
 0x737   :  { %vm710_vm15 = vcmp.le.f32.partialorder %v1781_v31, %v688_v43  ;;  %v719_v60 = vsel %vm711_vm14, %v1288_v40, 64.0 }
 0x738   :  { %v729_v44 = vsel %vm285_vm3, %v719_v60, inf  ;;  %v718_v22 = vsel %vm710_vm15, %v1288_v40, 64.0 }
 0x739   :  { %730 = vmin.xlane.f32.xlu1 %v729_v44  ;;  %v703_v38 = vpop.xlane.xlu1 %702  ;;  %v726_v49 = vsel %vm285_vm3, %v718_v22, inf }
 0x73a   :  { %vm715_vm1 = vcmp.le.f32.partialorder %v1798_v15, %v703_v38  ;;  %727 = vmin.xlane.f32.xlu0 %v726_v49  ;;  %v700_v55 = vpop.xlane.xlu0 %699 }
 0x73b   :  { %v723_v56 = vsel %vm715_vm1, %v1288_v40, 64.0  ;;  %vm714_vm2 = vcmp.le.f32.partialorder %v1803_v63, %v700_v55 }
 0x73c   :  { %v722_v5 = vsel %vm714_vm2, %v1288_v40, 64.0  ;;  %v741_v62 = vsel %vm285_vm3, %v723_v56, inf }
 0x73d   :  { %742 = vmin.xlane.f32.xlu1 %v741_v62  ;;  %v697_v18 = vpop.xlane.xlu1 %696  ;;  %v738_v6 = vsel %vm285_vm3, %v722_v5, inf }
 0x73e   :  { %vm713_vm4 = vcmp.le.f32.partialorder %v1820_v10, %v697_v18  ;;  %739 = vmin.xlane.f32.xlu0 %v738_v6  ;;  %v694_v23 = vpop.xlane.xlu0 %693 }
 0x73f   :  { %v721_v2 = vsel %vm713_vm4, %v1288_v40, 64.0  ;;  %vm712_vm5 = vcmp.le.f32.partialorder %v1825_v14, %v694_v23 }
 0x740   :  { %v720_v52 = vsel %vm712_vm5, %v1288_v40, 64.0  ;;  %v735_v53 = vsel %vm285_vm3, %v721_v2, inf }
 0x741   :  { %736 = vmin.xlane.f32.xlu1 %v735_v53  ;;  %v709_v47 = vpop.xlane.xlu1 %708  ;;  %v732_v24 = vsel %vm285_vm3, %v720_v52, inf }
 0x742   :  { %vm717_vm6 = vcmp.le.f32.partialorder %v1838_v33, %v709_v47  ;;  %733 = vmin.xlane.f32.xlu0 %v732_v24  ;;  %v706_v7 = vpop.xlane.xlu0 %705 }
 0x743   :  { %v725_v26 = vsel %vm717_vm6, %v1288_v40, 64.0  ;;  %vm716_vm11 = vcmp.le.f32.partialorder %v1843_v41, %v706_v7 }
 0x744   :  { %v724_v48 = vsel %vm716_vm11, %v1288_v40, 64.0  ;;  %v747_v9 = vsel %vm285_vm3, %v725_v26, inf }
 0x745   :  { %748 = vmin.xlane.f32.xlu1 %v747_v9  ;;  %v744_v27 = vsel %vm285_vm3, %v724_v48, inf }
 0x746   :  { %745 = vmin.xlane.f32.xlu0 %v744_v27 }
 0x7c6   :  { %v731_v57 = vpop.xlane.xlu1 %730 }
 0x7c7   :  { %vm751_vm13 = vcmp.eq.f32.partialorder %v1288_v40, %v731_v57  ;;  %v1876_v51 = vsel %vm955_vm12, %v731_v57, %v1767_v59  ;;  %v728_v13 = vpop.xlane.xlu0 %727 }
 0x7c8   :  { %v1879_v3 = vsel %vm751_vm13, 1e+30, %v1776_v29  ;;  %vm750_vm14 = vcmp.eq.f32.partialorder %v1288_v40, %v728_v13  ;;  %v1885_v54 = vsel %vm955_vm12, %v728_v13, %v1773_v28 }
 0x7c9   :  { %v1888_v25 = vsel %vm750_vm14, 1e+30, %v1781_v31  ;;  %v769_v32 = vsel %vm285_vm3, %v1879_v3, inf }
 0x7ca   :  { %770 = vmin.xlane.f32.xlu1 %v769_v32  ;;  %v743_v59 = vpop.xlane.xlu1 %742  ;;  %v766_v50 = vsel %vm285_vm3, %v1888_v25, inf }
 0x7cb   :  { %vm755_vm15 = vcmp.eq.f32.partialorder %v1288_v40, %v743_v59  ;;  %v1898_v29 = vsel %vm955_vm12, %v743_v59, %v1789_v46  ;;  %767 = vmin.xlane.f32.xlu0 %v766_v50  ;;  %v740_v28 = vpop.xlane.xlu0 %739 }
 0x7cc   :  { %v1901_v31 = vsel %vm755_vm15, 1e+30, %v1798_v15  ;;  %vm754_vm1 = vcmp.eq.f32.partialorder %v1288_v40, %v740_v28  ;;  %v1907_v1 = vsel %vm955_vm12, %v740_v28, %v1795_v12 }
 0x7cd   :  { %v1910_v58 = vsel %vm754_vm1, 1e+30, %v1803_v63  ;;  %v781_v36 = vsel %vm285_vm3, %v1901_v31, inf }
 0x7ce   :  { %782 = vmin.xlane.f32.xlu1 %v781_v36  ;;  %v737_v46 = vpop.xlane.xlu1 %736  ;;  %v778_v39 = vsel %vm285_vm3, %v1910_v58, inf }
 0x7cf   :  { %vm753_vm2 = vcmp.eq.f32.partialorder %v1288_v40, %v737_v46  ;;  %v1920_v15 = vsel %vm955_vm12, %v737_v46, %v1811_v16  ;;  %779 = vmin.xlane.f32.xlu0 %v778_v39  ;;  %v734_v12 = vpop.xlane.xlu0 %733 }
 0x7d0   :  { %v1923_v63 = vsel %vm753_vm2, 1e+30, %v1820_v10  ;;  %vm752_vm4 = vcmp.eq.f32.partialorder %v1288_v40, %v734_v12  ;;  %v1929_v34 = vsel %vm955_vm12, %v734_v12, %v1817_v30 }
 0x7d1   :  { %v1932_v42 = vsel %vm752_vm4, 1e+30, %v1825_v14  ;;  %v775_v4 = vsel %vm285_vm3, %v1923_v63, inf }
 0x7d2   :  { %776 = vmin.xlane.f32.xlu1 %v775_v4  ;;  %v1936_v16 = vpop.xlane.xlu1 %748  ;;  %v772_v10 = vsel %vm285_vm3, %v1932_v42, inf }
 0x7d3   :  { %vm757_vm5 = vcmp.eq.f32.partialorder %v1288_v40, %v1936_v16  ;;  %773 = vmin.xlane.f32.xlu0 %v772_v10  ;;  %v1942_v43 = vpop.xlane.xlu0 %745 }
 0x7d4   :  { %v1945_v30 = vsel %vm757_vm5, 1e+30, %v1838_v33  ;;  %vm756_vm6 = vcmp.eq.f32.partialorder %v1288_v40, %v1942_v43 }
 0x7d5   :  { %v1950_v14 = vsel %vm756_vm6, 1e+30, %v1843_v41  ;;  %v787_v60 = vsel %vm285_vm3, %v1945_v30, inf  ;;  %vm964_vm6 = vcmp.eq.s32.totalorder %v1234_v45, 6 }
 0x7d6   :  { %788 = vmin.xlane.f32.xlu1 %v787_v60  ;;  %v784_v44 = vsel %vm285_vm3, %v1950_v14, inf }
 0x7d7   :  { %785 = vmin.xlane.f32.xlu0 %v784_v44 }
 0x857   :  { %v771_v22 = vpop.xlane.xlu1 %770 }
 0x858   :  { %vm791_vm11 = vcmp.le.f32.partialorder %v1879_v3, %v771_v22  ;;  %v768_v38 = vpop.xlane.xlu0 %767 }
 0x859   :  { %v799_v33 = vsel %vm791_vm11, %v1288_v40, 64.0  ;;  %vm790_vm13 = vcmp.le.f32.partialorder %v1888_v25, %v768_v38 }
 0x85a   :  { %v798_v49 = vsel %vm790_vm13, %v1288_v40, 64.0  ;;  %v809_v41 = vsel %vm285_vm3, %v799_v33, inf }
 0x85b   :  { %810 = vmin.xlane.f32.xlu1 %v809_v41  ;;  %v783_v55 = vpop.xlane.xlu1 %782  ;;  %v806_v56 = vsel %vm285_vm3, %v798_v49, inf }
 0x85c   :  { %vm795_vm14 = vcmp.le.f32.partialorder %v1901_v31, %v783_v55  ;;  %807 = vmin.xlane.f32.xlu0 %v806_v56  ;;  %v780_v5 = vpop.xlane.xlu0 %779 }
 0x85d   :  { %v803_v62 = vsel %vm795_vm14, %v1288_v40, 64.0  ;;  %vm794_vm15 = vcmp.le.f32.partialorder %v1910_v58, %v780_v5 }
 0x85e   :  { %v802_v18 = vsel %vm794_vm15, %v1288_v40, 64.0  ;;  %v821_v6 = vsel %vm285_vm3, %v803_v62, inf }
 0x85f   :  { %822 = vmin.xlane.f32.xlu1 %v821_v6  ;;  %v777_v23 = vpop.xlane.xlu1 %776  ;;  %v818_v2 = vsel %vm285_vm3, %v802_v18, inf }
 0x860   :  { %vm793_vm1 = vcmp.le.f32.partialorder %v1923_v63, %v777_v23  ;;  %819 = vmin.xlane.f32.xlu0 %v818_v2  ;;  %v774_v52 = vpop.xlane.xlu0 %773 }
 0x861   :  { %v801_v53 = vsel %vm793_vm1, %v1288_v40, 64.0  ;;  %vm792_vm2 = vcmp.le.f32.partialorder %v1932_v42, %v774_v52 }
 0x862   :  { %v800_v47 = vsel %vm792_vm2, %v1288_v40, 64.0  ;;  %v815_v24 = vsel %vm285_vm3, %v801_v53, inf }
 0x863   :  { %816 = vmin.xlane.f32.xlu1 %v815_v24  ;;  %v789_v7 = vpop.xlane.xlu1 %788  ;;  %v812_v26 = vsel %vm285_vm3, %v800_v47, inf }
 0x864   :  { %vm797_vm4 = vcmp.le.f32.partialorder %v1945_v30, %v789_v7  ;;  %813 = vmin.xlane.f32.xlu0 %v812_v26  ;;  %v786_v48 = vpop.xlane.xlu0 %785 }
 0x865   :  { %v805_v9 = vsel %vm797_vm4, %v1288_v40, 64.0  ;;  %vm796_vm5 = vcmp.le.f32.partialorder %v1950_v14, %v786_v48 }
 0x866   :  { %v804_v27 = vsel %vm796_vm5, %v1288_v40, 64.0  ;;  %v827_v57 = vsel %vm285_vm3, %v805_v9, inf }
 0x867   :  { %828 = vmin.xlane.f32.xlu1 %v827_v57  ;;  %v824_v13 = vsel %vm285_vm3, %v804_v27, inf }
 0x868   :  { %825 = vmin.xlane.f32.xlu0 %v824_v13 }
 0x8e8   :  { %v811_v32 = vpop.xlane.xlu1 %810 }
 0x8e9   :  { %vm831_vm11 = vcmp.eq.f32.partialorder %v1288_v40, %v811_v32  ;;  %v1985_v59 = vsel %vm964_vm6, %v811_v32, %v1876_v51  ;;  %v808_v50 = vpop.xlane.xlu0 %807 }
 0x8ea   :  { %vm830_vm13 = vcmp.eq.f32.partialorder %v1288_v40, %v808_v50  ;;  %v1991_v28 = vsel %vm964_vm6, %v808_v50, %v1885_v54  ;;  %v839_v36 = vsel %vm831_vm11, 1e+30, %v1879_v3 }
 0x8eb   :  { %v849_v46 = vsel %vm285_vm3, %v839_v36, inf  ;;  %v838_v39 = vsel %vm830_vm13, 1e+30, %v1888_v25 }
 0x8ec   :  { %850 = vmin.xlane.f32.xlu1 %v849_v46  ;;  %v823_v12 = vpop.xlane.xlu1 %822  ;;  %v846_v4 = vsel %vm285_vm3, %v838_v39, inf }
 0x8ed   :  { %vm835_vm14 = vcmp.eq.f32.partialorder %v1288_v40, %v823_v12  ;;  %v2001_v51 = vsel %vm964_vm6, %v823_v12, %v1898_v29  ;;  %847 = vmin.xlane.f32.xlu0 %v846_v4  ;;  %v820_v54 = vpop.xlane.xlu0 %819 }
 0x8ee   :  { %vm834_vm15 = vcmp.eq.f32.partialorder %v1288_v40, %v820_v54  ;;  %v2007_v3 = vsel %vm964_vm6, %v820_v54, %v1907_v1  ;;  %v843_v25 = vsel %vm835_vm14, 1e+30, %v1901_v31 }
 0x8ef   :  { %v861_v10 = vsel %vm285_vm3, %v843_v25, inf  ;;  %v842_v60 = vsel %vm834_vm15, 1e+30, %v1910_v58 }
 0x8f0   :  { %862 = vmin.xlane.f32.xlu1 %v861_v10  ;;  %v817_v44 = vpop.xlane.xlu1 %816  ;;  %v858_v29 = vsel %vm285_vm3, %v842_v60, inf }
 0x8f1   :  { %vm833_vm1 = vcmp.eq.f32.partialorder %v1288_v40, %v817_v44  ;;  %v2017_v22 = vsel %vm964_vm6, %v817_v44, %v1920_v15  ;;  %859 = vmin.xlane.f32.xlu0 %v858_v29  ;;  %v814_v1 = vpop.xlane.xlu0 %813 }
 0x8f2   :  { %vm832_vm2 = vcmp.eq.f32.partialorder %v1288_v40, %v814_v1  ;;  %v2023_v31 = vsel %vm964_vm6, %v814_v1, %v1929_v34  ;;  %v841_v58 = vsel %vm833_vm1, 1e+30, %v1923_v63 }
 0x8f3   :  { %v855_v38 = vsel %vm285_vm3, %v841_v58, inf  ;;  %v840_v33 = vsel %vm832_vm2, 1e+30, %v1932_v42 }
 0x8f4   :  { %856 = vmin.xlane.f32.xlu1 %v855_v38  ;;  %v2028_v49 = vpop.xlane.xlu1 %828  ;;  %v852_v15 = vsel %vm285_vm3, %v840_v33, inf  ;;  %v917_v38 = vsel %vm910_vm7, %v1372_v21, 0.0 }
 0x8f5   :  { %vm837_vm4 = vcmp.eq.f32.partialorder %v1288_v40, %v2028_v49  ;;  %853 = vmin.xlane.f32.xlu0 %v852_v15  ;;  %v2033_v41 = vpop.xlane.xlu0 %825 }
 0x8f6   :  { %vm836_vm5 = vcmp.eq.f32.partialorder %v1288_v40, %v2033_v41  ;;  %v845_v63 = vsel %vm837_vm4, 1e+30, %v1945_v30 }
 0x8f7   :  { %v867_v34 = vsel %vm285_vm3, %v845_v63, inf  ;;  %v844_v42 = vsel %vm836_vm5, 1e+30, %v1950_v14 }
 0x8f8   :  { %868 = vmin.xlane.f32.xlu1 %v867_v34  ;;  %v864_v55 = vsel %vm285_vm3, %v844_v42, inf }
 0x8f9   :  { %865 = vmin.xlane.f32.xlu0 %v864_v55 }
 0x979   :  { %v851_v56 = vpop.xlane.xlu1 %850 }
 0x97a   :  { %vm871_vm11 = vcmp.le.f32.partialorder %v839_v36, %v851_v56  ;;  %v848_v5 = vpop.xlane.xlu0 %847 }
 0x97b   :  { %v879_v62 = vsel %vm871_vm11, %v1288_v40, 64.0  ;;  %vm870_vm13 = vcmp.le.f32.partialorder %v838_v39, %v848_v5  ;;  %vm973_vm11 = vcmp.eq.s32.totalorder %v1234_v45, 7 }
 0x97c   :  { %v878_v18 = vsel %vm870_vm13, %v1288_v40, 64.0  ;;  %v889_v6 = vsel %vm285_vm3, %v879_v62, inf  ;;  %vm990_vm13 = vcmask 64512  }
 0x97d   :  { %890 = vmin.xlane.f32.xlu1 %v889_v6  ;;  %v863_v30 = vpop.xlane.xlu1 %862  ;;  %v886_v23 = vsel %vm285_vm3, %v878_v18, inf }
 0x97e   :  { %vm875_vm14 = vcmp.le.f32.partialorder %v843_v25, %v863_v30  ;;  %887 = vmin.xlane.f32.xlu0 %v886_v23  ;;  %v860_v14 = vpop.xlane.xlu0 %859 }
 0x97f   :  { %v883_v2 = vsel %vm875_vm14, %v1288_v40, 64.0  ;;  %vm874_vm15 = vcmp.le.f32.partialorder %v842_v60, %v860_v14 }
 0x980   :  { %v882_v52 = vsel %vm874_vm15, %v1288_v40, 64.0  ;;  %v901_v53 = vsel %vm285_vm3, %v883_v2, inf }
 0x981   :  { %902 = vmin.xlane.f32.xlu1 %v901_v53  ;;  %v857_v47 = vpop.xlane.xlu1 %856  ;;  %v898_v24 = vsel %vm285_vm3, %v882_v52, inf }
 0x982   :  { %vm873_vm1 = vcmp.le.f32.partialorder %v841_v58, %v857_v47  ;;  %899 = vmin.xlane.f32.xlu0 %v898_v24  ;;  %v854_v7 = vpop.xlane.xlu0 %853 }
 0x983   :  { %v881_v26 = vsel %vm873_vm1, %v1288_v40, 64.0  ;;  %vm872_vm2 = vcmp.le.f32.partialorder %v840_v33, %v854_v7  ;;  %v926_v33 = vsel %vm919_vm8, %v1468_v11, %v917_v38 }
 0x984   :  { %v880_v48 = vsel %vm872_vm2, %v1288_v40, 64.0  ;;  %v895_v9 = vsel %vm285_vm3, %v881_v26, inf }
 0x985   :  { %896 = vmin.xlane.f32.xlu1 %v895_v9  ;;  %v869_v27 = vpop.xlane.xlu1 %868  ;;  %v892_v57 = vsel %vm285_vm3, %v880_v48, inf }
 0x986   :  { %vm877_vm4 = vcmp.le.f32.partialorder %v845_v63, %v869_v27  ;;  %893 = vmin.xlane.f32.xlu0 %v892_v57  ;;  %v866_v13 = vpop.xlane.xlu0 %865 }
 0x987   :  { %v885_v32 = vsel %vm877_vm4, %v1288_v40, 64.0  ;;  %vm876_vm5 = vcmp.le.f32.partialorder %v844_v42, %v866_v13 }
 0x988   :  { %v884_v50 = vsel %vm876_vm5, %v1288_v40, 64.0  ;;  %v907_v36 = vsel %vm285_vm3, %v885_v32, inf }
 0x989   :  { %908 = vmin.xlane.f32.xlu1 %v907_v36  ;;  %v904_v46 = vsel %vm285_vm3, %v884_v50, inf }
 0x98a   :  { %905 = vmin.xlane.f32.xlu0 %v904_v46 }
 0xa0a   :  { %v891_v39 = vpop.xlane.xlu1 %890 }
 0xa0b   :  { %v975_v12 = vsel %vm973_vm11, %v891_v39, %v1985_v59  ;;  %v888_v4 = vpop.xlane.xlu0 %887  ;;  %v918_v59 = vsel %vm910_vm7, %v1366_v19, 0.0 }
 0xa0c   :  { %v1098_v54 = vtrunc.f32 %v975_v12  ;;  %v974_v25 = vsel %vm973_vm11, %v888_v4, %v1991_v28 }
 0xa0d   :  { %v1096_v40 = vtrunc.f32 %v974_v25 }
 0xa0e   :  { %v1099_v10 = vcvt.f32.s32 %v1098_v54  ;;  %v903_v60 = vpop.xlane.xlu1 %902 }
 0xa0f   :  { %v1097_v44 = vcvt.f32.s32 %v1096_v40  ;;  %v979_v29 = vsel %vm973_vm11, %v903_v60, %v2001_v51  ;;  %v900_v1 = vpop.xlane.xlu0 %899  ;;  %v927_v51 = vsel %vm919_vm8, %v1462_v8, %v918_v59  ;;  %v935_v8 = vsel %vm928_vm9, %v1564_v20, %v926_v33 }
 0xa10   :  { %992 = vst.msk [vmem:[%s2157_s3 + $0x8] sm:$0xff] %vm990_vm13, %v1099_v10  ;;  %v1106_v28 = vtrunc.f32 %v979_v29  ;;  %v978_v58 = vsel %vm973_vm11, %v900_v1, %v2007_v3  ;;  %v936_v3 = vsel %vm928_vm9, %v1558_v17, %v927_v51  ;;  %v944_v17 = vsel %vm937_vm10, %v1724_v37, %v935_v8 }
 0xa11   :  { %991 = vst.msk [vmem:[%s2157_s3] sm:$0xff] %vm990_vm13, %v1097_v44  ;;  %v1104_v19 = vtrunc.f32 %v978_v58  ;;  %v945_v63 = vsel %vm937_vm10, %v1718_v35, %v936_v3 }
 0xa12   :  { %v1107_v15 = vcvt.f32.s32 %v1106_v28  ;;  %v897_v21 = vpop.xlane.xlu1 %896  ;;  %v954_v55 = vsel %vm946_vm0, %v1827_v61, %v945_v63 }
 0xa13   :  { %v1105_v34 = vcvt.f32.s32 %v1104_v19  ;;  %v977_v42 = vsel %vm973_vm11, %v897_v21, %v2017_v22  ;;  %v894_v11 = vpop.xlane.xlu0 %893  ;;  %v953_v22 = vsel %vm946_vm0, %v1833_v0, %v944_v17  ;;  %v963_v37 = vsel %vm955_vm12, %v1936_v16, %v954_v55 }
 0xa14   :  { %996 = vst.msk [vmem:[%s2157_s3 + $0x28] sm:$0xff] %vm990_vm13, %v1107_v15  ;;  %v1102_v20 = vtrunc.f32 %v977_v42  ;;  %v976_v35 = vsel %vm973_vm11, %v894_v11, %v2023_v31  ;;  %v962_v56 = vsel %vm955_vm12, %v1942_v43, %v953_v22  ;;  %v972_v31 = vsel %vm964_vm6, %v2028_v49, %v963_v37 }
 0xa15   :  { %995 = vst.msk [vmem:[%s2157_s3 + $0x20] sm:$0xff] %vm990_vm13, %v1105_v34  ;;  %v1100_v61 = vtrunc.f32 %v976_v35  ;;  %v971_v16 = vsel %vm964_vm6, %v2033_v41, %v962_v56 }
 0xa16   :  { %v1103_v5 = vcvt.f32.s32 %v1102_v20  ;;  %v909_v0 = vpop.xlane.xlu1 %908 }
 0xa17   :  { %v1101_v62 = vcvt.f32.s32 %v1100_v61  ;;  %v981_v18 = vsel %vm973_vm11, %v909_v0, %v972_v31  ;;  %v906_v6 = vpop.xlane.xlu0 %905 }
 0xa18   :  { %994 = vst.msk [vmem:[%s2157_s3 + $0x18] sm:$0xff] %vm990_vm13, %v1103_v5  ;;  %v1110_v43 = vtrunc.f32 %v981_v18  ;;  %v980_v49 = vsel %vm973_vm11, %v906_v6, %v971_v16 }
 0xa19   :  { %993 = vst.msk [vmem:[%s2157_s3 + $0x10] sm:$0xff] %vm990_vm13, %v1101_v62  ;;  %v1108_v41 = vtrunc.f32 %v980_v49 }
 0xa1a   :  { %v1111_v30 = vcvt.f32.s32 %v1110_v43 }
 0xa1b   :  { %v1109_v23 = vcvt.f32.s32 %v1108_v41 }
 0xa1c   :  { %998 = vst.msk [vmem:[%s2157_s3 + $0x38] sm:$0xff] %vm990_vm13, %v1111_v30 }
 0xa1d   :  { %997 = vst.msk [vmem:[%s2157_s3 + $0x30] sm:$0xff] %vm990_vm13, %v1109_v23 }

// kernel: hybrid_dgnn_forward.12
= control target key start
LH: loop header
LB: loop body
LE: loop exit
PB: predicated region body
PF: predicated region fallthrough
CT: control target
= control target key end

     0   :  { %v95_v0 = vlaneseq  ;;  %v1536_v1 = vmov 1966171168   ;;  %vm931_vm0 = vcmask 523264   ;;  %vm1444_vm1 = vcmask 1041409   ;;  %s2994_s0 = inlined_call_operand.vmem [shape: f32[64,64], index: 0, kind: input, shape index: {}]   ;;  %s2995_s1 = inlined_call_operand.vmem [shape: f32[64,8,64], index: 1, kind: input, shape index: {}]   ;;  %s2996_s2 = inlined_call_operand.vmem [shape: f32[64,64], index: 2, kind: output, shape index: {}]  }
   0x1   :  { %v93_v2 = vunpack.c.l.s4 %v1536_v1  ;;  %v11_v3 = vld [vmem:[%s2994_s0] sm:$0xff]  ;;  %v12_v4 = vld [vmem:[%s2994_s0 + $0x8] sm:$0xff]  ;;  %v13_v6 = vld [vmem:[%s2994_s0 + $0x10] sm:$0xff]  ;;  %vm1446_vm2 = vcmask 1042434   ;;  %vm1448_vm3 = vcmask 1043459   ;;  %vm1450_vm4 = vcmask 1044484  }
   0x2   :  { %v96_v5 = vshrl.u32 %v95_v0, 7  ;;  %v14_v7 = vld [vmem:[%s2994_s0 + $0x18] sm:$0xff]  ;;  %v91_v8 = vcombine.high %v11_v3, %v11_v3  ;;  %v140_v10 = vcombine.high %v12_v4, %v12_v4  ;;  %v15_v11 = vld [vmem:[%s2994_s0 + $0x20] sm:$0xff]  ;;  %v189_v12 = vcombine.high %v13_v6, %v13_v6  ;;  %v16_v14 = vld [vmem:[%s2994_s0 + $0x28] sm:$0xff] }
   0x3   :  { %v94_v9 = vunpack.c.0.s8 %v93_v2  ;;  %v238_v13 = vcombine.high %v14_v7, %v14_v7  ;;  %v1573_v15 = vld [vmem:[%s2994_s0 + $0x30] sm:$0xff]  ;;  %v1578_v16 = vld [vmem:[%s2994_s0 + $0x38] sm:$0xff]  ;;  %v287_v18 = vcombine.high %v15_v11, %v15_v11  ;;  %v336_v19 = vcombine.high %v16_v14, %v16_v14 }
   0x4   :  { %v385_v20 = vcombine.high %v1573_v15, %v1573_v15  ;;  %v434_v21 = vcombine.high %v1578_v16, %v1578_v16  ;;  %v1586_v22 = vsub.s32 0, %v96_v5  ;;  %vm1452_vm5 = vcmask 1045509  }
   0x5   :  { %v1580_v17 = vsub.s32 %v94_v9, %v96_v5  ;;  %vm1454_vm6 = vcmask 1046534   ;;  %vm1456_vm7 = vcmask 1047559  }
   0x7   :  { %v98_v23 = vrot.slane %v11_v3, %v1580_v17  ;;  %v105_v24 = vrot.slane %v91_v8, %v1580_v17  ;;  %v147_v25 = vrot.slane %v12_v4, %v1580_v17  ;;  %v154_v26 = vrot.slane %v140_v10, %v1580_v17 }
   0x8   :  { %v196_v27 = vrot.slane %v13_v6, %v1580_v17  ;;  %v203_v28 = vrot.slane %v189_v12, %v1580_v17  ;;  %v245_v29 = vrot.slane %v14_v7, %v1580_v17  ;;  %v252_v30 = vrot.slane %v238_v13, %v1580_v17 }
   0x9   :  { %v106_v31 = vcombine.high %v98_v23, %v98_v23  ;;  %v107_v32 = vcombine.high %v105_v24, %v105_v24  ;;  %v1597_v33 = vrot.slane %v98_v23, %v1580_v17  ;;  %v1600_v34 = vrot.slane %v105_v24, %v1580_v17 }
   0xa   :  { %v155_v35 = vcombine.high %v147_v25, %v147_v25  ;;  %v156_v36 = vcombine.high %v154_v26, %v154_v26  ;;  %v1603_v37 = vrot.slane %v147_v25, %v1580_v17  ;;  %v1606_v38 = vrot.slane %v154_v26, %v1580_v17 }
   0xb   :  { %v1609_v39 = vrot.slane %v106_v31, %v1580_v17  ;;  %v1612_v40 = vrot.slane %v107_v32, %v1580_v17  ;;  %v136_v41 = vcombine.high %v1597_v33, %v1597_v33  ;;  %v137_v42 = vcombine.high %v1600_v34, %v1600_v34 }
   0xc   :  { %v1619_v43 = vrot.slane %v155_v35, %v1580_v17  ;;  %v1622_v44 = vrot.slane %v156_v36, %v1580_v17  ;;  %v185_v45 = vcombine.high %v1603_v37, %v1603_v37  ;;  %v186_v46 = vcombine.high %v1606_v38, %v1606_v38 }
   0xd   :  { %v138_v47 = vcombine.high %v1609_v39, %v1609_v39  ;;  %v139_v48 = vcombine.high %v1612_v40, %v1612_v40  ;;  %v204_v49 = vcombine.high %v196_v27, %v196_v27  ;;  %v205_v50 = vcombine.high %v203_v28, %v203_v28 }
   0xe   :  { %v187_v51 = vcombine.high %v1619_v43, %v1619_v43  ;;  %v188_v52 = vcombine.high %v1622_v44, %v1622_v44  ;;  %v1637_v53 = vrot.slane %v196_v27, %v1580_v17  ;;  %v1640_v54 = vrot.slane %v203_v28, %v1580_v17 }
   0xf   :  { %v1643_v55 = vrot.slane %v204_v49, %v1580_v17  ;;  %v1646_v56 = vrot.slane %v205_v50, %v1580_v17  ;;  %v253_v57 = vcombine.high %v245_v29, %v245_v29  ;;  %v254_v58 = vcombine.high %v252_v30, %v252_v30 }
  0x10   :  { %v234_v59 = vcombine.high %v1637_v53, %v1637_v53  ;;  %v235_v60 = vcombine.high %v1640_v54, %v1640_v54  ;;  %v1653_v61 = vrot.slane %v245_v29, %v1580_v17  ;;  %v1656_v62 = vrot.slane %v252_v30, %v1580_v17 }
  0x11   :  { %v236_v63 = vcombine.high %v1643_v55, %v1643_v55  ;;  %v237_v0 = vcombine.high %v1646_v56, %v1646_v56  ;;  %v1663_v1 = vrot.slane %v253_v57, %v1580_v17  ;;  %v1666_v2 = vrot.slane %v254_v58, %v1580_v17 }
  0x12   :  { %v283_v3 = vcombine.high %v1653_v61, %v1653_v61  ;;  %v284_v4 = vcombine.high %v1656_v62, %v1656_v62  ;;  %v294_v5 = vrot.slane %v15_v11, %v1580_v17  ;;  %v301_v6 = vrot.slane %v287_v18, %v1580_v17 }
  0x13   :  { %v285_v7 = vcombine.high %v1663_v1, %v1663_v1  ;;  %v286_v8 = vcombine.high %v1666_v2, %v1666_v2  ;;  %v343_v9 = vrot.slane %v16_v14, %v1580_v17  ;;  %v350_v10 = vrot.slane %v336_v19, %v1580_v17 }
  0x14   :  { %v302_v12 = vcombine.high %v294_v5, %v294_v5  ;;  %v303_v13 = vcombine.high %v301_v6, %v301_v6  ;;  %v1681_v23 = vrot.slane %v294_v5, %v1580_v17  ;;  %v1684_v24 = vrot.slane %v301_v6, %v1580_v17 }
  0x15   :  { %v351_v11 = vcombine.high %v343_v9, %v343_v9  ;;  %v352_v18 = vcombine.high %v350_v10, %v350_v10  ;;  %v1687_v25 = vrot.slane %v343_v9, %v1580_v17  ;;  %v1690_v26 = vrot.slane %v350_v10, %v1580_v17 }
  0x16   :  { %3050 = vst [vmem:[#allocation2_spill] sm:$0xff] %v1681_v23  ;;  %3051 = vst [vmem:[#allocation3_spill] sm:$0xff] %v1684_v24  ;;  %v1693_v14 = vrot.slane %v302_v12, %v1580_v17  ;;  %v1696_v19 = vrot.slane %v303_v13, %v1580_v17  ;;  %v332_v27 = vcombine.high %v1681_v23, %v1681_v23  ;;  %v43_v23 = vld [vmem:[%s2995_s1 + $0xc0] sm:$0xff] }
  0x17   :  { %3052 = vst [vmem:[#allocation4_spill] sm:$0xff] %v1687_v25  ;;  %3053 = vst [vmem:[#allocation5_spill] sm:$0xff] %v1690_v26  ;;  %v333_v28 = vcombine.high %v1684_v24, %v1684_v24  ;;  %v1703_v29 = vrot.slane %v351_v11, %v1580_v17  ;;  %v1706_v30 = vrot.slane %v352_v18, %v1580_v17  ;;  %v35_v24 = vld [vmem:[%s2995_s1 + $0x80] sm:$0xff] }
  0x18   :  { %3054 = vst [vmem:[#allocation6_spill] sm:$0xff] %v1693_v14  ;;  %3055 = vst [vmem:[#allocation7_spill] sm:$0xff] %v1696_v19  ;;  %v381_v31 = vcombine.high %v1687_v25, %v1687_v25  ;;  %v382_v32 = vcombine.high %v1690_v26, %v1690_v26  ;;  %v334_v35 = vcombine.high %v1693_v14, %v1693_v14  ;;  %v27_v25 = vld [vmem:[%s2995_s1 + $0x40] sm:$0xff] }
  0x19   :  { %3056 = vst [vmem:[#allocation8_spill] sm:$0xff] %v1703_v29  ;;  %3057 = vst [vmem:[#allocation9_spill] sm:$0xff] %v1706_v30  ;;  %v335_v36 = vcombine.high %v1696_v19, %v1696_v19  ;;  %v392_v49 = vrot.slane %v1573_v15, %v1580_v17  ;;  %v399_v50 = vrot.slane %v385_v20, %v1580_v17 }
  0x1a   :  { %v383_v57 = vcombine.high %v1703_v29, %v1703_v29  ;;  %v441_v5 = vrot.slane %v1578_v16, %v1580_v17  ;;  %v448_v6 = vrot.slane %v434_v21, %v1580_v17  ;;  %v1968_v21 = vrot.slane %v382_v32, %v1586_v22  ;;  %v26_v32 = vld [vmem:[%s2995_s1 + $0x38] sm:$0xff] }
  0x1b   :  { %v400_v9 = vcombine.high %v392_v49, %v392_v49  ;;  %v401_v10 = vcombine.high %v399_v50, %v399_v50  ;;  %v1733_v12 = vrot.slane %v392_v49, %v1580_v17  ;;  %v1736_v15 = vrot.slane %v399_v50, %v1580_v17 }
  0x1c   :  { %v449_v20 = vcombine.high %v441_v5, %v441_v5  ;;  %v450_v13 = vcombine.high %v448_v6, %v448_v6  ;;  %v1739_v11 = vrot.slane %v441_v5, %v1580_v17  ;;  %v1742_v18 = vrot.slane %v448_v6, %v1580_v17  ;;  %3072 = vst [vmem:[#allocation24_spill] sm:$0xff] %v1968_v21  ;;  %v24_v6 = vld [vmem:[%s2995_s1 + $0x28] sm:$0xff] }
  0x1d   :  { %3058 = vst [vmem:[#allocation10_spill] sm:$0xff] %v1733_v12  ;;  %3059 = vst [vmem:[#allocation11_spill] sm:$0xff] %v1736_v15  ;;  %v1745_v58 = vrot.slane %v400_v9, %v1580_v17  ;;  %v1748_v16 = vrot.slane %v401_v10, %v1580_v17  ;;  %v1780_v9 = vrot.slane %v136_v41, %v1586_v22 }
  0x1e   :  { %3060 = vst [vmem:[#allocation12_spill] sm:$0xff] %v1739_v11  ;;  %3061 = vst [vmem:[#allocation13_spill] sm:$0xff] %v1742_v18  ;;  %v1755_v50 = vrot.slane %v449_v20, %v1580_v17  ;;  %v1758_v5 = vrot.slane %v450_v13, %v1580_v17  ;;  %v1786_v49 = vrot.slane %v138_v47, %v1586_v22 }
  0x1f   :  { %3062 = vst [vmem:[#allocation14_spill] sm:$0xff] %v1745_v58  ;;  %3063 = vst [vmem:[#allocation15_spill] sm:$0xff] %v1748_v16  ;;  %v1796_v13 = vrot.slane %v137_v42, %v1586_v22  ;;  %v1802_v41 = vrot.slane %v139_v48, %v1586_v22  ;;  %v1812_v17 = vrot.slane %v185_v45, %v1586_v22 }
  0x20   :  { %3064 = vst [vmem:[#allocation16_spill] sm:$0xff] %v1755_v50  ;;  %3065 = vst [vmem:[#allocation17_spill] sm:$0xff] %v1758_v5  ;;  %v1818_v42 = vrot.slane %v187_v51, %v1586_v22  ;;  %v1828_v20 = vrot.slane %v186_v46, %v1586_v22  ;;  %v1834_v45 = vrot.slane %v188_v52, %v1586_v22 }
  0x21   :  { %v1844_v47 = vrot.slane %v234_v59, %v1586_v22  ;;  %v1850_v46 = vrot.slane %v236_v63, %v1586_v22  ;;  %v1860_v48 = vrot.slane %v235_v60, %v1586_v22  ;;  %v1866_v59 = vrot.slane %v237_v0, %v1586_v22 }
  0x22   :  { %v1876_v51 = vrot.slane %v283_v3, %v1586_v22  ;;  %v1882_v60 = vrot.slane %v285_v7, %v1586_v22  ;;  %v1892_v52 = vrot.slane %v284_v4, %v1586_v22  ;;  %v1898_v3 = vrot.slane %v286_v8, %v1586_v22  ;;  %v20_v8 = vld [vmem:[%s2995_s1 + $0x8] sm:$0xff] }
  0x23   :  { %v1908_v63 = vrot.slane %v332_v27, %v1586_v22  ;;  %v1914_v4 = vrot.slane %v334_v35, %v1586_v22  ;;  %v1924_v0 = vrot.slane %v333_v28, %v1586_v22  ;;  %v1930_v27 = vrot.slane %v335_v36, %v1586_v22  ;;  %v19_v36 = vld [vmem:[%s2995_s1] sm:$0xff]  ;;  %v21_v35 = vld [vmem:[%s2995_s1 + $0x10] sm:$0xff] }
  0x24   :  { %v1940_v7 = vrot.slane %v381_v31, %v1586_v22  ;;  %v1946_v28 = vrot.slane %v383_v57, %v1586_v22  ;;  %v22_v31 = vld [vmem:[%s2995_s1 + $0x18] sm:$0xff]  ;;  %v3073_v10 = vcombine.high %v1706_v30, %v1706_v30  ;;  %v25_v57 = vld [vmem:[%s2995_s1 + $0x30] sm:$0xff]  ;;  %v3075_v21 = vcombine.high %v1733_v12, %v1733_v12 }
  0x25   :  { %3066 = vst [vmem:[#allocation18_spill] sm:$0xff] %v1908_v63  ;;  %3067 = vst [vmem:[#allocation19_spill] sm:$0xff] %v1914_v4  ;;  %v3077_v26 = vcombine.high %v1745_v58, %v1745_v58  ;;  %v3081_v12 = vcombine.high %v1748_v16, %v1748_v16  ;;  %v39_v63 = vld [vmem:[%s2995_s1 + $0xa0] sm:$0xff]  ;;  %v2114_v14 = vadd.f32 %v1786_v49, %v22_v31 }
  0x26   :  { %3068 = vst [vmem:[#allocation20_spill] sm:$0xff] %v1924_v0  ;;  %3069 = vst [vmem:[#allocation21_spill] sm:$0xff] %v1930_v27  ;;  %v1996_v30 = vrot.slane %v3075_v21, %v1586_v22  ;;  %v30_v21 = vld [vmem:[%s2995_s1 + $0x58] sm:$0xff]  ;;  %v31_v0 = vld [vmem:[%s2995_s1 + $0x60] sm:$0xff]  ;;  %v3093_v49 = vrot.slane %v1600_v34, %v1586_v22  ;;  %v2142_v31 = vadd.f32 %v1802_v41, %v26_v32 }
  0x27   :  { %3070 = vst [vmem:[#allocation22_spill] sm:$0xff] %v1940_v7  ;;  %3071 = vst [vmem:[#allocation23_spill] sm:$0xff] %v1946_v28  ;;  %v1974_v28 = vrot.slane %v3073_v10, %v1586_v22  ;;  %v23_v7 = vld [vmem:[%s2995_s1 + $0x20] sm:$0xff]  ;;  %v2002_v29 = vrot.slane %v3077_v26, %v1586_v22  ;;  %v29_v10 = vld [vmem:[%s2995_s1 + $0x50] sm:$0xff]  ;;  %v2030_v27 = vrot.slane %v3081_v12, %v1586_v22 }
  0x28   :  { %3076 = vst [vmem:[#allocation26_spill] sm:$0xff] %v1996_v30  ;;  %v3079_v30 = vcombine.high %v1736_v15, %v1736_v15  ;;  %v33_v26 = vld [vmem:[%s2995_s1 + $0x70] sm:$0xff]  ;;  %v3085_v15 = vcombine.high %v1755_v50, %v1755_v50  ;;  %v48_v34 = vld [vmem:[%s2995_s1 + $0xe8] sm:$0xff]  ;;  %v2167_v32 = vadd.f32 %v1812_v17, %v29_v10  ;;  %v3097_v17 = vrot.slane %v1606_v38, %v1586_v22 }
  0x29   :  { %3074 = vst [vmem:[#allocation25_spill] sm:$0xff] %v1974_v28  ;;  %3078 = vst [vmem:[#allocation27_spill] sm:$0xff] %v2002_v29  ;;  %v28_v28 = vld [vmem:[%s2995_s1 + $0x48] sm:$0xff]  ;;  %v37_v12 = vld [vmem:[%s2995_s1 + $0x90] sm:$0xff] }
  0x2a   :  { %v2024_v58 = vrot.slane %v3079_v30, %v1586_v22  ;;  %3082 = vst [vmem:[#allocation29_spill] sm:$0xff] %v2030_v27  ;;  %v32_v29 = vld [vmem:[%s2995_s1 + $0x68] sm:$0xff]  ;;  %v34_v30 = vld [vmem:[%s2995_s1 + $0x78] sm:$0xff]  ;;  %v2058_v19 = vrot.slane %v3085_v15, %v1586_v22  ;;  %v41_v15 = vld [vmem:[%s2995_s1 + $0xb0] sm:$0xff] }
  0x2b   :  { %v36_v27 = vld [vmem:[%s2995_s1 + $0x88] sm:$0xff] }
  0x2c   :  { %3080 = vst [vmem:[#allocation28_spill] sm:$0xff] %v2024_v58  ;;  %v3083_v58 = vcombine.high %v1739_v11, %v1739_v11  ;;  %3086 = vst [vmem:[#allocation31_spill] sm:$0xff] %v2058_v19  ;;  %v3089_v11 = vcombine.high %v1758_v5, %v1758_v5  ;;  %v40_v19 = vld [vmem:[%s2995_s1 + $0xa8] sm:$0xff] }
  0x2d   :  { %v56_v38 = vld [vmem:[%s2995_s1 + $0x128] sm:$0xff] }
  0x2e   :  { %v2052_v16 = vrot.slane %v3083_v58, %v1586_v22  ;;  %v38_v58 = vld [vmem:[%s2995_s1 + $0x98] sm:$0xff]  ;;  %v2086_v4 = vrot.slane %v3089_v11, %v1586_v22  ;;  %v3091_v11 = vrot.slane %v1597_v33, %v1586_v22  ;;  %v44_v33 = vld [vmem:[%s2995_s1 + $0xc8] sm:$0xff] }
  0x30   :  { %3084 = vst [vmem:[#allocation30_spill] sm:$0xff] %v2052_v16  ;;  %v3087_v16 = vcombine.high %v1742_v18, %v1742_v18  ;;  %3090 = vst [vmem:[#allocation33_spill] sm:$0xff] %v2086_v4  ;;  %v2103_v4 = vadd.f32 %v3091_v11, %v19_v36  ;;  %v2111_v18 = vadd.f32 %v1780_v9, %v21_v35  ;;  %v47_v11 = vld [vmem:[%s2995_s1 + $0xe0] sm:$0xff] }
  0x31   :  { %v2131_v9 = vadd.f32 %v3093_v49, %v23_v7  ;;  %v2139_v36 = vadd.f32 %v1796_v13, %v25_v57  ;;  %v3095_v13 = vrot.slane %v1603_v37, %v1586_v22  ;;  %v3096_v7 = vrot.slane %v1619_v43, %v1586_v22  ;;  %v52_v37 = vld [vmem:[%s2995_s1 + $0x108] sm:$0xff]  ;;  %v53_v43 = vld [vmem:[%s2995_s1 + $0x110] sm:$0xff] }
  0x32   :  { %v2080_v50 = vrot.slane %v3087_v16, %v1586_v22  ;;  %v42_v16 = vld [vmem:[%s2995_s1 + $0xb8] sm:$0xff]  ;;  %v2170_v49 = vadd.f32 %v1818_v42, %v30_v21  ;;  %v2187_v42 = vadd.f32 %v3097_v17, %v31_v0  ;;  %v2195_v21 = vadd.f32 %v1828_v20, %v33_v26 }
  0x33   :  { %v2159_v41 = vadd.f32 %v3095_v13, %v27_v25  ;;  %v2164_v57 = vadd.f32 %v3096_v7, %v28_v28  ;;  %v54_v25 = vld [vmem:[%s2995_s1 + $0x118] sm:$0xff]  ;;  %v3098_v28 = vrot.slane %v1622_v44, %v1586_v22  ;;  %v2198_v13 = vadd.f32 %v1834_v45, %v34_v30  ;;  %v55_v7 = vld [vmem:[%s2995_s1 + $0x120] sm:$0xff]  ;;  %v57_v44 = vld [vmem:[%s2995_s1 + $0x130] sm:$0xff] }
  0x34   :  { %3088 = vst [vmem:[#allocation32_spill] sm:$0xff] %v2080_v50  ;;  %v3092_v50 = vrot.slane %v1609_v39, %v1586_v22  ;;  %v45_v39 = vld [vmem:[%s2995_s1 + $0xd0] sm:$0xff]  ;;  %v3099_v20 = vrot.slane %v1637_v53, %v1586_v22  ;;  %v3100_v0 = vrot.slane %v1643_v55, %v1586_v22  ;;  %v2223_v30 = vadd.f32 %v1844_v47, %v37_v12  ;;  %v60_v53 = vld [vmem:[%s2995_s1 + $0x148] sm:$0xff] }
  0x35   :  { %v2192_v10 = vadd.f32 %v3098_v28, %v32_v29  ;;  %v58_v29 = vld [vmem:[%s2995_s1 + $0x138] sm:$0xff]  ;;  %v2226_v17 = vadd.f32 %v1850_v46, %v38_v58  ;;  %v59_v28 = vld [vmem:[%s2995_s1 + $0x140] sm:$0xff]  ;;  %v61_v55 = vld [vmem:[%s2995_s1 + $0x150] sm:$0xff]  ;;  %v3102_v46 = vrot.slane %v1646_v56, %v1586_v22  ;;  %v2248_v12 = vadd.f32 %v1860_v48, %v41_v15 }
  0x36   :  { %v2108_v5 = vadd.f32 %v3092_v50, %v20_v8  ;;  %v46_v50 = vld [vmem:[%s2995_s1 + $0xd8] sm:$0xff]  ;;  %v3094_v8 = vrot.slane %v1612_v40, %v1586_v22  ;;  %v49_v40 = vld [vmem:[%s2995_s1 + $0xf0] sm:$0xff]  ;;  %v2215_v45 = vadd.f32 %v3099_v20, %v35_v24  ;;  %v2220_v26 = vadd.f32 %v3100_v0, %v36_v27  ;;  %v64_v56 = vld [vmem:[%s2995_s1 + $0x168] sm:$0xff] }
  0x37   :  { %v3101_v24 = vrot.slane %v1640_v54, %v1586_v22  ;;  %v2245_v27 = vadd.f32 %v3102_v46, %v40_v19  ;;  %v2251_v58 = vadd.f32 %v1866_v59, %v42_v16  ;;  %v62_v20 = vld [vmem:[%s2995_s1 + $0x158] sm:$0xff]  ;;  %v63_v54 = vld [vmem:[%s2995_s1 + $0x160] sm:$0xff]  ;;  %v3103_v19 = vrot.slane %v1653_v61, %v1586_v22  ;;  %v65_v0 = vld [vmem:[%s2995_s1 + $0x170] sm:$0xff] }
  0x38   :  { %v2136_v35 = vadd.f32 %v3094_v8, %v24_v6  ;;  %v50_v6 = vld [vmem:[%s2995_s1 + $0xf8] sm:$0xff]  ;;  %v51_v8 = vld [vmem:[%s2995_s1 + $0x100] sm:$0xff]  ;;  %v3104_v59 = vrot.slane %v1663_v1, %v1586_v22  ;;  %v2273_v15 = vadd.f32 %v1876_v51, %v45_v39  ;;  %v2276_v16 = vadd.f32 %v1882_v60, %v46_v50 }
  0x39   :  { %v2240_v47 = vadd.f32 %v3101_v24, %v39_v63  ;;  %v2265_v48 = vadd.f32 %v3103_v19, %v43_v23  ;;  %v66_v61 = vld [vmem:[%s2995_s1 + $0x178] sm:$0xff]  ;;  %v67_v1 = vld [vmem:[%s2995_s1 + $0x180] sm:$0xff]  ;;  %v3106_v23 = vrot.slane %v1656_v62, %v1586_v22  ;;  %v3108_v60 = vrot.slane %v1666_v2, %v1586_v22  ;;  %v68_v24 = vld [vmem:[%s2995_s1 + $0x188] sm:$0xff] }
  0x3a   :  { %v2270_v63 = vadd.f32 %v3104_v59, %v44_v33  ;;  %3105 = vst [vmem:[#allocation34_spill] sm:$0xff] %v2276_v16  ;;  %v2298_v39 = vadd.f32 %v1892_v52, %v49_v40  ;;  %v2301_v50 = vadd.f32 %v1898_v3, %v50_v6  ;;  %v69_v62 = vld [vmem:[%s2995_s1 + $0x190] sm:$0xff]  ;;  %v70_v2 = vld [vmem:[%s2995_s1 + $0x198] sm:$0xff]  ;;  %v3115_v40 = vld [vmem:[#allocation6_spill] sm:$0xff] }
  0x3b   :  { %v2290_v51 = vadd.f32 %v3106_v23, %v47_v11  ;;  %v2295_v33 = vadd.f32 %v3108_v60, %v48_v34  ;;  %v3112_v11 = vld [vmem:[#allocation2_spill] sm:$0xff]  ;;  %v3116_v3 = vrot.slane %v3115_v40, %v1586_v22  ;;  %v3120_v59 = vld [vmem:[#allocation19_spill] sm:$0xff] }
  0x3c   :  { %3110 = vst [vmem:[#allocation37_spill] sm:$0xff] %v2298_v39  ;;  %3111 = vst [vmem:[#allocation38_spill] sm:$0xff] %v2301_v50  ;;  %v3113_v34 = vrot.slane %v3112_v11, %v1586_v22  ;;  %v3118_v46 = vld [vmem:[#allocation18_spill] sm:$0xff]  ;;  %v2326_v23 = vadd.f32 %v3120_v59, %v54_v25  ;;  %v73_v11 = vld [vmem:[%s2995_s1 + $0x1b0] sm:$0xff] }
  0x3d   :  { %3107 = vst [vmem:[#allocation35_spill] sm:$0xff] %v2290_v51  ;;  %3109 = vst [vmem:[#allocation36_spill] sm:$0xff] %v2295_v33  ;;  %v2320_v6 = vadd.f32 %v3116_v3, %v52_v37  ;;  %v2323_v19 = vadd.f32 %v3118_v46, %v53_v43  ;;  %v71_v60 = vld [vmem:[%s2995_s1 + $0x1a0] sm:$0xff]  ;;  %v3122_v37 = vld [vmem:[#allocation3_spill] sm:$0xff] }
  0x3e   :  { %v2315_v52 = vadd.f32 %v3113_v34, %v51_v8  ;;  %3121 = vst [vmem:[#allocation19_spill] sm:$0xff] %v2326_v23  ;;  %v72_v8 = vld [vmem:[%s2995_s1 + $0x1a8] sm:$0xff]  ;;  %v3123_v34 = vrot.slane %v3122_v37, %v1586_v22  ;;  %v3128_v46 = vld [vmem:[#allocation20_spill] sm:$0xff]  ;;  %v3130_v23 = vld [vmem:[#allocation21_spill] sm:$0xff] }
  0x3f   :  { %3117 = vst [vmem:[#allocation6_spill] sm:$0xff] %v2320_v6  ;;  %3119 = vst [vmem:[#allocation18_spill] sm:$0xff] %v2323_v19  ;;  %v3125_v40 = vld [vmem:[#allocation7_spill] sm:$0xff]  ;;  %v2348_v59 = vadd.f32 %v3128_v46, %v57_v44  ;;  %v2351_v19 = vadd.f32 %v3130_v23, %v58_v29  ;;  %v74_v6 = vld [vmem:[%s2995_s1 + $0x1b8] sm:$0xff] }
  0x40   :  { %3114 = vst [vmem:[#allocation2_spill] sm:$0xff] %v2315_v52  ;;  %v2340_v43 = vadd.f32 %v3123_v34, %v55_v7  ;;  %v3126_v25 = vrot.slane %v3125_v40, %v1586_v22  ;;  %v75_v7 = vld [vmem:[%s2995_s1 + $0x1c0] sm:$0xff]  ;;  %v76_v37 = vld [vmem:[%s2995_s1 + $0x1c8] sm:$0xff]  ;;  %v3135_v40 = vld [vmem:[#allocation8_spill] sm:$0xff] }
  0x41   :  { %3129 = vst [vmem:[#allocation20_spill] sm:$0xff] %v2348_v59  ;;  %3131 = vst [vmem:[#allocation21_spill] sm:$0xff] %v2351_v19  ;;  %v3136_v29 = vrot.slane %v3135_v40, %v1586_v22  ;;  %v3140_v19 = vld [vmem:[#allocation23_spill] sm:$0xff]  ;;  %v3145_v40 = vld [vmem:[#allocation9_spill] sm:$0xff] }
  0x42   :  { %3124 = vst [vmem:[#allocation3_spill] sm:$0xff] %v2340_v43  ;;  %v2345_v3 = vadd.f32 %v3126_v25, %v56_v38  ;;  %v3132_v38 = vld [vmem:[#allocation4_spill] sm:$0xff]  ;;  %v3138_v25 = vld [vmem:[#allocation22_spill] sm:$0xff]  ;;  %v2376_v59 = vadd.f32 %v3140_v19, %v62_v20  ;;  %v3146_v20 = vrot.slane %v3145_v40, %v1586_v22  ;;  %v3165_v43 = vld [vmem:[#allocation15_spill] sm:$0xff] }
  0x43   :  { %v3133_v34 = vrot.slane %v3132_v38, %v1586_v22  ;;  %v2370_v23 = vadd.f32 %v3136_v29, %v60_v53  ;;  %v2373_v46 = vadd.f32 %v3138_v25, %v61_v55  ;;  %v79_v38 = vld [vmem:[%s2995_s1 + $0x1e0] sm:$0xff]  ;;  %v3142_v53 = vld [vmem:[#allocation5_spill] sm:$0xff]  ;;  %v3148_v29 = vld [vmem:[#allocation24_spill] sm:$0xff] }
  0x44   :  { %3127 = vst [vmem:[#allocation7_spill] sm:$0xff] %v2345_v3  ;;  %3141 = vst [vmem:[#allocation23_spill] sm:$0xff] %v2376_v59  ;;  %v77_v3 = vld [vmem:[%s2995_s1 + $0x1d0] sm:$0xff]  ;;  %v2395_v19 = vadd.f32 %v3146_v20, %v64_v56  ;;  %v2398_v25 = vadd.f32 %v3148_v29, %v65_v0  ;;  %v3150_v59 = vld [vmem:[#allocation25_spill] sm:$0xff] }
  0x45   :  { %v2365_v44 = vadd.f32 %v3133_v34, %v59_v28  ;;  %3137 = vst [vmem:[#allocation8_spill] sm:$0xff] %v2370_v23  ;;  %3139 = vst [vmem:[#allocation22_spill] sm:$0xff] %v2373_v46  ;;  %v78_v28 = vld [vmem:[%s2995_s1 + $0x1d8] sm:$0xff]  ;;  %v3143_v34 = vrot.slane %v3142_v53, %v1586_v22  ;;  %v2401_v46 = vadd.f32 %v3150_v59, %v66_v61  ;;  %v80_v23 = vld [vmem:[%s2995_s1 + $0x1e8] sm:$0xff] }
  0x46   :  { %3147 = vst [vmem:[#allocation9_spill] sm:$0xff] %v2395_v19  ;;  %3149 = vst [vmem:[#allocation24_spill] sm:$0xff] %v2398_v25  ;;  %v82_v53 = vld [vmem:[%s2995_s1 + $0x1f8] sm:$0xff]  ;;  %v3152_v56 = vld [vmem:[#allocation10_spill] sm:$0xff] }
  0x47   :  { %3134 = vst [vmem:[#allocation4_spill] sm:$0xff] %v2365_v44  ;;  %v2390_v55 = vadd.f32 %v3143_v34, %v63_v54  ;;  %3151 = vst [vmem:[#allocation25_spill] sm:$0xff] %v2401_v46  ;;  %v81_v54 = vld [vmem:[%s2995_s1 + $0x1f0] sm:$0xff]  ;;  %v3153_v34 = vrot.slane %v3152_v56, %v1586_v22  ;;  %v3155_v40 = vld [vmem:[#allocation14_spill] sm:$0xff] }
  0x48   :  { %v3156_v61 = vrot.slane %v3155_v40, %v1586_v22  ;;  %v3158_v20 = vld [vmem:[#allocation26_spill] sm:$0xff]  ;;  %v3160_v46 = vld [vmem:[#allocation27_spill] sm:$0xff]  ;;  %v3197_v16 = vld [vmem:[#allocation20_spill] sm:$0xff] }
  0x49   :  { %3144 = vst [vmem:[#allocation5_spill] sm:$0xff] %v2390_v55  ;;  %v2415_v0 = vadd.f32 %v3153_v34, %v67_v1  ;;  %v2423_v29 = vadd.f32 %v3158_v20, %v69_v62  ;;  %v2426_v25 = vadd.f32 %v3160_v46, %v70_v2  ;;  %v3162_v19 = vld [vmem:[#allocation11_spill] sm:$0xff]  ;;  %v3166_v1 = vrot.slane %v3165_v43, %v1586_v22  ;;  %v3168_v34 = vld [vmem:[#allocation28_spill] sm:$0xff]  ;;  %v3198_v51 = vld [vmem:[#allocation21_spill] sm:$0xff] }
  0x4a   :  { %v2420_v59 = vadd.f32 %v3156_v61, %v68_v24  ;;  %v3163_v55 = vrot.slane %v3162_v19, %v1586_v22  ;;  %v2439_v40 = vadd.f32 %v3168_v34, %v73_v11  ;;  %v3170_v24 = vld [vmem:[#allocation29_spill] sm:$0xff]  ;;  %v3172_v62 = vld [vmem:[#allocation12_spill] sm:$0xff]  ;;  %v3178_v19 = vld [vmem:[#allocation30_spill] sm:$0xff] }
  0x4b   :  { %3154 = vst [vmem:[#allocation10_spill] sm:$0xff] %v2415_v0  ;;  %3159 = vst [vmem:[#allocation26_spill] sm:$0xff] %v2423_v29  ;;  %v2436_v56 = vadd.f32 %v3166_v1, %v72_v8  ;;  %v2442_v61 = vadd.f32 %v3170_v24, %v74_v6  ;;  %v3173_v2 = vrot.slane %v3172_v62, %v1586_v22  ;;  %v3175_v20 = vld [vmem:[#allocation16_spill] sm:$0xff]  ;;  %v3180_v8 = vld [vmem:[#allocation31_spill] sm:$0xff] }
  0x4c   :  { %3157 = vst [vmem:[#allocation14_spill] sm:$0xff] %v2420_v59  ;;  %3161 = vst [vmem:[#allocation27_spill] sm:$0xff] %v2426_v25  ;;  %v2431_v44 = vadd.f32 %v3163_v55, %v71_v60  ;;  %v3176_v60 = vrot.slane %v3175_v20, %v1586_v22  ;;  %v2455_v43 = vadd.f32 %v3178_v19, %v77_v3  ;;  %v3182_v11 = vld [vmem:[#allocation13_spill] sm:$0xff]  ;;  %v3196_v3 = vld [vmem:[#allocation7_spill] sm:$0xff] }
  0x4d   :  { %3167 = vst [vmem:[#allocation15_spill] sm:$0xff] %v2436_v56  ;;  %3169 = vst [vmem:[#allocation28_spill] sm:$0xff] %v2439_v40  ;;  %v2447_v46 = vadd.f32 %v3173_v2, %v75_v7  ;;  %v2458_v1 = vadd.f32 %v3180_v8, %v78_v28  ;;  %v3183_v6 = vrot.slane %v3182_v11, %v1586_v22  ;;  %v3185_v24 = vld [vmem:[#allocation17_spill] sm:$0xff]  ;;  %v3188_v2 = vld [vmem:[#allocation32_spill] sm:$0xff]  ;;  %v3209_v11 = vmax.f32 %v2111_v18, 0.0 }
  0x4e   :  { %3164 = vst [vmem:[#allocation11_spill] sm:$0xff] %v2431_v44  ;;  %3171 = vst [vmem:[#allocation29_spill] sm:$0xff] %v2442_v61  ;;  %v2452_v55 = vadd.f32 %v3176_v60, %v76_v37  ;;  %v3186_v7 = vrot.slane %v3185_v24, %v1586_v22  ;;  %v2471_v20 = vadd.f32 %v3188_v2, %v81_v54  ;;  %v3190_v37 = vld [vmem:[#allocation33_spill] sm:$0xff]  ;;  %v3199_v33 = vld [vmem:[#allocation4_spill] sm:$0xff]  ;;  %v3213_v18 = vmax.f32 %v2139_v36, 0.0 }
  0x4f   :  { %3174 = vst [vmem:[#allocation12_spill] sm:$0xff] %v2447_v46  ;;  %3179 = vst [vmem:[#allocation30_spill] sm:$0xff] %v2455_v43  ;;  %v2463_v34 = vadd.f32 %v3183_v6, %v79_v38  ;;  %v2474_v60 = vadd.f32 %v3190_v37, %v82_v53  ;;  %v3200_v39 = vld [vmem:[#allocation8_spill] sm:$0xff]  ;;  %v3201_v50 = vld [vmem:[#allocation22_spill] sm:$0xff]  ;;  %v3207_v37 = vmax.f32 %v2103_v4, 0.0  ;;  %v946_v53 = vsel %vm931_vm0, %v3209_v11, -inf }
  0x50   :  { %3177 = vst [vmem:[#allocation16_spill] sm:$0xff] %v2452_v55  ;;  %3181 = vst [vmem:[#allocation31_spill] sm:$0xff] %v2458_v1  ;;  %v2468_v62 = vadd.f32 %v3186_v7, %v80_v23  ;;  %v3202_v52 = vld [vmem:[#allocation23_spill] sm:$0xff]  ;;  %v3203_v2 = vld [vmem:[#allocation5_spill] sm:$0xff]  ;;  %v3208_v23 = vmax.f32 %v2108_v5, 0.0  ;;  %v3210_v6 = vmax.f32 %v2114_v14, 0.0 }
  0x51   :  { %3184 = vst [vmem:[#allocation13_spill] sm:$0xff] %v2463_v34  ;;  %3189 = vst [vmem:[#allocation32_spill] sm:$0xff] %v2471_v20  ;;  %v3204_v38 = vld [vmem:[#allocation9_spill] sm:$0xff]  ;;  %v932_v22 = vsel %vm931_vm0, %v3207_v37, -inf  ;;  %v947_v20 = vrot.slane %v946_v53, 4  ;;  %v3211_v4 = vmax.f32 %v2131_v9, 0.0 }
  0x52   :  { %3187 = vst [vmem:[#allocation17_spill] sm:$0xff] %v2468_v62  ;;  %3191 = vst [vmem:[#allocation33_spill] sm:$0xff] %v2474_v60  ;;  %v939_v54 = vsel %vm931_vm0, %v3208_v23, -inf  ;;  %v953_v24 = vsel %vm931_vm0, %v3210_v6, -inf  ;;  %v933_v62 = vrot.slane %v932_v22, 4  ;;  %v3212_v5 = vmax.f32 %v2136_v35, 0.0 }
  0x53   :  { %v940_v7 = vrot.slane %v939_v54, 4  ;;  %v954_v8 = vrot.slane %v953_v24, 4  ;;  %v960_v37 = vsel %vm931_vm0, %v3211_v4, -inf  ;;  %v974_v11 = vsel %vm931_vm0, %v3213_v18, -inf }
  0x54   :  { %v967_v23 = vsel %vm931_vm0, %v3212_v5, -inf  ;;  %v3214_v14 = vmax.f32 %v2142_v31, 0.0  ;;  %v934_v60 = vmax.f32 %v932_v22, %v933_v62  ;;  %v948_v1 = vmax.f32 %v946_v53, %v947_v20 }
  0x55   :  { %v941_v34 = vmax.f32 %v939_v54, %v940_v7  ;;  %v955_v43 = vmax.f32 %v953_v24, %v954_v8  ;;  %v961_v55 = vrot.slane %v960_v37, 4  ;;  %v968_v9 = vrot.slane %v967_v23, 4 }
  0x56   :  { %v981_v6 = vsel %vm931_vm0, %v3214_v14, -inf  ;;  %v975_v46 = vrot.slane %v974_v11, 4  ;;  %v935_v61 = vrot.slane %v934_v60, 2  ;;  %v949_v40 = vrot.slane %v948_v1, 2 }
  0x57   :  { %v982_v4 = vrot.slane %v981_v6, 4  ;;  %v942_v35 = vrot.slane %v941_v34, 2  ;;  %v956_v5 = vrot.slane %v955_v43, 2  ;;  %v962_v56 = vmax.f32 %v960_v37, %v961_v55 }
  0x58   :  { %v969_v36 = vmax.f32 %v967_v23, %v968_v9  ;;  %v976_v44 = vmax.f32 %v974_v11, %v975_v46  ;;  %v936_v25 = vmax.f32 %v934_v60, %v935_v61  ;;  %v950_v29 = vmax.f32 %v948_v1, %v949_v40 }
  0x59   :  { %v983_v18 = vmax.f32 %v981_v6, %v982_v4  ;;  %v943_v31 = vmax.f32 %v941_v34, %v942_v35  ;;  %v957_v14 = vmax.f32 %v955_v43, %v956_v5  ;;  %v963_v62 = vrot.slane %v962_v56, 2 }
  0x5a   :  { %v970_v22 = vrot.slane %v969_v36, 2  ;;  %v977_v20 = vrot.slane %v976_v44, 2  ;;  %v937_v54 = vrot.slane %v936_v25, 1  ;;  %v951_v24 = vrot.slane %v950_v29, 1 }
  0x5b   :  { %v984_v8 = vrot.slane %v983_v18, 2  ;;  %v944_v53 = vrot.slane %v943_v31, 1  ;;  %v958_v7 = vrot.slane %v957_v14, 1  ;;  %v964_v59 = vmax.f32 %v962_v56, %v963_v62 }
  0x5c   :  { %v971_v0 = vmax.f32 %v969_v36, %v970_v22  ;;  %v978_v28 = vmax.f32 %v976_v44, %v977_v20  ;;  %v2564_v55 = vmax.f32 %v936_v25, %v937_v54  ;;  %v2568_v61 = vmax.f32 %v950_v29, %v951_v24 }
  0x5d   :  { %v985_v19 = vmax.f32 %v983_v18, %v984_v8  ;;  %v2566_v46 = vmax.f32 %v943_v31, %v944_v53  ;;  %v2570_v40 = vmax.f32 %v957_v14, %v958_v7  ;;  %v965_v43 = vrot.slane %v964_v59, 1 }
  0x5e   :  { %v972_v1 = vrot.slane %v971_v0, 1  ;;  %v979_v34 = vrot.slane %v978_v28, 1  ;;  %v3215_v37 = vmax.f32 %v2159_v41, 0.0  ;;  %v3216_v56 = vmax.f32 %v2164_v57, 0.0 }
  0x5f   :  { %v986_v60 = vrot.slane %v985_v19, 1  ;;  %v3217_v25 = vmax.f32 %v2167_v32, 0.0  ;;  %v3218_v29 = vmax.f32 %v2170_v49, 0.0  ;;  %v2584_v9 = vmax.f32 %v964_v59, %v965_v43 }
  0x60   :  { %v988_v23 = vsel %vm931_vm0, %v3215_v37, -inf  ;;  %v995_v44 = vsel %vm931_vm0, %v3216_v56, -inf  ;;  %v2586_v4 = vmax.f32 %v971_v0, %v972_v1  ;;  %v2588_v35 = vmax.f32 %v978_v28, %v979_v34 }
  0x61   :  { %v1002_v11 = vsel %vm931_vm0, %v3217_v25, -inf  ;;  %v1009_v6 = vsel %vm931_vm0, %v3218_v29, -inf  ;;  %v2590_v41 = vmax.f32 %v985_v19, %v986_v60  ;;  %v989_v5 = vrot.slane %v988_v23, 4 }
  0x62   :  { %v996_v57 = vrot.slane %v995_v44, 4  ;;  %v1003_v36 = vrot.slane %v1002_v11, 4  ;;  %v1010_v18 = vrot.slane %v1009_v6, 4  ;;  %v3220_v32 = vmax.f32 %v2187_v42, 0.0 }
  0x63   :  { %3219 = vst [vmem:[#allocation7_spill] sm:$0xff] %v2590_v41  ;;  %v3221_v49 = vmax.f32 %v2192_v10, 0.0  ;;  %v3222_v59 = vmax.f32 %v2195_v21, 0.0  ;;  %v3223_v28 = vmax.f32 %v2198_v13, 0.0  ;;  %v990_v62 = vmax.f32 %v988_v23, %v989_v5 }
  0x64   :  { %v1016_v31 = vsel %vm931_vm0, %v3220_v32, -inf  ;;  %v997_v22 = vmax.f32 %v995_v44, %v996_v57  ;;  %v1004_v20 = vmax.f32 %v1002_v11, %v1003_v36  ;;  %v1011_v8 = vmax.f32 %v1009_v6, %v1010_v18 }
  0x65   :  { %v1023_v14 = vsel %vm931_vm0, %v3221_v49, -inf  ;;  %v1030_v0 = vsel %vm931_vm0, %v3222_v59, -inf  ;;  %v1037_v19 = vsel %vm931_vm0, %v3223_v28, -inf  ;;  %v1017_v54 = vrot.slane %v1016_v31, 4 }
  0x66   :  { %v1024_v42 = vrot.slane %v1023_v14, 4  ;;  %v1031_v53 = vrot.slane %v1030_v0, 4  ;;  %v1038_v24 = vrot.slane %v1037_v19, 4  ;;  %v991_v7 = vrot.slane %v990_v62, 2 }
  0x67   :  { %v998_v10 = vrot.slane %v997_v22, 2  ;;  %v1005_v43 = vrot.slane %v1004_v20, 2  ;;  %v1012_v1 = vrot.slane %v1011_v8, 2  ;;  %v1018_v34 = vmax.f32 %v1016_v31, %v1017_v54 }
  0x68   :  { %v1025_v21 = vmax.f32 %v1023_v14, %v1024_v42  ;;  %v1032_v60 = vmax.f32 %v1030_v0, %v1031_v53  ;;  %v1039_v37 = vmax.f32 %v1037_v19, %v1038_v24  ;;  %v992_v56 = vmax.f32 %v990_v62, %v991_v7 }
  0x69   :  { %v999_v13 = vmax.f32 %v997_v22, %v998_v10  ;;  %v1006_v25 = vmax.f32 %v1004_v20, %v1005_v43  ;;  %v1013_v29 = vmax.f32 %v1011_v8, %v1012_v1  ;;  %v1019_v23 = vrot.slane %v1018_v34, 2 }
  0x6a   :  { %v1026_v44 = vrot.slane %v1025_v21, 2  ;;  %v1033_v11 = vrot.slane %v1032_v60, 2  ;;  %v1040_v6 = vrot.slane %v1039_v37, 2  ;;  %v993_v5 = vrot.slane %v992_v56, 1 }
  0x6b   :  { %v1000_v57 = vrot.slane %v999_v13, 1  ;;  %v1007_v36 = vrot.slane %v1006_v25, 1  ;;  %v1014_v18 = vrot.slane %v1013_v29, 1  ;;  %v1020_v32 = vmax.f32 %v1018_v34, %v1019_v23 }
  0x6c   :  { %v1027_v49 = vmax.f32 %v1025_v21, %v1026_v44  ;;  %v1034_v59 = vmax.f32 %v1032_v60, %v1033_v11  ;;  %v1041_v28 = vmax.f32 %v1039_v37, %v1040_v6  ;;  %v2604_v31 = vmax.f32 %v992_v56, %v993_v5 }
  0x6d   :  { %v2606_v14 = vmax.f32 %v999_v13, %v1000_v57  ;;  %v2608_v0 = vmax.f32 %v1006_v25, %v1007_v36  ;;  %v2610_v19 = vmax.f32 %v1013_v29, %v1014_v18  ;;  %v1021_v62 = vrot.slane %v1020_v32, 1 }
  0x6e   :  { %v1028_v22 = vrot.slane %v1027_v49, 1  ;;  %v1035_v20 = vrot.slane %v1034_v59, 1  ;;  %v1042_v8 = vrot.slane %v1041_v28, 1  ;;  %v3224_v54 = vmax.f32 %v2215_v45, 0.0 }
  0x6f   :  { %v3225_v53 = vmax.f32 %v2220_v26, 0.0  ;;  %v3226_v7 = vmax.f32 %v2223_v30, 0.0  ;;  %v3227_v43 = vmax.f32 %v2226_v17, 0.0  ;;  %v2624_v34 = vmax.f32 %v1020_v32, %v1021_v62 }
  0x70   :  { %v1044_v42 = vsel %vm931_vm0, %v3224_v54, -inf  ;;  %v2626_v21 = vmax.f32 %v1027_v49, %v1028_v22  ;;  %v2628_v60 = vmax.f32 %v1034_v59, %v1035_v20  ;;  %v2630_v45 = vmax.f32 %v1041_v28, %v1042_v8 }
  0x71   :  { %v1051_v24 = vsel %vm931_vm0, %v3225_v53, -inf  ;;  %v1058_v10 = vsel %vm931_vm0, %v3226_v7, -inf  ;;  %v1065_v1 = vsel %vm931_vm0, %v3227_v43, -inf  ;;  %v1045_v37 = vrot.slane %v1044_v42, 4 }
  0x72   :  { %3228 = vst [vmem:[#allocation20_spill] sm:$0xff] %v2626_v21  ;;  %3229 = vst [vmem:[#allocation21_spill] sm:$0xff] %v2628_v60  ;;  %v1052_v26 = vrot.slane %v1051_v24, 4  ;;  %v1059_v56 = vrot.slane %v1058_v10, 4  ;;  %v1066_v13 = vrot.slane %v1065_v1, 4  ;;  %v3231_v30 = vmax.f32 %v2240_v47, 0.0 }
  0x73   :  { %3230 = vst [vmem:[#allocation4_spill] sm:$0xff] %v2630_v45  ;;  %v3232_v17 = vmax.f32 %v2245_v27, 0.0  ;;  %v3233_v23 = vmax.f32 %v2248_v12, 0.0  ;;  %v3234_v11 = vmax.f32 %v2251_v58, 0.0  ;;  %v1046_v5 = vmax.f32 %v1044_v42, %v1045_v37 }
  0x74   :  { %v1072_v25 = vsel %vm931_vm0, %v3231_v30, -inf  ;;  %v1053_v57 = vmax.f32 %v1051_v24, %v1052_v26  ;;  %v1060_v36 = vmax.f32 %v1058_v10, %v1059_v56  ;;  %v1067_v18 = vmax.f32 %v1065_v1, %v1066_v13 }
  0x75   :  { %v1079_v29 = vsel %vm931_vm0, %v3232_v17, -inf  ;;  %v1086_v44 = vsel %vm931_vm0, %v3233_v23, -inf  ;;  %v1093_v6 = vsel %vm931_vm0, %v3234_v11, -inf  ;;  %v1073_v32 = vrot.slane %v1072_v25, 4 }
  0x76   :  { %v1080_v47 = vrot.slane %v1079_v29, 4  ;;  %v1087_v49 = vrot.slane %v1086_v44, 4  ;;  %v1094_v59 = vrot.slane %v1093_v6, 4  ;;  %v1047_v28 = vrot.slane %v1046_v5, 2 }
  0x77   :  { %v1054_v27 = vrot.slane %v1053_v57, 2  ;;  %v1061_v62 = vrot.slane %v1060_v36, 2  ;;  %v1068_v22 = vrot.slane %v1067_v18, 2  ;;  %v1074_v20 = vmax.f32 %v1072_v25, %v1073_v32 }
  0x78   :  { %v1081_v12 = vmax.f32 %v1079_v29, %v1080_v47  ;;  %v1088_v8 = vmax.f32 %v1086_v44, %v1087_v49  ;;  %v1095_v54 = vmax.f32 %v1093_v6, %v1094_v59  ;;  %v1048_v53 = vmax.f32 %v1046_v5, %v1047_v28 }
  0x79   :  { %v1055_v58 = vmax.f32 %v1053_v57, %v1054_v27  ;;  %v1062_v7 = vmax.f32 %v1060_v36, %v1061_v62  ;;  %v1069_v43 = vmax.f32 %v1067_v18, %v1068_v22  ;;  %v1075_v42 = vrot.slane %v1074_v20, 2  ;;  %v3238_v62 = vld [vmem:[#allocation34_spill] sm:$0xff] }
  0x7a   :  { %v1082_v24 = vrot.slane %v1081_v12, 2  ;;  %v1089_v10 = vrot.slane %v1088_v8, 2  ;;  %v1096_v1 = vrot.slane %v1095_v54, 2  ;;  %v1049_v37 = vrot.slane %v1048_v53, 1 }
  0x7b   :  { %v1056_v26 = vrot.slane %v1055_v58, 1  ;;  %v1063_v56 = vrot.slane %v1062_v7, 1  ;;  %v1070_v13 = vrot.slane %v1069_v43, 1  ;;  %v1076_v30 = vmax.f32 %v1074_v20, %v1075_v42 }
  0x7c   :  { %v1083_v17 = vmax.f32 %v1081_v12, %v1082_v24  ;;  %v1090_v23 = vmax.f32 %v1088_v8, %v1089_v10  ;;  %v1097_v11 = vmax.f32 %v1095_v54, %v1096_v1  ;;  %v2644_v25 = vmax.f32 %v1048_v53, %v1049_v37  ;;  %v3245_v24 = vld [vmem:[#allocation36_spill] sm:$0xff]  ;;  %v3247_v37 = vld [vmem:[#allocation37_spill] sm:$0xff] }
  0x7d   :  { %v2646_v29 = vmax.f32 %v1055_v58, %v1056_v26  ;;  %v2648_v44 = vmax.f32 %v1062_v7, %v1063_v56  ;;  %v2650_v6 = vmax.f32 %v1069_v43, %v1070_v13  ;;  %v1077_v5 = vrot.slane %v1076_v30, 1  ;;  %v3243_v43 = vld [vmem:[#allocation35_spill] sm:$0xff]  ;;  %v3249_v13 = vld [vmem:[#allocation38_spill] sm:$0xff] }
  0x7e   :  { %v1084_v57 = vrot.slane %v1083_v17, 1  ;;  %v1091_v36 = vrot.slane %v1090_v23, 1  ;;  %v1098_v18 = vrot.slane %v1097_v11, 1  ;;  %v3235_v32 = vmax.f32 %v2265_v48, 0.0 }
  0x7f   :  { %v3236_v49 = vmax.f32 %v2270_v63, 0.0  ;;  %v3237_v28 = vmax.f32 %v2273_v15, 0.0  ;;  %v3239_v22 = vmax.f32 %v3238_v62, 0.0  ;;  %v2664_v12 = vmax.f32 %v1076_v30, %v1077_v5 }
  0x80   :  { %v1100_v47 = vsel %vm931_vm0, %v3235_v32, -inf  ;;  %v2666_v8 = vmax.f32 %v1083_v17, %v1084_v57  ;;  %v2668_v54 = vmax.f32 %v1090_v23, %v1091_v36  ;;  %v2670_v48 = vmax.f32 %v1097_v11, %v1098_v18 }
  0x81   :  { %v1107_v59 = vsel %vm931_vm0, %v3236_v49, -inf  ;;  %v1114_v27 = vsel %vm931_vm0, %v3237_v28, -inf  ;;  %v1121_v20 = vsel %vm931_vm0, %v3239_v22, -inf  ;;  %v1101_v53 = vrot.slane %v1100_v47, 4 }
  0x82   :  { %3240 = vst [vmem:[#allocation8_spill] sm:$0xff] %v2666_v8  ;;  %3241 = vst [vmem:[#allocation22_spill] sm:$0xff] %v2668_v54  ;;  %v1108_v63 = vrot.slane %v1107_v59, 4  ;;  %v1115_v58 = vrot.slane %v1114_v27, 4  ;;  %v1122_v7 = vrot.slane %v1121_v20, 4  ;;  %v3244_v15 = vmax.f32 %v3243_v43, 0.0 }
  0x83   :  { %3242 = vst [vmem:[#allocation23_spill] sm:$0xff] %v2670_v48  ;;  %v3246_v10 = vmax.f32 %v3245_v24, 0.0  ;;  %v3248_v26 = vmax.f32 %v3247_v37, 0.0  ;;  %v3250_v30 = vmax.f32 %v3249_v13, 0.0  ;;  %v1102_v23 = vmax.f32 %v1100_v47, %v1101_v53 }
  0x84   :  { %v1128_v42 = vsel %vm931_vm0, %v3244_v15, -inf  ;;  %v1109_v11 = vmax.f32 %v1107_v59, %v1108_v63  ;;  %v1116_v5 = vmax.f32 %v1114_v27, %v1115_v58  ;;  %v1123_v57 = vmax.f32 %v1121_v20, %v1122_v7 }
  0x85   :  { %v1135_v1 = vsel %vm931_vm0, %v3246_v10, -inf  ;;  %v1142_v56 = vsel %vm931_vm0, %v3248_v26, -inf  ;;  %v1149_v17 = vsel %vm931_vm0, %v3250_v30, -inf  ;;  %v1129_v36 = vrot.slane %v1128_v42, 4 }
  0x86   :  { %v1136_v18 = vrot.slane %v1135_v1, 4  ;;  %v1143_v32 = vrot.slane %v1142_v56, 4  ;;  %v1150_v49 = vrot.slane %v1149_v17, 4  ;;  %v1103_v28 = vrot.slane %v1102_v23, 2 }
  0x87   :  { %v1110_v62 = vrot.slane %v1109_v11, 2  ;;  %v1117_v22 = vrot.slane %v1116_v5, 2  ;;  %v1124_v43 = vrot.slane %v1123_v57, 2  ;;  %v1130_v15 = vmax.f32 %v1128_v42, %v1129_v36  ;;  %v3251_v36 = vld [vmem:[#allocation2_spill] sm:$0xff] }
  0x88   :  { %v1137_v24 = vmax.f32 %v1135_v1, %v1136_v18  ;;  %v1144_v10 = vmax.f32 %v1142_v56, %v1143_v32  ;;  %v1151_v37 = vmax.f32 %v1149_v17, %v1150_v49  ;;  %v1104_v26 = vmax.f32 %v1102_v23, %v1103_v28  ;;  %v3253_v49 = vld [vmem:[#allocation6_spill] sm:$0xff] }
  0x89   :  { %v1111_v13 = vmax.f32 %v1109_v11, %v1110_v62  ;;  %v1118_v48 = vmax.f32 %v1116_v5, %v1117_v22  ;;  %v1125_v30 = vmax.f32 %v1123_v57, %v1124_v43  ;;  %v1131_v47 = vrot.slane %v1130_v15, 2  ;;  %v3255_v22 = vld [vmem:[#allocation18_spill] sm:$0xff] }
  0x8a   :  { %v1138_v59 = vrot.slane %v1137_v24, 2  ;;  %v1145_v27 = vrot.slane %v1144_v10, 2  ;;  %v1152_v20 = vrot.slane %v1151_v37, 2  ;;  %v1105_v53 = vrot.slane %v1104_v26, 1 }
  0x8b   :  { %v1112_v63 = vrot.slane %v1111_v13, 1  ;;  %v1119_v58 = vrot.slane %v1118_v48, 1  ;;  %v1126_v7 = vrot.slane %v1125_v30, 1  ;;  %v1132_v45 = vmax.f32 %v1130_v15, %v1131_v47 }
  0x8c   :  { %v1139_v54 = vmax.f32 %v1137_v24, %v1138_v59  ;;  %v1146_v60 = vmax.f32 %v1144_v10, %v1145_v27  ;;  %v1153_v41 = vmax.f32 %v1151_v37, %v1152_v20  ;;  %v2684_v42 = vmax.f32 %v1104_v26, %v1105_v53  ;;  %v3262_v53 = vld [vmem:[#allocation3_spill] sm:$0xff] }
  0x8d   :  { %v2686_v1 = vmax.f32 %v1111_v13, %v1112_v63  ;;  %v2688_v56 = vmax.f32 %v1118_v48, %v1119_v58  ;;  %v2690_v17 = vmax.f32 %v1125_v30, %v1126_v7  ;;  %v1133_v23 = vrot.slane %v1132_v45, 1  ;;  %v3257_v48 = vld [vmem:[#allocation19_spill] sm:$0xff] }
  0x8e   :  { %v1140_v11 = vrot.slane %v1139_v54, 1  ;;  %v1147_v5 = vrot.slane %v1146_v60, 1  ;;  %v1154_v57 = vrot.slane %v1153_v41, 1  ;;  %v3252_v18 = vmax.f32 %v3251_v36, 0.0 }
  0x8f   :  { %v3254_v28 = vmax.f32 %v3253_v49, 0.0  ;;  %v3256_v43 = vmax.f32 %v3255_v22, 0.0  ;;  %v3258_v24 = vmax.f32 %v3257_v48, 0.0  ;;  %v2704_v37 = vmax.f32 %v1132_v45, %v1133_v23 }
  0x90   :  { %v1156_v32 = vsel %vm931_vm0, %v3252_v18, -inf  ;;  %v2706_v26 = vmax.f32 %v1139_v54, %v1140_v11  ;;  %v2708_v13 = vmax.f32 %v1146_v60, %v1147_v5  ;;  %v2710_v30 = vmax.f32 %v1153_v41, %v1154_v57 }
  0x91   :  { %v1163_v62 = vsel %vm931_vm0, %v3254_v28, -inf  ;;  %v1170_v15 = vsel %vm931_vm0, %v3256_v43, -inf  ;;  %v1177_v10 = vsel %vm931_vm0, %v3258_v24, -inf  ;;  %v1157_v47 = vrot.slane %v1156_v32, 4 }
  0x92   :  { %3259 = vst [vmem:[#allocation5_spill] sm:$0xff] %v2706_v26  ;;  %3260 = vst [vmem:[#allocation9_spill] sm:$0xff] %v2708_v13  ;;  %v1164_v59 = vrot.slane %v1163_v62, 4  ;;  %v1171_v27 = vrot.slane %v1170_v15, 4  ;;  %v1178_v20 = vrot.slane %v1177_v10, 4  ;;  %v3263_v63 = vmax.f32 %v3262_v53, 0.0 }
  0x93   :  { %3261 = vst [vmem:[#allocation34_spill] sm:$0xff] %v2710_v30  ;;  %v3264_v7 = vmax.f32 %v3196_v3, 0.0  ;;  %v3265_v45 = vmax.f32 %v3197_v16, 0.0  ;;  %v3266_v60 = vmax.f32 %v3198_v51, 0.0  ;;  %v1158_v23 = vmax.f32 %v1156_v32, %v1157_v47 }
  0x94   :  { %v1184_v58 = vsel %vm931_vm0, %v3263_v63, -inf  ;;  %v1165_v11 = vmax.f32 %v1163_v62, %v1164_v59  ;;  %v1172_v5 = vmax.f32 %v1170_v15, %v1171_v27  ;;  %v1179_v57 = vmax.f32 %v1177_v10, %v1178_v20 }
  0x95   :  { %v1191_v36 = vsel %vm931_vm0, %v3264_v7, -inf  ;;  %v1198_v54 = vsel %vm931_vm0, %v3265_v45, -inf  ;;  %v1205_v41 = vsel %vm931_vm0, %v3266_v60, -inf  ;;  %v1185_v18 = vrot.slane %v1184_v58, 4 }
  0x96   :  { %v1192_v49 = vrot.slane %v1191_v36, 4  ;;  %v1199_v28 = vrot.slane %v1198_v54, 4  ;;  %v1206_v22 = vrot.slane %v1205_v41, 4  ;;  %v1159_v43 = vrot.slane %v1158_v23, 2 }
  0x97   :  { %v1166_v3 = vrot.slane %v1165_v11, 2  ;;  %v1173_v48 = vrot.slane %v1172_v5, 2  ;;  %v1180_v24 = vrot.slane %v1179_v57, 2  ;;  %v1186_v53 = vmax.f32 %v1184_v58, %v1185_v18 }
  0x98   :  { %v1193_v16 = vmax.f32 %v1191_v36, %v1192_v49  ;;  %v1200_v63 = vmax.f32 %v1198_v54, %v1199_v28  ;;  %v1207_v7 = vmax.f32 %v1205_v41, %v1206_v22  ;;  %v1160_v45 = vmax.f32 %v1158_v23, %v1159_v43 }
  0x99   :  { %v1167_v51 = vmax.f32 %v1165_v11, %v1166_v3  ;;  %v1174_v30 = vmax.f32 %v1172_v5, %v1173_v48  ;;  %v1181_v60 = vmax.f32 %v1179_v57, %v1180_v24  ;;  %v1187_v32 = vrot.slane %v1186_v53, 2 }
  0x9a   :  { %v1194_v62 = vrot.slane %v1193_v16, 2  ;;  %v1201_v15 = vrot.slane %v1200_v63, 2  ;;  %v1208_v10 = vrot.slane %v1207_v7, 2  ;;  %v1161_v47 = vrot.slane %v1160_v45, 1 }
  0x9b   :  { %v1168_v59 = vrot.slane %v1167_v51, 1  ;;  %v1175_v27 = vrot.slane %v1174_v30, 1  ;;  %v1182_v20 = vrot.slane %v1181_v60, 1  ;;  %v1188_v13 = vmax.f32 %v1186_v53, %v1187_v32 }
  0x9c   :  { %v1195_v26 = vmax.f32 %v1193_v16, %v1194_v62  ;;  %v1202_v8 = vmax.f32 %v1200_v63, %v1201_v15  ;;  %v1209_v21 = vmax.f32 %v1207_v7, %v1208_v10  ;;  %v2724_v58 = vmax.f32 %v1160_v45, %v1161_v47 }
  0x9d   :  { %v2726_v36 = vmax.f32 %v1167_v51, %v1168_v59  ;;  %v2728_v54 = vmax.f32 %v1174_v30, %v1175_v27  ;;  %v2730_v41 = vmax.f32 %v1181_v60, %v1182_v20  ;;  %v1189_v23 = vrot.slane %v1188_v13, 1 }
  0x9e   :  { %v1196_v11 = vrot.slane %v1195_v26, 1  ;;  %v1203_v5 = vrot.slane %v1202_v8, 1  ;;  %v1210_v57 = vrot.slane %v1209_v21, 1  ;;  %v3268_v18 = vmax.f32 %v3199_v33, 0.0 }
  0x9f   :  { %3267 = vst [vmem:[#allocation35_spill] sm:$0xff] %v2730_v41  ;;  %v3269_v28 = vmax.f32 %v3200_v39, 0.0  ;;  %v3270_v43 = vmax.f32 %v3201_v50, 0.0  ;;  %v3271_v30 = vmax.f32 %v3202_v52, 0.0  ;;  %v2744_v24 = vmax.f32 %v1188_v13, %v1189_v23  ;;  %v3278_v13 = vld [vmem:[#allocation24_spill] sm:$0xff] }
  0xa0   :  { %v1212_v49 = vsel %vm931_vm0, %v3268_v18, -inf  ;;  %v2746_v53 = vmax.f32 %v1195_v26, %v1196_v11  ;;  %v2748_v16 = vmax.f32 %v1202_v8, %v1203_v5  ;;  %v2750_v33 = vmax.f32 %v1209_v21, %v1210_v57  ;;  %v3280_v8 = vld [vmem:[#allocation25_spill] sm:$0xff] }
  0xa1   :  { %v1219_v22 = vsel %vm931_vm0, %v3269_v28, -inf  ;;  %v1226_v3 = vsel %vm931_vm0, %v3270_v43, -inf  ;;  %v1233_v48 = vsel %vm931_vm0, %v3271_v30, -inf  ;;  %3272 = vst [vmem:[#allocation36_spill] sm:$0xff] %v2744_v24  ;;  %v1213_v63 = vrot.slane %v1212_v49, 4 }
  0xa2   :  { %3273 = vst [vmem:[#allocation37_spill] sm:$0xff] %v2746_v53  ;;  %3274 = vst [vmem:[#allocation38_spill] sm:$0xff] %v2748_v16  ;;  %v1220_v39 = vrot.slane %v1219_v22, 4  ;;  %v1227_v7 = vrot.slane %v1226_v3, 4  ;;  %v1234_v45 = vrot.slane %v1233_v48, 4  ;;  %v3276_v50 = vmax.f32 %v3203_v2, 0.0 }
  0xa3   :  { %3275 = vst [vmem:[#allocation2_spill] sm:$0xff] %v2750_v33  ;;  %v3277_v52 = vmax.f32 %v3204_v38, 0.0  ;;  %v3279_v32 = vmax.f32 %v3278_v13, 0.0  ;;  %v3281_v62 = vmax.f32 %v3280_v8, 0.0  ;;  %v1214_v15 = vmax.f32 %v1212_v49, %v1213_v63 }
  0xa4   :  { %v1240_v51 = vsel %vm931_vm0, %v3276_v50, -inf  ;;  %v1221_v10 = vmax.f32 %v1219_v22, %v1220_v39  ;;  %v1228_v47 = vmax.f32 %v1226_v3, %v1227_v7  ;;  %v1235_v59 = vmax.f32 %v1233_v48, %v1234_v45 }
  0xa5   :  { %v1247_v60 = vsel %vm931_vm0, %v3277_v52, -inf  ;;  %v1254_v26 = vsel %vm931_vm0, %v3279_v32, -inf  ;;  %v1261_v21 = vsel %vm931_vm0, %v3281_v62, -inf  ;;  %v1241_v27 = vrot.slane %v1240_v51, 4 }
  0xa6   :  { %v1248_v2 = vrot.slane %v1247_v60, 4  ;;  %v1255_v20 = vrot.slane %v1254_v26, 4  ;;  %v1262_v23 = vrot.slane %v1261_v21, 4  ;;  %v1215_v11 = vrot.slane %v1214_v15, 2 }
  0xa7   :  { %v1222_v38 = vrot.slane %v1221_v10, 2  ;;  %v1229_v5 = vrot.slane %v1228_v47, 2  ;;  %v1236_v57 = vrot.slane %v1235_v59, 2  ;;  %v1242_v18 = vmax.f32 %v1240_v51, %v1241_v27  ;;  %v3284_v27 = vld [vmem:[#allocation10_spill] sm:$0xff] }
  0xa8   :  { %v1249_v28 = vmax.f32 %v1247_v60, %v1248_v2  ;;  %v1256_v43 = vmax.f32 %v1254_v26, %v1255_v20  ;;  %v1263_v30 = vmax.f32 %v1261_v21, %v1262_v23  ;;  %v1216_v50 = vmax.f32 %v1214_v15, %v1215_v11  ;;  %v3286_v23 = vld [vmem:[#allocation14_spill] sm:$0xff] }
  0xa9   :  { %v1223_v52 = vmax.f32 %v1221_v10, %v1222_v38  ;;  %v1230_v13 = vmax.f32 %v1228_v47, %v1229_v5  ;;  %v1237_v32 = vmax.f32 %v1235_v59, %v1236_v57  ;;  %v1243_v49 = vrot.slane %v1242_v18, 2  ;;  %v3288_v5 = vld [vmem:[#allocation26_spill] sm:$0xff] }
  0xaa   :  { %v1250_v22 = vrot.slane %v1249_v28, 2  ;;  %v1257_v3 = vrot.slane %v1256_v43, 2  ;;  %v1264_v48 = vrot.slane %v1263_v30, 2  ;;  %v1217_v63 = vrot.slane %v1216_v50, 1 }
  0xab   :  { %v1224_v39 = vrot.slane %v1223_v52, 1  ;;  %v1231_v7 = vrot.slane %v1230_v13, 1  ;;  %v1238_v45 = vrot.slane %v1237_v32, 1  ;;  %v1244_v8 = vmax.f32 %v1242_v18, %v1243_v49 }
  0xac   :  { %v1251_v62 = vmax.f32 %v1249_v28, %v1250_v22  ;;  %v1258_v33 = vmax.f32 %v1256_v43, %v1257_v3  ;;  %v1265_v16 = vmax.f32 %v1263_v30, %v1264_v48  ;;  %v2764_v51 = vmax.f32 %v1216_v50, %v1217_v63  ;;  %v3290_v28 = vld [vmem:[#allocation27_spill] sm:$0xff] }
  0xad   :  { %v2766_v60 = vmax.f32 %v1223_v52, %v1224_v39  ;;  %v2768_v26 = vmax.f32 %v1230_v13, %v1231_v7  ;;  %v2770_v21 = vmax.f32 %v1237_v32, %v1238_v45  ;;  %v1245_v15 = vrot.slane %v1244_v8, 1  ;;  %v3296_v63 = vld [vmem:[#allocation11_spill] sm:$0xff] }
  0xae   :  { %v1252_v10 = vrot.slane %v1251_v62, 1  ;;  %v1259_v47 = vrot.slane %v1258_v33, 1  ;;  %v1266_v59 = vrot.slane %v1265_v16, 1  ;;  %v3285_v2 = vmax.f32 %v3284_v27, 0.0  ;;  %v3298_v45 = vld [vmem:[#allocation15_spill] sm:$0xff] }
  0xaf   :  { %3282 = vst [vmem:[#allocation6_spill] sm:$0xff] %v2768_v26  ;;  %3283 = vst [vmem:[#allocation18_spill] sm:$0xff] %v2770_v21  ;;  %v3287_v11 = vmax.f32 %v3286_v23, 0.0  ;;  %v3289_v57 = vmax.f32 %v3288_v5, 0.0  ;;  %v3291_v43 = vmax.f32 %v3290_v28, 0.0  ;;  %v2784_v50 = vmax.f32 %v1244_v8, %v1245_v15  ;;  %v3300_v8 = vld [vmem:[#allocation28_spill] sm:$0xff] }
  0xb0   :  { %v1268_v20 = vsel %vm931_vm0, %v3285_v2, -inf  ;;  %v2786_v52 = vmax.f32 %v1251_v62, %v1252_v10  ;;  %v2788_v13 = vmax.f32 %v1258_v33, %v1259_v47  ;;  %v2790_v32 = vmax.f32 %v1265_v16, %v1266_v59  ;;  %v3302_v33 = vld [vmem:[#allocation29_spill] sm:$0xff] }
  0xb1   :  { %v1275_v38 = vsel %vm931_vm0, %v3287_v11, -inf  ;;  %v1282_v18 = vsel %vm931_vm0, %v3289_v57, -inf  ;;  %v1289_v30 = vsel %vm931_vm0, %v3291_v43, -inf  ;;  %3292 = vst [vmem:[#allocation19_spill] sm:$0xff] %v2784_v50  ;;  %v1269_v49 = vrot.slane %v1268_v20, 4 }
  0xb2   :  { %3293 = vst [vmem:[#allocation3_spill] sm:$0xff] %v2786_v52  ;;  %3294 = vst [vmem:[#allocation24_spill] sm:$0xff] %v2788_v13  ;;  %v1276_v22 = vrot.slane %v1275_v38, 4  ;;  %v1283_v3 = vrot.slane %v1282_v18, 4  ;;  %v1290_v48 = vrot.slane %v1289_v30, 4  ;;  %v3297_v39 = vmax.f32 %v3296_v63, 0.0 }
  0xb3   :  { %3295 = vst [vmem:[#allocation25_spill] sm:$0xff] %v2790_v32  ;;  %v3299_v27 = vmax.f32 %v3298_v45, 0.0  ;;  %v3301_v15 = vmax.f32 %v3300_v8, 0.0  ;;  %v3303_v10 = vmax.f32 %v3302_v33, 0.0  ;;  %v1270_v47 = vmax.f32 %v1268_v20, %v1269_v49 }
  0xb4   :  { %v1296_v7 = vsel %vm931_vm0, %v3297_v39, -inf  ;;  %v1277_v59 = vmax.f32 %v1275_v38, %v1276_v22  ;;  %v1284_v23 = vmax.f32 %v1282_v18, %v1283_v3  ;;  %v1291_v11 = vmax.f32 %v1289_v30, %v1290_v48 }
  0xb5   :  { %v1303_v2 = vsel %vm931_vm0, %v3299_v27, -inf  ;;  %v1310_v62 = vsel %vm931_vm0, %v3301_v15, -inf  ;;  %v1317_v16 = vsel %vm931_vm0, %v3303_v10, -inf  ;;  %v1297_v5 = vrot.slane %v1296_v7, 4 }
  0xb6   :  { %v1304_v57 = vrot.slane %v1303_v2, 4  ;;  %v1311_v28 = vrot.slane %v1310_v62, 4  ;;  %v1318_v43 = vrot.slane %v1317_v16, 4  ;;  %v1271_v63 = vrot.slane %v1270_v47, 2 }
  0xb7   :  { %v1278_v39 = vrot.slane %v1277_v59, 2  ;;  %v1285_v45 = vrot.slane %v1284_v23, 2  ;;  %v1292_v27 = vrot.slane %v1291_v11, 2  ;;  %v1298_v32 = vmax.f32 %v1296_v7, %v1297_v5  ;;  %v3307_v5 = vld [vmem:[#allocation12_spill] sm:$0xff] }
  0xb8   :  { %v1305_v8 = vmax.f32 %v1303_v2, %v1304_v57  ;;  %v1312_v13 = vmax.f32 %v1310_v62, %v1311_v28  ;;  %v1319_v15 = vmax.f32 %v1317_v16, %v1318_v43  ;;  %v1272_v52 = vmax.f32 %v1270_v47, %v1271_v63 }
  0xb9   :  { %v1279_v33 = vmax.f32 %v1277_v59, %v1278_v39  ;;  %v1286_v50 = vmax.f32 %v1284_v23, %v1285_v45  ;;  %v1293_v10 = vmax.f32 %v1291_v11, %v1292_v27  ;;  %v1299_v20 = vrot.slane %v1298_v32, 2 }
  0xba   :  { %v1306_v38 = vrot.slane %v1305_v8, 2  ;;  %v1313_v18 = vrot.slane %v1312_v13, 2  ;;  %v1320_v30 = vrot.slane %v1319_v15, 2  ;;  %v1273_v49 = vrot.slane %v1272_v52, 1 }
  0xbb   :  { %v1280_v22 = vrot.slane %v1279_v33, 1  ;;  %v1287_v3 = vrot.slane %v1286_v50, 1  ;;  %v1294_v48 = vrot.slane %v1293_v10, 1  ;;  %v1300_v53 = vmax.f32 %v1298_v32, %v1299_v20  ;;  %v3309_v32 = vld [vmem:[#allocation16_spill] sm:$0xff] }
  0xbc   :  { %v1307_v21 = vmax.f32 %v1305_v8, %v1306_v38  ;;  %v1314_v24 = vmax.f32 %v1312_v13, %v1313_v18  ;;  %v1321_v26 = vmax.f32 %v1319_v15, %v1320_v30  ;;  %v2804_v7 = vmax.f32 %v1272_v52, %v1273_v49  ;;  %v3311_v52 = vld [vmem:[#allocation30_spill] sm:$0xff]  ;;  %v3319_v49 = vld [vmem:[#allocation13_spill] sm:$0xff] }
  0xbd   :  { %v2806_v2 = vmax.f32 %v1279_v33, %v1280_v22  ;;  %v2808_v62 = vmax.f32 %v1286_v50, %v1287_v3  ;;  %v2810_v16 = vmax.f32 %v1293_v10, %v1294_v48  ;;  %v1301_v47 = vrot.slane %v1300_v53, 1  ;;  %v3313_v50 = vld [vmem:[#allocation31_spill] sm:$0xff]  ;;  %v3321_v48 = vld [vmem:[#allocation17_spill] sm:$0xff] }
  0xbe   :  { %v1308_v59 = vrot.slane %v1307_v21, 1  ;;  %v1315_v23 = vrot.slane %v1314_v24, 1  ;;  %v1322_v11 = vrot.slane %v1321_v26, 1  ;;  %v3308_v57 = vmax.f32 %v3307_v5, 0.0 }
  0xbf   :  { %3304 = vst [vmem:[#allocation10_spill] sm:$0xff] %v2806_v2  ;;  %3305 = vst [vmem:[#allocation14_spill] sm:$0xff] %v2808_v62  ;;  %v3310_v43 = vmax.f32 %v3309_v32, 0.0  ;;  %v3312_v63 = vmax.f32 %v3311_v52, 0.0  ;;  %v3314_v45 = vmax.f32 %v3313_v50, 0.0  ;;  %v2824_v8 = vmax.f32 %v1300_v53, %v1301_v47  ;;  %v3323_v53 = vld [vmem:[#allocation32_spill] sm:$0xff] }
  0xc0   :  { %3306 = vst [vmem:[#allocation26_spill] sm:$0xff] %v2810_v16  ;;  %v1324_v28 = vsel %vm931_vm0, %v3308_v57, -inf  ;;  %v2826_v15 = vmax.f32 %v1307_v21, %v1308_v59  ;;  %v2828_v33 = vmax.f32 %v1314_v24, %v1315_v23  ;;  %v2830_v10 = vmax.f32 %v1321_v26, %v1322_v11  ;;  %v3325_v24 = vld [vmem:[#allocation33_spill] sm:$0xff] }
  0xc1   :  { %v1331_v13 = vsel %vm931_vm0, %v3310_v43, -inf  ;;  %v1338_v39 = vsel %vm931_vm0, %v3312_v63, -inf  ;;  %v1345_v27 = vsel %vm931_vm0, %v3314_v45, -inf  ;;  %3315 = vst [vmem:[#allocation27_spill] sm:$0xff] %v2824_v8  ;;  %v1325_v20 = vrot.slane %v1324_v28, 4 }
  0xc2   :  { %3316 = vst [vmem:[#allocation11_spill] sm:$0xff] %v2826_v15  ;;  %3317 = vst [vmem:[#allocation15_spill] sm:$0xff] %v2828_v33  ;;  %v1332_v38 = vrot.slane %v1331_v13, 4  ;;  %v1339_v18 = vrot.slane %v1338_v39, 4  ;;  %v1346_v30 = vrot.slane %v1345_v27, 4  ;;  %v3320_v22 = vmax.f32 %v3319_v49, 0.0 }
  0xc3   :  { %3318 = vst [vmem:[#allocation28_spill] sm:$0xff] %v2830_v10  ;;  %v3322_v5 = vmax.f32 %v3321_v48, 0.0  ;;  %v3324_v47 = vmax.f32 %v3323_v53, 0.0  ;;  %v3326_v59 = vmax.f32 %v3325_v24, 0.0  ;;  %v1326_v23 = vmax.f32 %v1324_v28, %v1325_v20 }
  0xc4   :  { %v1352_v3 = vsel %vm931_vm0, %v3320_v22, -inf  ;;  %v1333_v11 = vmax.f32 %v1331_v13, %v1332_v38  ;;  %v1340_v32 = vmax.f32 %v1338_v39, %v1339_v18  ;;  %v1347_v43 = vmax.f32 %v1345_v27, %v1346_v30 }
  0xc5   :  { %v1359_v57 = vsel %vm931_vm0, %v3322_v5, -inf  ;;  %v1366_v21 = vsel %vm931_vm0, %v3324_v47, -inf  ;;  %v1373_v26 = vsel %vm931_vm0, %v3326_v59, -inf  ;;  %v1353_v52 = vrot.slane %v1352_v3, 4 }
  0xc6   :  { %v1360_v63 = vrot.slane %v1359_v57, 4  ;;  %v1367_v50 = vrot.slane %v1366_v21, 4  ;;  %v1374_v45 = vrot.slane %v1373_v26, 4  ;;  %v1327_v49 = vrot.slane %v1326_v23, 2 }
  0xc7   :  { %v1334_v22 = vrot.slane %v1333_v11, 2  ;;  %v1341_v48 = vrot.slane %v1340_v32, 2  ;;  %v1348_v5 = vrot.slane %v1347_v43, 2  ;;  %v1354_v10 = vmax.f32 %v1352_v3, %v1353_v52 }
  0xc8   :  { %v1361_v53 = vmax.f32 %v1359_v57, %v1360_v63  ;;  %v1368_v33 = vmax.f32 %v1366_v21, %v1367_v50  ;;  %v1375_v47 = vmax.f32 %v1373_v26, %v1374_v45  ;;  %v1328_v15 = vmax.f32 %v1326_v23, %v1327_v49  ;;  %v3331_v45 = vld [vmem:[#allocation21_spill] sm:$0xff]  ;;  %v3332_v49 = vld [vmem:[#allocation22_spill] sm:$0xff] }
  0xc9   :  { %v1335_v24 = vmax.f32 %v1333_v11, %v1334_v22  ;;  %v1342_v8 = vmax.f32 %v1340_v32, %v1341_v48  ;;  %v1349_v59 = vmax.f32 %v1347_v43, %v1348_v5  ;;  %v1355_v28 = vrot.slane %v1354_v10, 2  ;;  %v3333_v22 = vld [vmem:[#allocation9_spill] sm:$0xff]  ;;  %v3334_v48 = vld [vmem:[#allocation4_spill] sm:$0xff] }
  0xca   :  { %v1362_v13 = vrot.slane %v1361_v53, 2  ;;  %v1369_v39 = vrot.slane %v1368_v33, 2  ;;  %v1376_v27 = vrot.slane %v1375_v47, 2  ;;  %v1329_v20 = vrot.slane %v1328_v15, 1 }
  0xcb   :  { %v1336_v38 = vrot.slane %v1335_v24, 1  ;;  %v1343_v18 = vrot.slane %v1342_v8, 1  ;;  %v1350_v30 = vrot.slane %v1349_v59, 1  ;;  %v1356_v16 = vmax.f32 %v1354_v10, %v1355_v28 }
  0xcc   :  { %v1363_v62 = vmax.f32 %v1361_v53, %v1362_v13  ;;  %v1370_v41 = vmax.f32 %v1368_v33, %v1369_v39  ;;  %v1377_v2 = vmax.f32 %v1375_v47, %v1376_v27  ;;  %v1330_v3 = vmax.f32 %v1328_v15, %v1329_v20  ;;  %v3335_v53 = vld [vmem:[#allocation23_spill] sm:$0xff]  ;;  %v3337_v27 = vld [vmem:[#allocation10_spill] sm:$0xff] }
  0xcd   :  { %v1337_v57 = vmax.f32 %v1335_v24, %v1336_v38  ;;  %v1344_v21 = vmax.f32 %v1342_v8, %v1343_v18  ;;  %v1351_v26 = vmax.f32 %v1349_v59, %v1350_v30  ;;  %v1357_v23 = vrot.slane %v1356_v16, 1  ;;  %v3336_v24 = vld [vmem:[#allocation34_spill] sm:$0xff]  ;;  %v3341_v30 = vld [vmem:[#allocation36_spill] sm:$0xff] }
  0xce   :  { %v1364_v11 = vrot.slane %v1363_v62, 1  ;;  %v1371_v32 = vrot.slane %v1370_v41, 1  ;;  %v1378_v43 = vrot.slane %v1377_v2, 1  ;;  %v1445_v15 = vsel %vm1444_vm1, %v2566_v46, %v2564_v55 }
  0xcf   :  { %v1358_v52 = vmax.f32 %v1356_v16, %v1357_v23  ;;  %v1447_v8 = vsel %vm1446_vm2, %v2568_v61, %v1445_v15  ;;  %v1458_v33 = vsel %vm1444_vm1, %v2606_v14, %v2604_v31  ;;  %v3330_v16 = vld [vmem:[#allocation7_spill] sm:$0xff]  ;;  %v1479_v28 = vsel %vm1444_vm1, %v2726_v36, %v2724_v58  ;;  %v3344_v15 = vld [vmem:[#allocation37_spill] sm:$0xff] }
  0xd0   :  { %v1365_v63 = vmax.f32 %v1363_v62, %v1364_v11  ;;  %v2844_v50 = vmax.f32 %v1370_v41, %v1371_v32  ;;  %v2846_v10 = vmax.f32 %v1377_v2, %v1378_v43  ;;  %v1465_v41 = vsel %vm1444_vm1, %v2646_v29, %v2644_v25  ;;  %v3329_v62 = vld [vmem:[#allocation5_spill] sm:$0xff]  ;;  %v3338_v58 = vld [vmem:[#allocation35_spill] sm:$0xff]  ;;  %v3343_v11 = vld [vmem:[#allocation26_spill] sm:$0xff] }
  0xd1   :  { %v1472_v2 = vsel %vm1444_vm1, %v2686_v1, %v2684_v42  ;;  %v1449_v55 = vsel %vm1448_vm3, %v2570_v40, %v1447_v8  ;;  %v1459_v46 = vsel %vm1446_vm2, %v2608_v0, %v1458_v33  ;;  %v1466_v61 = vsel %vm1446_vm2, %v2648_v44, %v1465_v41  ;;  %v3327_v1 = vld [vmem:[#allocation20_spill] sm:$0xff]  ;;  %v3345_v33 = vld [vmem:[#allocation19_spill] sm:$0xff] }
  0xd2   :  { %v1473_v31 = vsel %vm1446_vm2, %v2688_v56, %v1472_v2  ;;  %v1451_v14 = vsel %vm1450_vm4, %v2584_v9, %v1449_v55  ;;  %v1460_v25 = vsel %vm1448_vm3, %v2610_v19, %v1459_v46  ;;  %v1467_v29 = vsel %vm1448_vm3, %v2650_v6, %v1466_v61  ;;  %v3328_v56 = vld [vmem:[#allocation8_spill] sm:$0xff]  ;;  %v3346_v2 = vld [vmem:[#allocation27_spill] sm:$0xff]  ;;  %v3347_v46 = vld [vmem:[#allocation38_spill] sm:$0xff] }
  0xd3   :  { %v1474_v40 = vsel %vm1448_vm3, %v2690_v17, %v1473_v31  ;;  %v1453_v0 = vsel %vm1452_vm5, %v2586_v4, %v1451_v14  ;;  %v1461_v44 = vsel %vm1450_vm4, %v2624_v34, %v1460_v25  ;;  %v1468_v42 = vsel %vm1450_vm4, %v2664_v12, %v1467_v29  ;;  %v3348_v31 = vld [vmem:[#allocation3_spill] sm:$0xff] }
  0xd4   :  { %v1475_v9 = vsel %vm1450_vm4, %v2704_v37, %v1474_v40  ;;  %v1455_v19 = vsel %vm1454_vm6, %v2588_v35, %v1453_v0  ;;  %v1462_v6 = vsel %vm1452_vm5, %v3327_v1, %v1461_v44  ;;  %v1469_v17 = vsel %vm1452_vm5, %v3328_v56, %v1468_v42  ;;  %v3349_v25 = vld [vmem:[#allocation11_spill] sm:$0xff]  ;;  %v3350_v40 = vld [vmem:[#allocation2_spill] sm:$0xff]  ;;  %v3351_v44 = vld [vmem:[#allocation24_spill] sm:$0xff] }
  0xd5   :  { %v1476_v4 = vsel %vm1452_vm5, %v3329_v62, %v1475_v9  ;;  %v1457_v34 = vsel %vm1456_vm7, %v3330_v16, %v1455_v19  ;;  %v1463_v12 = vsel %vm1454_vm6, %v3331_v45, %v1462_v6  ;;  %v1470_v37 = vsel %vm1454_vm6, %v3332_v49, %v1469_v17  ;;  %v3352_v9 = vld [vmem:[#allocation15_spill] sm:$0xff]  ;;  %v3353_v1 = vld [vmem:[#allocation25_spill] sm:$0xff]  ;;  %v3354_v56 = vld [vmem:[#allocation28_spill] sm:$0xff] }
  0xd6   :  { %v1477_v35 = vsel %vm1454_vm6, %v3333_v22, %v1476_v4  ;;  %v1464_v5 = vsel %vm1456_vm7, %v3334_v48, %v1463_v12  ;;  %v1471_v47 = vsel %vm1456_vm7, %v3335_v53, %v1470_v37  ;;  %1515 = vst.msk [vmem:[%s2996_s2] sm:$0xff] %vm931_vm0, %v1457_v34  ;;  %v1480_v13 = vsel %vm1446_vm2, %v2728_v54, %v1479_v28  ;;  %v3339_v54 = vld [vmem:[#allocation6_spill] sm:$0xff] }
  0xd7   :  { %v1478_v59 = vsel %vm1456_vm7, %v3336_v24, %v1477_v35  ;;  %v1486_v39 = vsel %vm1444_vm1, %v2766_v60, %v2764_v51  ;;  %v1493_v20 = vsel %vm1444_vm1, %v3337_v27, %v2804_v7  ;;  %v1500_v38 = vsel %vm1444_vm1, %v1337_v57, %v1330_v3  ;;  %1516 = vst.msk [vmem:[%s2996_s2 + $0x8] sm:$0xff] %vm931_vm0, %v1464_v5  ;;  %v3340_v60 = vld [vmem:[#allocation14_spill] sm:$0xff] }
  0xd8   :  { %1517 = vst.msk [vmem:[%s2996_s2 + $0x10] sm:$0xff] %vm931_vm0, %v1471_v47  ;;  %1518 = vst.msk [vmem:[%s2996_s2 + $0x18] sm:$0xff] %vm931_vm0, %v1478_v59  ;;  %v1481_v36 = vsel %vm1448_vm3, %v3338_v58, %v1480_v13  ;;  %v1487_v51 = vsel %vm1446_vm2, %v3339_v54, %v1486_v39  ;;  %v1494_v7 = vsel %vm1446_vm2, %v3340_v60, %v1493_v20  ;;  %v3342_v57 = vld [vmem:[#allocation18_spill] sm:$0xff] }
  0xd9   :  { %v1501_v18 = vsel %vm1446_vm2, %v1344_v21, %v1500_v38  ;;  %v1482_v3 = vsel %vm1450_vm4, %v3341_v30, %v1481_v36  ;;  %v1488_v23 = vsel %vm1448_vm3, %v3342_v57, %v1487_v51  ;;  %v1495_v32 = vsel %vm1448_vm3, %v3343_v11, %v1494_v7 }
  0xda   :  { %v1502_v43 = vsel %vm1448_vm3, %v1351_v26, %v1501_v18  ;;  %v1483_v8 = vsel %vm1452_vm5, %v3344_v15, %v1482_v3  ;;  %v1489_v41 = vsel %vm1450_vm4, %v3345_v33, %v1488_v23  ;;  %v1496_v21 = vsel %vm1450_vm4, %v3346_v2, %v1495_v32 }
  0xdb   :  { %v1503_v55 = vsel %vm1450_vm4, %v1358_v52, %v1502_v43  ;;  %v1484_v61 = vsel %vm1454_vm6, %v3347_v46, %v1483_v8  ;;  %v1490_v14 = vsel %vm1452_vm5, %v3348_v31, %v1489_v41  ;;  %v1497_v26 = vsel %vm1452_vm5, %v3349_v25, %v1496_v21 }
  0xdc   :  { %v1504_v29 = vsel %vm1452_vm5, %v1365_v63, %v1503_v55  ;;  %v1485_v0 = vsel %vm1456_vm7, %v3350_v40, %v1484_v61  ;;  %v1491_v42 = vsel %vm1454_vm6, %v3351_v44, %v1490_v14  ;;  %v1498_v52 = vsel %vm1454_vm6, %v3352_v9, %v1497_v26 }
  0xdd   :  { %v1505_v19 = vsel %vm1454_vm6, %v2844_v50, %v1504_v29  ;;  %v1492_v6 = vsel %vm1456_vm7, %v3353_v1, %v1491_v42  ;;  %v1499_v17 = vsel %vm1456_vm7, %v3354_v56, %v1498_v52  ;;  %1519 = vst.msk [vmem:[%s2996_s2 + $0x20] sm:$0xff] %vm931_vm0, %v1485_v0 }
  0xde   :  { %v1506_v63 = vsel %vm1456_vm7, %v2846_v10, %v1505_v19  ;;  %1520 = vst.msk [vmem:[%s2996_s2 + $0x28] sm:$0xff] %vm931_vm0, %v1492_v6  ;;  %1521 = vst.msk [vmem:[%s2996_s2 + $0x30] sm:$0xff] %vm931_vm0, %v1499_v17 }
  0xdf   :  { %1522 = vst.msk [vmem:[%s2996_s2 + $0x38] sm:$0xff] %vm931_vm0, %v1506_v63 }

// kernel: hybrid_dgnn_forward.13
= control target key start
LH: loop header
LB: loop body
LE: loop exit
PB: predicated region body
PF: predicated region fallthrough
CT: control target
= control target key end

     0   :  { %vm39_vm0 = vcmask 523264   ;;  %v248_v39 = vlaneseq  ;;  %s2153_s1 = inlined_call_operand.vmem [shape: f32[64,64], index: 1, kind: input, shape index: {}, may-alias: {0,1}]   ;;  %s2154_s0 = inlined_call_operand.vmem [shape: f32[64,64], index: 0, kind: input, shape index: {}, may-alias: {0,1}]   ;;  %s2155_s2 = inlined_call_operand.vmem [shape: f32[1,64], index: 2, kind: input, shape index: {}]   ;;  %s2156_s3 = inlined_call_operand.vmem [shape: s32[64,8], index: 3, kind: output, shape index: {}]  }
   0x1   :  { %v23_v0 = vld [vmem:[%s2153_s1] sm:$0xff]  ;;  %v24_v1 = vld [vmem:[%s2153_s1 + $0x8] sm:$0xff]  ;;  %vm1139_vm1 = vmpackc.low %vm39_vm0, %vm39_vm0 }
   0x2   :  { %v1063_v3 = vpack.c.bf16 %v24_v1, %v23_v0  ;;  %v25_v4 = vld [vmem:[%s2153_s1 + $0x10] sm:$0xff]  ;;  %v26_v5 = vld [vmem:[%s2153_s1 + $0x18] sm:$0xff]  ;;  %v15_v7 = vld [vmem:[%s2154_s0] sm:$0xff]  ;;  %v249_v42 = vshrl.u32 %v248_v39, 7  ;;  %v1233_v46 = vand.u32 127, %v248_v39 }
   0x3   :  { %v1069_v6 = vpack.c.bf16 %v26_v5, %v25_v4  ;;  %v16_v8 = vld [vmem:[%s2154_s0 + $0x8] sm:$0xff]  ;;  %v19_v9 = vld [vmem:[%s2154_s0 + $0x20] sm:$0xff]  ;;  %v31_v10 = vmul.f32 %v15_v7, %v15_v7  ;;  %v17_v11 = vld [vmem:[%s2154_s0 + $0x10] sm:$0xff]  ;;  %1051 = vmatprep.mubr.msk.f32.mxu0 %vm39_vm0, %v15_v7 }
   0x4   :  { %1065 = vmatprep.subr.msk.bf16.mxu0 %vm1139_vm1, %v1063_v3  ;;  %1087 = vmatprep.subr.msk.bf16.mxu1 %vm1139_vm1, %v1063_v3  ;;  %v32_v12 = vmul.f32 %v16_v8, %v16_v8  ;;  %v33_v13 = vmul.f32 %v17_v11, %v17_v11  ;;  %v27_v14 = vld [vmem:[%s2153_s1 + $0x20] sm:$0xff]  ;;  %v28_v15 = vld [vmem:[%s2153_s1 + $0x28] sm:$0xff]  ;;  %v18_v16 = vld [vmem:[%s2154_s0 + $0x18] sm:$0xff]  ;;  %v35_v20 = vmul.f32 %v19_v9, %v19_v9  ;;  %v250_v45 = vadd.s32 8, %v249_v42 }
   0x5   :  { %1068 = vmatpush3.bf16.xpose.msk.msra.mxu0 %vm1139_vm1, %v1063_v3  ;;  %1091 = vmatpush3.bf16.xpose.msk.msra.mxu1 %vm1139_vm1, %v1063_v3  ;;  %v40_v17 = vsel %vm39_vm0, %v31_v10, 0.0  ;;  %v34_v19 = vmul.f32 %v18_v16, %v18_v16  ;;  %v1075_v22 = vpack.c.bf16 %v28_v15, %v27_v14  ;;  %v20_v23 = vld [vmem:[%s2154_s0 + $0x28] sm:$0xff]  ;;  %v21_v24 = vld [vmem:[%s2154_s0 + $0x30] sm:$0xff]  ;;  %v30_v30 = vld [vmem:[%s2153_s1 + $0x38] sm:$0xff]  ;;  %v254_v47 = vadd.s32 40, %v249_v42 }
   0x6   :  { %1071 = vmatprep.subr.msk.bf16.mxu0 %vm1139_vm1, %v1069_v6  ;;  %1088 = vmatprep.subr.msk.bf16.mxu1 %vm1139_vm1, %v1069_v6  ;;  %v46_v18 = vsel %vm39_vm0, %v33_v13, 0.0  ;;  %v43_v21 = vsel %vm39_vm0, %v32_v12, 0.0  ;;  %v36_v26 = vmul.f32 %v20_v23, %v20_v23  ;;  %v52_v27 = vsel %vm39_vm0, %v35_v20, 0.0  ;;  %v29_v29 = vld [vmem:[%s2153_s1 + $0x30] sm:$0xff]  ;;  %v22_v31 = vld [vmem:[%s2154_s0 + $0x38] sm:$0xff] }
   0x7   :  { %1057 = vmatprep.mubr.msk.f32.mxu1 %vm39_vm0, %v19_v9  ;;  %41 = vadd.xlane.f32.xlu0 %v40_v17  ;;  %v49_v25 = vsel %vm39_vm0, %v34_v19, 0.0  ;;  %v37_v28 = vmul.f32 %v21_v24, %v21_v24  ;;  %v38_v33 = vmul.f32 %v22_v31, %v22_v31  ;;  %v1081_v35 = vpack.c.bf16 %v30_v30, %v29_v29  ;;  %v1018_v48 = vld [vmem:[%s2155_s2] ss:$0 sm:$0xff] }
   0x8   :  { %47 = vadd.xlane.f32.xlu1 %v46_v18  ;;  %v55_v32 = vsel %vm39_vm0, %v36_v26, 0.0  ;;  %v253_v49 = vadd.s32 32, %v249_v42  ;;  %vm270_vm2 = vcmp.eq.s32.totalorder %v250_v45, %v1233_v46  ;;  %vm269_vm3 = vcmp.eq.s32.totalorder %v249_v42, %v1233_v46 }
   0x9   :  { %v58_v34 = vsel %vm39_vm0, %v37_v28, 0.0  ;;  %v61_v36 = vsel %vm39_vm0, %v38_v33, 0.0  ;;  %v252_v56 = vadd.s32 24, %v249_v42  ;;  %vm274_vm4 = vcmp.eq.s32.totalorder %v254_v47, %v1233_v46 }
   0xa   :  { %v251_v61 = vadd.s32 16, %v249_v42  ;;  %vm273_vm5 = vcmp.eq.s32.totalorder %v253_v49, %v1233_v46  ;;  %v256_v5 = vadd.s32 56, %v249_v42 }
   0xb   :  { %44 = vadd.xlane.f32.xlu0 %v43_v21  ;;  %vm272_vm6 = vcmp.eq.s32.totalorder %v252_v56, %v1233_v46 }
   0xc   :  { %50 = vadd.xlane.f32.xlu1 %v49_v25  ;;  %v255_v25 = vadd.s32 48, %v249_v42  ;;  %vm271_vm7 = vcmp.eq.s32.totalorder %v251_v61, %v1233_v46  ;;  %vm276_vm8 = vcmp.eq.s32.totalorder %v256_v5, %v1233_v46 }
   0xd   :  { %1074 = vmatpush3.bf16.xpose.msk.msra.mxu0 %vm1139_vm1, %v1069_v6  ;;  %1092 = vmatpush3.bf16.xpose.msk.msra.mxu1 %vm1139_vm1, %v1069_v6 }
   0xe   :  { %1077 = vmatprep.subr.msk.bf16.mxu0 %vm1139_vm1, %v1075_v22  ;;  %1089 = vmatprep.subr.msk.bf16.mxu1 %vm1139_vm1, %v1075_v22  ;;  %vm275_vm9 = vcmp.eq.s32.totalorder %v255_v25, %v1233_v46 }
   0xf   :  { %53 = vadd.xlane.f32.xlu0 %v52_v27 }
  0x10   :  { %56 = vadd.xlane.f32.xlu1 %v55_v32 }
  0x13   :  { %59 = vadd.xlane.f32.xlu0 %v58_v34 }
  0x14   :  { %62 = vadd.xlane.f32.xlu1 %v61_v36 }
  0x15   :  { %1080 = vmatpush3.bf16.xpose.msk.msra.mxu0 %vm1139_vm1, %v1075_v22  ;;  %1093 = vmatpush3.bf16.xpose.msk.msra.mxu1 %vm1139_vm1, %v1075_v22 }
  0x16   :  { %1083 = vmatprep.subr.msk.bf16.mxu0 %vm1139_vm1, %v1081_v35  ;;  %1090 = vmatprep.subr.msk.bf16.mxu1 %vm1139_vm1, %v1081_v35 }
  0x1d   :  { %1086 = vmatpush3.bf16.xpose.msk.msra.mxu0 %vm1139_vm1, %v1081_v35  ;;  %1094 = vmatpush3.bf16.xpose.msk.msra.mxu1 %vm1139_vm1, %v1081_v35 }
  0x24   :  { %1052 = vmatmul.mubr.msk.f32.vlgmr.msra.gmra.mrb[0].mxu0 %vm39_vm0, %v16_v8  ;;  %1058 = vmatmul.mubr.msk.f32.vlgmr.msra.gmra.mrb[0].mxu1 %vm39_vm0, %v20_v23 }
  0x25   :  { %1054 = vmatprep.mubr.msk.f32.mxu0 %vm39_vm0, %v17_v11  ;;  %1060 = vmatprep.mubr.msk.f32.mxu1 %vm39_vm0, %v21_v24 }
  0x28   :  { %1055 = vmatmul.mubr.msk.f32.gmra.mrb[2].mxu0 %vm39_vm0, %v18_v16  ;;  %1061 = vmatmul.mubr.msk.f32.gmra.mrb[2].mxu1 %vm39_vm0, %v22_v31 }
  0x94   :  { %v42_v37 = vpop.xlane.xlu0 %41 }
  0x95   :  { %v48_v38 = vpop.xlane.xlu1 %47  ;;  %v224_v62 = vadd.f32 %v1018_v48, %v42_v37 }
  0x96   :  { %v226_v2 = vadd.f32 %v1018_v48, %v48_v38 }
  0x98   :  { %v45_v40 = vpop.xlane.xlu0 %44 }
  0x99   :  { %v51_v41 = vpop.xlane.xlu1 %50  ;;  %v225_v50 = vadd.f32 %v1018_v48, %v45_v40  ;;  %v1287_v40 = vcvt.s32.f32 %v1233_v46 }
  0x9a   :  { %v227_v6 = vadd.f32 %v1018_v48, %v51_v41 }
  0x9c   :  { %v54_v43 = vpop.xlane.xlu0 %53 }
  0x9d   :  { %v57_v44 = vpop.xlane.xlu1 %56  ;;  %v228_v55 = vadd.f32 %v1018_v48, %v54_v43 }
  0x9e   :  { %v229_v51 = vadd.f32 %v1018_v48, %v57_v44 }
  0xa0   :  { %v60_v52 = vpop.xlane.xlu0 %59 }
  0xa1   :  { %v63_v1 = vpop.xlane.xlu1 %62  ;;  %v230_v11 = vadd.f32 %v1018_v48, %v60_v52 }
  0xa2   :  { %v231_v17 = vadd.f32 %v1018_v48, %v63_v1 }
  0xf7   :  { %v1053_v53 = vpop.f32.mrb[0].mxu0  ;;  %v1059_v54 = vpop.f32.mrb[0].mxu1 }
  0xf8   :  { %v233_v57 = vmul.f32 2.0, %v1053_v53  ;;  %v178_v58 = vpop.f32.mrb[1].mxu0  ;;  %v237_v59 = vmul.f32 2.0, %v1059_v54  ;;  %v198_v60 = vpop.f32.mrb[1].mxu1 }
  0xf9   :  { %v232_v63 = vmul.f32 2.0, %v178_v58  ;;  %v236_v0 = vmul.f32 2.0, %v198_v60 }
  0xfa   :  { %v241_v3 = vsub.f32 %v225_v50, %v233_v57  ;;  %v245_v4 = vsub.f32 %v229_v51, %v237_v59 }
  0xfb   :  { %v240_v7 = vsub.f32 %v224_v62, %v232_v63  ;;  %v1056_v8 = vpop.f32.mrb[2].mxu0  ;;  %v244_v9 = vsub.f32 %v228_v55, %v236_v0  ;;  %v1062_v10 = vpop.f32.mrb[2].mxu1 }
  0xfc   :  { %v235_v12 = vmul.f32 2.0, %v1056_v8  ;;  %v188_v13 = vpop.f32.mrb[3].mxu0  ;;  %v1244_v14 = vsel %vm270_vm2, 1e+30, %v241_v3  ;;  %v239_v15 = vmul.f32 2.0, %v1062_v10  ;;  %v208_v16 = vpop.f32.mrb[3].mxu1 }
  0xfd   :  { %v234_v18 = vmul.f32 2.0, %v188_v13  ;;  %v288_v19 = vsel %vm39_vm0, %v1244_v14, inf  ;;  %v1250_v20 = vsel %vm269_vm3, 1e+30, %v240_v7  ;;  %v1254_v21 = vsel %vm274_vm4, 1e+30, %v245_v4 }
  0xfe   :  { %v243_v22 = vsub.f32 %v227_v6, %v235_v12  ;;  %289 = vmin.xlane.f32.xlu1 %v288_v19  ;;  %v285_v23 = vsel %vm39_vm0, %v1250_v20, inf  ;;  %v238_v24 = vmul.f32 2.0, %v208_v16  ;;  %v300_v27 = vsel %vm39_vm0, %v1254_v21, inf }
  0xff   :  { %v242_v26 = vsub.f32 %v226_v2, %v234_v18  ;;  %286 = vmin.xlane.f32.xlu0 %v285_v23  ;;  %v1262_v28 = vsel %vm273_vm5, 1e+30, %v244_v9  ;;  %v247_v29 = vsub.f32 %v231_v17, %v239_v15 }
 0x100   :  { %v297_v30 = vsel %vm39_vm0, %v1262_v28, inf  ;;  %v246_v31 = vsub.f32 %v230_v11, %v238_v24  ;;  %v1269_v32 = vsel %vm272_vm6, 1e+30, %v243_v22 }
 0x101   :  { %v1272_v33 = vsel %vm271_vm7, 1e+30, %v242_v26  ;;  %v1274_v34 = vsel %vm276_vm8, 1e+30, %v247_v29  ;;  %v294_v35 = vsel %vm39_vm0, %v1269_v32, inf }
 0x102   :  { %301 = vmin.xlane.f32.xlu1 %v300_v27  ;;  %v1278_v36 = vsel %vm275_vm9, 1e+30, %v246_v31  ;;  %v291_v37 = vsel %vm39_vm0, %v1272_v33, inf  ;;  %v306_v38 = vsel %vm39_vm0, %v1274_v34, inf }
 0x103   :  { %298 = vmin.xlane.f32.xlu0 %v297_v30  ;;  %v303_v39 = vsel %vm39_vm0, %v1278_v36, inf }
 0x106   :  { %295 = vmin.xlane.f32.xlu1 %v294_v35 }
 0x107   :  { %292 = vmin.xlane.f32.xlu0 %v291_v37 }
 0x10a   :  { %307 = vmin.xlane.f32.xlu1 %v306_v38 }
 0x10b   :  { %304 = vmin.xlane.f32.xlu0 %v303_v39 }
 0x18b   :  { %v290_v41 = vpop.xlane.xlu1 %289 }
 0x18c   :  { %vm310_vm10 = vcmp.le.f32.partialorder %v1244_v14, %v290_v41  ;;  %v287_v42 = vpop.xlane.xlu0 %286 }
 0x18d   :  { %vm309_vm11 = vcmp.le.f32.partialorder %v1250_v20, %v287_v42  ;;  %v318_v43 = vsel %vm310_vm10, %v1287_v40, 64.0 }
 0x18e   :  { %v328_v44 = vsel %vm39_vm0, %v318_v43, inf  ;;  %v317_v45 = vsel %vm309_vm11, %v1287_v40, 64.0 }
 0x18f   :  { %329 = vmin.xlane.f32.xlu1 %v328_v44  ;;  %v302_v47 = vpop.xlane.xlu1 %301  ;;  %v325_v48 = vsel %vm39_vm0, %v317_v45, inf }
 0x190   :  { %vm314_vm12 = vcmp.le.f32.partialorder %v1254_v21, %v302_v47  ;;  %326 = vmin.xlane.f32.xlu0 %v325_v48  ;;  %v299_v49 = vpop.xlane.xlu0 %298 }
 0x191   :  { %vm313_vm13 = vcmp.le.f32.partialorder %v1262_v28, %v299_v49  ;;  %v322_v50 = vsel %vm314_vm12, %v1287_v40, 64.0 }
 0x192   :  { %v340_v51 = vsel %vm39_vm0, %v322_v50, inf  ;;  %v321_v52 = vsel %vm313_vm13, %v1287_v40, 64.0 }
 0x193   :  { %341 = vmin.xlane.f32.xlu1 %v340_v51  ;;  %v296_v53 = vpop.xlane.xlu1 %295  ;;  %v337_v54 = vsel %vm39_vm0, %v321_v52, inf }
 0x194   :  { %vm312_vm14 = vcmp.le.f32.partialorder %v1269_v32, %v296_v53  ;;  %338 = vmin.xlane.f32.xlu0 %v337_v54  ;;  %v293_v55 = vpop.xlane.xlu0 %292 }
 0x195   :  { %vm311_vm15 = vcmp.le.f32.partialorder %v1272_v33, %v293_v55  ;;  %v320_v56 = vsel %vm312_vm14, %v1287_v40, 64.0 }
 0x196   :  { %v334_v57 = vsel %vm39_vm0, %v320_v56, inf  ;;  %v319_v58 = vsel %vm311_vm15, %v1287_v40, 64.0 }
 0x197   :  { %335 = vmin.xlane.f32.xlu1 %v334_v57  ;;  %v308_v59 = vpop.xlane.xlu1 %307  ;;  %v331_v60 = vsel %vm39_vm0, %v319_v58, inf }
 0x198   :  { %vm316_vm1 = vcmp.le.f32.partialorder %v1274_v34, %v308_v59  ;;  %332 = vmin.xlane.f32.xlu0 %v331_v60  ;;  %v305_v61 = vpop.xlane.xlu0 %304 }
 0x199   :  { %vm315_vm2 = vcmp.le.f32.partialorder %v1278_v36, %v305_v61  ;;  %v324_v62 = vsel %vm316_vm1, %v1287_v40, 64.0 }
 0x19a   :  { %v346_v63 = vsel %vm39_vm0, %v324_v62, inf  ;;  %v323_v0 = vsel %vm315_vm2, %v1287_v40, 64.0 }
 0x19b   :  { %347 = vmin.xlane.f32.xlu1 %v346_v63  ;;  %v343_v1 = vsel %vm39_vm0, %v323_v0, inf }
 0x19c   :  { %344 = vmin.xlane.f32.xlu0 %v343_v1 }
 0x21c   :  { %v1313_v2 = vpop.xlane.xlu1 %329 }
 0x21d   :  { %vm350_vm3 = vcmp.eq.f32.partialorder %v1287_v40, %v1313_v2  ;;  %v1317_v3 = vpop.xlane.xlu0 %326 }
 0x21e   :  { %vm349_vm4 = vcmp.eq.f32.partialorder %v1287_v40, %v1317_v3  ;;  %v1322_v4 = vsel %vm350_vm3, 1e+30, %v1244_v14 }
 0x21f   :  { %v368_v5 = vsel %vm39_vm0, %v1322_v4, inf  ;;  %v1327_v6 = vsel %vm349_vm4, 1e+30, %v1250_v20 }
 0x220   :  { %369 = vmin.xlane.f32.xlu1 %v368_v5  ;;  %v1329_v7 = vpop.xlane.xlu1 %341  ;;  %v365_v8 = vsel %vm39_vm0, %v1327_v6, inf }
 0x221   :  { %vm354_vm5 = vcmp.eq.f32.partialorder %v1287_v40, %v1329_v7  ;;  %366 = vmin.xlane.f32.xlu0 %v365_v8  ;;  %v1335_v9 = vpop.xlane.xlu0 %338 }
 0x222   :  { %vm353_vm6 = vcmp.eq.f32.partialorder %v1287_v40, %v1335_v9  ;;  %v1340_v10 = vsel %vm354_vm5, 1e+30, %v1254_v21 }
 0x223   :  { %v380_v11 = vsel %vm39_vm0, %v1340_v10, inf  ;;  %v1345_v12 = vsel %vm353_vm6, 1e+30, %v1262_v28 }
 0x224   :  { %381 = vmin.xlane.f32.xlu1 %v380_v11  ;;  %v1347_v13 = vpop.xlane.xlu1 %335  ;;  %v377_v14 = vsel %vm39_vm0, %v1345_v12, inf }
 0x225   :  { %vm352_vm7 = vcmp.eq.f32.partialorder %v1287_v40, %v1347_v13  ;;  %378 = vmin.xlane.f32.xlu0 %v377_v14  ;;  %v1353_v15 = vpop.xlane.xlu0 %332 }
 0x226   :  { %vm351_vm8 = vcmp.eq.f32.partialorder %v1287_v40, %v1353_v15  ;;  %v1358_v16 = vsel %vm352_vm7, 1e+30, %v1269_v32 }
 0x227   :  { %v374_v17 = vsel %vm39_vm0, %v1358_v16, inf  ;;  %v1363_v18 = vsel %vm351_vm8, 1e+30, %v1272_v33 }
 0x228   :  { %375 = vmin.xlane.f32.xlu1 %v374_v17  ;;  %v1365_v19 = vpop.xlane.xlu1 %347  ;;  %v371_v20 = vsel %vm39_vm0, %v1363_v18, inf }
 0x229   :  { %vm356_vm9 = vcmp.eq.f32.partialorder %v1287_v40, %v1365_v19  ;;  %372 = vmin.xlane.f32.xlu0 %v371_v20  ;;  %v1371_v21 = vpop.xlane.xlu0 %344 }
 0x22a   :  { %vm355_vm10 = vcmp.eq.f32.partialorder %v1287_v40, %v1371_v21  ;;  %v1376_v22 = vsel %vm356_vm9, 1e+30, %v1274_v34 }
 0x22b   :  { %v386_v23 = vsel %vm39_vm0, %v1376_v22, inf  ;;  %v1381_v24 = vsel %vm355_vm10, 1e+30, %v1278_v36 }
 0x22c   :  { %387 = vmin.xlane.f32.xlu1 %v386_v23  ;;  %v383_v25 = vsel %vm39_vm0, %v1381_v24, inf }
 0x22d   :  { %384 = vmin.xlane.f32.xlu0 %v383_v25 }
 0x2ad   :  { %v370_v26 = vpop.xlane.xlu1 %369 }
 0x2ae   :  { %vm390_vm11 = vcmp.le.f32.partialorder %v1322_v4, %v370_v26  ;;  %v367_v27 = vpop.xlane.xlu0 %366 }
 0x2af   :  { %vm389_vm12 = vcmp.le.f32.partialorder %v1327_v6, %v367_v27  ;;  %v398_v28 = vsel %vm390_vm11, %v1287_v40, 64.0 }
 0x2b0   :  { %v408_v29 = vsel %vm39_vm0, %v398_v28, inf  ;;  %v397_v30 = vsel %vm389_vm12, %v1287_v40, 64.0 }
 0x2b1   :  { %409 = vmin.xlane.f32.xlu1 %v408_v29  ;;  %v382_v31 = vpop.xlane.xlu1 %381  ;;  %v405_v32 = vsel %vm39_vm0, %v397_v30, inf }
 0x2b2   :  { %vm394_vm13 = vcmp.le.f32.partialorder %v1340_v10, %v382_v31  ;;  %406 = vmin.xlane.f32.xlu0 %v405_v32  ;;  %v379_v33 = vpop.xlane.xlu0 %378 }
 0x2b3   :  { %vm393_vm14 = vcmp.le.f32.partialorder %v1345_v12, %v379_v33  ;;  %v402_v34 = vsel %vm394_vm13, %v1287_v40, 64.0 }
 0x2b4   :  { %v420_v35 = vsel %vm39_vm0, %v402_v34, inf  ;;  %v401_v36 = vsel %vm393_vm14, %v1287_v40, 64.0 }
 0x2b5   :  { %421 = vmin.xlane.f32.xlu1 %v420_v35  ;;  %v376_v37 = vpop.xlane.xlu1 %375  ;;  %v417_v38 = vsel %vm39_vm0, %v401_v36, inf }
 0x2b6   :  { %vm392_vm15 = vcmp.le.f32.partialorder %v1358_v16, %v376_v37  ;;  %418 = vmin.xlane.f32.xlu0 %v417_v38  ;;  %v373_v39 = vpop.xlane.xlu0 %372 }
 0x2b7   :  { %vm391_vm1 = vcmp.le.f32.partialorder %v1363_v18, %v373_v39  ;;  %v400_v41 = vsel %vm392_vm15, %v1287_v40, 64.0 }
 0x2b8   :  { %v414_v42 = vsel %vm39_vm0, %v400_v41, inf  ;;  %v399_v43 = vsel %vm391_vm1, %v1287_v40, 64.0 }
 0x2b9   :  { %415 = vmin.xlane.f32.xlu1 %v414_v42  ;;  %v388_v44 = vpop.xlane.xlu1 %387  ;;  %v411_v45 = vsel %vm39_vm0, %v399_v43, inf }
 0x2ba   :  { %vm396_vm2 = vcmp.le.f32.partialorder %v1376_v22, %v388_v44  ;;  %412 = vmin.xlane.f32.xlu0 %v411_v45  ;;  %v385_v47 = vpop.xlane.xlu0 %384 }
 0x2bb   :  { %vm395_vm3 = vcmp.le.f32.partialorder %v1381_v24, %v385_v47  ;;  %v404_v48 = vsel %vm396_vm2, %v1287_v40, 64.0 }
 0x2bc   :  { %v426_v49 = vsel %vm39_vm0, %v404_v48, inf  ;;  %v403_v50 = vsel %vm395_vm3, %v1287_v40, 64.0 }
 0x2bd   :  { %427 = vmin.xlane.f32.xlu1 %v426_v49  ;;  %v423_v51 = vsel %vm39_vm0, %v403_v50, inf }
 0x2be   :  { %424 = vmin.xlane.f32.xlu0 %v423_v51 }
 0x33e   :  { %v1409_v52 = vpop.xlane.xlu1 %409 }
 0x33f   :  { %vm430_vm4 = vcmp.eq.f32.partialorder %v1287_v40, %v1409_v52  ;;  %v1413_v53 = vpop.xlane.xlu0 %406 }
 0x340   :  { %vm429_vm5 = vcmp.eq.f32.partialorder %v1287_v40, %v1413_v53  ;;  %v1418_v54 = vsel %vm430_vm4, 1e+30, %v1322_v4 }
 0x341   :  { %v448_v55 = vsel %vm39_vm0, %v1418_v54, inf  ;;  %v1423_v56 = vsel %vm429_vm5, 1e+30, %v1327_v6 }
 0x342   :  { %449 = vmin.xlane.f32.xlu1 %v448_v55  ;;  %v1425_v57 = vpop.xlane.xlu1 %421  ;;  %v445_v58 = vsel %vm39_vm0, %v1423_v56, inf }
 0x343   :  { %vm434_vm6 = vcmp.eq.f32.partialorder %v1287_v40, %v1425_v57  ;;  %446 = vmin.xlane.f32.xlu0 %v445_v58  ;;  %v1431_v59 = vpop.xlane.xlu0 %418 }
 0x344   :  { %vm433_vm7 = vcmp.eq.f32.partialorder %v1287_v40, %v1431_v59  ;;  %v1436_v60 = vsel %vm434_vm6, 1e+30, %v1340_v10 }
 0x345   :  { %v460_v61 = vsel %vm39_vm0, %v1436_v60, inf  ;;  %v1441_v62 = vsel %vm433_vm7, 1e+30, %v1345_v12 }
 0x346   :  { %461 = vmin.xlane.f32.xlu1 %v460_v61  ;;  %v1443_v63 = vpop.xlane.xlu1 %415  ;;  %v457_v0 = vsel %vm39_vm0, %v1441_v62, inf }
 0x347   :  { %vm432_vm8 = vcmp.eq.f32.partialorder %v1287_v40, %v1443_v63  ;;  %458 = vmin.xlane.f32.xlu0 %v457_v0  ;;  %v1449_v1 = vpop.xlane.xlu0 %412 }
 0x348   :  { %vm431_vm9 = vcmp.eq.f32.partialorder %v1287_v40, %v1449_v1  ;;  %v1454_v4 = vsel %vm432_vm8, 1e+30, %v1358_v16 }
 0x349   :  { %v454_v5 = vsel %vm39_vm0, %v1454_v4, inf  ;;  %v1459_v6 = vsel %vm431_vm9, 1e+30, %v1363_v18 }
 0x34a   :  { %455 = vmin.xlane.f32.xlu1 %v454_v5  ;;  %v1461_v8 = vpop.xlane.xlu1 %427  ;;  %v451_v10 = vsel %vm39_vm0, %v1459_v6, inf }
 0x34b   :  { %vm436_vm10 = vcmp.eq.f32.partialorder %v1287_v40, %v1461_v8  ;;  %452 = vmin.xlane.f32.xlu0 %v451_v10  ;;  %v1467_v11 = vpop.xlane.xlu0 %424 }
 0x34c   :  { %vm435_vm11 = vcmp.eq.f32.partialorder %v1287_v40, %v1467_v11  ;;  %v1472_v12 = vsel %vm436_vm10, 1e+30, %v1376_v22 }
 0x34d   :  { %v466_v14 = vsel %vm39_vm0, %v1472_v12, inf  ;;  %v1477_v16 = vsel %vm435_vm11, 1e+30, %v1381_v24 }
 0x34e   :  { %467 = vmin.xlane.f32.xlu1 %v466_v14  ;;  %v463_v17 = vsel %vm39_vm0, %v1477_v16, inf }
 0x34f   :  { %464 = vmin.xlane.f32.xlu0 %v463_v17 }
 0x3cf   :  { %v450_v18 = vpop.xlane.xlu1 %449 }
 0x3d0   :  { %vm470_vm12 = vcmp.le.f32.partialorder %v1418_v54, %v450_v18  ;;  %v447_v20 = vpop.xlane.xlu0 %446 }
 0x3d1   :  { %vm469_vm13 = vcmp.le.f32.partialorder %v1423_v56, %v447_v20  ;;  %v478_v22 = vsel %vm470_vm12, %v1287_v40, 64.0 }
 0x3d2   :  { %v488_v23 = vsel %vm39_vm0, %v478_v22, inf  ;;  %v477_v25 = vsel %vm469_vm13, %v1287_v40, 64.0 }
 0x3d3   :  { %489 = vmin.xlane.f32.xlu1 %v488_v23  ;;  %v462_v24 = vpop.xlane.xlu1 %461  ;;  %v485_v26 = vsel %vm39_vm0, %v477_v25, inf }
 0x3d4   :  { %vm474_vm14 = vcmp.le.f32.partialorder %v1436_v60, %v462_v24  ;;  %486 = vmin.xlane.f32.xlu0 %v485_v26  ;;  %v459_v27 = vpop.xlane.xlu0 %458 }
 0x3d5   :  { %vm473_vm15 = vcmp.le.f32.partialorder %v1441_v62, %v459_v27  ;;  %v482_v28 = vsel %vm474_vm14, %v1287_v40, 64.0 }
 0x3d6   :  { %v500_v29 = vsel %vm39_vm0, %v482_v28, inf  ;;  %v481_v30 = vsel %vm473_vm15, %v1287_v40, 64.0 }
 0x3d7   :  { %501 = vmin.xlane.f32.xlu1 %v500_v29  ;;  %v456_v31 = vpop.xlane.xlu1 %455  ;;  %v497_v32 = vsel %vm39_vm0, %v481_v30, inf }
 0x3d8   :  { %vm472_vm1 = vcmp.le.f32.partialorder %v1454_v4, %v456_v31  ;;  %498 = vmin.xlane.f32.xlu0 %v497_v32  ;;  %v453_v33 = vpop.xlane.xlu0 %452 }
 0x3d9   :  { %vm471_vm2 = vcmp.le.f32.partialorder %v1459_v6, %v453_v33  ;;  %v480_v34 = vsel %vm472_vm1, %v1287_v40, 64.0 }
 0x3da   :  { %v494_v35 = vsel %vm39_vm0, %v480_v34, inf  ;;  %v479_v36 = vsel %vm471_vm2, %v1287_v40, 64.0 }
 0x3db   :  { %495 = vmin.xlane.f32.xlu1 %v494_v35  ;;  %v468_v37 = vpop.xlane.xlu1 %467  ;;  %v491_v38 = vsel %vm39_vm0, %v479_v36, inf }
 0x3dc   :  { %vm476_vm3 = vcmp.le.f32.partialorder %v1472_v12, %v468_v37  ;;  %492 = vmin.xlane.f32.xlu0 %v491_v38  ;;  %v465_v39 = vpop.xlane.xlu0 %464 }
 0x3dd   :  { %vm475_vm4 = vcmp.le.f32.partialorder %v1477_v16, %v465_v39  ;;  %v484_v41 = vsel %vm476_vm3, %v1287_v40, 64.0 }
 0x3de   :  { %v506_v42 = vsel %vm39_vm0, %v484_v41, inf  ;;  %v483_v43 = vsel %vm475_vm4, %v1287_v40, 64.0 }
 0x3df   :  { %507 = vmin.xlane.f32.xlu1 %v506_v42  ;;  %v503_v44 = vsel %vm39_vm0, %v483_v43, inf }
 0x3e0   :  { %504 = vmin.xlane.f32.xlu0 %v503_v44 }
 0x460   :  { %v1505_v45 = vpop.xlane.xlu1 %489 }
 0x461   :  { %vm510_vm5 = vcmp.eq.f32.partialorder %v1287_v40, %v1505_v45  ;;  %v1509_v47 = vpop.xlane.xlu0 %486 }
 0x462   :  { %vm509_vm6 = vcmp.eq.f32.partialorder %v1287_v40, %v1509_v47  ;;  %v1514_v48 = vsel %vm510_vm5, 1e+30, %v1418_v54 }
 0x463   :  { %v528_v49 = vsel %vm39_vm0, %v1514_v48, inf  ;;  %v1519_v50 = vsel %vm509_vm6, 1e+30, %v1423_v56  ;;  %vm909_vm6 = vcmp.eq.s32.totalorder %v1233_v46, 0 }
 0x464   :  { %529 = vmin.xlane.f32.xlu1 %v528_v49  ;;  %v1521_v51 = vpop.xlane.xlu1 %501  ;;  %v525_v55 = vsel %vm39_vm0, %v1519_v50, inf }
 0x465   :  { %vm514_vm7 = vcmp.eq.f32.partialorder %v1287_v40, %v1521_v51  ;;  %526 = vmin.xlane.f32.xlu0 %v525_v55  ;;  %v1527_v58 = vpop.xlane.xlu0 %498 }
 0x466   :  { %vm513_vm8 = vcmp.eq.f32.partialorder %v1287_v40, %v1527_v58  ;;  %v1532_v54 = vsel %vm514_vm7, 1e+30, %v1436_v60  ;;  %vm918_vm7 = vcmp.eq.s32.totalorder %v1233_v46, 1 }
 0x467   :  { %v540_v56 = vsel %vm39_vm0, %v1532_v54, inf  ;;  %v1537_v61 = vsel %vm513_vm8, 1e+30, %v1441_v62  ;;  %vm927_vm8 = vcmp.eq.s32.totalorder %v1233_v46, 2 }
 0x468   :  { %541 = vmin.xlane.f32.xlu1 %v540_v56  ;;  %v1539_v0 = vpop.xlane.xlu1 %495  ;;  %v537_v5 = vsel %vm39_vm0, %v1537_v61, inf  ;;  %v911_v56 = vsel %vm909_vm6, %v1313_v2, 0.0 }
 0x469   :  { %vm512_vm9 = vcmp.eq.f32.partialorder %v1287_v40, %v1539_v0  ;;  %538 = vmin.xlane.f32.xlu0 %v537_v5  ;;  %v1545_v10 = vpop.xlane.xlu0 %492  ;;  %v910_v5 = vsel %vm909_vm6, %v1317_v3, 0.0 }
 0x46a   :  { %vm511_vm10 = vcmp.eq.f32.partialorder %v1287_v40, %v1545_v10  ;;  %v1550_v60 = vsel %vm512_vm9, 1e+30, %v1454_v4  ;;  %vm936_vm9 = vcmp.eq.s32.totalorder %v1233_v46, 3 }
 0x46b   :  { %v534_v62 = vsel %vm39_vm0, %v1550_v60, inf  ;;  %v1555_v14 = vsel %vm511_vm10, 1e+30, %v1459_v6 }
 0x46c   :  { %535 = vmin.xlane.f32.xlu1 %v534_v62  ;;  %v1557_v17 = vpop.xlane.xlu1 %507  ;;  %v531_v18 = vsel %vm39_vm0, %v1555_v14, inf  ;;  %v920_v62 = vsel %vm918_vm7, %v1409_v52, %v911_v56 }
 0x46d   :  { %vm516_vm11 = vcmp.eq.f32.partialorder %v1287_v40, %v1557_v17  ;;  %532 = vmin.xlane.f32.xlu0 %v531_v18  ;;  %v1563_v20 = vpop.xlane.xlu0 %504  ;;  %v919_v18 = vsel %vm918_vm7, %v1413_v53, %v910_v5  ;;  %v915_v53 = vsel %vm909_vm6, %v1329_v7, 0.0 }
 0x46e   :  { %vm515_vm12 = vcmp.eq.f32.partialorder %v1287_v40, %v1563_v20  ;;  %v1568_v4 = vsel %vm516_vm11, 1e+30, %v1472_v12  ;;  %v928_v2 = vsel %vm927_vm8, %v1509_v47, %v919_v18  ;;  %v914_v47 = vsel %vm909_vm6, %v1335_v9, 0.0 }
 0x46f   :  { %v546_v6 = vsel %vm39_vm0, %v1568_v4, inf  ;;  %v1573_v22 = vsel %vm515_vm12, 1e+30, %v1477_v16 }
 0x470   :  { %547 = vmin.xlane.f32.xlu1 %v546_v6  ;;  %v543_v23 = vsel %vm39_vm0, %v1573_v22, inf  ;;  %v929_v6 = vsel %vm927_vm8, %v1505_v45, %v920_v62 }
 0x471   :  { %544 = vmin.xlane.f32.xlu0 %v543_v23 }
 0x4f1   :  { %v530_v25 = vpop.xlane.xlu1 %529 }
 0x4f2   :  { %vm550_vm13 = vcmp.le.f32.partialorder %v1514_v48, %v530_v25  ;;  %v527_v24 = vpop.xlane.xlu0 %526 }
 0x4f3   :  { %vm549_vm14 = vcmp.le.f32.partialorder %v1519_v50, %v527_v24  ;;  %v558_v12 = vsel %vm550_vm13, %v1287_v40, 64.0  ;;  %v924_v24 = vsel %vm918_vm7, %v1425_v57, %v915_v53 }
 0x4f4   :  { %v568_v26 = vsel %vm39_vm0, %v558_v12, inf  ;;  %v557_v27 = vsel %vm549_vm14, %v1287_v40, 64.0 }
 0x4f5   :  { %569 = vmin.xlane.f32.xlu1 %v568_v26  ;;  %v542_v16 = vpop.xlane.xlu1 %541  ;;  %v565_v28 = vsel %vm39_vm0, %v557_v27, inf  ;;  %v923_v26 = vsel %vm918_vm7, %v1431_v59, %v914_v47 }
 0x4f6   :  { %vm554_vm15 = vcmp.le.f32.partialorder %v1532_v54, %v542_v16  ;;  %566 = vmin.xlane.f32.xlu0 %v565_v28  ;;  %v539_v29 = vpop.xlane.xlu0 %538  ;;  %v932_v57 = vsel %vm927_vm8, %v1527_v58, %v923_v26  ;;  %v912_v28 = vsel %vm909_vm6, %v1353_v15, 0.0 }
 0x4f7   :  { %vm553_vm1 = vcmp.le.f32.partialorder %v1537_v61, %v539_v29  ;;  %v562_v30 = vsel %vm554_vm15, %v1287_v40, 64.0 }
 0x4f8   :  { %v580_v31 = vsel %vm39_vm0, %v562_v30, inf  ;;  %v561_v32 = vsel %vm553_vm1, %v1287_v40, 64.0 }
 0x4f9   :  { %581 = vmin.xlane.f32.xlu1 %v580_v31  ;;  %v536_v33 = vpop.xlane.xlu1 %535  ;;  %v577_v34 = vsel %vm39_vm0, %v561_v32, inf  ;;  %v921_v31 = vsel %vm918_vm7, %v1449_v1, %v912_v28 }
 0x4fa   :  { %vm552_vm2 = vcmp.le.f32.partialorder %v1550_v60, %v536_v33  ;;  %578 = vmin.xlane.f32.xlu0 %v577_v34  ;;  %v533_v35 = vpop.xlane.xlu0 %532 }
 0x4fb   :  { %vm551_vm3 = vcmp.le.f32.partialorder %v1555_v14, %v533_v35  ;;  %v560_v36 = vsel %vm552_vm2, %v1287_v40, 64.0 }
 0x4fc   :  { %v574_v37 = vsel %vm39_vm0, %v560_v36, inf  ;;  %v559_v38 = vsel %vm551_vm3, %v1287_v40, 64.0 }
 0x4fd   :  { %575 = vmin.xlane.f32.xlu1 %v574_v37  ;;  %v548_v39 = vpop.xlane.xlu1 %547  ;;  %v571_v41 = vsel %vm39_vm0, %v559_v38, inf }
 0x4fe   :  { %vm556_vm4 = vcmp.le.f32.partialorder %v1568_v4, %v548_v39  ;;  %572 = vmin.xlane.f32.xlu0 %v571_v41  ;;  %v545_v42 = vpop.xlane.xlu0 %544 }
 0x4ff   :  { %vm555_vm5 = vcmp.le.f32.partialorder %v1573_v22, %v545_v42  ;;  %v564_v43 = vsel %vm556_vm4, %v1287_v40, 64.0 }
 0x500   :  { %v586_v44 = vsel %vm39_vm0, %v564_v43, inf  ;;  %v563_v49 = vsel %vm555_vm5, %v1287_v40, 64.0 }
 0x501   :  { %587 = vmin.xlane.f32.xlu1 %v586_v44  ;;  %v583_v55 = vsel %vm39_vm0, %v563_v49, inf }
 0x502   :  { %584 = vmin.xlane.f32.xlu0 %v583_v55 }
 0x582   :  { %v570_v23 = vpop.xlane.xlu1 %569 }
 0x583   :  { %vm590_vm10 = vcmp.eq.f32.partialorder %v1287_v40, %v570_v23  ;;  %v1626_v3 = vsel %vm936_vm9, %v570_v23, %v929_v6  ;;  %v567_v52 = vpop.xlane.xlu0 %566 }
 0x584   :  { %vm589_vm11 = vcmp.eq.f32.partialorder %v1287_v40, %v567_v52  ;;  %v1634_v45 = vsel %vm936_vm9, %v567_v52, %v928_v2  ;;  %v1637_v25 = vsel %vm590_vm10, 1e+30, %v1514_v48  ;;  %v933_v48 = vsel %vm927_vm8, %v1521_v51, %v924_v24 }
 0x585   :  { %v608_v7 = vsel %vm39_vm0, %v1637_v25, inf  ;;  %v1648_v12 = vsel %vm589_vm11, 1e+30, %v1519_v50  ;;  %v913_v51 = vsel %vm909_vm6, %v1347_v13, 0.0 }
 0x586   :  { %609 = vmin.xlane.f32.xlu1 %v608_v7  ;;  %v582_v9 = vpop.xlane.xlu1 %581  ;;  %v605_v27 = vsel %vm39_vm0, %v1648_v12, inf  ;;  %v922_v29 = vsel %vm918_vm7, %v1443_v63, %v913_v51  ;;  %v930_v63 = vsel %vm927_vm8, %v1545_v10, %v921_v31 }
 0x587   :  { %vm594_vm12 = vcmp.eq.f32.partialorder %v1287_v40, %v582_v9  ;;  %v1664_v50 = vsel %vm936_vm9, %v582_v9, %v933_v48  ;;  %606 = vmin.xlane.f32.xlu0 %v605_v27  ;;  %v579_v59 = vpop.xlane.xlu0 %578 }
 0x588   :  { %vm593_vm13 = vcmp.eq.f32.partialorder %v1287_v40, %v579_v59  ;;  %v1672_v16 = vsel %vm936_vm9, %v579_v59, %v932_v57  ;;  %v1675_v58 = vsel %vm594_vm12, 1e+30, %v1532_v54  ;;  %v931_v54 = vsel %vm927_vm8, %v1539_v0, %v922_v29 }
 0x589   :  { %v620_v13 = vsel %vm39_vm0, %v1675_v58, inf  ;;  %v1686_v30 = vsel %vm593_vm13, 1e+30, %v1537_v61 }
 0x58a   :  { %621 = vmin.xlane.f32.xlu1 %v620_v13  ;;  %v576_v15 = vpop.xlane.xlu1 %575  ;;  %v617_v32 = vsel %vm39_vm0, %v1686_v30, inf }
 0x58b   :  { %vm592_vm14 = vcmp.eq.f32.partialorder %v1287_v40, %v576_v15  ;;  %v1702_v61 = vsel %vm936_vm9, %v576_v15, %v931_v54  ;;  %618 = vmin.xlane.f32.xlu0 %v617_v32  ;;  %v573_v1 = vpop.xlane.xlu0 %572 }
 0x58c   :  { %vm591_vm15 = vcmp.eq.f32.partialorder %v1287_v40, %v573_v1  ;;  %v1707_v0 = vsel %vm936_vm9, %v573_v1, %v930_v63  ;;  %v1710_v33 = vsel %vm592_vm14, 1e+30, %v1550_v60 }
 0x58d   :  { %v614_v10 = vsel %vm39_vm0, %v1710_v33, inf  ;;  %v1715_v34 = vsel %vm591_vm15, 1e+30, %v1555_v14  ;;  %vm945_vm15 = vcmp.eq.s32.totalorder %v1233_v46, 4 }
 0x58e   :  { %615 = vmin.xlane.f32.xlu1 %v614_v10  ;;  %v1717_v35 = vpop.xlane.xlu1 %587  ;;  %v611_v36 = vsel %vm39_vm0, %v1715_v34, inf }
 0x58f   :  { %vm596_vm1 = vcmp.eq.f32.partialorder %v1287_v40, %v1717_v35  ;;  %612 = vmin.xlane.f32.xlu0 %v611_v36  ;;  %v1723_v37 = vpop.xlane.xlu0 %584 }
 0x590   :  { %vm595_vm2 = vcmp.eq.f32.partialorder %v1287_v40, %v1723_v37  ;;  %v1728_v60 = vsel %vm596_vm1, 1e+30, %v1568_v4 }
 0x591   :  { %v626_v14 = vsel %vm39_vm0, %v1728_v60, inf  ;;  %v1733_v38 = vsel %vm595_vm2, 1e+30, %v1573_v22 }
 0x592   :  { %627 = vmin.xlane.f32.xlu1 %v626_v14  ;;  %v623_v39 = vsel %vm39_vm0, %v1733_v38, inf }
 0x593   :  { %624 = vmin.xlane.f32.xlu0 %v623_v39 }
 0x613   :  { %v610_v41 = vpop.xlane.xlu1 %609 }
 0x614   :  { %vm630_vm3 = vcmp.le.f32.partialorder %v1637_v25, %v610_v41  ;;  %v607_v42 = vpop.xlane.xlu0 %606 }
 0x615   :  { %vm629_vm4 = vcmp.le.f32.partialorder %v1648_v12, %v607_v42  ;;  %v638_v4 = vsel %vm630_vm3, %v1287_v40, 64.0 }
 0x616   :  { %v648_v43 = vsel %vm39_vm0, %v638_v4, inf  ;;  %v637_v44 = vsel %vm629_vm4, %v1287_v40, 64.0 }
 0x617   :  { %649 = vmin.xlane.f32.xlu1 %v648_v43  ;;  %v622_v22 = vpop.xlane.xlu1 %621  ;;  %v645_v49 = vsel %vm39_vm0, %v637_v44, inf }
 0x618   :  { %vm634_vm5 = vcmp.le.f32.partialorder %v1675_v58, %v622_v22  ;;  %646 = vmin.xlane.f32.xlu0 %v645_v49  ;;  %v619_v55 = vpop.xlane.xlu0 %618 }
 0x619   :  { %vm633_vm10 = vcmp.le.f32.partialorder %v1686_v30, %v619_v55  ;;  %v642_v56 = vsel %vm634_vm5, %v1287_v40, 64.0 }
 0x61a   :  { %v660_v5 = vsel %vm39_vm0, %v642_v56, inf  ;;  %v641_v62 = vsel %vm633_vm10, %v1287_v40, 64.0 }
 0x61b   :  { %661 = vmin.xlane.f32.xlu1 %v660_v5  ;;  %v616_v18 = vpop.xlane.xlu1 %615  ;;  %v657_v6 = vsel %vm39_vm0, %v641_v62, inf }
 0x61c   :  { %vm632_vm11 = vcmp.le.f32.partialorder %v1710_v33, %v616_v18  ;;  %658 = vmin.xlane.f32.xlu0 %v657_v6  ;;  %v613_v23 = vpop.xlane.xlu0 %612 }
 0x61d   :  { %vm631_vm12 = vcmp.le.f32.partialorder %v1715_v34, %v613_v23  ;;  %v640_v2 = vsel %vm632_vm11, %v1287_v40, 64.0 }
 0x61e   :  { %v654_v52 = vsel %vm39_vm0, %v640_v2, inf  ;;  %v639_v53 = vsel %vm631_vm12, %v1287_v40, 64.0 }
 0x61f   :  { %655 = vmin.xlane.f32.xlu1 %v654_v52  ;;  %v628_v47 = vpop.xlane.xlu1 %627  ;;  %v651_v24 = vsel %vm39_vm0, %v639_v53, inf }
 0x620   :  { %vm636_vm13 = vcmp.le.f32.partialorder %v1728_v60, %v628_v47  ;;  %652 = vmin.xlane.f32.xlu0 %v651_v24  ;;  %v625_v7 = vpop.xlane.xlu0 %624 }
 0x621   :  { %vm635_vm14 = vcmp.le.f32.partialorder %v1733_v38, %v625_v7  ;;  %v644_v26 = vsel %vm636_vm13, %v1287_v40, 64.0 }
 0x622   :  { %v666_v48 = vsel %vm39_vm0, %v644_v26, inf  ;;  %v643_v9 = vsel %vm635_vm14, %v1287_v40, 64.0 }
 0x623   :  { %667 = vmin.xlane.f32.xlu1 %v666_v48  ;;  %v663_v27 = vsel %vm39_vm0, %v643_v9, inf }
 0x624   :  { %664 = vmin.xlane.f32.xlu0 %v663_v27 }
 0x6a4   :  { %v650_v57 = vpop.xlane.xlu1 %649 }
 0x6a5   :  { %vm670_vm1 = vcmp.eq.f32.partialorder %v1287_v40, %v650_v57  ;;  %v1766_v59 = vsel %vm945_vm15, %v650_v57, %v1626_v3  ;;  %v647_v51 = vpop.xlane.xlu0 %646 }
 0x6a6   :  { %vm669_vm2 = vcmp.eq.f32.partialorder %v1287_v40, %v647_v51  ;;  %v1772_v28 = vsel %vm945_vm15, %v647_v51, %v1634_v45  ;;  %v1775_v29 = vsel %vm670_vm1, 1e+30, %v1637_v25 }
 0x6a7   :  { %v688_v13 = vsel %vm39_vm0, %v1775_v29, inf  ;;  %v1780_v31 = vsel %vm669_vm2, 1e+30, %v1648_v12 }
 0x6a8   :  { %689 = vmin.xlane.f32.xlu1 %v688_v13  ;;  %v662_v3 = vpop.xlane.xlu1 %661  ;;  %v685_v54 = vsel %vm39_vm0, %v1780_v31, inf }
 0x6a9   :  { %vm674_vm3 = vcmp.eq.f32.partialorder %v1287_v40, %v662_v3  ;;  %v1788_v45 = vsel %vm945_vm15, %v662_v3, %v1664_v50  ;;  %686 = vmin.xlane.f32.xlu0 %v685_v54  ;;  %v659_v25 = vpop.xlane.xlu0 %658 }
 0x6aa   :  { %vm673_vm4 = vcmp.eq.f32.partialorder %v1287_v40, %v659_v25  ;;  %v1794_v12 = vsel %vm945_vm15, %v659_v25, %v1672_v16  ;;  %v1797_v15 = vsel %vm674_vm3, 1e+30, %v1675_v58 }
 0x6ab   :  { %v700_v32 = vsel %vm39_vm0, %v1797_v15, inf  ;;  %v1802_v63 = vsel %vm673_vm4, 1e+30, %v1686_v30 }
 0x6ac   :  { %701 = vmin.xlane.f32.xlu1 %v700_v32  ;;  %v656_v50 = vpop.xlane.xlu1 %655  ;;  %v697_v1 = vsel %vm39_vm0, %v1802_v63, inf }
 0x6ad   :  { %vm672_vm5 = vcmp.eq.f32.partialorder %v1287_v40, %v656_v50  ;;  %v1810_v16 = vsel %vm945_vm15, %v656_v50, %v1702_v61  ;;  %698 = vmin.xlane.f32.xlu0 %v697_v1  ;;  %v653_v58 = vpop.xlane.xlu0 %652 }
 0x6ae   :  { %vm671_vm10 = vcmp.eq.f32.partialorder %v1287_v40, %v653_v58  ;;  %v1816_v30 = vsel %vm945_vm15, %v653_v58, %v1707_v0  ;;  %v1819_v10 = vsel %vm672_vm5, 1e+30, %v1710_v33 }
 0x6af   :  { %v694_v36 = vsel %vm39_vm0, %v1819_v10, inf  ;;  %v1824_v14 = vsel %vm671_vm10, 1e+30, %v1715_v34 }
 0x6b0   :  { %695 = vmin.xlane.f32.xlu1 %v694_v36  ;;  %v1826_v61 = vpop.xlane.xlu1 %667  ;;  %v691_v39 = vsel %vm39_vm0, %v1824_v14, inf }
 0x6b1   :  { %vm676_vm11 = vcmp.eq.f32.partialorder %v1287_v40, %v1826_v61  ;;  %692 = vmin.xlane.f32.xlu0 %v691_v39  ;;  %v1832_v0 = vpop.xlane.xlu0 %664 }
 0x6b2   :  { %vm675_vm12 = vcmp.eq.f32.partialorder %v1287_v40, %v1832_v0  ;;  %v1837_v33 = vsel %vm676_vm11, 1e+30, %v1728_v60  ;;  %vm954_vm11 = vcmp.eq.s32.totalorder %v1233_v46, 5 }
 0x6b3   :  { %v706_v34 = vsel %vm39_vm0, %v1837_v33, inf  ;;  %v1842_v41 = vsel %vm675_vm12, 1e+30, %v1733_v38 }
 0x6b4   :  { %707 = vmin.xlane.f32.xlu1 %v706_v34  ;;  %v703_v42 = vsel %vm39_vm0, %v1842_v41, inf }
 0x6b5   :  { %704 = vmin.xlane.f32.xlu0 %v703_v42 }
 0x735   :  { %v690_v4 = vpop.xlane.xlu1 %689 }
 0x736   :  { %vm710_vm13 = vcmp.le.f32.partialorder %v1775_v29, %v690_v4  ;;  %v687_v43 = vpop.xlane.xlu0 %686 }
 0x737   :  { %vm709_vm14 = vcmp.le.f32.partialorder %v1780_v31, %v687_v43  ;;  %v718_v60 = vsel %vm710_vm13, %v1287_v40, 64.0 }
 0x738   :  { %v728_v44 = vsel %vm39_vm0, %v718_v60, inf  ;;  %v717_v22 = vsel %vm709_vm14, %v1287_v40, 64.0 }
 0x739   :  { %729 = vmin.xlane.f32.xlu1 %v728_v44  ;;  %v702_v38 = vpop.xlane.xlu1 %701  ;;  %v725_v49 = vsel %vm39_vm0, %v717_v22, inf }
 0x73a   :  { %vm714_vm1 = vcmp.le.f32.partialorder %v1797_v15, %v702_v38  ;;  %726 = vmin.xlane.f32.xlu0 %v725_v49  ;;  %v699_v55 = vpop.xlane.xlu0 %698 }
 0x73b   :  { %v722_v56 = vsel %vm714_vm1, %v1287_v40, 64.0  ;;  %vm713_vm2 = vcmp.le.f32.partialorder %v1802_v63, %v699_v55 }
 0x73c   :  { %v721_v5 = vsel %vm713_vm2, %v1287_v40, 64.0  ;;  %v740_v62 = vsel %vm39_vm0, %v722_v56, inf }
 0x73d   :  { %741 = vmin.xlane.f32.xlu1 %v740_v62  ;;  %v696_v18 = vpop.xlane.xlu1 %695  ;;  %v737_v6 = vsel %vm39_vm0, %v721_v5, inf }
 0x73e   :  { %vm712_vm3 = vcmp.le.f32.partialorder %v1819_v10, %v696_v18  ;;  %738 = vmin.xlane.f32.xlu0 %v737_v6  ;;  %v693_v23 = vpop.xlane.xlu0 %692 }
 0x73f   :  { %v720_v2 = vsel %vm712_vm3, %v1287_v40, 64.0  ;;  %vm711_vm4 = vcmp.le.f32.partialorder %v1824_v14, %v693_v23 }
 0x740   :  { %v719_v52 = vsel %vm711_vm4, %v1287_v40, 64.0  ;;  %v734_v53 = vsel %vm39_vm0, %v720_v2, inf }
 0x741   :  { %735 = vmin.xlane.f32.xlu1 %v734_v53  ;;  %v708_v47 = vpop.xlane.xlu1 %707  ;;  %v731_v24 = vsel %vm39_vm0, %v719_v52, inf }
 0x742   :  { %vm716_vm5 = vcmp.le.f32.partialorder %v1837_v33, %v708_v47  ;;  %732 = vmin.xlane.f32.xlu0 %v731_v24  ;;  %v705_v7 = vpop.xlane.xlu0 %704 }
 0x743   :  { %v724_v26 = vsel %vm716_vm5, %v1287_v40, 64.0  ;;  %vm715_vm10 = vcmp.le.f32.partialorder %v1842_v41, %v705_v7 }
 0x744   :  { %v723_v48 = vsel %vm715_vm10, %v1287_v40, 64.0  ;;  %v746_v9 = vsel %vm39_vm0, %v724_v26, inf }
 0x745   :  { %747 = vmin.xlane.f32.xlu1 %v746_v9  ;;  %v743_v27 = vsel %vm39_vm0, %v723_v48, inf }
 0x746   :  { %744 = vmin.xlane.f32.xlu0 %v743_v27 }
 0x7c6   :  { %v730_v57 = vpop.xlane.xlu1 %729 }
 0x7c7   :  { %vm750_vm12 = vcmp.eq.f32.partialorder %v1287_v40, %v730_v57  ;;  %v1875_v51 = vsel %vm954_vm11, %v730_v57, %v1766_v59  ;;  %v727_v13 = vpop.xlane.xlu0 %726 }
 0x7c8   :  { %v1878_v3 = vsel %vm750_vm12, 1e+30, %v1775_v29  ;;  %vm749_vm13 = vcmp.eq.f32.partialorder %v1287_v40, %v727_v13  ;;  %v1884_v54 = vsel %vm954_vm11, %v727_v13, %v1772_v28 }
 0x7c9   :  { %v1887_v25 = vsel %vm749_vm13, 1e+30, %v1780_v31  ;;  %v768_v32 = vsel %vm39_vm0, %v1878_v3, inf }
 0x7ca   :  { %769 = vmin.xlane.f32.xlu1 %v768_v32  ;;  %v742_v59 = vpop.xlane.xlu1 %741  ;;  %v765_v50 = vsel %vm39_vm0, %v1887_v25, inf }
 0x7cb   :  { %vm754_vm14 = vcmp.eq.f32.partialorder %v1287_v40, %v742_v59  ;;  %v1897_v29 = vsel %vm954_vm11, %v742_v59, %v1788_v45  ;;  %766 = vmin.xlane.f32.xlu0 %v765_v50  ;;  %v739_v28 = vpop.xlane.xlu0 %738 }
 0x7cc   :  { %v1900_v31 = vsel %vm754_vm14, 1e+30, %v1797_v15  ;;  %vm753_vm1 = vcmp.eq.f32.partialorder %v1287_v40, %v739_v28  ;;  %v1906_v1 = vsel %vm954_vm11, %v739_v28, %v1794_v12 }
 0x7cd   :  { %v1909_v58 = vsel %vm753_vm1, 1e+30, %v1802_v63  ;;  %v780_v36 = vsel %vm39_vm0, %v1900_v31, inf }
 0x7ce   :  { %781 = vmin.xlane.f32.xlu1 %v780_v36  ;;  %v736_v45 = vpop.xlane.xlu1 %735  ;;  %v777_v39 = vsel %vm39_vm0, %v1909_v58, inf }
 0x7cf   :  { %vm752_vm2 = vcmp.eq.f32.partialorder %v1287_v40, %v736_v45  ;;  %v1919_v15 = vsel %vm954_vm11, %v736_v45, %v1810_v16  ;;  %778 = vmin.xlane.f32.xlu0 %v777_v39  ;;  %v733_v12 = vpop.xlane.xlu0 %732 }
 0x7d0   :  { %v1922_v63 = vsel %vm752_vm2, 1e+30, %v1819_v10  ;;  %vm751_vm3 = vcmp.eq.f32.partialorder %v1287_v40, %v733_v12  ;;  %v1928_v34 = vsel %vm954_vm11, %v733_v12, %v1816_v30 }
 0x7d1   :  { %v1931_v42 = vsel %vm751_vm3, 1e+30, %v1824_v14  ;;  %v774_v4 = vsel %vm39_vm0, %v1922_v63, inf }
 0x7d2   :  { %775 = vmin.xlane.f32.xlu1 %v774_v4  ;;  %v1935_v16 = vpop.xlane.xlu1 %747  ;;  %v771_v10 = vsel %vm39_vm0, %v1931_v42, inf }
 0x7d3   :  { %vm756_vm4 = vcmp.eq.f32.partialorder %v1287_v40, %v1935_v16  ;;  %772 = vmin.xlane.f32.xlu0 %v771_v10  ;;  %v1941_v43 = vpop.xlane.xlu0 %744 }
 0x7d4   :  { %v1944_v30 = vsel %vm756_vm4, 1e+30, %v1837_v33  ;;  %vm755_vm5 = vcmp.eq.f32.partialorder %v1287_v40, %v1941_v43 }
 0x7d5   :  { %v1949_v14 = vsel %vm755_vm5, 1e+30, %v1842_v41  ;;  %v786_v60 = vsel %vm39_vm0, %v1944_v30, inf  ;;  %vm963_vm5 = vcmp.eq.s32.totalorder %v1233_v46, 6 }
 0x7d6   :  { %787 = vmin.xlane.f32.xlu1 %v786_v60  ;;  %v783_v44 = vsel %vm39_vm0, %v1949_v14, inf }
 0x7d7   :  { %784 = vmin.xlane.f32.xlu0 %v783_v44 }
 0x857   :  { %v770_v22 = vpop.xlane.xlu1 %769 }
 0x858   :  { %vm790_vm10 = vcmp.le.f32.partialorder %v1878_v3, %v770_v22  ;;  %v767_v38 = vpop.xlane.xlu0 %766 }
 0x859   :  { %v798_v33 = vsel %vm790_vm10, %v1287_v40, 64.0  ;;  %vm789_vm12 = vcmp.le.f32.partialorder %v1887_v25, %v767_v38 }
 0x85a   :  { %v797_v49 = vsel %vm789_vm12, %v1287_v40, 64.0  ;;  %v808_v41 = vsel %vm39_vm0, %v798_v33, inf }
 0x85b   :  { %809 = vmin.xlane.f32.xlu1 %v808_v41  ;;  %v782_v55 = vpop.xlane.xlu1 %781  ;;  %v805_v56 = vsel %vm39_vm0, %v797_v49, inf }
 0x85c   :  { %vm794_vm13 = vcmp.le.f32.partialorder %v1900_v31, %v782_v55  ;;  %806 = vmin.xlane.f32.xlu0 %v805_v56  ;;  %v779_v5 = vpop.xlane.xlu0 %778 }
 0x85d   :  { %v802_v62 = vsel %vm794_vm13, %v1287_v40, 64.0  ;;  %vm793_vm14 = vcmp.le.f32.partialorder %v1909_v58, %v779_v5 }
 0x85e   :  { %v801_v18 = vsel %vm793_vm14, %v1287_v40, 64.0  ;;  %v820_v6 = vsel %vm39_vm0, %v802_v62, inf }
 0x85f   :  { %821 = vmin.xlane.f32.xlu1 %v820_v6  ;;  %v776_v23 = vpop.xlane.xlu1 %775  ;;  %v817_v2 = vsel %vm39_vm0, %v801_v18, inf }
 0x860   :  { %vm792_vm1 = vcmp.le.f32.partialorder %v1922_v63, %v776_v23  ;;  %818 = vmin.xlane.f32.xlu0 %v817_v2  ;;  %v773_v52 = vpop.xlane.xlu0 %772 }
 0x861   :  { %v800_v53 = vsel %vm792_vm1, %v1287_v40, 64.0  ;;  %vm791_vm2 = vcmp.le.f32.partialorder %v1931_v42, %v773_v52 }
 0x862   :  { %v799_v47 = vsel %vm791_vm2, %v1287_v40, 64.0  ;;  %v814_v24 = vsel %vm39_vm0, %v800_v53, inf }
 0x863   :  { %815 = vmin.xlane.f32.xlu1 %v814_v24  ;;  %v788_v7 = vpop.xlane.xlu1 %787  ;;  %v811_v26 = vsel %vm39_vm0, %v799_v47, inf }
 0x864   :  { %vm796_vm3 = vcmp.le.f32.partialorder %v1944_v30, %v788_v7  ;;  %812 = vmin.xlane.f32.xlu0 %v811_v26  ;;  %v785_v48 = vpop.xlane.xlu0 %784 }
 0x865   :  { %v804_v9 = vsel %vm796_vm3, %v1287_v40, 64.0  ;;  %vm795_vm4 = vcmp.le.f32.partialorder %v1949_v14, %v785_v48 }
 0x866   :  { %v803_v27 = vsel %vm795_vm4, %v1287_v40, 64.0  ;;  %v826_v57 = vsel %vm39_vm0, %v804_v9, inf }
 0x867   :  { %827 = vmin.xlane.f32.xlu1 %v826_v57  ;;  %v823_v13 = vsel %vm39_vm0, %v803_v27, inf }
 0x868   :  { %824 = vmin.xlane.f32.xlu0 %v823_v13 }
 0x8e8   :  { %v810_v32 = vpop.xlane.xlu1 %809 }
 0x8e9   :  { %vm830_vm10 = vcmp.eq.f32.partialorder %v1287_v40, %v810_v32  ;;  %v1984_v59 = vsel %vm963_vm5, %v810_v32, %v1875_v51  ;;  %v807_v50 = vpop.xlane.xlu0 %806 }
 0x8ea   :  { %vm829_vm12 = vcmp.eq.f32.partialorder %v1287_v40, %v807_v50  ;;  %v1990_v28 = vsel %vm963_vm5, %v807_v50, %v1884_v54  ;;  %v838_v36 = vsel %vm830_vm10, 1e+30, %v1878_v3 }
 0x8eb   :  { %v848_v45 = vsel %vm39_vm0, %v838_v36, inf  ;;  %v837_v39 = vsel %vm829_vm12, 1e+30, %v1887_v25 }
 0x8ec   :  { %849 = vmin.xlane.f32.xlu1 %v848_v45  ;;  %v822_v12 = vpop.xlane.xlu1 %821  ;;  %v845_v4 = vsel %vm39_vm0, %v837_v39, inf }
 0x8ed   :  { %vm834_vm13 = vcmp.eq.f32.partialorder %v1287_v40, %v822_v12  ;;  %v2000_v51 = vsel %vm963_vm5, %v822_v12, %v1897_v29  ;;  %846 = vmin.xlane.f32.xlu0 %v845_v4  ;;  %v819_v54 = vpop.xlane.xlu0 %818 }
 0x8ee   :  { %vm833_vm14 = vcmp.eq.f32.partialorder %v1287_v40, %v819_v54  ;;  %v2006_v3 = vsel %vm963_vm5, %v819_v54, %v1906_v1  ;;  %v842_v25 = vsel %vm834_vm13, 1e+30, %v1900_v31 }
 0x8ef   :  { %v860_v10 = vsel %vm39_vm0, %v842_v25, inf  ;;  %v841_v60 = vsel %vm833_vm14, 1e+30, %v1909_v58 }
 0x8f0   :  { %861 = vmin.xlane.f32.xlu1 %v860_v10  ;;  %v816_v44 = vpop.xlane.xlu1 %815  ;;  %v857_v29 = vsel %vm39_vm0, %v841_v60, inf }
 0x8f1   :  { %vm832_vm1 = vcmp.eq.f32.partialorder %v1287_v40, %v816_v44  ;;  %v2016_v22 = vsel %vm963_vm5, %v816_v44, %v1919_v15  ;;  %858 = vmin.xlane.f32.xlu0 %v857_v29  ;;  %v813_v1 = vpop.xlane.xlu0 %812 }
 0x8f2   :  { %vm831_vm2 = vcmp.eq.f32.partialorder %v1287_v40, %v813_v1  ;;  %v2022_v31 = vsel %vm963_vm5, %v813_v1, %v1928_v34  ;;  %v840_v58 = vsel %vm832_vm1, 1e+30, %v1922_v63 }
 0x8f3   :  { %v854_v38 = vsel %vm39_vm0, %v840_v58, inf  ;;  %v839_v33 = vsel %vm831_vm2, 1e+30, %v1931_v42 }
 0x8f4   :  { %855 = vmin.xlane.f32.xlu1 %v854_v38  ;;  %v2027_v49 = vpop.xlane.xlu1 %827  ;;  %v851_v15 = vsel %vm39_vm0, %v839_v33, inf  ;;  %v916_v38 = vsel %vm909_vm6, %v1371_v21, 0.0 }
 0x8f5   :  { %vm836_vm3 = vcmp.eq.f32.partialorder %v1287_v40, %v2027_v49  ;;  %852 = vmin.xlane.f32.xlu0 %v851_v15  ;;  %v2032_v41 = vpop.xlane.xlu0 %824 }
 0x8f6   :  { %vm835_vm4 = vcmp.eq.f32.partialorder %v1287_v40, %v2032_v41  ;;  %v844_v63 = vsel %vm836_vm3, 1e+30, %v1944_v30 }
 0x8f7   :  { %v866_v34 = vsel %vm39_vm0, %v844_v63, inf  ;;  %v843_v42 = vsel %vm835_vm4, 1e+30, %v1949_v14 }
 0x8f8   :  { %867 = vmin.xlane.f32.xlu1 %v866_v34  ;;  %v863_v55 = vsel %vm39_vm0, %v843_v42, inf }
 0x8f9   :  { %864 = vmin.xlane.f32.xlu0 %v863_v55 }
 0x979   :  { %v850_v56 = vpop.xlane.xlu1 %849 }
 0x97a   :  { %vm870_vm10 = vcmp.le.f32.partialorder %v838_v36, %v850_v56  ;;  %v847_v5 = vpop.xlane.xlu0 %846 }
 0x97b   :  { %v878_v62 = vsel %vm870_vm10, %v1287_v40, 64.0  ;;  %vm869_vm12 = vcmp.le.f32.partialorder %v837_v39, %v847_v5  ;;  %vm972_vm10 = vcmp.eq.s32.totalorder %v1233_v46, 7 }
 0x97c   :  { %v877_v18 = vsel %vm869_vm12, %v1287_v40, 64.0  ;;  %v888_v6 = vsel %vm39_vm0, %v878_v62, inf  ;;  %vm989_vm12 = vcmask 64512  }
 0x97d   :  { %889 = vmin.xlane.f32.xlu1 %v888_v6  ;;  %v862_v30 = vpop.xlane.xlu1 %861  ;;  %v885_v23 = vsel %vm39_vm0, %v877_v18, inf }
 0x97e   :  { %vm874_vm13 = vcmp.le.f32.partialorder %v842_v25, %v862_v30  ;;  %886 = vmin.xlane.f32.xlu0 %v885_v23  ;;  %v859_v14 = vpop.xlane.xlu0 %858 }
 0x97f   :  { %v882_v2 = vsel %vm874_vm13, %v1287_v40, 64.0  ;;  %vm873_vm14 = vcmp.le.f32.partialorder %v841_v60, %v859_v14 }
 0x980   :  { %v881_v52 = vsel %vm873_vm14, %v1287_v40, 64.0  ;;  %v900_v53 = vsel %vm39_vm0, %v882_v2, inf }
 0x981   :  { %901 = vmin.xlane.f32.xlu1 %v900_v53  ;;  %v856_v47 = vpop.xlane.xlu1 %855  ;;  %v897_v24 = vsel %vm39_vm0, %v881_v52, inf }
 0x982   :  { %vm872_vm1 = vcmp.le.f32.partialorder %v840_v58, %v856_v47  ;;  %898 = vmin.xlane.f32.xlu0 %v897_v24  ;;  %v853_v7 = vpop.xlane.xlu0 %852 }
 0x983   :  { %v880_v26 = vsel %vm872_vm1, %v1287_v40, 64.0  ;;  %vm871_vm2 = vcmp.le.f32.partialorder %v839_v33, %v853_v7  ;;  %v925_v33 = vsel %vm918_vm7, %v1467_v11, %v916_v38 }
 0x984   :  { %v879_v48 = vsel %vm871_vm2, %v1287_v40, 64.0  ;;  %v894_v9 = vsel %vm39_vm0, %v880_v26, inf }
 0x985   :  { %895 = vmin.xlane.f32.xlu1 %v894_v9  ;;  %v868_v27 = vpop.xlane.xlu1 %867  ;;  %v891_v57 = vsel %vm39_vm0, %v879_v48, inf }
 0x986   :  { %vm876_vm3 = vcmp.le.f32.partialorder %v844_v63, %v868_v27  ;;  %892 = vmin.xlane.f32.xlu0 %v891_v57  ;;  %v865_v13 = vpop.xlane.xlu0 %864 }
 0x987   :  { %v884_v32 = vsel %vm876_vm3, %v1287_v40, 64.0  ;;  %vm875_vm4 = vcmp.le.f32.partialorder %v843_v42, %v865_v13 }
 0x988   :  { %v883_v50 = vsel %vm875_vm4, %v1287_v40, 64.0  ;;  %v906_v36 = vsel %vm39_vm0, %v884_v32, inf }
 0x989   :  { %907 = vmin.xlane.f32.xlu1 %v906_v36  ;;  %v903_v45 = vsel %vm39_vm0, %v883_v50, inf }
 0x98a   :  { %904 = vmin.xlane.f32.xlu0 %v903_v45 }
 0xa0a   :  { %v890_v39 = vpop.xlane.xlu1 %889 }
 0xa0b   :  { %v974_v12 = vsel %vm972_vm10, %v890_v39, %v1984_v59  ;;  %v887_v4 = vpop.xlane.xlu0 %886  ;;  %v917_v59 = vsel %vm909_vm6, %v1365_v19, 0.0 }
 0xa0c   :  { %v1097_v54 = vtrunc.f32 %v974_v12  ;;  %v973_v25 = vsel %vm972_vm10, %v887_v4, %v1990_v28 }
 0xa0d   :  { %v1095_v40 = vtrunc.f32 %v973_v25 }
 0xa0e   :  { %v1098_v10 = vcvt.f32.s32 %v1097_v54  ;;  %v902_v60 = vpop.xlane.xlu1 %901 }
 0xa0f   :  { %v1096_v44 = vcvt.f32.s32 %v1095_v40  ;;  %v978_v29 = vsel %vm972_vm10, %v902_v60, %v2000_v51  ;;  %v899_v1 = vpop.xlane.xlu0 %898  ;;  %v926_v51 = vsel %vm918_vm7, %v1461_v8, %v917_v59  ;;  %v934_v8 = vsel %vm927_vm8, %v1563_v20, %v925_v33 }
 0xa10   :  { %991 = vst.msk [vmem:[%s2156_s3 + $0x8] sm:$0xff] %vm989_vm12, %v1098_v10  ;;  %v1105_v28 = vtrunc.f32 %v978_v29  ;;  %v977_v58 = vsel %vm972_vm10, %v899_v1, %v2006_v3  ;;  %v935_v3 = vsel %vm927_vm8, %v1557_v17, %v926_v51  ;;  %v943_v17 = vsel %vm936_vm9, %v1723_v37, %v934_v8 }
 0xa11   :  { %990 = vst.msk [vmem:[%s2156_s3] sm:$0xff] %vm989_vm12, %v1096_v44  ;;  %v1103_v19 = vtrunc.f32 %v977_v58  ;;  %v944_v63 = vsel %vm936_vm9, %v1717_v35, %v935_v3 }
 0xa12   :  { %v1106_v15 = vcvt.f32.s32 %v1105_v28  ;;  %v896_v21 = vpop.xlane.xlu1 %895  ;;  %v953_v55 = vsel %vm945_vm15, %v1826_v61, %v944_v63 }
 0xa13   :  { %v1104_v34 = vcvt.f32.s32 %v1103_v19  ;;  %v976_v42 = vsel %vm972_vm10, %v896_v21, %v2016_v22  ;;  %v893_v11 = vpop.xlane.xlu0 %892  ;;  %v952_v22 = vsel %vm945_vm15, %v1832_v0, %v943_v17  ;;  %v962_v37 = vsel %vm954_vm11, %v1935_v16, %v953_v55 }
 0xa14   :  { %995 = vst.msk [vmem:[%s2156_s3 + $0x28] sm:$0xff] %vm989_vm12, %v1106_v15  ;;  %v1101_v20 = vtrunc.f32 %v976_v42  ;;  %v975_v35 = vsel %vm972_vm10, %v893_v11, %v2022_v31  ;;  %v961_v56 = vsel %vm954_vm11, %v1941_v43, %v952_v22  ;;  %v971_v31 = vsel %vm963_vm5, %v2027_v49, %v962_v37 }
 0xa15   :  { %994 = vst.msk [vmem:[%s2156_s3 + $0x20] sm:$0xff] %vm989_vm12, %v1104_v34  ;;  %v1099_v61 = vtrunc.f32 %v975_v35  ;;  %v970_v16 = vsel %vm963_vm5, %v2032_v41, %v961_v56 }
 0xa16   :  { %v1102_v5 = vcvt.f32.s32 %v1101_v20  ;;  %v908_v0 = vpop.xlane.xlu1 %907 }
 0xa17   :  { %v1100_v62 = vcvt.f32.s32 %v1099_v61  ;;  %v980_v18 = vsel %vm972_vm10, %v908_v0, %v971_v31  ;;  %v905_v6 = vpop.xlane.xlu0 %904 }
 0xa18   :  { %993 = vst.msk [vmem:[%s2156_s3 + $0x18] sm:$0xff] %vm989_vm12, %v1102_v5  ;;  %v1109_v43 = vtrunc.f32 %v980_v18  ;;  %v979_v49 = vsel %vm972_vm10, %v905_v6, %v970_v16 }
 0xa19   :  { %992 = vst.msk [vmem:[%s2156_s3 + $0x10] sm:$0xff] %vm989_vm12, %v1100_v62  ;;  %v1107_v41 = vtrunc.f32 %v979_v49 }
 0xa1a   :  { %v1110_v30 = vcvt.f32.s32 %v1109_v43 }
 0xa1b   :  { %v1108_v23 = vcvt.f32.s32 %v1107_v41 }
 0xa1c   :  { %997 = vst.msk [vmem:[%s2156_s3 + $0x38] sm:$0xff] %vm989_vm12, %v1110_v30 }
 0xa1d   :  { %996 = vst.msk [vmem:[%s2156_s3 + $0x30] sm:$0xff] %vm989_vm12, %v1108_v23 }

// kernel: hybrid_dgnn_forward.14
= control target key start
LH: loop header
LB: loop body
LE: loop exit
PB: predicated region body
PF: predicated region fallthrough
CT: control target
= control target key end

     0   :  { %vm71_vm0 = vcmask 523264   ;;  %s496_s1 = inlined_call_operand.vmem [shape: bf16[64,64], index: 1, kind: input, shape index: {}]   ;;  %s497_s2 = inlined_call_operand.vmem [shape: bf16[64,64], index: 2, kind: input, shape index: {}]   ;;  %s498_s0 = inlined_call_operand.vmem [shape: f32[64,64], index: 0, kind: input, shape index: {}]   ;;  %s499_s3 = inlined_call_operand.vmem [shape: f32[1,64], index: 3, kind: input, shape index: {}]   ;;  %s500_s5 = inlined_call_operand.vmem [shape: f32[64,64], index: 5, kind: output, shape index: {1}]   ;;  %s501_s4 = inlined_call_operand.vmem [shape: f32[64,64], index: 4, kind: output, shape index: {0}]  }
   0x1   :  { %v335_v0 = vld [vmem:[%s496_s1] sm:$0xff]   ;;  %v337_v2 = vld [vmem:[%s496_s1 + $0x8] sm:$0xff]   ;;  %v339_v4 = vld [vmem:[%s496_s1 + $0x10] sm:$0xff]  }
   0x2   :  { %v336_v1 = vld [vmem:[%s497_s2] sm:$0xff]   ;;  %303 = vmatprep.subr.bf16.mxu0 %v335_v0  ;;  %v338_v3 = vld [vmem:[%s497_s2 + $0x8] sm:$0xff]   ;;  %v340_v5 = vld [vmem:[%s497_s2 + $0x10] sm:$0xff]  }
   0x3   :  { %319 = vmatprep.subr.bf16.mxu1 %v336_v1  ;;  %304 = vmatpush3.bf16.msra.mxu0 %v335_v0  ;;  %v341_v6 = vld [vmem:[%s496_s1 + $0x18] sm:$0xff]   ;;  %v20_v7 = vld [vmem:[%s498_s0] sm:$0xff]  ;;  %v21_v8 = vld [vmem:[%s498_s0 + $0x8] sm:$0xff] }
   0x4   :  { %320 = vmatpush3.bf16.msra.mxu1 %v336_v1  ;;  %305 = vmatprep.subr.bf16.mxu0 %v337_v2  ;;  %v342_v9 = vld [vmem:[%s497_s2 + $0x18] sm:$0xff]   ;;  %v28_v10 = vpack.c.bf16 %v21_v8, %v20_v7  ;;  %v22_v11 = vld [vmem:[%s498_s0 + $0x10] sm:$0xff]  ;;  %v24_v13 = vld [vmem:[%s498_s0 + $0x20] sm:$0xff] }
   0x5   :  { %321 = vmatprep.subr.bf16.mxu1 %v338_v3  ;;  %v23_v12 = vld [vmem:[%s498_s0 + $0x18] sm:$0xff]  ;;  %v25_v14 = vld [vmem:[%s498_s0 + $0x28] sm:$0xff]  ;;  %v26_v17 = vld [vmem:[%s498_s0 + $0x30] sm:$0xff] }
   0x6   :  { %311 = vmatprep.mubr.msk.bf16.mxu0 %vm71_vm0, %v28_v10  ;;  %327 = vmatprep.mubr.msk.bf16.mxu1 %vm71_vm0, %v28_v10  ;;  %v29_v15 = vpack.c.bf16 %v23_v12, %v22_v11  ;;  %v30_v16 = vpack.c.bf16 %v25_v14, %v24_v13  ;;  %v27_v18 = vld [vmem:[%s498_s0 + $0x38] sm:$0xff]  ;;  %v270_v20 = vld [vmem:[%s499_s3] ss:$0 sm:$0xff] }
   0x7   :  { %306 = vmatpush3.bf16.msra.mxu0 %v337_v2  ;;  %v31_v19 = vpack.c.bf16 %v27_v18, %v26_v17 }
   0x8   :  { %322 = vmatpush3.bf16.msra.mxu1 %v338_v3  ;;  %307 = vmatprep.subr.bf16.mxu0 %v339_v4 }
   0x9   :  { %323 = vmatprep.subr.bf16.mxu1 %v340_v5 }
   0xb   :  { %308 = vmatpush3.bf16.msra.mxu0 %v339_v4 }
   0xc   :  { %324 = vmatpush3.bf16.msra.mxu1 %v340_v5  ;;  %309 = vmatprep.subr.bf16.mxu0 %v341_v6 }
   0xd   :  { %325 = vmatprep.subr.bf16.mxu1 %v342_v9 }
   0xf   :  { %310 = vmatpush3.bf16.msra.mxu0 %v341_v6 }
  0x10   :  { %326 = vmatpush3.bf16.msra.mxu1 %v342_v9 }
  0x12   :  { %312 = vmatmul.mubr.msk.bf16.vlgmr.msra.gmra.mrb[0].mxu0 %vm71_vm0, %v29_v15 }
  0x13   :  { %328 = vmatmul.mubr.msk.bf16.vlgmr.msra.gmra.mrb[0].mxu1 %vm71_vm0, %v29_v15  ;;  %315 = vmatprep.mubr.msk.bf16.mxu0 %vm71_vm0, %v30_v16 }
  0x14   :  { %331 = vmatprep.mubr.msk.bf16.mxu1 %vm71_vm0, %v30_v16 }
  0x1a   :  { %316 = vmatmul.mubr.msk.bf16.gmra.mrb[4].mxu0 %vm71_vm0, %v31_v19 }
  0x1b   :  { %332 = vmatmul.mubr.msk.bf16.gmra.mrb[4].mxu1 %vm71_vm0, %v31_v19 }
  0xe5   :  { %v313_v21 = vpop.f32.mrb[0].mxu0 }
  0xe6   :  { %v127_v22 = vadd.f32 %v313_v21, %v270_v20  ;;  %v329_v23 = vpop.f32.mrb[0].mxu1  ;;  %v118_v24 = vpop.f32.mrb[1].mxu0 }
  0xe7   :  { %256 = vst.msk [vmem:[%s500_s5 + $0x10] sm:$0xff] %vm71_vm0, %v329_v23  ;;  %v119_v25 = vadd.f32 %v270_v20, %v118_v24  ;;  %v223_v26 = vpop.f32.mrb[1].mxu1  ;;  %v314_v27 = vpop.f32.mrb[2].mxu0 }
  0xe8   :  { %151 = vst.msk [vmem:[%s501_s4 + $0x10] sm:$0xff] %vm71_vm0, %v127_v22  ;;  %254 = vst.msk [vmem:[%s500_s5] sm:$0xff] %vm71_vm0, %v223_v26  ;;  %v130_v28 = vadd.f32 %v314_v27, %v270_v20  ;;  %v330_v29 = vpop.f32.mrb[2].mxu1  ;;  %v121_v30 = vpop.f32.mrb[3].mxu0 }
  0xe9   :  { %149 = vst.msk [vmem:[%s501_s4] sm:$0xff] %vm71_vm0, %v119_v25  ;;  %257 = vst.msk [vmem:[%s500_s5 + $0x18] sm:$0xff] %vm71_vm0, %v330_v29  ;;  %v122_v31 = vadd.f32 %v270_v20, %v121_v30  ;;  %v226_v32 = vpop.f32.mrb[3].mxu1 }
  0xea   :  { %152 = vst.msk [vmem:[%s501_s4 + $0x18] sm:$0xff] %vm71_vm0, %v130_v28  ;;  %255 = vst.msk [vmem:[%s500_s5 + $0x8] sm:$0xff] %vm71_vm0, %v226_v32 }
  0xeb   :  { %150 = vst.msk [vmem:[%s501_s4 + $0x8] sm:$0xff] %vm71_vm0, %v122_v31 }
  0xed   :  { %v317_v33 = vpop.f32.mrb[4].mxu0 }
  0xee   :  { %v143_v34 = vadd.f32 %v317_v33, %v270_v20  ;;  %v333_v35 = vpop.f32.mrb[4].mxu1  ;;  %v134_v36 = vpop.f32.mrb[5].mxu0 }
  0xef   :  { %260 = vst.msk [vmem:[%s500_s5 + $0x30] sm:$0xff] %vm71_vm0, %v333_v35  ;;  %v135_v37 = vadd.f32 %v270_v20, %v134_v36  ;;  %v239_v38 = vpop.f32.mrb[5].mxu1  ;;  %v318_v39 = vpop.f32.mrb[6].mxu0 }
  0xf0   :  { %155 = vst.msk [vmem:[%s501_s4 + $0x30] sm:$0xff] %vm71_vm0, %v143_v34  ;;  %258 = vst.msk [vmem:[%s500_s5 + $0x20] sm:$0xff] %vm71_vm0, %v239_v38  ;;  %v146_v40 = vadd.f32 %v318_v39, %v270_v20  ;;  %v334_v41 = vpop.f32.mrb[6].mxu1  ;;  %v137_v42 = vpop.f32.mrb[7].mxu0 }
  0xf1   :  { %153 = vst.msk [vmem:[%s501_s4 + $0x20] sm:$0xff] %vm71_vm0, %v135_v37  ;;  %261 = vst.msk [vmem:[%s500_s5 + $0x38] sm:$0xff] %vm71_vm0, %v334_v41  ;;  %v138_v43 = vadd.f32 %v270_v20, %v137_v42  ;;  %v242_v44 = vpop.f32.mrb[7].mxu1 }
  0xf2   :  { %156 = vst.msk [vmem:[%s501_s4 + $0x38] sm:$0xff] %vm71_vm0, %v146_v40  ;;  %259 = vst.msk [vmem:[%s500_s5 + $0x28] sm:$0xff] %vm71_vm0, %v242_v44 }
  0xf3   :  { %154 = vst.msk [vmem:[%s501_s4 + $0x28] sm:$0xff] %vm71_vm0, %v138_v43 }

// kernel: hybrid_dgnn_forward.19
= control target key start
LH: loop header
LB: loop body
LE: loop exit
PB: predicated region body
PF: predicated region fallthrough
CT: control target
= control target key end

     0   :  { %vm675_vm0 = vcmask 523264   ;;  %s4454_s1 = inlined_call_operand.vmem [shape: bf16[192,1024], index: 1, kind: input, shape index: {}]   ;;  %s4455_s0 = inlined_call_operand.vmem [shape: f32[64,192], index: 0, kind: input, shape index: {}]   ;;  %s4456_s3 = inlined_call_operand.vmem [shape: bf16[1024,256], index: 3, kind: input, shape index: {}]   ;;  %s4457_s2 = inlined_call_operand.vmem [shape: f32[1,1024], index: 2, kind: input, shape index: {}]   ;;  %s4458_s5 = inlined_call_operand.vmem [shape: bf16[256,128], index: 5, kind: input, shape index: {}]   ;;  %s4459_s7 = inlined_call_operand.vmem [shape: bf16[128,128], index: 7, kind: input, shape index: {}]   ;;  %s4460_s4 = inlined_call_operand.vmem [shape: f32[1,256], index: 4, kind: input, shape index: {}]   ;;  %s4461_s6 = inlined_call_operand.vmem [shape: f32[1,128], index: 6, kind: input, shape index: {}]   ;;  %s4462_s8 = inlined_call_operand.vmem [shape: f32[1,128], index: 8, kind: input, shape index: {}]   ;;  %s4463_s9 = inlined_call_operand.vmem [shape: f32[64,128], index: 9, kind: output, shape index: {}]  }
   0x1   :  { %v57_v0 = vld [vmem:[%s4454_s1] sm:$0xff]  ;;  %v34_v14 = vld [vmem:[%s4455_s0 + $0x8] sm:$0xff]  ;;  %v36_v15 = vld [vmem:[%s4455_s0 + $0x18] sm:$0xff] }
   0x2   :  { %v61_v1 = vld [vmem:[%s4454_s1 + $0x20] sm:$0xff]  ;;  %v3362_v17 = vpack.c.bf16 %v36_v15, %v34_v14  ;;  %v59_v31 = vld [vmem:[%s4454_s1 + $0x10] sm:$0xff]  ;;  %v58_v14 = vld [vmem:[%s4454_s1 + $0x8] sm:$0xff] }
   0x3   :  { %v65_v2 = vld [vmem:[%s4454_s1 + $0x40] sm:$0xff]  ;;  %v2613_v3 = vcombine.high %v57_v0, %v61_v1  ;;  %v2612_v4 = vcombine.low %v57_v0, %v61_v1  ;;  %v63_v32 = vld [vmem:[%s4454_s1 + $0x30] sm:$0xff]  ;;  %v62_v15 = vld [vmem:[%s4454_s1 + $0x28] sm:$0xff] }
   0x4   :  { %v69_v5 = vld [vmem:[%s4454_s1 + $0x60] sm:$0xff]  ;;  %2708 = vmatprep.mubr.msk.bf16.mxu1 %vm675_vm0, %v3362_v17  ;;  %2716 = vmatprep.mubr.msk.bf16.mxu0 %vm675_vm0, %v3362_v17  ;;  %v2617_v34 = vcombine.high %v59_v31, %v63_v32  ;;  %v2616_v35 = vcombine.low %v59_v31, %v63_v32  ;;  %v67_v36 = vld [vmem:[%s4454_s1 + $0x50] sm:$0xff]  ;;  %v2614_v31 = vcombine.low %v58_v14, %v62_v15  ;;  %v74_v32 = vld [vmem:[%s4454_s1 + $0x88] sm:$0xff] }
   0x5   :  { %v2621_v6 = vcombine.high %v65_v2, %v69_v5  ;;  %v73_v7 = vld [vmem:[%s4454_s1 + $0x80] sm:$0xff]  ;;  %688 = vmatprep.subr.bf16.mxu1 %v2613_v3  ;;  %v2620_v9 = vcombine.low %v65_v2, %v69_v5  ;;  %v71_v37 = vld [vmem:[%s4454_s1 + $0x70] sm:$0xff] }
   0x6   :  { %v77_v8 = vld [vmem:[%s4454_s1 + $0xa0] sm:$0xff]  ;;  %689 = vmatpush1.bf16.msra.mxu1 %v2612_v4  ;;  %v2625_v38 = vcombine.high %v67_v36, %v71_v37  ;;  %v75_v39 = vld [vmem:[%s4454_s1 + $0x90] sm:$0xff]  ;;  %834 = vmatprep.subr.bf16.mxu0 %v2617_v34  ;;  %v2624_v43 = vcombine.low %v67_v36, %v71_v37 }
   0x7   :  { %690 = vmatprep.subr.bf16.mxu1 %v2621_v6  ;;  %v2629_v10 = vcombine.high %v73_v7, %v77_v8  ;;  %v81_v11 = vld [vmem:[%s4454_s1 + $0xc0] sm:$0xff]  ;;  %v2628_v13 = vcombine.low %v73_v7, %v77_v8  ;;  %v79_v40 = vld [vmem:[%s4454_s1 + $0xb0] sm:$0xff]  ;;  %835 = vmatpush1.bf16.msra.mxu0 %v2616_v35 }
   0x8   :  { %v85_v12 = vld [vmem:[%s4454_s1 + $0xe0] sm:$0xff]  ;;  %836 = vmatprep.subr.bf16.mxu0 %v2625_v38  ;;  %v2633_v46 = vcombine.high %v75_v39, %v79_v40  ;;  %v83_v47 = vld [vmem:[%s4454_s1 + $0xd0] sm:$0xff]  ;;  %v2632_v51 = vcombine.low %v75_v39, %v79_v40 }
   0x9   :  { %v2637_v16 = vcombine.high %v81_v11, %v85_v12  ;;  %v89_v18 = vld [vmem:[%s4454_s1 + $0x100] sm:$0xff]  ;;  %v2636_v20 = vcombine.low %v81_v11, %v85_v12  ;;  %v87_v48 = vld [vmem:[%s4454_s1 + $0xf0] sm:$0xff] }
   0xa   :  { %691 = vmatpush1.bf16.msra.mxu1 %v2620_v9  ;;  %v93_v19 = vld [vmem:[%s4454_s1 + $0x120] sm:$0xff]  ;;  %v2641_v54 = vcombine.high %v83_v47, %v87_v48  ;;  %v91_v55 = vld [vmem:[%s4454_s1 + $0x110] sm:$0xff]  ;;  %v2640_v59 = vcombine.low %v83_v47, %v87_v48 }
   0xb   :  { %692 = vmatprep.subr.bf16.mxu1 %v2629_v10  ;;  %v2645_v21 = vcombine.high %v89_v18, %v93_v19  ;;  %v97_v22 = vld [vmem:[%s4454_s1 + $0x140] sm:$0xff]  ;;  %v2644_v24 = vcombine.low %v89_v18, %v93_v19  ;;  %837 = vmatpush1.bf16.msra.mxu0 %v2624_v43  ;;  %v95_v56 = vld [vmem:[%s4454_s1 + $0x130] sm:$0xff]  ;;  %v82_v43 = vld [vmem:[%s4454_s1 + $0xc8] sm:$0xff] }
   0xc   :  { %v101_v23 = vld [vmem:[%s4454_s1 + $0x160] sm:$0xff]  ;;  %838 = vmatprep.subr.bf16.mxu0 %v2633_v46  ;;  %v2649_v62 = vcombine.high %v91_v55, %v95_v56  ;;  %v99_v63 = vld [vmem:[%s4454_s1 + $0x150] sm:$0xff]  ;;  %v2648_v3 = vcombine.low %v91_v55, %v95_v56  ;;  %v44_v46 = vld [vmem:[%s4455_s0 + $0x58] sm:$0xff] }
   0xd   :  { %v2653_v25 = vcombine.high %v97_v22, %v101_v23  ;;  %v105_v26 = vld [vmem:[%s4454_s1 + $0x180] sm:$0xff]  ;;  %v2652_v28 = vcombine.low %v97_v22, %v101_v23  ;;  %v103_v0 = vld [vmem:[%s4454_s1 + $0x170] sm:$0xff]  ;;  %v2615_v22 = vcombine.high %v58_v14, %v62_v15  ;;  %v40_v23 = vld [vmem:[%s4455_s0 + $0x38] sm:$0xff] }
   0xe   :  { %693 = vmatpush1.bf16.msra.mxu1 %v2628_v13  ;;  %v109_v27 = vld [vmem:[%s4454_s1 + $0x1a0] sm:$0xff]  ;;  %v2657_v6 = vcombine.high %v99_v63, %v103_v0  ;;  %v107_v7 = vld [vmem:[%s4454_s1 + $0x190] sm:$0xff]  ;;  %v2656_v11 = vcombine.low %v99_v63, %v103_v0  ;;  %v94_v55 = vld [vmem:[%s4454_s1 + $0x128] sm:$0xff] }
   0xf   :  { %694 = vmatprep.subr.bf16.mxu1 %v2637_v16  ;;  %v2661_v29 = vcombine.high %v105_v26, %v109_v27  ;;  %v113_v30 = vld [vmem:[%s4454_s1 + $0x1c0] sm:$0xff]  ;;  %v2660_v41 = vcombine.low %v105_v26, %v109_v27  ;;  %839 = vmatpush1.bf16.msra.mxu0 %v2632_v51  ;;  %v111_v8 = vld [vmem:[%s4454_s1 + $0x1b0] sm:$0xff]  ;;  %v70_v26 = vld [vmem:[%s4454_s1 + $0x68] sm:$0xff] }
  0x10   :  { %v117_v33 = vld [vmem:[%s4454_s1 + $0x1e0] sm:$0xff]  ;;  %840 = vmatprep.subr.bf16.mxu0 %v2641_v54  ;;  %v35_v13 = vld [vmem:[%s4455_s0 + $0x10] sm:$0xff]  ;;  %v2665_v16 = vcombine.high %v107_v7, %v111_v8  ;;  %v90_v54 = vld [vmem:[%s4454_s1 + $0x108] sm:$0xff] }
  0x11   :  { %v2669_v42 = vcombine.high %v113_v30, %v117_v33  ;;  %v121_v44 = vld [vmem:[%s4454_s1 + $0x200] sm:$0xff]  ;;  %v2668_v49 = vcombine.low %v113_v30, %v117_v33  ;;  %v115_v18 = vld [vmem:[%s4454_s1 + $0x1d0] sm:$0xff]  ;;  %v78_v33 = vld [vmem:[%s4454_s1 + $0xa8] sm:$0xff] }
  0x12   :  { %695 = vmatpush1.bf16.msra.mxu1 %v2636_v20  ;;  %v125_v45 = vld [vmem:[%s4454_s1 + $0x220] sm:$0xff]  ;;  %v119_v19 = vld [vmem:[%s4454_s1 + $0x1f0] sm:$0xff]  ;;  %v2631_v47 = vcombine.high %v74_v32, %v78_v33 }
  0x13   :  { %696 = vmatprep.subr.bf16.mxu1 %v2645_v21  ;;  %v2677_v50 = vcombine.high %v121_v44, %v125_v45  ;;  %v129_v52 = vld [vmem:[%s4454_s1 + $0x240] sm:$0xff]  ;;  %v2676_v57 = vcombine.low %v121_v44, %v125_v45  ;;  %841 = vmatpush1.bf16.msra.mxu0 %v2640_v59  ;;  %v38_v21 = vld [vmem:[%s4455_s0 + $0x28] sm:$0xff]  ;;  %v2673_v27 = vcombine.high %v115_v18, %v119_v19  ;;  %v127_v30 = vld [vmem:[%s4454_s1 + $0x230] sm:$0xff] }
  0x14   :  { %v133_v53 = vld [vmem:[%s4454_s1 + $0x260] sm:$0xff]  ;;  %842 = vmatprep.subr.bf16.mxu0 %v2649_v62  ;;  %v3502_v34 = vpack.c.bf16 %v40_v23, %v38_v21  ;;  %v2672_v36 = vcombine.low %v115_v18, %v119_v19  ;;  %v131_v37 = vld [vmem:[%s4454_s1 + $0x250] sm:$0xff]  ;;  %v86_v44 = vld [vmem:[%s4454_s1 + $0xe8] sm:$0xff] }
  0x15   :  { %v2685_v58 = vcombine.high %v129_v52, %v133_v53  ;;  %v137_v60 = vld [vmem:[%s4454_s1 + $0x280] sm:$0xff]  ;;  %v2684_v1 = vcombine.low %v129_v52, %v133_v53  ;;  %v135_v38 = vld [vmem:[%s4454_s1 + $0x270] sm:$0xff]  ;;  %v42_v45 = vld [vmem:[%s4455_s0 + $0x48] sm:$0xff]  ;;  %v2630_v53 = vcombine.low %v74_v32, %v78_v33  ;;  %v2638_v0 = vcombine.low %v82_v43, %v86_v44 }
  0x16   :  { %697 = vmatpush1.bf16.msra.mxu1 %v2644_v24  ;;  %v141_v61 = vld [vmem:[%s4454_s1 + $0x2a0] sm:$0xff]  ;;  %v2664_v24 = vcombine.low %v107_v7, %v111_v8  ;;  %v39_v40 = vld [vmem:[%s4455_s0 + $0x30] sm:$0xff]  ;;  %v2689_v51 = vcombine.high %v131_v37, %v135_v38  ;;  %v3545_v56 = vpack.c.bf16 %v44_v46, %v42_v45  ;;  %v114_v18 = vld [vmem:[%s4454_s1 + $0x1c8] sm:$0xff] }
  0x17   :  { %698 = vmatprep.subr.bf16.mxu1 %v2653_v25  ;;  %v2693_v2 = vcombine.high %v137_v60, %v141_v61  ;;  %v145_v4 = vld [vmem:[%s4454_s1 + $0x2c0] sm:$0xff]  ;;  %v2692_v9 = vcombine.low %v137_v60, %v141_v61  ;;  %843 = vmatpush1.bf16.msra.mxu0 %v2648_v3  ;;  %v66_v25 = vld [vmem:[%s4454_s1 + $0x48] sm:$0xff]  ;;  %v147_v59 = vld [vmem:[%s4454_s1 + $0x2d0] sm:$0xff] }
  0x18   :  { %v149_v5 = vld [vmem:[%s4454_s1 + $0x2e0] sm:$0xff]  ;;  %844 = vmatprep.subr.bf16.mxu0 %v2657_v6  ;;  %v2623_v35 = vcombine.high %v66_v25, %v70_v26  ;;  %v151_v60 = vld [vmem:[%s4454_s1 + $0x2f0] sm:$0xff]  ;;  %v46_v3 = vld [vmem:[%s4455_s0 + $0x68] sm:$0xff] }
  0x19   :  { %v2701_v10 = vcombine.high %v145_v4, %v149_v5  ;;  %v33_v12 = vld [vmem:[%s4455_s0] sm:$0xff]  ;;  %v2700_v20 = vcombine.low %v145_v4, %v149_v5  ;;  %v43_v62 = vld [vmem:[%s4455_s0 + $0x50] sm:$0xff]  ;;  %v48_v4 = vld [vmem:[%s4455_s0 + $0x78] sm:$0xff]  ;;  %v2647_v5 = vcombine.high %v90_v54, %v94_v55  ;;  %v2705_v7 = vcombine.high %v147_v59, %v151_v60 }
  0x1a   :  { %699 = vmatpush1.bf16.msra.mxu1 %v2652_v28  ;;  %v3488_v28 = vpack.c.bf16 %v35_v13, %v33_v12  ;;  %v37_v39 = vld [vmem:[%s4455_s0 + $0x20] sm:$0xff]  ;;  %v3582_v12 = vpack.c.bf16 %v48_v4, %v46_v3  ;;  %v2704_v14 = vcombine.low %v147_v59, %v151_v60  ;;  %v118_v19 = vld [vmem:[%s4454_s1 + $0x1e8] sm:$0xff]  ;;  %v47_v21 = vld [vmem:[%s4455_s0 + $0x70] sm:$0xff] }
  0x1b   :  { %700 = vmatprep.subr.bf16.mxu1 %v2661_v29  ;;  %845 = vmatpush1.bf16.msra.mxu0 %v2656_v11  ;;  %v123_v29 = vld [vmem:[%s4454_s1 + $0x210] sm:$0xff]  ;;  %v3537_v52 = vpack.c.bf16 %v39_v40, %v37_v39  ;;  %v41_v61 = vld [vmem:[%s4455_s0 + $0x40] sm:$0xff]  ;;  %v110_v11 = vld [vmem:[%s4454_s1 + $0x1a8] sm:$0xff]  ;;  %v2670_v32 = vcombine.low %v114_v18, %v118_v19 }
  0x1c   :  { %846 = vmatprep.subr.bf16.mxu0 %v2665_v16  ;;  %v2680_v48 = vcombine.low %v123_v29, %v127_v30  ;;  %v3574_v8 = vpack.c.bf16 %v43_v62, %v41_v61  ;;  %v3072_v15 = vld [vmem:[%s4456_s3 + $0x104] ss:$8 sps:$4 sm:$0xff]   ;;  %v3070_v23 = vld [vmem:[%s4456_s3 + $0x100] ss:$8 sps:$4 sm:$0xff]   ;;  %v60_v46 = vld [vmem:[%s4454_s1 + $0x18] sm:$0xff] }
  0x1d   :  { %v130_v33 = vld [vmem:[%s4454_s1 + $0x248] sm:$0xff]  ;;  %v84_v61 = vld [vmem:[%s4454_s1 + $0xd8] sm:$0xff] }
  0x1e   :  { %701 = vmatpush1.bf16.msra.mxu1 %v2660_v41  ;;  %v2681_v41 = vcombine.high %v123_v29, %v127_v30  ;;  %v126_v29 = vld [vmem:[%s4454_s1 + $0x228] sm:$0xff]  ;;  %v3076_v30 = vld [vmem:[%s4456_s3 + $0x110] ss:$8 sps:$4 sm:$0xff]  }
  0x1f   :  { %702 = vmatprep.subr.bf16.mxu1 %v2669_v42  ;;  %847 = vmatpush1.bf16.msra.mxu0 %v2664_v24  ;;  %v2622_v42 = vcombine.low %v66_v25, %v70_v26  ;;  %v3078_v24 = vld [vmem:[%s4456_s3 + $0x114] ss:$8 sps:$4 sm:$0xff]   ;;  %v142_v39 = vld [vmem:[%s4454_s1 + $0x2a8] sm:$0xff] }
  0x20   :  { %848 = vmatprep.subr.bf16.mxu0 %v2673_v27  ;;  %v122_v27 = vld [vmem:[%s4454_s1 + $0x208] sm:$0xff]  ;;  %v88_v62 = vld [vmem:[%s4454_s1 + $0xf8] sm:$0xff] }
  0x21   :  { %v2642_v3 = vcombine.low %v84_v61, %v88_v62 }
  0x22   :  { %703 = vmatpush1.bf16.msra.mxu1 %v2668_v49  ;;  %v139_v49 = vld [vmem:[%s4454_s1 + $0x290] sm:$0xff] }
  0x23   :  { %704 = vmatprep.subr.bf16.mxu1 %v2677_v50  ;;  %849 = vmatpush1.bf16.msra.mxu0 %v2672_v36  ;;  %v143_v50 = vld [vmem:[%s4454_s1 + $0x2b0] sm:$0xff]  ;;  %v2679_v36 = vcombine.high %v122_v27, %v126_v29 }
  0x24   :  { %850 = vmatprep.subr.bf16.mxu0 %v2681_v41  ;;  %v2697_v63 = vcombine.high %v139_v49, %v143_v50  ;;  %v2696_v6 = vcombine.low %v139_v49, %v143_v50 }
  0x26   :  { %705 = vmatpush1.bf16.msra.mxu1 %v2676_v57  ;;  %v2639_v57 = vcombine.high %v82_v43, %v86_v44  ;;  %v150_v43 = vld [vmem:[%s4454_s1 + $0x2e8] sm:$0xff] }
  0x27   :  { %706 = vmatprep.subr.bf16.mxu1 %v2685_v58  ;;  %851 = vmatpush1.bf16.msra.mxu0 %v2680_v48  ;;  %v2688_v58 = vcombine.low %v131_v37, %v135_v38  ;;  %v2678_v37 = vcombine.low %v122_v27, %v126_v29  ;;  %v138_v38 = vld [vmem:[%s4454_s1 + $0x288] sm:$0xff] }
  0x28   :  { %852 = vmatprep.subr.bf16.mxu0 %v2689_v51  ;;  %v2695_v44 = vcombine.high %v138_v38, %v142_v39  ;;  %v2694_v45 = vcombine.low %v138_v38, %v142_v39  ;;  %v68_v51 = vld [vmem:[%s4454_s1 + $0x58] sm:$0xff] }
  0x2a   :  { %707 = vmatpush1.bf16.msra.mxu1 %v2684_v1  ;;  %v98_v1 = vld [vmem:[%s4454_s1 + $0x148] sm:$0xff] }
  0x2b   :  { %708 = vmatprep.subr.bf16.mxu1 %v2693_v2  ;;  %v102_v2 = vld [vmem:[%s4454_s1 + $0x168] sm:$0xff]  ;;  %853 = vmatpush1.bf16.msra.mxu0 %v2688_v58  ;;  %v80_v58 = vld [vmem:[%s4454_s1 + $0xb8] sm:$0xff] }
  0x2c   :  { %854 = vmatprep.subr.bf16.mxu0 %v2697_v63  ;;  %v2655_v13 = vcombine.high %v98_v1, %v102_v2  ;;  %v2654_v16 = vcombine.low %v98_v1, %v102_v2  ;;  %v92_v1 = vld [vmem:[%s4454_s1 + $0x118] sm:$0xff] }
  0x2d   :  { %v96_v2 = vld [vmem:[%s4454_s1 + $0x138] sm:$0xff] }
  0x2e   :  { %709 = vmatpush1.bf16.msra.mxu1 %v2692_v9  ;;  %v2646_v9 = vcombine.low %v90_v54, %v94_v55  ;;  %v2651_v4 = vcombine.high %v92_v1, %v96_v2 }
  0x2f   :  { %710 = vmatprep.subr.bf16.mxu1 %v2701_v10  ;;  %v106_v10 = vld [vmem:[%s4454_s1 + $0x188] sm:$0xff]  ;;  %855 = vmatpush1.bf16.msra.mxu0 %v2696_v6  ;;  %v104_v6 = vld [vmem:[%s4454_s1 + $0x178] sm:$0xff] }
  0x30   :  { %856 = vmatprep.subr.bf16.mxu0 %v2705_v7  ;;  %v2662_v26 = vcombine.low %v106_v10, %v110_v11  ;;  %v2650_v7 = vcombine.low %v92_v1, %v96_v2  ;;  %v3049_v1 = vld [vmem:[%s4456_s3 + $0x50] ss:$8 sps:$4 sm:$0xff]   ;;  %v3054_v2 = vld [vmem:[%s4456_s3 + $0x64] ss:$8 sps:$4 sm:$0xff]  }
  0x32   :  { %711 = vmatpush1.bf16.msra.mxu1 %v2700_v20  ;;  %v45_v20 = vld [vmem:[%s4455_s0 + $0x60] sm:$0xff] }
  0x33   :  { %761 = vmatprep.subr.bf16.mxu1 %v2615_v22  ;;  %v2663_v22 = vcombine.high %v106_v10, %v110_v11  ;;  %857 = vmatpush1.bf16.msra.mxu0 %v2704_v14  ;;  %v3608_v25 = vpack.c.bf16 %v47_v21, %v45_v20  ;;  %v108_v10 = vld [vmem:[%s4454_s1 + $0x198] sm:$0xff] }
  0x34   :  { %1929 = vmatprep.subr.bf16.mxu0 %v3072_v15  ;;  %v112_v11 = vld [vmem:[%s4454_s1 + $0x1b8] sm:$0xff] }
  0x35   :  { %721 = vmatmul.mubr.bf16.vlgmr.msra.gmra.mrb[0].mxu1 %v3488_v28  ;;  %v2667_v14 = vcombine.high %v108_v10, %v112_v11  ;;  %v116_v15 = vld [vmem:[%s4454_s1 + $0x1d8] sm:$0xff] }
  0x36   :  { %762 = vmatpush1.bf16.msra.mxu1 %v2614_v31  ;;  %2709 = vmatprep.mubr.msk.bf16.mxu1 %vm675_vm0, %v3502_v34  ;;  %v2671_v31 = vcombine.high %v114_v18, %v118_v19  ;;  %v2666_v18 = vcombine.low %v108_v10, %v112_v11  ;;  %v124_v20 = vld [vmem:[%s4454_s1 + $0x218] sm:$0xff]  ;;  %v3118_v10 = vld [vmem:[%s4456_s3 + $0x1c0] ss:$8 sps:$4 sm:$0xff]  }
  0x37   :  { %763 = vmatprep.subr.bf16.mxu1 %v2623_v35  ;;  %867 = vmatmul.mubr.bf16.vlgmr.msra.gmra.mrb[0].mxu0 %v3488_v28  ;;  %v134_v35 = vld [vmem:[%s4454_s1 + $0x268] sm:$0xff]  ;;  %v128_v21 = vld [vmem:[%s4454_s1 + $0x238] sm:$0xff] }
  0x38   :  { %2717 = vmatprep.mubr.msk.bf16.mxu0 %vm675_vm0, %v3502_v34  ;;  %1930 = vmatpush1.bf16.msra.mxu0 %v3070_v23  ;;  %v2687_v40 = vcombine.high %v130_v33, %v134_v35  ;;  %v2686_v41 = vcombine.low %v130_v33, %v134_v35  ;;  %v2683_v23 = vcombine.high %v124_v20, %v128_v21  ;;  %v148_v33 = vld [vmem:[%s4454_s1 + $0x2d8] sm:$0xff]  ;;  %v3058_v11 = vld [vmem:[%s4456_s3 + $0x80] ss:$8 sps:$4 sm:$0xff]  }
  0x39   :  { %1931 = vmatprep.subr.bf16.mxu0 %v3078_v24  ;;  %v132_v24 = vld [vmem:[%s4454_s1 + $0x258] sm:$0xff]  ;;  %v2682_v27 = vcombine.low %v124_v20, %v128_v21  ;;  %v3064_v20 = vld [vmem:[%s4456_s3 + $0xa0] ss:$8 sps:$4 sm:$0xff]  }
  0x3a   :  { %764 = vmatpush1.bf16.msra.mxu1 %v2622_v42  ;;  %v146_v42 = vld [vmem:[%s4454_s1 + $0x2c8] sm:$0xff]  ;;  %v152_v35 = vld [vmem:[%s4454_s1 + $0x2f8] sm:$0xff] }
  0x3b   :  { %765 = vmatprep.subr.bf16.mxu1 %v2631_v47  ;;  %v64_v47 = vld [vmem:[%s4454_s1 + $0x38] sm:$0xff]  ;;  %v2703_v48 = vcombine.high %v146_v42, %v150_v43  ;;  %v2702_v49 = vcombine.low %v146_v42, %v150_v43  ;;  %v2707_v39 = vcombine.high %v148_v33, %v152_v35  ;;  %v2706_v42 = vcombine.low %v148_v33, %v152_v35  ;;  %v3036_v43 = vld [vmem:[%s4456_s3 + $0x4] ss:$8 sps:$4 sm:$0xff]  }
  0x3c   :  { %1932 = vmatpush1.bf16.msra.mxu0 %v3076_v30  ;;  %v2619_v50 = vcombine.high %v60_v46, %v64_v47  ;;  %v2618_v54 = vcombine.low %v60_v46, %v64_v47  ;;  %v140_v30 = vld [vmem:[%s4454_s1 + $0x298] sm:$0xff]  ;;  %v3034_v46 = vld [vmem:[%s4456_s3] ss:$8 sps:$4 sm:$0xff]  }
  0x3d   :  { %731 = vmatmul.mubr.bf16.gmra.mrb[4].mxu1 %v3537_v52  ;;  %v3039_v47 = vld [vmem:[%s4456_s3 + $0x14] ss:$8 sps:$4 sm:$0xff]   ;;  %v3091_v35 = vld [vmem:[%s4456_s3 + $0xf0] ss:$8 sps:$4 sm:$0xff]  }
  0x3e   :  { %766 = vmatpush1.bf16.msra.mxu1 %v2630_v53  ;;  %2710 = vmatprep.mubr.msk.bf16.mxu1 %vm675_vm0, %v3545_v56  ;;  %v72_v53 = vld [vmem:[%s4454_s1 + $0x78] sm:$0xff] }
  0x3f   :  { %767 = vmatprep.subr.bf16.mxu1 %v2639_v57  ;;  %877 = vmatmul.mubr.bf16.gmra.mrb[4].mxu0 %v3537_v52  ;;  %v2627_v55 = vcombine.high %v68_v51, %v72_v53  ;;  %v76_v57 = vld [vmem:[%s4454_s1 + $0x98] sm:$0xff]  ;;  %v2626_v59 = vcombine.low %v68_v51, %v72_v53  ;;  %v3042_v53 = vld [vmem:[%s4456_s3 + $0x24] ss:$8 sps:$4 sm:$0xff]  }
  0x40   :  { %2718 = vmatprep.mubr.msk.bf16.mxu0 %vm675_vm0, %v3545_v56  ;;  %v2635_v60 = vcombine.high %v76_v57, %v80_v58  ;;  %v2634_v63 = vcombine.low %v76_v57, %v80_v58  ;;  %v3037_v51 = vld [vmem:[%s4456_s3 + $0x10] ss:$8 sps:$4 sm:$0xff]   ;;  %v3108_v58 = vld [vmem:[%s4456_s3 + $0x184] ss:$8 sps:$4 sm:$0xff]   ;;  %v3069_v21 = vld [vmem:[%s4456_s3 + $0xb4] ss:$8 sps:$4 sm:$0xff]  }
  0x41   :  { %v3103_v57 = vld [vmem:[%s4456_s3 + $0x170] ss:$8 sps:$4 sm:$0xff]   ;;  %v3093_v33 = vld [vmem:[%s4456_s3 + $0xf4] ss:$8 sps:$4 sm:$0xff]  }
  0x42   :  { %768 = vmatpush1.bf16.msra.mxu1 %v2638_v0  ;;  %v2643_v0 = vcombine.high %v84_v61, %v88_v62  ;;  %v3106_v61 = vld [vmem:[%s4456_s3 + $0x180] ss:$8 sps:$4 sm:$0xff]   ;;  %v3051_v62 = vld [vmem:[%s4456_s3 + $0x54] ss:$8 sps:$4 sm:$0xff]  }
  0x43   :  { %769 = vmatprep.subr.bf16.mxu1 %v2647_v5  ;;  %v100_v5 = vld [vmem:[%s4454_s1 + $0x158] sm:$0xff] }
  0x45   :  { %741 = vmatmul.mubr.bf16.gmra.mrb[8].mxu1 %v3574_v8 }
  0x46   :  { %770 = vmatpush1.bf16.msra.mxu1 %v2646_v9  ;;  %2711 = vmatprep.mubr.msk.bf16.mxu1 %vm675_vm0, %v3582_v12  ;;  %v2659_v9 = vcombine.high %v100_v5, %v104_v6 }
  0x47   :  { %771 = vmatprep.subr.bf16.mxu1 %v2655_v13  ;;  %887 = vmatmul.mubr.bf16.gmra.mrb[8].mxu0 %v3574_v8  ;;  %v2658_v13 = vcombine.low %v100_v5, %v104_v6  ;;  %v3115_v5 = vld [vmem:[%s4456_s3 + $0x1b0] ss:$8 sps:$4 sm:$0xff]   ;;  %v3120_v6 = vld [vmem:[%s4456_s3 + $0x1c4] ss:$8 sps:$4 sm:$0xff]  }
  0x48   :  { %2719 = vmatprep.mubr.msk.bf16.mxu0 %vm675_vm0, %v3582_v12 }
  0x4a   :  { %772 = vmatpush1.bf16.msra.mxu1 %v2654_v16  ;;  %v120_v16 = vld [vmem:[%s4454_s1 + $0x1f8] sm:$0xff] }
  0x4b   :  { %773 = vmatprep.subr.bf16.mxu1 %v2663_v22  ;;  %v2675_v19 = vcombine.high %v116_v15, %v120_v16  ;;  %v2674_v22 = vcombine.low %v116_v15, %v120_v16  ;;  %v3061_v15 = vld [vmem:[%s4456_s3 + $0x90] ss:$8 sps:$4 sm:$0xff]   ;;  %v3066_v16 = vld [vmem:[%s4456_s3 + $0xa4] ss:$8 sps:$4 sm:$0xff]  }
  0x4d   :  { %751 = vmatmul.mubr.bf16.gmra.mrb[12].mxu1 %v3608_v25 }
  0x4e   :  { %774 = vmatpush1.bf16.msra.mxu1 %v2662_v26  ;;  %2712 = vmatprep.mubr.msk.bf16.mxu1 %vm675_vm0, %v3362_v17  ;;  %v136_v26 = vld [vmem:[%s4454_s1 + $0x278] sm:$0xff] }
  0x4f   :  { %775 = vmatprep.subr.bf16.mxu1 %v2671_v31  ;;  %897 = vmatmul.mubr.bf16.gmra.mrb[12].mxu0 %v3608_v25  ;;  %v2691_v29 = vcombine.high %v132_v24, %v136_v26  ;;  %v2690_v31 = vcombine.low %v132_v24, %v136_v26  ;;  %v3067_v24 = vld [vmem:[%s4456_s3 + $0xb0] ss:$8 sps:$4 sm:$0xff]   ;;  %v3075_v26 = vld [vmem:[%s4456_s3 + $0xc4] ss:$8 sps:$4 sm:$0xff]  }
  0x52   :  { %776 = vmatpush1.bf16.msra.mxu1 %v2670_v32 }
  0x53   :  { %777 = vmatprep.subr.bf16.mxu1 %v2679_v36  ;;  %v3084_v36 = vld [vmem:[%s4456_s3 + $0x124] ss:$8 sps:$4 sm:$0xff]  }
  0x54   :  { %1933 = vmatprep.subr.bf16.mxu0 %v3084_v36  ;;  %v155_v36 = vlaneseq }
  0x56   :  { %778 = vmatpush1.bf16.msra.mxu1 %v2678_v37  ;;  %v3082_v37 = vld [vmem:[%s4456_s3 + $0x120] ss:$8 sps:$4 sm:$0xff]  }
  0x57   :  { %779 = vmatprep.subr.bf16.mxu1 %v2687_v40  ;;  %1934 = vmatpush1.bf16.msra.mxu0 %v3082_v37  ;;  %v3090_v40 = vld [vmem:[%s4456_s3 + $0x134] ss:$8 sps:$4 sm:$0xff]   ;;  %v3927_v37 = vshrl.u32 %v155_v36, 7 }
  0x58   :  { %1935 = vmatprep.subr.bf16.mxu0 %v3090_v40 }
  0x59   :  { %v161_v40 = vsub.s32 1, %v3927_v37 }
  0x5a   :  { %780 = vmatpush1.bf16.msra.mxu1 %v2686_v41  ;;  %v3088_v41 = vld [vmem:[%s4456_s3 + $0x130] ss:$8 sps:$4 sm:$0xff]  }
  0x5b   :  { %781 = vmatprep.subr.bf16.mxu1 %v2695_v44  ;;  %1936 = vmatpush1.bf16.msra.mxu0 %v3088_v41  ;;  %v3096_v44 = vld [vmem:[%s4456_s3 + $0x144] ss:$8 sps:$4 sm:$0xff]  }
  0x5c   :  { %1937 = vmatprep.subr.bf16.mxu0 %v3096_v44 }
  0x5e   :  { %782 = vmatpush1.bf16.msra.mxu1 %v2694_v45  ;;  %v3094_v45 = vld [vmem:[%s4456_s3 + $0x140] ss:$8 sps:$4 sm:$0xff]  }
  0x5f   :  { %783 = vmatprep.subr.bf16.mxu1 %v2703_v48  ;;  %1938 = vmatpush1.bf16.msra.mxu0 %v3094_v45  ;;  %v3097_v48 = vld [vmem:[%s4456_s3 + $0x150] ss:$8 sps:$4 sm:$0xff]  }
  0x62   :  { %784 = vmatpush1.bf16.msra.mxu1 %v2702_v49  ;;  %v3099_v49 = vld [vmem:[%s4456_s3 + $0x154] ss:$8 sps:$4 sm:$0xff]  }
  0x63   :  { %907 = vmatprep.subr.bf16.mxu1 %v2619_v50  ;;  %v3102_v50 = vld [vmem:[%s4456_s3 + $0x164] ss:$8 sps:$4 sm:$0xff]   ;;  %1939 = vmatprep.subr.bf16.mxu0 %v3099_v49 }
  0x64   :  { %1940 = vmatpush1.bf16.msra.mxu0 %v3097_v48 }
  0x65   :  { %794 = vmatmul.mubr.bf16.vlgmr.msra.gmra.mrb[16].mxu1 %v3488_v28  ;;  %1941 = vmatprep.subr.bf16.mxu0 %v3102_v50 }
  0x66   :  { %2713 = vmatprep.mubr.msk.bf16.mxu1 %vm675_vm0, %v3502_v34  ;;  %908 = vmatpush1.bf16.msra.mxu1 %v2618_v54  ;;  %v3100_v54 = vld [vmem:[%s4456_s3 + $0x160] ss:$8 sps:$4 sm:$0xff]  }
  0x67   :  { %909 = vmatprep.subr.bf16.mxu1 %v2627_v55  ;;  %v3045_v55 = vld [vmem:[%s4456_s3 + $0x34] ss:$8 sps:$4 sm:$0xff]  }
  0x68   :  { %1942 = vmatpush1.bf16.msra.mxu0 %v3100_v54 }
  0x6a   :  { %910 = vmatpush1.bf16.msra.mxu1 %v2626_v59  ;;  %v3043_v59 = vld [vmem:[%s4456_s3 + $0x30] ss:$8 sps:$4 sm:$0xff]  }
  0x6b   :  { %911 = vmatprep.subr.bf16.mxu1 %v2635_v60  ;;  %v3048_v60 = vld [vmem:[%s4456_s3 + $0x44] ss:$8 sps:$4 sm:$0xff]  }
  0x6d   :  { %804 = vmatmul.mubr.bf16.gmra.mrb[20].mxu1 %v3537_v52 }
  0x6e   :  { %2714 = vmatprep.mubr.msk.bf16.mxu1 %vm675_vm0, %v3545_v56  ;;  %912 = vmatpush1.bf16.msra.mxu1 %v2634_v63  ;;  %v3109_v63 = vld [vmem:[%s4456_s3 + $0x190] ss:$8 sps:$4 sm:$0xff]  }
  0x6f   :  { %913 = vmatprep.subr.bf16.mxu1 %v2643_v0  ;;  %v3114_v0 = vld [vmem:[%s4456_s3 + $0x1a4] ss:$8 sps:$4 sm:$0xff]  }
  0x72   :  { %914 = vmatpush1.bf16.msra.mxu1 %v2642_v3  ;;  %v3112_v3 = vld [vmem:[%s4456_s3 + $0x1a0] ss:$8 sps:$4 sm:$0xff]  }
  0x73   :  { %915 = vmatprep.subr.bf16.mxu1 %v2651_v4  ;;  %v3057_v4 = vld [vmem:[%s4456_s3 + $0x74] ss:$8 sps:$4 sm:$0xff]  }
  0x75   :  { %814 = vmatmul.mubr.bf16.gmra.mrb[24].mxu1 %v3574_v8 }
  0x76   :  { %2715 = vmatprep.mubr.msk.bf16.mxu1 %vm675_vm0, %v3582_v12  ;;  %916 = vmatpush1.bf16.msra.mxu1 %v2650_v7  ;;  %v3055_v7 = vld [vmem:[%s4456_s3 + $0x70] ss:$8 sps:$4 sm:$0xff]  }
  0x77   :  { %917 = vmatprep.subr.bf16.mxu1 %v2659_v9  ;;  %v3060_v9 = vld [vmem:[%s4456_s3 + $0x84] ss:$8 sps:$4 sm:$0xff]  }
  0x7a   :  { %918 = vmatpush1.bf16.msra.mxu1 %v2658_v13  ;;  %v3063_v13 = vld [vmem:[%s4456_s3 + $0x94] ss:$8 sps:$4 sm:$0xff]  }
  0x7b   :  { %919 = vmatprep.subr.bf16.mxu1 %v2667_v14  ;;  %v3121_v14 = vld [vmem:[%s4456_s3 + $0x1d0] ss:$8 sps:$4 sm:$0xff]  }
  0x7d   :  { %824 = vmatmul.mubr.bf16.gmra.mrb[28].mxu1 %v3608_v25 }
  0x7e   :  { %920 = vmatpush1.bf16.msra.mxu1 %v2666_v18  ;;  %2720 = vmatprep.mubr.msk.bf16.mxu1 %vm675_vm0, %v3362_v17  ;;  %v144_v17 = vld [vmem:[%s4454_s1 + $0x2b8] sm:$0xff]  ;;  %v3126_v18 = vld [vmem:[%s4456_s3 + $0x1e4] ss:$8 sps:$4 sm:$0xff]  }
  0x7f   :  { %921 = vmatprep.subr.bf16.mxu1 %v2675_v19  ;;  %v2699_v32 = vcombine.high %v140_v30, %v144_v17  ;;  %v2698_v38 = vcombine.low %v140_v30, %v144_v17  ;;  %v3124_v19 = vld [vmem:[%s4456_s3 + $0x1e0] ss:$8 sps:$4 sm:$0xff]   ;;  %v3081_v30 = vld [vmem:[%s4456_s3 + $0xd4] ss:$8 sps:$4 sm:$0xff]   ;;  %v3079_v17 = vld [vmem:[%s4456_s3 + $0xd0] ss:$8 sps:$4 sm:$0xff]  }
  0x82   :  { %922 = vmatpush1.bf16.msra.mxu1 %v2674_v22  ;;  %v3129_v22 = vld [vmem:[%s4456_s3 + $0x1f4] ss:$8 sps:$4 sm:$0xff]  }
  0x83   :  { %923 = vmatprep.subr.bf16.mxu1 %v2683_v23  ;;  %v3127_v23 = vld [vmem:[%s4456_s3 + $0x1f0] ss:$8 sps:$4 sm:$0xff]  }
  0x86   :  { %924 = vmatpush1.bf16.msra.mxu1 %v2682_v27  ;;  %v3132_v27 = vld [vmem:[%s4456_s3 + $0x204] ss:$8 sps:$4 sm:$0xff]  }
  0x87   :  { %925 = vmatprep.subr.bf16.mxu1 %v2691_v29  ;;  %v3073_v29 = vld [vmem:[%s4456_s3 + $0xc0] ss:$8 sps:$4 sm:$0xff]  }
  0x8a   :  { %926 = vmatpush1.bf16.msra.mxu1 %v2690_v31  ;;  %v3087_v31 = vld [vmem:[%s4456_s3 + $0xe4] ss:$8 sps:$4 sm:$0xff]  }
  0x8b   :  { %927 = vmatprep.subr.bf16.mxu1 %v2699_v32  ;;  %v3085_v32 = vld [vmem:[%s4456_s3 + $0xe0] ss:$8 sps:$4 sm:$0xff]  }
  0x8e   :  { %928 = vmatpush1.bf16.msra.mxu1 %v2698_v38  ;;  %v157_v38 = vsub.s32 0, %v3927_v37 }
  0x8f   :  { %929 = vmatprep.subr.bf16.mxu1 %v2707_v39  ;;  %v3933_v39 = vld [vmem:[%s4457_s2] sm:$0xff] }
  0x90   :  { %v3939_v41 = vrot.slane %v3933_v39, %v157_v38 }
  0x92   :  { %930 = vmatpush1.bf16.msra.mxu1 %v2706_v42  ;;  %v3944_v42 = vrot.slane %v3933_v39, %v161_v40 }
  0x93   :  { %1856 = vmatprep.subr.bf16.mxu1 %v3036_v43 }
  0x95   :  { %940 = vmatmul.mubr.bf16.vlgmr.msra.gmra.mrb[32].mxu1 %v3488_v28  ;;  %v3105_v28 = vld [vmem:[%s4456_s3 + $0x174] ss:$8 sps:$4 sm:$0xff]  }
  0x96   :  { %1857 = vmatpush1.bf16.msra.mxu1 %v3034_v46  ;;  %2721 = vmatprep.mubr.msk.bf16.mxu1 %vm675_vm0, %v3502_v34  ;;  %v3040_v34 = vld [vmem:[%s4456_s3 + $0x20] ss:$8 sps:$4 sm:$0xff]  }
  0x97   :  { %1858 = vmatprep.subr.bf16.mxu1 %v3039_v47  ;;  %1943 = vmatprep.subr.bf16.mxu0 %v3105_v28 }
  0x98   :  { %1944 = vmatpush1.bf16.msra.mxu0 %v3103_v57 }
  0x99   :  { %1945 = vmatprep.subr.bf16.mxu0 %v3108_v58 }
  0x9a   :  { %1859 = vmatpush1.bf16.msra.mxu1 %v3037_v51 }
  0x9b   :  { %1860 = vmatprep.subr.bf16.mxu1 %v3042_v53 }
  0x9c   :  { %1946 = vmatpush1.bf16.msra.mxu0 %v3106_v61 }
  0x9d   :  { %950 = vmatmul.mubr.bf16.gmra.mrb[36].mxu1 %v3537_v52  ;;  %v3111_v52 = vld [vmem:[%s4456_s3 + $0x194] ss:$8 sps:$4 sm:$0xff]  }
  0x9e   :  { %1861 = vmatpush1.bf16.msra.mxu1 %v3040_v34  ;;  %2722 = vmatprep.mubr.msk.bf16.mxu1 %vm675_vm0, %v3545_v56  ;;  %v3046_v56 = vld [vmem:[%s4456_s3 + $0x40] ss:$8 sps:$4 sm:$0xff]  }
  0x9f   :  { %1862 = vmatprep.subr.bf16.mxu1 %v3045_v55  ;;  %1947 = vmatprep.subr.bf16.mxu0 %v3111_v52 }
  0xa0   :  { %1948 = vmatpush1.bf16.msra.mxu0 %v3109_v63 }
  0xa1   :  { %1949 = vmatprep.subr.bf16.mxu0 %v3114_v0 }
  0xa2   :  { %1863 = vmatpush1.bf16.msra.mxu1 %v3043_v59 }
  0xa3   :  { %1864 = vmatprep.subr.bf16.mxu1 %v3048_v60 }
  0xa4   :  { %1950 = vmatpush1.bf16.msra.mxu0 %v3112_v3  ;;  %v173_v3 = vsub.s32 4, %v3927_v37 }
  0xa5   :  { %960 = vmatmul.mubr.bf16.gmra.mrb[40].mxu1 %v3574_v8  ;;  %v3117_v8 = vld [vmem:[%s4456_s3 + $0x1b4] ss:$8 sps:$4 sm:$0xff]  }
  0xa6   :  { %1865 = vmatpush1.bf16.msra.mxu1 %v3046_v56  ;;  %2723 = vmatprep.mubr.msk.bf16.mxu1 %vm675_vm0, %v3582_v12  ;;  %v3052_v12 = vld [vmem:[%s4456_s3 + $0x60] ss:$8 sps:$4 sm:$0xff]  }
  0xa7   :  { %1866 = vmatprep.subr.bf16.mxu1 %v3051_v62  ;;  %1951 = vmatprep.subr.bf16.mxu0 %v3117_v8 }
  0xa8   :  { %1952 = vmatpush1.bf16.msra.mxu0 %v3115_v5 }
  0xa9   :  { %1953 = vmatprep.subr.bf16.mxu0 %v3120_v6 }
  0xaa   :  { %1867 = vmatpush1.bf16.msra.mxu1 %v3049_v1 }
  0xab   :  { %1868 = vmatprep.subr.bf16.mxu1 %v3054_v2 }
  0xac   :  { %1954 = vmatpush1.bf16.msra.mxu0 %v3118_v10 }
  0xad   :  { %970 = vmatmul.mubr.bf16.gmra.mrb[44].mxu1 %v3608_v25  ;;  %v3123_v25 = vld [vmem:[%s4456_s3 + $0x1d4] ss:$8 sps:$4 sm:$0xff]  }
  0xae   :  { %1869 = vmatpush1.bf16.msra.mxu1 %v3052_v12  ;;  %1955 = vmatprep.subr.bf16.mxu0 %v3123_v25  ;;  %v177_v12 = vsub.s32 5, %v3927_v37  ;;  %v3959_v25 = vrot.slane %v3933_v39, %v173_v3 }
  0xaf   :  { %1870 = vmatprep.subr.bf16.mxu1 %v3057_v4 }
  0xb0   :  { %1956 = vmatpush1.bf16.msra.mxu0 %v3121_v14 }
  0xb1   :  { %1957 = vmatprep.subr.bf16.mxu0 %v3126_v18 }
  0xb2   :  { %1871 = vmatpush1.bf16.msra.mxu1 %v3055_v7 }
  0xb3   :  { %1872 = vmatprep.subr.bf16.mxu1 %v3060_v9 }
  0xb4   :  { %1958 = vmatpush1.bf16.msra.mxu0 %v3124_v19 }
  0xb5   :  { %1959 = vmatprep.subr.bf16.mxu0 %v3129_v22 }
  0xb6   :  { %1873 = vmatpush1.bf16.msra.mxu1 %v3058_v11 }
  0xb7   :  { %1874 = vmatprep.subr.bf16.mxu1 %v3063_v13 }
  0xb8   :  { %1960 = vmatpush1.bf16.msra.mxu0 %v3127_v23 }
  0xb9   :  { %2002 = vmatprep.subr.bf16.mxu0 %v3132_v27 }
  0xba   :  { %1875 = vmatpush1.bf16.msra.mxu1 %v3061_v15  ;;  %v3963_v15 = vrot.slane %v3933_v39, %v177_v12 }
  0xbb   :  { %1876 = vmatprep.subr.bf16.mxu1 %v3066_v16 }
  0xbe   :  { %1877 = vmatpush1.bf16.msra.mxu1 %v3064_v20 }
  0xbf   :  { %1878 = vmatprep.subr.bf16.mxu1 %v3069_v21 }
  0xc2   :  { %1879 = vmatpush1.bf16.msra.mxu1 %v3067_v24 }
  0xc3   :  { %1880 = vmatprep.subr.bf16.mxu1 %v3075_v26 }
  0xc6   :  { %1881 = vmatpush1.bf16.msra.mxu1 %v3073_v29 }
  0xc7   :  { %1882 = vmatprep.subr.bf16.mxu1 %v3081_v30 }
  0xca   :  { %1883 = vmatpush1.bf16.msra.mxu1 %v3079_v17 }
  0xcb   :  { %1884 = vmatprep.subr.bf16.mxu1 %v3087_v31 }
  0xce   :  { %1885 = vmatpush1.bf16.msra.mxu1 %v3085_v32 }
  0xcf   :  { %1886 = vmatprep.subr.bf16.mxu1 %v3093_v33 }
  0xd2   :  { %1887 = vmatpush1.bf16.msra.mxu1 %v3091_v35 }
 0x108   :  { %v722_v43 = vpop.f32.mrb[0].mxu1 }
 0x109   :  { %v723_v44 = vadd.f32 %v722_v43, %v3939_v41  ;;  %v724_v45 = vpop.f32.mrb[1].mxu1 }
 0x10a   :  { %v725_v46 = vadd.f32 %v724_v45, %v3944_v42  ;;  %v726_v47 = vpop.f32.mrb[2].mxu1  ;;  %v868_v20 = vpop.f32.mrb[0].mxu0 }
 0x10b   :  { %v980_v48 = vmax.f32 %v723_v44, 0.0  ;;  %v727_v49 = vadd.f32 %v726_v47, %v3939_v41  ;;  %v728_v50 = vpop.f32.mrb[3].mxu1  ;;  %v869_v22 = vadd.f32 %v868_v20, %v3959_v25  ;;  %v870_v23 = vpop.f32.mrb[1].mxu0 }
 0x10c   :  { %v729_v51 = vadd.f32 %v728_v50, %v3944_v42  ;;  %v981_v54 = vmax.f32 %v725_v46, 0.0  ;;  %v871_v26 = vadd.f32 %v870_v23, %v3963_v15  ;;  %v872_v27 = vpop.f32.mrb[2].mxu0 }
 0x10d   :  { %v988_v53 = vmax.f32 %v727_v49, 0.0  ;;  %v984_v17 = vmax.f32 %v869_v22, 0.0  ;;  %v873_v31 = vadd.f32 %v872_v27, %v3959_v25  ;;  %v874_v32 = vpop.f32.mrb[3].mxu0 }
 0x10e   :  { %v989_v28 = vmax.f32 %v729_v51, 0.0  ;;  %v985_v36 = vmax.f32 %v871_v26, 0.0  ;;  %v875_v43 = vadd.f32 %v874_v32, %v3963_v15 }
 0x10f   :  { %v1044_v34 = vpack.c.bf16 %v988_v53, %v980_v48  ;;  %v992_v46 = vmax.f32 %v873_v31, 0.0 }
 0x110   :  { %v1045_v55 = vpack.c.bf16 %v989_v28, %v981_v54  ;;  %v732_v57 = vpop.f32.mrb[4].mxu1  ;;  %v993_v50 = vmax.f32 %v875_v43, 0.0 }
 0x111   :  { %v733_v58 = vadd.f32 %v732_v57, %v3939_v41  ;;  %v734_v59 = vpop.f32.mrb[5].mxu1  ;;  %v3974_v54 = vpack.c.bf16 %v992_v46, %v984_v17 }
 0x112   :  { %1888 = vmatprep.mubr.bf16.mxu1 %v1045_v55  ;;  %v735_v60 = vadd.f32 %v734_v59, %v3944_v42  ;;  %v736_v61 = vpop.f32.mrb[6].mxu1  ;;  %v878_v55 = vpop.f32.mrb[4].mxu0 }
 0x113   :  { %1889 = vmatmul.mubr.bf16.vlgmr.msra.gmra.mrb[48].mxu1 %v1044_v34  ;;  %v996_v52 = vmax.f32 %v733_v58, 0.0  ;;  %v737_v56 = vadd.f32 %v736_v61, %v3939_v41  ;;  %v738_v62 = vpop.f32.mrb[7].mxu1  ;;  %v3976_v34 = vpack.c.bf16 %v993_v50, %v985_v36  ;;  %v879_v58 = vadd.f32 %v878_v55, %v3959_v25  ;;  %v880_v59 = vpop.f32.mrb[5].mxu0 }
 0x114   :  { %v997_v63 = vmax.f32 %v735_v60, 0.0  ;;  %v739_v0 = vadd.f32 %v738_v62, %v3944_v42  ;;  %v881_v61 = vadd.f32 %v880_v59, %v3963_v15 }
 0x115   :  { %v1004_v1 = vmax.f32 %v737_v56, 0.0  ;;  %v1000_v56 = vmax.f32 %v879_v58, 0.0 }
 0x116   :  { %v1005_v2 = vmax.f32 %v739_v0, 0.0 }
 0x117   :  { %v1052_v8 = vpack.c.bf16 %v1004_v1, %v996_v52 }
 0x118   :  { %v1053_v4 = vpack.c.bf16 %v1005_v2, %v997_v63  ;;  %v742_v5 = vpop.f32.mrb[8].mxu1 }
 0x119   :  { %v743_v6 = vadd.f32 %v742_v5, %v3939_v41  ;;  %v744_v7 = vpop.f32.mrb[9].mxu1 }
 0x11a   :  { %v745_v9 = vadd.f32 %v744_v7, %v3944_v42  ;;  %v746_v10 = vpop.f32.mrb[10].mxu1  ;;  %1898 = vmatprep.mubr.bf16.mxu1 %v1053_v4 }
 0x11b   :  { %v1012_v11 = vmax.f32 %v743_v6, 0.0  ;;  %v747_v13 = vadd.f32 %v746_v10, %v3939_v41  ;;  %v748_v14 = vpop.f32.mrb[11].mxu1  ;;  %1899 = vmatmul.mubr.bf16.gmra.mrb[52].mxu1 %v1052_v8 }
 0x11c   :  { %v1013_v16 = vmax.f32 %v745_v9, 0.0  ;;  %v749_v18 = vadd.f32 %v748_v14, %v3944_v42 }
 0x11d   :  { %v1020_v19 = vmax.f32 %v747_v13, 0.0  ;;  %v165_v13 = vsub.s32 2, %v3927_v37 }
 0x11e   :  { %v1021_v21 = vmax.f32 %v749_v18, 0.0  ;;  %v169_v18 = vsub.s32 3, %v3927_v37 }
 0x11f   :  { %v1060_v24 = vpack.c.bf16 %v1020_v19, %v1012_v11  ;;  %v3995_v22 = vrot.slane %v3933_v39, %v165_v13 }
 0x120   :  { %v1061_v29 = vpack.c.bf16 %v1021_v21, %v1013_v16  ;;  %v752_v30 = vpop.f32.mrb[12].mxu1  ;;  %v4000_v26 = vrot.slane %v3933_v39, %v169_v18 }
 0x121   :  { %v753_v33 = vadd.f32 %v752_v30, %v3939_v41  ;;  %v754_v35 = vpop.f32.mrb[13].mxu1 }
 0x122   :  { %v755_v44 = vadd.f32 %v754_v35, %v3944_v42  ;;  %v756_v45 = vpop.f32.mrb[14].mxu1  ;;  %1908 = vmatprep.mubr.bf16.mxu1 %v1061_v29 }
 0x123   :  { %v1028_v47 = vmax.f32 %v753_v33, 0.0  ;;  %v757_v48 = vadd.f32 %v756_v45, %v3939_v41  ;;  %v758_v49 = vpop.f32.mrb[15].mxu1  ;;  %1909 = vmatmul.mubr.bf16.gmra.mrb[56].mxu1 %v1060_v24  ;;  %v882_v41 = vpop.f32.mrb[6].mxu0 }
 0x124   :  { %v1029_v51 = vmax.f32 %v755_v44, 0.0  ;;  %v759_v53 = vadd.f32 %v758_v49, %v3944_v42  ;;  %v883_v62 = vadd.f32 %v882_v41, %v3959_v25  ;;  %v884_v63 = vpop.f32.mrb[7].mxu0  ;;  %v1001_v42 = vmax.f32 %v881_v61, 0.0  ;;  %v3130_v61 = vld [vmem:[%s4456_s3 + $0x200] ss:$8 sps:$4 sm:$0xff]  }
 0x125   :  { %v1036_v28 = vmax.f32 %v757_v48, 0.0  ;;  %v885_v0 = vadd.f32 %v884_v63, %v3963_v15  ;;  %v888_v12 = vpop.f32.mrb[8].mxu0 }
 0x126   :  { %v1037_v57 = vmax.f32 %v759_v53, 0.0  ;;  %v1008_v1 = vmax.f32 %v883_v62, 0.0  ;;  %v889_v4 = vadd.f32 %v888_v12, %v3959_v25  ;;  %v890_v5 = vpop.f32.mrb[9].mxu0  ;;  %v3133_v12 = vld [vmem:[%s4456_s3 + $0x210] ss:$8 sps:$4 sm:$0xff]  }
 0x127   :  { %v1068_v60 = vpack.c.bf16 %v1036_v28, %v1028_v47  ;;  %v1009_v2 = vmax.f32 %v885_v0, 0.0  ;;  %v891_v6 = vadd.f32 %v890_v5, %v3963_v15  ;;  %v892_v7 = vpop.f32.mrb[10].mxu0 }
 0x128   :  { %v1069_v52 = vpack.c.bf16 %v1037_v57, %v1029_v51  ;;  %v3982_v3 = vpack.c.bf16 %v1008_v1, %v1000_v56  ;;  %v1016_v9 = vmax.f32 %v889_v4, 0.0  ;;  %v893_v10 = vadd.f32 %v892_v7, %v3959_v25  ;;  %v894_v11 = vpop.f32.mrb[11].mxu0 }
 0x129   :  { %v3984_v8 = vpack.c.bf16 %v1009_v2, %v1001_v42  ;;  %v1017_v14 = vmax.f32 %v891_v6, 0.0  ;;  %v895_v16 = vadd.f32 %v894_v11, %v3963_v15  ;;  %v898_v24 = vpop.f32.mrb[12].mxu0  ;;  %v3138_v6 = vld [vmem:[%s4456_s3 + $0x224] ss:$8 sps:$4 sm:$0xff]   ;;  %v3136_v11 = vld [vmem:[%s4456_s3 + $0x220] ss:$8 sps:$4 sm:$0xff]  }
 0x12a   :  { %1918 = vmatprep.mubr.bf16.mxu1 %v1069_v52  ;;  %v1024_v19 = vmax.f32 %v893_v10, 0.0  ;;  %v899_v27 = vadd.f32 %v898_v24, %v3959_v25  ;;  %v900_v29 = vpop.f32.mrb[13].mxu0  ;;  %v3135_v52 = vld [vmem:[%s4456_s3 + $0x214] ss:$8 sps:$4 sm:$0xff]  }
 0x12b   :  { %1919 = vmatmul.mubr.bf16.gmra.mrb[60].mxu1 %v1068_v60  ;;  %v1025_v20 = vmax.f32 %v895_v16, 0.0  ;;  %v901_v30 = vadd.f32 %v900_v29, %v3963_v15  ;;  %v902_v17 = vpop.f32.mrb[14].mxu0  ;;  %v3141_v16 = vld [vmem:[%s4456_s3 + $0x234] ss:$8 sps:$4 sm:$0xff]  }
 0x12c   :  { %v3992_v21 = vpack.c.bf16 %v1024_v19, %v1016_v9  ;;  %v1032_v32 = vmax.f32 %v899_v27, 0.0  ;;  %v903_v33 = vadd.f32 %v902_v17, %v3959_v25  ;;  %v904_v35 = vpop.f32.mrb[15].mxu0  ;;  %v3139_v17 = vld [vmem:[%s4456_s3 + $0x230] ss:$8 sps:$4 sm:$0xff]  }
 0x12d   :  { %v3997_v23 = vpack.c.bf16 %v1025_v20, %v1017_v14  ;;  %v1033_v44 = vmax.f32 %v901_v30, 0.0  ;;  %v905_v45 = vadd.f32 %v904_v35, %v3963_v15 }
 0x12e   :  { %v1040_v48 = vmax.f32 %v903_v33, 0.0  ;;  %v3144_v33 = vld [vmem:[%s4456_s3 + $0x244] ss:$8 sps:$4 sm:$0xff]  }
 0x12f   :  { %v1041_v51 = vmax.f32 %v905_v45, 0.0 }
 0x130   :  { %v4010_v28 = vpack.c.bf16 %v1040_v48, %v1032_v32 }
 0x131   :  { %v4012_v57 = vpack.c.bf16 %v1041_v51, %v1033_v44  ;;  %v3142_v44 = vld [vmem:[%s4456_s3 + $0x240] ss:$8 sps:$4 sm:$0xff]  }
 0x138   :  { %v795_v31 = vpop.f32.mrb[16].mxu1 }
 0x139   :  { %v796_v36 = vadd.f32 %v795_v31, %v3995_v22  ;;  %v797_v43 = vpop.f32.mrb[17].mxu1 }
 0x13a   :  { %v798_v46 = vadd.f32 %v797_v43, %v4000_v26  ;;  %v799_v47 = vpop.f32.mrb[18].mxu1 }
 0x13b   :  { %v800_v49 = vadd.f32 %v799_v47, %v3995_v22  ;;  %v801_v50 = vpop.f32.mrb[19].mxu1  ;;  %v982_v25 = vmax.f32 %v796_v36, 0.0  ;;  %v3147_v47 = vld [vmem:[%s4456_s3 + $0x254] ss:$8 sps:$4 sm:$0xff]  }
 0x13c   :  { %v802_v53 = vadd.f32 %v801_v50, %v4000_v26  ;;  %v983_v58 = vmax.f32 %v798_v46, 0.0 }
 0x13d   :  { %v990_v55 = vmax.f32 %v800_v49, 0.0 }
 0x13e   :  { %v991_v59 = vmax.f32 %v802_v53, 0.0 }
 0x13f   :  { %v1046_v60 = vpack.c.bf16 %v990_v55, %v982_v25 }
 0x140   :  { %v1047_v15 = vpack.c.bf16 %v991_v59, %v983_v58  ;;  %v805_v41 = vpop.f32.mrb[20].mxu1  ;;  %v3145_v58 = vld [vmem:[%s4456_s3 + $0x250] ss:$8 sps:$4 sm:$0xff]  }
 0x141   :  { %v806_v56 = vadd.f32 %v805_v41, %v3995_v22  ;;  %v807_v62 = vpop.f32.mrb[21].mxu1 }
 0x142   :  { %1961 = vmatprep.mubr.bf16.mxu0 %v1047_v15  ;;  %v808_v63 = vadd.f32 %v807_v62, %v4000_v26  ;;  %v809_v42 = vpop.f32.mrb[22].mxu1  ;;  %v3150_v15 = vld [vmem:[%s4456_s3 + $0x264] ss:$8 sps:$4 sm:$0xff]   ;;  %v3153_v62 = vld [vmem:[%s4456_s3 + $0x274] ss:$8 sps:$4 sm:$0xff]  }
 0x143   :  { %1962 = vmatmul.mubr.bf16.vlgmr.msra.gmra.mrb[16].mxu0 %v1046_v60  ;;  %v998_v0 = vmax.f32 %v806_v56, 0.0  ;;  %v810_v1 = vadd.f32 %v809_v42, %v3995_v22  ;;  %v811_v2 = vpop.f32.mrb[23].mxu1  ;;  %v3154_v42 = vld [vmem:[%s4456_s3 + $0x280] ss:$8 sps:$4 sm:$0xff]  }
 0x144   :  { %2003 = vmatpush1.bf16.msra.mxu0 %v3130_v61  ;;  %v999_v4 = vmax.f32 %v808_v63, 0.0  ;;  %v812_v5 = vadd.f32 %v811_v2, %v4000_v26  ;;  %v3156_v63 = vld [vmem:[%s4456_s3 + $0x284] ss:$8 sps:$4 sm:$0xff]   ;;  %v185_v2 = vsub.s32 7, %v3927_v37 }
 0x145   :  { %2004 = vmatprep.subr.bf16.mxu0 %v3135_v52  ;;  %v1006_v7 = vmax.f32 %v810_v1, 0.0  ;;  %v181_v1 = vsub.s32 6, %v3927_v37 }
 0x146   :  { %v1007_v9 = vmax.f32 %v812_v5, 0.0  ;;  %v4093_v5 = vrot.slane %v3933_v39, %v185_v2  ;;  %v3180_v2 = vld [vmem:[%s4456_s3 + $0x304] ss:$8 sps:$4 sm:$0xff]  }
 0x147   :  { %v1054_v10 = vpack.c.bf16 %v1006_v7, %v998_v0  ;;  %v3159_v0 = vld [vmem:[%s4456_s3 + $0x294] ss:$8 sps:$4 sm:$0xff]  }
 0x148   :  { %2005 = vmatpush1.bf16.msra.mxu0 %v3133_v12  ;;  %v1055_v13 = vpack.c.bf16 %v1007_v9, %v999_v4  ;;  %v815_v14 = vpop.f32.mrb[24].mxu1  ;;  %v3162_v12 = vld [vmem:[%s4456_s3 + $0x2a4] ss:$8 sps:$4 sm:$0xff]   ;;  %v4090_v4 = vrot.slane %v3933_v39, %v181_v1  ;;  %v3165_v9 = vld [vmem:[%s4456_s3 + $0x2b4] ss:$8 sps:$4 sm:$0xff]  }
 0x149   :  { %2006 = vmatprep.subr.bf16.mxu0 %v3138_v6  ;;  %v816_v18 = vadd.f32 %v815_v14, %v3995_v22  ;;  %v817_v19 = vpop.f32.mrb[25].mxu1  ;;  %v3160_v6 = vld [vmem:[%s4456_s3 + $0x2a0] ss:$8 sps:$4 sm:$0xff]  }
 0x14a   :  { %v818_v20 = vadd.f32 %v817_v19, %v4000_v26  ;;  %v819_v24 = vpop.f32.mrb[26].mxu1  ;;  %1971 = vmatprep.mubr.bf16.mxu0 %v1055_v13  ;;  %v3163_v19 = vld [vmem:[%s4456_s3 + $0x2b0] ss:$8 sps:$4 sm:$0xff]  }
 0x14b   :  { %v1014_v27 = vmax.f32 %v816_v18, 0.0  ;;  %v820_v29 = vadd.f32 %v819_v24, %v3995_v22  ;;  %v821_v30 = vpop.f32.mrb[27].mxu1  ;;  %1972 = vmatmul.mubr.bf16.gmra.mrb[20].mxu0 %v1054_v10 }
 0x14c   :  { %2007 = vmatpush1.bf16.msra.mxu0 %v3136_v11  ;;  %v1015_v31 = vmax.f32 %v818_v20, 0.0  ;;  %v822_v32 = vadd.f32 %v821_v30, %v4000_v26 }
 0x14d   :  { %2008 = vmatprep.subr.bf16.mxu0 %v3141_v16  ;;  %v1022_v35 = vmax.f32 %v820_v29, 0.0 }
 0x14e   :  { %v1023_v36 = vmax.f32 %v822_v32, 0.0 }
 0x14f   :  { %v1062_v43 = vpack.c.bf16 %v1022_v35, %v1014_v27  ;;  %v3168_v27 = vld [vmem:[%s4456_s3 + $0x2c4] ss:$8 sps:$4 sm:$0xff]   ;;  %v3171_v35 = vld [vmem:[%s4456_s3 + $0x2d4] ss:$8 sps:$4 sm:$0xff]  }
 0x150   :  { %2009 = vmatpush1.bf16.msra.mxu0 %v3139_v17  ;;  %v1063_v45 = vpack.c.bf16 %v1023_v36, %v1015_v31  ;;  %v825_v46 = vpop.f32.mrb[28].mxu1  ;;  %v3166_v31 = vld [vmem:[%s4456_s3 + $0x2c0] ss:$8 sps:$4 sm:$0xff]  }
 0x151   :  { %2010 = vmatprep.subr.bf16.mxu0 %v3144_v33  ;;  %v826_v48 = vadd.f32 %v825_v46, %v3995_v22  ;;  %v827_v49 = vpop.f32.mrb[29].mxu1 }
 0x152   :  { %v828_v50 = vadd.f32 %v827_v49, %v4000_v26  ;;  %v829_v51 = vpop.f32.mrb[30].mxu1  ;;  %1981 = vmatprep.mubr.bf16.mxu0 %v1063_v45  ;;  %v3169_v49 = vld [vmem:[%s4456_s3 + $0x2d0] ss:$8 sps:$4 sm:$0xff]  }
 0x153   :  { %v1030_v53 = vmax.f32 %v826_v48, 0.0  ;;  %v830_v25 = vadd.f32 %v829_v51, %v3995_v22  ;;  %v831_v55 = vpop.f32.mrb[31].mxu1  ;;  %1982 = vmatmul.mubr.bf16.gmra.mrb[24].mxu0 %v1062_v43  ;;  %v3148_v22 = vld [vmem:[%s4456_s3 + $0x260] ss:$8 sps:$4 sm:$0xff]  }
 0x154   :  { %2011 = vmatpush1.bf16.msra.mxu0 %v3142_v44  ;;  %v1031_v59 = vmax.f32 %v828_v50, 0.0  ;;  %v832_v60 = vadd.f32 %v831_v55, %v4000_v26  ;;  %v3151_v26 = vld [vmem:[%s4456_s3 + $0x270] ss:$8 sps:$4 sm:$0xff]  }
 0x155   :  { %2012 = vmatprep.subr.bf16.mxu0 %v3147_v47  ;;  %v1038_v61 = vmax.f32 %v830_v25, 0.0 }
 0x156   :  { %v1039_v41 = vmax.f32 %v832_v60, 0.0 }
 0x157   :  { %v1070_v52 = vpack.c.bf16 %v1038_v61, %v1030_v53  ;;  %v3174_v53 = vld [vmem:[%s4456_s3 + $0x2e4] ss:$8 sps:$4 sm:$0xff]   ;;  %v3177_v61 = vld [vmem:[%s4456_s3 + $0x2f4] ss:$8 sps:$4 sm:$0xff]  }
 0x158   :  { %2013 = vmatpush1.bf16.msra.mxu0 %v3145_v58  ;;  %v1071_v56 = vpack.c.bf16 %v1039_v41, %v1031_v59  ;;  %v3172_v59 = vld [vmem:[%s4456_s3 + $0x2e0] ss:$8 sps:$4 sm:$0xff]  }
 0x159   :  { %2014 = vmatprep.subr.bf16.mxu0 %v3150_v15 }
 0x15a   :  { %1991 = vmatprep.mubr.bf16.mxu0 %v1071_v56 }
 0x15b   :  { %1992 = vmatmul.mubr.bf16.gmra.mrb[28].mxu0 %v1070_v52 }
 0x15c   :  { %2015 = vmatpush1.bf16.msra.mxu0 %v3148_v22  ;;  %2034 = vmatprep.mubr.bf16.mxu0 %v3976_v34  ;;  %v3157_v34 = vld [vmem:[%s4456_s3 + $0x290] ss:$8 sps:$4 sm:$0xff]  }
 0x15d   :  { %2016 = vmatprep.subr.bf16.mxu0 %v3153_v62 }
 0x160   :  { %2017 = vmatpush1.bf16.msra.mxu0 %v3151_v26 }
 0x161   :  { %2018 = vmatprep.subr.bf16.mxu0 %v3156_v63 }
 0x164   :  { %2019 = vmatpush1.bf16.msra.mxu0 %v3154_v42  ;;  %v3175_v42 = vld [vmem:[%s4456_s3 + $0x2f0] ss:$8 sps:$4 sm:$0xff]  }
 0x165   :  { %2020 = vmatprep.subr.bf16.mxu0 %v3159_v0 }
 0x168   :  { %2021 = vmatpush1.bf16.msra.mxu0 %v3157_v34  ;;  %v941_v7 = vpop.f32.mrb[32].mxu1 }
 0x169   :  { %2022 = vmatprep.subr.bf16.mxu0 %v3162_v12  ;;  %v942_v10 = vadd.f32 %v941_v7, %v4090_v4  ;;  %v943_v11 = vpop.f32.mrb[33].mxu1  ;;  %v3178_v7 = vld [vmem:[%s4456_s3 + $0x300] ss:$8 sps:$4 sm:$0xff]  }
 0x16a   :  { %v944_v13 = vadd.f32 %v943_v11, %v4093_v5  ;;  %v945_v14 = vpop.f32.mrb[34].mxu1  ;;  %v3183_v11 = vld [vmem:[%s4456_s3 + $0x314] ss:$8 sps:$4 sm:$0xff]  }
 0x16b   :  { %v986_v16 = vmax.f32 %v942_v10, 0.0  ;;  %v946_v39 = vadd.f32 %v945_v14, %v4090_v4  ;;  %v947_v18 = vpop.f32.mrb[35].mxu1 }
 0x16c   :  { %2023 = vmatpush1.bf16.msra.mxu0 %v3160_v6  ;;  %v987_v20 = vmax.f32 %v944_v13, 0.0  ;;  %v948_v24 = vadd.f32 %v947_v18, %v4093_v5 }
 0x16d   :  { %2024 = vmatprep.subr.bf16.mxu0 %v3165_v9  ;;  %v994_v29 = vmax.f32 %v946_v39, 0.0 }
 0x16e   :  { %v995_v30 = vmax.f32 %v948_v24, 0.0 }
 0x16f   :  { %v4111_v17 = vpack.c.bf16 %v994_v29, %v986_v16  ;;  %v3181_v16 = vld [vmem:[%s4456_s3 + $0x310] ss:$8 sps:$4 sm:$0xff]  }
 0x170   :  { %2025 = vmatpush1.bf16.msra.mxu0 %v3163_v19  ;;  %v4116_v32 = vpack.c.bf16 %v995_v30, %v987_v20  ;;  %v951_v33 = vpop.f32.mrb[36].mxu1  ;;  %v3186_v19 = vld [vmem:[%s4456_s3 + $0x324] ss:$8 sps:$4 sm:$0xff]  }
 0x171   :  { %2026 = vmatprep.subr.bf16.mxu0 %v3168_v27  ;;  %v952_v36 = vadd.f32 %v951_v33, %v4090_v4  ;;  %v953_v43 = vpop.f32.mrb[37].mxu1  ;;  %v3227_v33 = vld [vmem:[%s4458_s5] sm:$0xff]  }
 0x172   :  { %v954_v44 = vadd.f32 %v953_v43, %v4093_v5  ;;  %v955_v45 = vpop.f32.mrb[38].mxu1  ;;  %v3189_v43 = vld [vmem:[%s4456_s3 + $0x334] ss:$8 sps:$4 sm:$0xff]  }
 0x173   :  { %v1002_v46 = vmax.f32 %v952_v36, 0.0  ;;  %v956_v47 = vadd.f32 %v955_v45, %v4090_v4  ;;  %v957_v48 = vpop.f32.mrb[39].mxu1  ;;  %v3229_v36 = vld [vmem:[%s4458_s5 + $0x8] sm:$0xff]   ;;  %v3230_v45 = vld [vmem:[%s4458_s5 + $0x50] sm:$0xff]  }
 0x174   :  { %2027 = vmatpush1.bf16.msra.mxu0 %v3166_v31  ;;  %v1003_v50 = vmax.f32 %v954_v44, 0.0  ;;  %v958_v51 = vadd.f32 %v957_v48, %v4093_v5  ;;  %v3226_v31 = vld [vmem:[%s4458_s5 + $0x40] sm:$0xff]   ;;  %v3232_v48 = vld [vmem:[%s4458_s5 + $0x58] sm:$0xff]  }
 0x175   :  { %2028 = vmatprep.subr.bf16.mxu0 %v3171_v35  ;;  %v1010_v25 = vmax.f32 %v956_v47, 0.0  ;;  %2878 = vmatprep.subr.bf16.mxu1 %v3226_v31  ;;  %v3231_v47 = vld [vmem:[%s4458_s5 + $0x10] sm:$0xff]   ;;  %v3240_v31 = vld [vmem:[%s4458_s5 + $0x78] sm:$0xff]  }
 0x176   :  { %v1011_v55 = vmax.f32 %v958_v51, 0.0  ;;  %2879 = vmatpush3.bf16.msra.mxu1 %v3227_v33  ;;  %v3234_v51 = vld [vmem:[%s4458_s5 + $0x60] sm:$0xff]  }
 0x177   :  { %v4131_v58 = vpack.c.bf16 %v1010_v25, %v1002_v46  ;;  %v3187_v46 = vld [vmem:[%s4456_s3 + $0x330] ss:$8 sps:$4 sm:$0xff]   ;;  %v3242_v33 = vld [vmem:[%s4459_s7] sm:$0xff]  }
 0x178   :  { %2029 = vmatpush1.bf16.msra.mxu0 %v3169_v49  ;;  %v4136_v60 = vpack.c.bf16 %v1011_v55, %v1003_v50  ;;  %v961_v15 = vpop.f32.mrb[40].mxu1  ;;  %v3192_v49 = vld [vmem:[%s4456_s3 + $0x344] ss:$8 sps:$4 sm:$0xff]   ;;  %v3233_v50 = vld [vmem:[%s4458_s5 + $0x18] sm:$0xff]  }
 0x179   :  { %2030 = vmatprep.subr.bf16.mxu0 %v3174_v53  ;;  %v962_v41 = vadd.f32 %v961_v15, %v4090_v4  ;;  %v963_v52 = vpop.f32.mrb[41].mxu1  ;;  %v3235_v53 = vld [vmem:[%s4458_s5 + $0x20] sm:$0xff]   ;;  %v3193_v25 = vld [vmem:[%s4456_s3 + $0x350] ss:$8 sps:$4 sm:$0xff]   ;;  %v3236_v55 = vld [vmem:[%s4458_s5 + $0x68] sm:$0xff]  }
 0x17a   :  { %v964_v22 = vadd.f32 %v963_v52, %v4093_v5  ;;  %v965_v56 = vpop.f32.mrb[42].mxu1  ;;  %v3201_v15 = vld [vmem:[%s4456_s3 + $0x374] ss:$8 sps:$4 sm:$0xff]   ;;  %v3202_v52 = vld [vmem:[%s4456_s3 + $0x380] ss:$8 sps:$4 sm:$0xff]  }
 0x17b   :  { %v1018_v62 = vmax.f32 %v962_v41, 0.0  ;;  %v966_v26 = vadd.f32 %v965_v56, %v4090_v4  ;;  %v967_v63 = vpop.f32.mrb[43].mxu1  ;;  %v3204_v41 = vld [vmem:[%s4456_s3 + $0x384] ss:$8 sps:$4 sm:$0xff]   ;;  %v3208_v56 = vld [vmem:[%s4456_s3 + $0x3a0] ss:$8 sps:$4 sm:$0xff]  }
 0x17c   :  { %2031 = vmatpush1.bf16.msra.mxu0 %v3172_v59  ;;  %v1019_v0 = vmax.f32 %v964_v22, 0.0  ;;  %v968_v1 = vadd.f32 %v967_v63, %v4093_v5  ;;  %v3237_v59 = vld [vmem:[%s4458_s5 + $0x28] sm:$0xff]  }
 0x17d   :  { %2032 = vmatprep.subr.bf16.mxu0 %v3177_v61  ;;  %v1026_v34 = vmax.f32 %v966_v26, 0.0  ;;  %v3199_v61 = vld [vmem:[%s4456_s3 + $0x370] ss:$8 sps:$4 sm:$0xff]   ;;  %v3210_v22 = vld [vmem:[%s4456_s3 + $0x3a4] ss:$8 sps:$4 sm:$0xff]  }
 0x17e   :  { %v1027_v12 = vmax.f32 %v968_v1, 0.0  ;;  %v3211_v26 = vld [vmem:[%s4456_s3 + $0x3b0] ss:$8 sps:$4 sm:$0xff]   ;;  %v3216_v63 = vld [vmem:[%s4456_s3 + $0x3c4] ss:$8 sps:$4 sm:$0xff]  }
 0x17f   :  { %v4151_v6 = vpack.c.bf16 %v1026_v34, %v1018_v62  ;;  %v3213_v62 = vld [vmem:[%s4456_s3 + $0x3b4] ss:$8 sps:$4 sm:$0xff]   ;;  %v3217_v1 = vld [vmem:[%s4456_s3 + $0x3d0] ss:$8 sps:$4 sm:$0xff]   ;;  %v3220_v34 = vld [vmem:[%s4456_s3 + $0x3e0] ss:$8 sps:$4 sm:$0xff]  }
 0x180   :  { %2033 = vmatpush1.bf16.msra.mxu0 %v3175_v42  ;;  %v4156_v9 = vpack.c.bf16 %v1027_v12, %v1019_v0  ;;  %v971_v10 = vpop.f32.mrb[44].mxu1  ;;  %v3214_v42 = vld [vmem:[%s4456_s3 + $0x3c0] ss:$8 sps:$4 sm:$0xff]   ;;  %v3219_v0 = vld [vmem:[%s4456_s3 + $0x3d4] ss:$8 sps:$4 sm:$0xff]  }
 0x181   :  { %2075 = vmatprep.subr.bf16.mxu0 %v3180_v2  ;;  %v972_v13 = vadd.f32 %v971_v10, %v4090_v4  ;;  %v973_v14 = vpop.f32.mrb[45].mxu1  ;;  %v3222_v2 = vld [vmem:[%s4456_s3 + $0x3e4] ss:$8 sps:$4 sm:$0xff]   ;;  %v3225_v12 = vld [vmem:[%s4456_s3 + $0x3f4] ss:$8 sps:$4 sm:$0xff]  }
 0x182   :  { %v974_v39 = vadd.f32 %v973_v14, %v4093_v5  ;;  %v975_v18 = vpop.f32.mrb[46].mxu1 }
 0x183   :  { %2035 = vmatmul.mubr.bf16.vlgmr.msra.gmra.mrb[16].mxu0 %v3974_v54  ;;  %v1034_v20 = vmax.f32 %v972_v13, 0.0  ;;  %v976_v24 = vadd.f32 %v975_v18, %v4090_v4  ;;  %v977_v27 = vpop.f32.mrb[47].mxu1  ;;  %v3184_v4 = vld [vmem:[%s4456_s3 + $0x320] ss:$8 sps:$4 sm:$0xff]  }
 0x184   :  { %2076 = vmatpush1.bf16.msra.mxu0 %v3178_v7  ;;  %2044 = vmatprep.mubr.bf16.mxu0 %v3984_v8  ;;  %v1035_v29 = vmax.f32 %v974_v39, 0.0  ;;  %v978_v30 = vadd.f32 %v977_v27, %v4093_v5  ;;  %v3228_v8 = vld [vmem:[%s4458_s5 + $0x48] sm:$0xff]   ;;  %v3223_v7 = vld [vmem:[%s4456_s3 + $0x3f0] ss:$8 sps:$4 sm:$0xff]  }
 0x185   :  { %2077 = vmatprep.subr.bf16.mxu0 %v3183_v11  ;;  %v1042_v54 = vmax.f32 %v976_v24, 0.0  ;;  %2880 = vmatprep.subr.bf16.mxu1 %v3228_v8  ;;  %v1204_v8 = vld [vmem:[%s4460_s4] sm:$0x3] }
 0x186   :  { %v1043_v35 = vmax.f32 %v978_v30, 0.0  ;;  %2881 = vmatpush3.bf16.msra.mxu1 %v3229_v36  ;;  %v3239_v30 = vld [vmem:[%s4458_s5 + $0x30] sm:$0xff]   ;;  %v4357_v36 = vrot.slane %v1204_v8, %v161_v40 }
 0x187   :  { %v4185_v5 = vpack.c.bf16 %v1042_v54, %v1034_v20  ;;  %2882 = vmatprep.subr.bf16.mxu1 %v3230_v45  ;;  %v3241_v54 = vld [vmem:[%s4458_s5 + $0x38] sm:$0xff]  }
 0x188   :  { %2078 = vmatpush1.bf16.msra.mxu0 %v3181_v16  ;;  %v4193_v44 = vpack.c.bf16 %v1043_v35, %v1035_v29  ;;  %v3238_v29 = vld [vmem:[%s4458_s5 + $0x70] sm:$0xff]  }
 0x189   :  { %2079 = vmatprep.subr.bf16.mxu0 %v3186_v19  ;;  %v4344_v35 = vld [vmem:[%s4459_s7 + $0x10] sm:$0xff]  }
 0x18a   :  { %2883 = vmatpush3.bf16.msra.mxu1 %v3231_v47 }
 0x18b   :  { %2045 = vmatmul.mubr.bf16.gmra.mrb[20].mxu0 %v3982_v3  ;;  %v3190_v3 = vld [vmem:[%s4456_s3 + $0x340] ss:$8 sps:$4 sm:$0xff]   ;;  %2884 = vmatprep.subr.bf16.mxu1 %v3232_v48 }
 0x18c   :  { %2080 = vmatpush1.bf16.msra.mxu0 %v3184_v4  ;;  %2054 = vmatprep.mubr.bf16.mxu0 %v3997_v23  ;;  %v3195_v23 = vld [vmem:[%s4456_s3 + $0x354] ss:$8 sps:$4 sm:$0xff]   ;;  %v3243_v4 = vld [vmem:[%s4459_s7 + $0x8] sm:$0xff]  }
 0x18d   :  { %2081 = vmatprep.subr.bf16.mxu0 %v3189_v43 }
 0x18e   :  { %2885 = vmatpush3.bf16.msra.mxu1 %v3233_v50 }
 0x18f   :  { %2886 = vmatprep.subr.bf16.mxu1 %v3234_v51 }
 0x190   :  { %2082 = vmatpush1.bf16.msra.mxu0 %v3187_v46 }
 0x191   :  { %2083 = vmatprep.subr.bf16.mxu0 %v3192_v49 }
 0x192   :  { %2887 = vmatpush3.bf16.msra.mxu1 %v3235_v53 }
 0x193   :  { %2055 = vmatmul.mubr.bf16.gmra.mrb[24].mxu0 %v3992_v21  ;;  %v3198_v21 = vld [vmem:[%s4456_s3 + $0x364] ss:$8 sps:$4 sm:$0xff]   ;;  %2888 = vmatprep.subr.bf16.mxu1 %v3236_v55 }
 0x194   :  { %2084 = vmatpush1.bf16.msra.mxu0 %v3190_v3  ;;  %2064 = vmatprep.mubr.bf16.mxu0 %v4012_v57  ;;  %v3196_v57 = vld [vmem:[%s4456_s3 + $0x360] ss:$8 sps:$4 sm:$0xff]  }
 0x195   :  { %2085 = vmatprep.subr.bf16.mxu0 %v3195_v23 }
 0x196   :  { %2889 = vmatpush3.bf16.msra.mxu1 %v3237_v59 }
 0x197   :  { %2890 = vmatprep.subr.bf16.mxu1 %v3238_v29 }
 0x198   :  { %2086 = vmatpush1.bf16.msra.mxu0 %v3193_v25 }
 0x199   :  { %2087 = vmatprep.subr.bf16.mxu0 %v3198_v21 }
 0x19a   :  { %2891 = vmatpush3.bf16.msra.mxu1 %v3239_v30 }
 0x19b   :  { %2065 = vmatmul.mubr.bf16.gmra.mrb[28].mxu0 %v4010_v28  ;;  %v3207_v28 = vld [vmem:[%s4456_s3 + $0x394] ss:$8 sps:$4 sm:$0xff]   ;;  %2892 = vmatprep.subr.bf16.mxu1 %v3240_v31 }
 0x19c   :  { %2088 = vmatpush1.bf16.msra.mxu0 %v3196_v57  ;;  %2107 = vmatprep.mubr.bf16.mxu0 %v4116_v32  ;;  %v3205_v32 = vld [vmem:[%s4456_s3 + $0x390] ss:$8 sps:$4 sm:$0xff]  }
 0x19d   :  { %2089 = vmatprep.subr.bf16.mxu0 %v3201_v15 }
 0x19e   :  { %2893 = vmatpush3.bf16.msra.mxu1 %v3241_v54 }
 0x19f   :  { %2954 = vmatprep.subr.bf16.mxu1 %v3242_v33 }
 0x1a0   :  { %2090 = vmatpush1.bf16.msra.mxu0 %v3199_v61 }
 0x1a1   :  { %2091 = vmatprep.subr.bf16.mxu0 %v3204_v41 }
 0x1a4   :  { %2092 = vmatpush1.bf16.msra.mxu0 %v3202_v52 }
 0x1a5   :  { %2093 = vmatprep.subr.bf16.mxu0 %v3207_v28 }
 0x1a8   :  { %2094 = vmatpush1.bf16.msra.mxu0 %v3205_v32 }
 0x1a9   :  { %2095 = vmatprep.subr.bf16.mxu0 %v3210_v22 }
 0x1ac   :  { %2096 = vmatpush1.bf16.msra.mxu0 %v3208_v56 }
 0x1ad   :  { %2097 = vmatprep.subr.bf16.mxu0 %v3213_v62 }
 0x1b0   :  { %2098 = vmatpush1.bf16.msra.mxu0 %v3211_v26 }
 0x1b1   :  { %2099 = vmatprep.subr.bf16.mxu0 %v3216_v63 }
 0x1b4   :  { %2100 = vmatpush1.bf16.msra.mxu0 %v3214_v42 }
 0x1b5   :  { %2101 = vmatprep.subr.bf16.mxu0 %v3219_v0 }
 0x1b8   :  { %2102 = vmatpush1.bf16.msra.mxu0 %v3217_v1 }
 0x1b9   :  { %2103 = vmatprep.subr.bf16.mxu0 %v3222_v2 }
 0x1bc   :  { %2104 = vmatpush1.bf16.msra.mxu0 %v3220_v34 }
 0x1bd   :  { %2105 = vmatprep.subr.bf16.mxu0 %v3225_v12 }
 0x1c0   :  { %2106 = vmatpush1.bf16.msra.mxu0 %v3223_v7 }
 0x1c1   :  { %2930 = vmatprep.subr.bf16.mxu0 %v3242_v33 }
 0x1c3   :  { %2108 = vmatmul.mubr.bf16.vlgmr.msra.gmra.mrb[16].mxu0 %v4111_v17 }
 0x1c4   :  { %2117 = vmatprep.mubr.bf16.mxu0 %v4136_v60  ;;  %2931 = vmatpush3.bf16.msra.mxu0 %v3242_v33 }
 0x1c5   :  { %2932 = vmatprep.subr.bf16.mxu0 %v3243_v4 }
 0x1c8   :  { %2933 = vmatpush3.bf16.msra.mxu0 %v3243_v4 }
 0x1c9   :  { %2934 = vmatprep.subr.bf16.mxu0 %v4344_v35 }
 0x1cb   :  { %2118 = vmatmul.mubr.bf16.gmra.mrb[20].mxu0 %v4131_v58 }
 0x1cc   :  { %2127 = vmatprep.mubr.bf16.mxu0 %v4156_v9  ;;  %2935 = vmatpush3.bf16.msra.mxu0 %v4344_v35 }
 0x1d3   :  { %2128 = vmatmul.mubr.bf16.gmra.mrb[24].mxu0 %v4151_v6 }
 0x1d4   :  { %2137 = vmatprep.mubr.bf16.mxu0 %v4193_v44 }
 0x1db   :  { %2138 = vmatmul.mubr.bf16.gmra.mrb[28].mxu0 %v4185_v5  ;;  %v4353_v5 = vrot.slane %v1204_v8, %v157_v38 }
 0x1e6   :  { %v1890_v10 = vpop.f32.mrb[48].mxu1 }
 0x1e7   :  { %v1892_v11 = vpop.f32.mrb[49].mxu1  ;;  %v1891_v43 = vadd.f32 %v1890_v10, %v4353_v5 }
 0x1e8   :  { %v1894_v13 = vpop.f32.mrb[50].mxu1  ;;  %v1893_v44 = vadd.f32 %v1892_v11, %v4357_v36 }
 0x1e9   :  { %v1896_v14 = vpop.f32.mrb[51].mxu1  ;;  %v1895_v46 = vadd.f32 %v1894_v13, %v4353_v5 }
 0x1ea   :  { %v1897_v49 = vadd.f32 %v1896_v14, %v4357_v36 }
 0x1ee   :  { %v1900_v16 = vpop.f32.mrb[52].mxu1 }
 0x1ef   :  { %v1902_v39 = vpop.f32.mrb[53].mxu1  ;;  %v1901_v55 = vadd.f32 %v1900_v16, %v4353_v5 }
 0x1f0   :  { %v1904_v18 = vpop.f32.mrb[54].mxu1  ;;  %v1903_v59 = vadd.f32 %v1902_v39, %v4357_v36 }
 0x1f1   :  { %v1906_v17 = vpop.f32.mrb[55].mxu1  ;;  %v1905_v61 = vadd.f32 %v1904_v18, %v4353_v5 }
 0x1f2   :  { %v1907_v28 = vadd.f32 %v1906_v17, %v4357_v36 }
 0x1f6   :  { %v4307_v19 = vpop.f32.mrb[56].mxu1 }
 0x1f7   :  { %v4309_v60 = vpop.f32.mrb[57].mxu1  ;;  %v1911_v2 = vadd.f32 %v4307_v19, %v4353_v5 }
 0x1f8   :  { %v4311_v58 = vpop.f32.mrb[58].mxu1  ;;  %v1913_v12 = vadd.f32 %v4309_v60, %v4357_v36 }
 0x1f9   :  { %v4313_v9 = vpop.f32.mrb[59].mxu1  ;;  %v1915_v11 = vadd.f32 %v4311_v58, %v4353_v5 }
 0x1fa   :  { %v1917_v16 = vadd.f32 %v4313_v9, %v4357_v36 }
 0x1fe   :  { %v4315_v6 = vpop.f32.mrb[60].mxu1 }
 0x1ff   :  { %v4317_v20 = vpop.f32.mrb[61].mxu1  ;;  %v1921_v54 = vadd.f32 %v4315_v6, %v4353_v5 }
 0x200   :  { %v4319_v24 = vpop.f32.mrb[62].mxu1  ;;  %v1923_v9 = vadd.f32 %v4317_v20, %v4357_v36 }
 0x201   :  { %v4321_v27 = vpop.f32.mrb[63].mxu1 }
 0x296   :  { %v2109_v45 = vpop.f32.mrb[16].mxu0 }
 0x297   :  { %v2971_v47 = vadd.f32 %v2109_v45, %v1891_v43  ;;  %v2111_v48 = vpop.f32.mrb[17].mxu0  ;;  %v1925_v43 = vadd.f32 %v4319_v24, %v4353_v5  ;;  %v3245_v24 = vld [vmem:[%s4459_s7 + $0x18] sm:$0xff]   ;;  %v3247_v5 = vld [vmem:[%s4459_s7 + $0x28] sm:$0xff]  }
 0x298   :  { %v2973_v3 = vadd.f32 %v2111_v48, %v1893_v44  ;;  %v2113_v50 = vpop.f32.mrb[18].mxu0  ;;  %2936 = vmatprep.subr.bf16.mxu0 %v3245_v24 }
 0x299   :  { %v2975_v23 = vadd.f32 %v2113_v50, %v1895_v46  ;;  %v2115_v38 = vpop.f32.mrb[19].mxu0  ;;  %v2148_v53 = vmax.f32 %v2971_v47, 0.0  ;;  %2937 = vmatpush3.bf16.msra.mxu0 %v3245_v24 }
 0x29a   :  { %v2977_v51 = vadd.f32 %v2115_v38, %v1897_v49  ;;  %v2149_v40 = vmax.f32 %v2973_v3, 0.0 }
 0x29b   :  { %v2150_v37 = vmax.f32 %v2975_v23, 0.0 }
 0x29c   :  { %v2151_v25 = vmax.f32 %v2977_v51, 0.0 }
 0x29d   :  { %v2164_v21 = vpack.c.bf16 %v2150_v37, %v2148_v53  ;;  %v3249_v53 = vld [vmem:[%s4459_s7 + $0x38] sm:$0xff]  }
 0x29e   :  { %v2165_v57 = vpack.c.bf16 %v2151_v25, %v2149_v40  ;;  %v2119_v15 = vpop.f32.mrb[20].mxu0  ;;  %v2852_v40 = vld [vmem:[%s4461_s6] ss:$0 sm:$0xff] }
 0x29f   :  { %v2979_v41 = vadd.f32 %v2119_v15, %v1901_v55  ;;  %v2121_v52 = vpop.f32.mrb[21].mxu0 }
 0x2a0   :  { %v2981_v32 = vadd.f32 %v2121_v52, %v1903_v59  ;;  %v2123_v22 = vpop.f32.mrb[22].mxu0  ;;  %2339 = vmatprep.mubr.bf16.mxu1 %v2165_v57 }
 0x2a1   :  { %v2983_v56 = vadd.f32 %v2123_v22, %v1905_v61  ;;  %v2125_v62 = vpop.f32.mrb[23].mxu0  ;;  %2340 = vmatmul.mubr.bf16.vlgmr.msra.gmra.mrb[64].mxu1 %v2164_v21  ;;  %v2152_v63 = vmax.f32 %v2979_v41, 0.0 }
 0x2a2   :  { %v2985_v26 = vadd.f32 %v2125_v62, %v1907_v28  ;;  %2962 = vmatpush3.bf16.msra.mxu1 %v3242_v33  ;;  %v2153_v0 = vmax.f32 %v2981_v32, 0.0 }
 0x2a3   :  { %v2154_v42 = vmax.f32 %v2983_v56, 0.0  ;;  %2955 = vmatprep.subr.bf16.mxu1 %v3243_v4 }
 0x2a4   :  { %v2155_v1 = vmax.f32 %v2985_v26, 0.0 }
 0x2a5   :  { %v2166_v34 = vpack.c.bf16 %v2154_v42, %v2152_v63 }
 0x2a6   :  { %v2167_v7 = vpack.c.bf16 %v2155_v1, %v2153_v0  ;;  %v2129_v10 = vpop.f32.mrb[24].mxu0  ;;  %2963 = vmatpush3.bf16.msra.mxu1 %v3243_v4 }
 0x2a7   :  { %v2987_v13 = vadd.f32 %v2129_v10, %v1911_v2  ;;  %v2131_v14 = vpop.f32.mrb[25].mxu0  ;;  %2956 = vmatprep.subr.bf16.mxu1 %v4344_v35 }
 0x2a8   :  { %v2989_v39 = vadd.f32 %v2131_v14, %v1913_v12  ;;  %v2133_v18 = vpop.f32.mrb[26].mxu0  ;;  %2347 = vmatprep.mubr.bf16.mxu1 %v2167_v7 }
 0x2a9   :  { %v2991_v17 = vadd.f32 %v2133_v18, %v1915_v11  ;;  %v2135_v19 = vpop.f32.mrb[27].mxu0  ;;  %2348 = vmatmul.mubr.bf16.gmra.mrb[68].mxu1 %v2166_v34  ;;  %v2156_v29 = vmax.f32 %v2987_v13, 0.0 }
 0x2aa   :  { %v2993_v60 = vadd.f32 %v2135_v19, %v1917_v16  ;;  %2964 = vmatpush3.bf16.msra.mxu1 %v4344_v35  ;;  %v2157_v31 = vmax.f32 %v2989_v39, 0.0  ;;  %v1927_v35 = vadd.f32 %v4321_v27, %v4357_v36  ;;  %v3246_v27 = vld [vmem:[%s4459_s7 + $0x20] sm:$0xff]   ;;  %v3248_v36 = vld [vmem:[%s4459_s7 + $0x30] sm:$0xff]  }
 0x2ab   :  { %v2158_v30 = vmax.f32 %v2991_v17, 0.0  ;;  %2957 = vmatprep.subr.bf16.mxu1 %v3245_v24  ;;  %2938 = vmatprep.subr.bf16.mxu0 %v3246_v27 }
 0x2ac   :  { %v2159_v58 = vmax.f32 %v2993_v60, 0.0  ;;  %2939 = vmatpush3.bf16.msra.mxu0 %v3246_v27 }
 0x2ad   :  { %v2168_v33 = vpack.c.bf16 %v2158_v30, %v2156_v29  ;;  %2940 = vmatprep.subr.bf16.mxu0 %v3247_v5 }
 0x2ae   :  { %v2169_v4 = vpack.c.bf16 %v2159_v58, %v2157_v31  ;;  %v2139_v8 = vpop.f32.mrb[28].mxu0  ;;  %2965 = vmatpush3.bf16.msra.mxu1 %v3245_v24 }
 0x2af   :  { %v2995_v44 = vadd.f32 %v2139_v8, %v1921_v54  ;;  %v2141_v45 = vpop.f32.mrb[29].mxu0  ;;  %2958 = vmatprep.subr.bf16.mxu1 %v3246_v27 }
 0x2b0   :  { %v2997_v46 = vadd.f32 %v2141_v45, %v1923_v9  ;;  %v2143_v47 = vpop.f32.mrb[30].mxu0  ;;  %2355 = vmatprep.mubr.bf16.mxu1 %v2169_v4  ;;  %2941 = vmatpush3.bf16.msra.mxu0 %v3247_v5 }
 0x2b1   :  { %v2999_v48 = vadd.f32 %v2143_v47, %v1925_v43  ;;  %v2145_v49 = vpop.f32.mrb[31].mxu0  ;;  %2356 = vmatmul.mubr.bf16.gmra.mrb[72].mxu1 %v2168_v33  ;;  %v2160_v3 = vmax.f32 %v2995_v44, 0.0  ;;  %2942 = vmatprep.subr.bf16.mxu0 %v3248_v36  ;;  %v2869_v44 = vld [vmem:[%s4462_s8] ss:$0 sm:$0xff] }
 0x2b2   :  { %v3001_v6 = vadd.f32 %v2145_v49, %v1927_v35  ;;  %v2161_v20 = vmax.f32 %v2997_v46, 0.0  ;;  %2966 = vmatpush3.bf16.msra.mxu1 %v3246_v27 }
 0x2b3   :  { %v2162_v50 = vmax.f32 %v2999_v48, 0.0  ;;  %2959 = vmatprep.subr.bf16.mxu1 %v3247_v5 }
 0x2b4   :  { %v2163_v23 = vmax.f32 %v3001_v6, 0.0  ;;  %2943 = vmatpush3.bf16.msra.mxu0 %v3248_v36 }
 0x2b5   :  { %v2170_v38 = vpack.c.bf16 %v2162_v50, %v2160_v3  ;;  %2944 = vmatprep.subr.bf16.mxu0 %v3249_v53 }
 0x2b6   :  { %v2171_v51 = vpack.c.bf16 %v2163_v23, %v2161_v20  ;;  %2967 = vmatpush3.bf16.msra.mxu1 %v3247_v5 }
 0x2b7   :  { %2960 = vmatprep.subr.bf16.mxu1 %v3248_v36 }
 0x2b8   :  { %2363 = vmatprep.mubr.bf16.mxu1 %v2171_v51  ;;  %2945 = vmatpush3.bf16.msra.mxu0 %v3249_v53 }
 0x2b9   :  { %2364 = vmatmul.mubr.bf16.gmra.mrb[76].mxu1 %v2170_v38 }
 0x2ba   :  { %2968 = vmatpush3.bf16.msra.mxu1 %v3248_v36 }
 0x2bb   :  { %2961 = vmatprep.subr.bf16.mxu1 %v3249_v53 }
 0x2be   :  { %2969 = vmatpush3.bf16.msra.mxu1 %v3249_v53 }
 0x374   :  { %v2894_v37 = vpop.f32.mrb[64].mxu1 }
 0x375   :  { %v2895_v25 = vpop.f32.mrb[65].mxu1 }
 0x376   :  { %v2896_v55 = vadd.f32 %v2895_v25, %v2894_v37  ;;  %v2897_v21 = vpop.f32.mrb[66].mxu1 }
 0x377   :  { %v2898_v59 = vpop.f32.mrb[67].mxu1 }
 0x378   :  { %v2342_v57 = vadd.f32 %v2896_v55, %v2852_v40  ;;  %v2899_v15 = vadd.f32 %v2898_v59, %v2897_v21 }
 0x37a   :  { %v2345_v61 = vadd.f32 %v2899_v15, %v2852_v40  ;;  %v2372_v41 = vmax.f32 %v2342_v57, 0.0 }
 0x37c   :  { %v2373_v52 = vmax.f32 %v2345_v61, 0.0  ;;  %v2900_v28 = vpop.f32.mrb[68].mxu1 }
 0x37d   :  { %v2901_v32 = vpop.f32.mrb[69].mxu1 }
 0x37e   :  { %v2902_v22 = vadd.f32 %v2901_v32, %v2900_v28  ;;  %v2903_v56 = vpop.f32.mrb[70].mxu1  ;;  %v2380_v62 = vpack.c.bf16 %v2373_v52, %v2372_v41 }
 0x37f   :  { %v2904_v26 = vpop.f32.mrb[71].mxu1 }
 0x380   :  { %v2350_v63 = vadd.f32 %v2902_v22, %v2852_v40  ;;  %v2905_v42 = vadd.f32 %v2904_v26, %v2903_v56  ;;  %2946 = vmatprep.mubr.bf16.mxu0 %v2380_v62 }
 0x382   :  { %v2353_v0 = vadd.f32 %v2905_v42, %v2852_v40  ;;  %v2374_v1 = vmax.f32 %v2350_v63, 0.0 }
 0x384   :  { %v2375_v2 = vmax.f32 %v2353_v0, 0.0  ;;  %v2906_v34 = vpop.f32.mrb[72].mxu1 }
 0x385   :  { %v2907_v12 = vpop.f32.mrb[73].mxu1 }
 0x386   :  { %v2381_v7 = vpack.c.bf16 %v2375_v2, %v2374_v1  ;;  %v2908_v10 = vadd.f32 %v2907_v12, %v2906_v34  ;;  %v2909_v11 = vpop.f32.mrb[74].mxu1 }
 0x387   :  { %v2910_v13 = vpop.f32.mrb[75].mxu1 }
 0x388   :  { %v2358_v14 = vadd.f32 %v2908_v10, %v2852_v40  ;;  %v2911_v16 = vadd.f32 %v2910_v13, %v2909_v11  ;;  %2947 = vmatmul.mubr.bf16.vlgmr.msra.gmra.mrb[32].mxu0 %v2381_v7 }
 0x38a   :  { %v2361_v39 = vadd.f32 %v2911_v16, %v2852_v40  ;;  %v2376_v18 = vmax.f32 %v2358_v14, 0.0 }
 0x38c   :  { %v2377_v17 = vmax.f32 %v2361_v39, 0.0  ;;  %v2912_v19 = vpop.f32.mrb[76].mxu1 }
 0x38d   :  { %v2913_v60 = vpop.f32.mrb[77].mxu1 }
 0x38e   :  { %v2914_v29 = vadd.f32 %v2913_v60, %v2912_v19  ;;  %v2915_v30 = vpop.f32.mrb[78].mxu1  ;;  %v2382_v31 = vpack.c.bf16 %v2377_v17, %v2376_v18 }
 0x38f   :  { %v2916_v58 = vpop.f32.mrb[79].mxu1 }
 0x390   :  { %v2366_v54 = vadd.f32 %v2914_v29, %v2852_v40  ;;  %v2917_v33 = vadd.f32 %v2916_v58, %v2915_v30  ;;  %2950 = vmatprep.mubr.bf16.mxu1 %v2382_v31 }
 0x392   :  { %v2369_v9 = vadd.f32 %v2917_v33, %v2852_v40  ;;  %v2378_v4 = vmax.f32 %v2366_v54, 0.0 }
 0x394   :  { %v2379_v8 = vmax.f32 %v2369_v9, 0.0 }
 0x396   :  { %v2383_v43 = vpack.c.bf16 %v2379_v8, %v2378_v4 }
 0x398   :  { %2951 = vmatmul.mubr.bf16.vlgmr.msra.gmra.mrb[80].mxu1 %v2383_v43 }
 0x45b   :  { %v2948_v45 = vpop.f32.mrb[32].mxu0 }
 0x45c   :  { %v2498_v35 = vadd.f32 %v2948_v45, %v2869_v44  ;;  %v2489_v46 = vpop.f32.mrb[33].mxu0 }
 0x45d   :  { %v2490_v47 = vadd.f32 %v2869_v44, %v2489_v46  ;;  %v2949_v48 = vpop.f32.mrb[34].mxu0 }
 0x45e   :  { %2524 = vmax.xlane.f32.xlu1 %v2498_v35  ;;  %v2492_v49 = vpop.f32.mrb[35].mxu0  ;;  %v2501_v6 = vadd.f32 %v2949_v48, %v2869_v44 }
 0x45f   :  { %2520 = vmax.xlane.f32.xlu0 %v2490_v47  ;;  %v2493_v3 = vadd.f32 %v2869_v44, %v2492_v49 }
 0x462   :  { %2526 = vmax.xlane.f32.xlu1 %v2501_v6 }
 0x463   :  { %2522 = vmax.xlane.f32.xlu0 %v2493_v3 }
 0x46b   :  { %v2952_v50 = vpop.f32.mrb[80].mxu1 }
 0x46c   :  { %v2505_v20 = vpop.f32.mrb[81].mxu1  ;;  %v2514_v27 = vadd.f32 %v2952_v50, %v2869_v44 }
 0x46d   :  { %v2506_v23 = vadd.f32 %v2869_v44, %v2505_v20  ;;  %v2953_v38 = vpop.f32.mrb[82].mxu1 }
 0x46e   :  { %v2508_v51 = vpop.f32.mrb[83].mxu1  ;;  %v2517_v5 = vadd.f32 %v2953_v38, %v2869_v44 }
 0x46f   :  { %v2509_v24 = vadd.f32 %v2869_v44, %v2508_v51  ;;  %2528 = vmax.xlane.f32.xlu0 %v2506_v23 }
 0x471   :  { %2530 = vmax.xlane.f32.xlu1 %v2509_v24 }
 0x473   :  { %2532 = vmax.xlane.f32.xlu0 %v2514_v27 }
 0x475   :  { %2534 = vmax.xlane.f32.xlu1 %v2517_v5 }
 0x4eb   :  { %v2525_v36 = vpop.xlane.xlu1 %2524 }
 0x4ec   :  { %v2538_v53 = vsub.f32 %v2498_v35, %v2525_v36  ;;  %v2521_v37 = vpop.xlane.xlu0 %2520 }
 0x4ed   :  { %v4406_v40 = vsub.f32 %v2490_v47, %v2521_v37 }
 0x4ee   :  { %v2548_v25 = vmul.f32 1.442695, %v2538_v53 }
 0x4ef   :  { %v2544_v55 = vmul.f32 1.442695, %v4406_v40  ;;  %v2527_v21 = vpop.xlane.xlu1 %2526 }
 0x4f0   :  { %3250 = vpow2.f32 %v2548_v25  ;;  %v4409_v59 = vsub.f32 %v2501_v6, %v2527_v21  ;;  %v2523_v57 = vpop.xlane.xlu0 %2522 }
 0x4f1   :  { %v4411_v15 = vsub.f32 %v2493_v3, %v2523_v57  ;;  %3252 = vpow2.f32 %v2544_v55 }
 0x4f2   :  { %v2550_v61 = vmul.f32 1.442695, %v4409_v59 }
 0x4f3   :  { %v2546_v41 = vmul.f32 1.442695, %v4411_v15 }
 0x4f4   :  { %3254 = vpow2.f32 %v2550_v61 }
 0x4f5   :  { %3256 = vpow2.f32 %v2546_v41 }
 0x4fa   :  { %v3251_v52 = vpop.eup %3250 }
 0x4fb   :  { %2564 = vadd.xlane.f32.xlu0 %v3251_v52  ;;  %v3253_v32 = vpop.eup %3252 }
 0x4fc   :  { %v2529_v28 = vpop.xlane.xlu0 %2528 }
 0x4fd   :  { %v4415_v22 = vsub.f32 %v2506_v23, %v2529_v28 }
 0x4fe   :  { %v3255_v56 = vpop.eup %3254  ;;  %v2531_v62 = vpop.xlane.xlu1 %2530 }
 0x4ff   :  { %v2552_v26 = vmul.f32 1.442695, %v4415_v22  ;;  %v4418_v63 = vsub.f32 %v2509_v24, %v2531_v62  ;;  %2566 = vadd.xlane.f32.xlu1 %v3255_v56  ;;  %2560 = vadd.xlane.f32.xlu0 %v3253_v32  ;;  %v3257_v2 = vpop.eup %3256 }
 0x500   :  { %v2533_v42 = vpop.xlane.xlu0 %2532 }
 0x501   :  { %3258 = vpow2.f32 %v2552_v26  ;;  %v2554_v0 = vmul.f32 1.442695, %v4418_v63  ;;  %v4421_v1 = vsub.f32 %v2514_v27, %v2533_v42 }
 0x502   :  { %v2535_v34 = vpop.xlane.xlu1 %2534 }
 0x503   :  { %3260 = vpow2.f32 %v2554_v0  ;;  %v2556_v12 = vmul.f32 1.442695, %v4421_v1  ;;  %v2543_v7 = vsub.f32 %v2517_v5, %v2535_v34  ;;  %2562 = vadd.xlane.f32.xlu1 %v3257_v2 }
 0x505   :  { %3262 = vpow2.f32 %v2556_v12  ;;  %v2558_v10 = vmul.f32 1.442695, %v2543_v7 }
 0x507   :  { %3264 = vpow2.f32 %v2558_v10 }
 0x50b   :  { %v3259_v11 = vpop.eup %3258 }
 0x50c   :  { %2568 = vadd.xlane.f32.xlu0 %v3259_v11 }
 0x50d   :  { %v3261_v13 = vpop.eup %3260 }
 0x50e   :  { %2570 = vadd.xlane.f32.xlu1 %v3261_v13 }
 0x50f   :  { %v3263_v14 = vpop.eup %3262 }
 0x510   :  { %2572 = vadd.xlane.f32.xlu0 %v3263_v14 }
 0x511   :  { %v3265_v16 = vpop.eup %3264 }
 0x512   :  { %2574 = vadd.xlane.f32.xlu1 %v3265_v16 }
 0x588   :  { %v2565_v39 = vpop.xlane.xlu0 %2564 }
 0x589   :  { %3266 = vlog2.f32 %v2565_v39 }
 0x58c   :  { %v2567_v18 = vpop.xlane.xlu1 %2566  ;;  %v2561_v17 = vpop.xlane.xlu0 %2560 }
 0x58d   :  { %3268 = vlog2.f32 %v2567_v18 }
 0x58e   :  { %3270 = vlog2.f32 %v2561_v17 }
 0x590   :  { %v2563_v19 = vpop.xlane.xlu1 %2562 }
 0x591   :  { %3272 = vlog2.f32 %v2563_v19 }
 0x593   :  { %v3267_v60 = vpop.eup %3266 }
 0x594   :  { %v2581_v29 = vmul.f32 0.6931472, %v3267_v60 }
 0x596   :  { %v2594_v30 = vsub.f32 %v2538_v53, %v2581_v29 }
 0x597   :  { %v3269_v31 = vpop.eup %3268 }
 0x598   :  { %v3271_v58 = vpop.eup %3270  ;;  %2602 = vst [vmem:[%s4463_s9 + $0x10] sm:$0xff] %v2594_v30  ;;  %v2583_v54 = vmul.f32 0.6931472, %v3269_v31 }
 0x599   :  { %v2577_v33 = vmul.f32 0.6931472, %v3271_v58  ;;  %v2569_v9 = vpop.xlane.xlu0 %2568 }
 0x59a   :  { %v2595_v4 = vsub.f32 %v4409_v59, %v2583_v54  ;;  %3274 = vlog2.f32 %v2569_v9 }
 0x59b   :  { %v3273_v8 = vpop.eup %3272  ;;  %v2592_v43 = vsub.f32 %v4406_v40, %v2577_v33  ;;  %v2571_v44 = vpop.xlane.xlu1 %2570 }
 0x59c   :  { %2603 = vst [vmem:[%s4463_s9 + $0x18] sm:$0xff] %v2595_v4  ;;  %v2579_v45 = vmul.f32 0.6931472, %v3273_v8  ;;  %3276 = vlog2.f32 %v2571_v44 }
 0x59d   :  { %2600 = vst [vmem:[%s4463_s9] sm:$0xff] %v2592_v43  ;;  %v2573_v35 = vpop.xlane.xlu0 %2572 }
 0x59e   :  { %v2593_v46 = vsub.f32 %v4411_v15, %v2579_v45  ;;  %3278 = vlog2.f32 %v2573_v35 }
 0x59f   :  { %v2575_v47 = vpop.xlane.xlu1 %2574 }
 0x5a0   :  { %2601 = vst [vmem:[%s4463_s9 + $0x8] sm:$0xff] %v2593_v46  ;;  %3280 = vlog2.f32 %v2575_v47 }
 0x5a4   :  { %v3275_v48 = vpop.eup %3274 }
 0x5a5   :  { %v2585_v49 = vmul.f32 0.6931472, %v3275_v48 }
 0x5a6   :  { %v3277_v6 = vpop.eup %3276 }
 0x5a7   :  { %v2596_v3 = vsub.f32 %v4415_v22, %v2585_v49  ;;  %v2587_v50 = vmul.f32 0.6931472, %v3277_v6 }
 0x5a8   :  { %v3279_v20 = vpop.eup %3278 }
 0x5a9   :  { %2604 = vst [vmem:[%s4463_s9 + $0x20] sm:$0xff] %v2596_v3  ;;  %v2597_v23 = vsub.f32 %v4418_v63, %v2587_v50  ;;  %v2589_v38 = vmul.f32 0.6931472, %v3279_v20 }
 0x5aa   :  { %v3281_v51 = vpop.eup %3280 }
 0x5ab   :  { %2605 = vst [vmem:[%s4463_s9 + $0x28] sm:$0xff] %v2597_v23  ;;  %v2598_v24 = vsub.f32 %v4421_v1, %v2589_v38  ;;  %v2591_v27 = vmul.f32 0.6931472, %v3281_v51 }
 0x5ad   :  { %2606 = vst [vmem:[%s4463_s9 + $0x30] sm:$0xff] %v2598_v24  ;;  %v2599_v5 = vsub.f32 %v2543_v7, %v2591_v27 }
 0x5af   :  { %2607 = vst [vmem:[%s4463_s9 + $0x38] sm:$0xff] %v2599_v5 }

</bundles_post_ra>
